<compile_context>
chip_gen: v6e
topology: v6e:2x2x1
jax: 0.10.0
libtpu: 0.0.40
codegen_flags: <defaults>
</compile_context>

<pallas_src>
import functools
import math

import jax
import jax.numpy as jnp
from jax import lax
from jax.experimental import pallas as pl
from jax.experimental.pallas import tpu as pltpu


# ----------------------------- in-kernel helpers ------------------------------

_INV_SQRT2 = 1.0 / math.sqrt(2.0)
# Abramowitz & Stegun 7.1.26 erf coefficients (max abs error 1.5e-7).
_EA = (0.254829592, -0.284496736, 1.421413741, -1.453152027, 1.061405429)
_EP = 0.3275911


def _gelu_exact(v):
    """nn.GELU() default (erf formulation); erf via A&S polynomial (<=1.5e-7)."""
    z = v * _INV_SQRT2
    a = jnp.abs(z)
    t = 1.0 / (1.0 + _EP * a)
    poly = ((((_EA[4] * t + _EA[3]) * t + _EA[2]) * t + _EA[1]) * t + _EA[0]) * t
    e = 1.0 - poly * jnp.exp(-(a * a))
    erf = jnp.where(z >= 0.0, e, -e)
    return 0.5 * v * (1.0 + erf)


def _mat_vpu(w_ref, b_ref, x):
    """(W @ x + b) as K unrolled VPU broadcast multiply-adds (exact f32).

    w_ref: Ref (K, M, 1); w_ref[k] is column k of W as an (M, 1) tile
    b_ref: Ref (M, 1)
    x:     (K, L) array  ->  returns (M, L) array
    """
    acc = w_ref[0] * x[0:1, :]
    for k in range(1, w_ref.shape[0]):
        acc = acc + w_ref[k] * x[k:k + 1, :]
    return acc + b_ref[...]


def _dwconv(x, taps_ref, b_ref, kh, kw, w_idx, h_idx, H, W):
    """Depthwise 'same' conv on a (C, H*W) tile (channels on sublanes).

    taps_ref: Ref (kh*kw, C, 1), per-channel taps in row-major (kh, kw) order
    b_ref:    Ref (C, 1) bias
    w_idx:    (1, H*W) int32 column index (w) of each flattened position
    h_idx:    (1, H*W) int32 row index (h) of each flattened position

    Each tap is a static lane roll (XLU) of the flattened image plus a single
    masked select for the edges; no zero-padded copies are materialized.
    """
    HW = x.shape[1]
    ph, pw = kh // 2, kw // 2
    acc = None
    t = 0
    for i in range(kh):
        di = i - ph
        for j in range(kw):
            dj = j - pw
            d = di * W + dj
            src = x if d == 0 else pltpu.roll(x, shift=(-d) % HW, axis=1)
            # zero out taps that fall outside the (H, W) image
            m = None
            if dj > 0:
                m = w_idx < (W - dj)
            elif dj < 0:
                m = w_idx >= (-dj)
            if di > 0:
                mh = h_idx < (H - di)
                m = mh if m is None else (m & mh)
            elif di < 0:
                mh = h_idx >= (-di)
                m = mh if m is None else (m & mh)
            if m is not None:
                src = jnp.where(m, src, 0.0)   # one select, no extra multiply
            term = src * taps_ref[t]
            acc = term if acc is None else acc + term
            t += 1
    return acc + b_ref[...]


# ----------------------------- fused kernel -----------------------------------

def repblock_kernel(x_ref, widx_ref, hidx_ref,
                    wc_ref, bc_ref, w1_ref, b1_ref, w2_ref, b2_ref,
                    w55_ref, b55_ref,
                    w17_ref, b17_ref, w71_ref, b71_ref,
                    w111_ref, b111_ref, w11_1_ref, b11_1_ref,
                    w121_ref, b121_ref, w21_1_ref, b21_1_ref,
                    o_ref, *, H, W):
    x = x_ref[0]                       # (C, HW)
    w_idx = widx_ref[...]              # (1, HW) int32
    h_idx = hidx_ref[...]              # (1, HW) int32

    # ---- 1x1 conv + GELU ----------------------------------------------------
    y = _gelu_exact(_mat_vpu(wc_ref, bc_ref, x))          # (C, HW)

    # ---- channel attention ---------------------------------------------------
    avg = jnp.mean(y, axis=1, keepdims=True)              # adaptive_avg_pool2d
    mx = jnp.max(y, axis=1, keepdims=True)                # adaptive_max_pool2d

    def mlp(v):
        h = jnp.maximum(_mat_vpu(w1_ref, b1_ref, v), 0.0)
        return jax.nn.sigmoid(_mat_vpu(w2_ref, b2_ref, h))

    att = mlp(avg) + mlp(mx)                              # (C, 1)
    inp = att * y                                         # channel_att_vec * inputs

    # ---- multi-branch depthwise convs (all VMEM/vreg resident) ---------------
    x_init = _dwconv(inp, w55_ref, b55_ref, 5, 5, w_idx, h_idx, H, W)
    xs = x_init
    br = _dwconv(x_init, w17_ref, b17_ref, 1, 7, w_idx, h_idx, H, W)
    br = _dwconv(br, w71_ref, b71_ref, 7, 1, w_idx, h_idx, H, W)
    xs = xs + br
    br = _dwconv(x_init, w111_ref, b111_ref, 1, 11, w_idx, h_idx, H, W)
    br = _dwconv(br, w11_1_ref, b11_1_ref, 11, 1, w_idx, h_idx, H, W)
    xs = xs + br
    br = _dwconv(x_init, w121_ref, b121_ref, 1, 21, w_idx, h_idx, H, W)
    br = _dwconv(br, w21_1_ref, b21_1_ref, 21, 1, w_idx, h_idx, H, W)
    xs = xs + br

    # ---- spatial attention gate + final 1x1 convs -----------------------------
    sp = _mat_vpu(wc_ref, bc_ref, xs)                     # spatial_att = conv(xs)
    out = sp * inp
    o_ref[0] = _mat_vpu(wc_ref, bc_ref, out)              # lane-dense store


# ----------------------------- wrapper -----------------------------------------

def _pw_cols(w):
    # torch (Cout, Cin, 1, 1) -> (Cin, Cout, 1): [k] is column k of W as (Cout, 1)
    return jnp.transpose(w[:, :, 0, 0], (1, 0))[:, :, None]


def _dw_taps(w):
    # torch depthwise (C, 1, kh, kw) -> (kh*kw, C, 1), taps in row-major order
    c, _, kh, kw = w.shape
    return jnp.transpose(w[:, 0, :, :], (1, 2, 0)).reshape(kh * kw, c)[:, :, None]


def _col(b):
    return b[:, None]


def _full_spec(a):
    """BlockSpec for a full (untiled) array replicated across the grid."""
    nd = a.ndim
    return pl.BlockSpec(a.shape, lambda b, _nd=nd: (0,) * _nd)


def repblock_forward(x_nchw, P):
    """Pallas implementation of RepBlock.forward. x_nchw: (N, C, H, W) f32."""
    N, C, H, W = x_nchw.shape
    HW = H * W
    # (C, HW) per image: NCHW -> (N, C, HW) is a free reshape, no transpose.
    x = x_nchw.reshape(N, C, HW).astype(jnp.float32)

    w_idx = (jnp.arange(HW, dtype=jnp.int32) % W)[None, :]
    h_idx = (jnp.arange(HW, dtype=jnp.int32) // W)[None, :]

    wc, bc = _pw_cols(P["conv_w"]), _col(P["conv_b"])
    w1, b1 = _pw_cols(P["fc1_w"]), _col(P["fc1_b"])
    w2, b2 = _pw_cols(P["fc2_w"]), _col(P["fc2_b"])

    dw_args = []
    for name in ("dw55", "dw17", "dw71", "dw111", "dw11_1", "dw121", "dw21_1"):
        dw_args.append(_dw_taps(P[name + "_w"]))
        dw_args.append(_col(P[name + "_b"]))

    consts = [w_idx, h_idx, wc, bc, w1, b1, w2, b2] + dw_args
    img_spec = pl.BlockSpec((1, C, HW), lambda b: (b, 0, 0))

    # TODO(synk): for much larger H*W, tile the lane (HW) axis and turn the
    # channel-attention mean/max into a grid-axis accumulator; at these shapes
    # a whole (C, HW) image is a few KiB and fits VMEM trivially (incl. v7x).
    out = pl.pallas_call(
        functools.partial(repblock_kernel, H=H, W=W),
        out_shape=jax.ShapeDtypeStruct((N, C, HW), jnp.float32),
        grid=(N,),
        in_specs=[img_spec] + [_full_spec(a) for a in consts],
        out_specs=img_spec,
        compiler_params=pltpu.CompilerParams(
            dimension_semantics=("parallel",)),   # batch images across TCs (v7x)
    )(x, *consts)

    return out.reshape(N, C, H, W)


# ----------------------------- reference (plain JAX, NCHW like PyTorch) --------

def ref_forward(x, P):
    dn = ("NCHW", "OIHW", "NCHW")
    prec = lax.Precision.HIGHEST

    def conv1x1(v, w, b):
        y = lax.conv_general_dilated(v, w, (1, 1), "VALID",
                                     dimension_numbers=dn, precision=prec)
        return y + b[None, :, None, None]

    def dconv(v, w, b, ph, pw):
        y = lax.conv_general_dilated(v, w, (1, 1), [(ph, ph), (pw, pw)],
                                     dimension_numbers=dn,
                                     feature_group_count=v.shape[1],
                                     precision=prec)
        return y + b[None, :, None, None]

    # exact erf GELU (nn.GELU default)
    y = jax.nn.gelu(conv1x1(x, P["conv_w"], P["conv_b"]), approximate=False)

    def mlp(p):
        h = jnp.maximum(conv1x1(p, P["fc1_w"], P["fc1_b"]), 0.0)
        return jax.nn.sigmoid(conv1x1(h, P["fc2_w"], P["fc2_b"]))

    avg = jnp.mean(y, axis=(2, 3), keepdims=True)
    mx = jnp.max(y, axis=(2, 3), keepdims=True)
    att = mlp(avg) + mlp(mx)
    inp = att * y

    x_init = dconv(inp, P["dw55_w"], P["dw55_b"], 2, 2)
    x_1 = dconv(x_init, P["dw17_w"], P["dw17_b"], 0, 3)
    x_1 = dconv(x_1, P["dw71_w"], P["dw71_b"], 3, 0)
    x_2 = dconv(x_init, P["dw111_w"], P["dw111_b"], 0, 5)
    x_2 = dconv(x_2, P["dw11_1_w"], P["dw11_1_b"], 5, 0)
    x_3 = dconv(x_init, P["dw121_w"], P["dw121_b"], 0, 10)
    x_3 = dconv(x_3, P["dw21_1_w"], P["dw21_1_b"], 10, 0)
    xs = x_1 + x_2 + x_3 + x_init

    sp = conv1x1(xs, P["conv_w"], P["conv_b"])
    out = sp * inp
    return conv1x1(out, P["conv_w"], P["conv_b"])


# ----------------------------- params -------------------------------------------

def init_params(key, C, Cint):
    ks = jax.random.split(key, 20)

    def nrm(k, shape, s=0.2):
        return (s * jax.random.normal(k, shape)).astype(jnp.float32)

    P = {
        "conv_w": nrm(ks[0], (C, C, 1, 1)), "conv_b": nrm(ks[1], (C,), 0.1),
        "fc1_w": nrm(ks[2], (Cint, C, 1, 1)), "fc1_b": nrm(ks[3], (Cint,), 0.1),
        "fc2_w": nrm(ks[4], (C, Cint, 1, 1)), "fc2_b": nrm(ks[5], (C,), 0.1),
        "dw55_w": nrm(ks[6], (C, 1, 5, 5)), "dw55_b": nrm(ks[7], (C,), 0.1),
        "dw17_w": nrm(ks[8], (C, 1, 1, 7)), "dw17_b": nrm(ks[9], (C,), 0.1),
        "dw71_w": nrm(ks[10], (C, 1, 7, 1)), "dw71_b": nrm(ks[11], (C,), 0.1),
        "dw111_w": nrm(ks[12], (C, 1, 1, 11)), "dw111_b": nrm(ks[13], (C,), 0.1),
        "dw11_1_w": nrm(ks[14], (C, 1, 11, 1)), "dw11_1_b": nrm(ks[15], (C,), 0.1),
        "dw121_w": nrm(ks[16], (C, 1, 1, 21)), "dw121_b": nrm(ks[17], (C,), 0.1),
        "dw21_1_w": nrm(ks[18], (C, 1, 21, 1)), "dw21_1_b": nrm(ks[19], (C,), 0.1),
    }
    return P


# ----------------------------- main ----------------------------------------------

if __name__ == "__main__":
    N, C, H, W = 2, 8, 16, 16
    Cint = C // 4  # channelAttention_reduce = 4

    key = jax.random.PRNGKey(0)
    kx, kp = jax.random.split(key)
    x = jax.random.normal(kx, (N, C, H, W), dtype=jnp.float32)
    P = init_params(kp, C, Cint)

    out = jax.block_until_ready(repblock_forward(x, P))
    ref = jax.block_until_ready(ref_forward(x, P))

    assert out.shape == (N, C, H, W), out.shape
    err = float(jnp.max(jnp.abs(out - ref)))
    if err > 1e-3:  # kernel is exact f32 VPU math; erf poly |err| <= 1.5e-7
        raise AssertionError(f"mismatch vs reference, max abs err = {err}")

    print("KERNEL_OK")
</pallas_src>

<mosaic_0001>
module attributes {stable_mosaic.version = 11 : i64} {
  func.func @repblock_kernel(%arg0: i32, %arg1: memref<1x8x256xf32, #tpu.memory_space<vmem>>, %arg2: memref<1x256xi32, #tpu.memory_space<vmem>>, %arg3: memref<1x256xi32, #tpu.memory_space<vmem>>, %arg4: memref<8x8x1xf32, #tpu.memory_space<vmem>>, %arg5: memref<8x1xf32, #tpu.memory_space<vmem>>, %arg6: memref<8x2x1xf32, #tpu.memory_space<vmem>>, %arg7: memref<2x1xf32, #tpu.memory_space<vmem>>, %arg8: memref<2x8x1xf32, #tpu.memory_space<vmem>>, %arg9: memref<8x1xf32, #tpu.memory_space<vmem>>, %arg10: memref<25x8x1xf32, #tpu.memory_space<vmem>>, %arg11: memref<8x1xf32, #tpu.memory_space<vmem>>, %arg12: memref<7x8x1xf32, #tpu.memory_space<vmem>>, %arg13: memref<8x1xf32, #tpu.memory_space<vmem>>, %arg14: memref<7x8x1xf32, #tpu.memory_space<vmem>>, %arg15: memref<8x1xf32, #tpu.memory_space<vmem>>, %arg16: memref<11x8x1xf32, #tpu.memory_space<vmem>>, %arg17: memref<8x1xf32, #tpu.memory_space<vmem>>, %arg18: memref<11x8x1xf32, #tpu.memory_space<vmem>>, %arg19: memref<8x1xf32, #tpu.memory_space<vmem>>, %arg20: memref<21x8x1xf32, #tpu.memory_space<vmem>>, %arg21: memref<8x1xf32, #tpu.memory_space<vmem>>, %arg22: memref<21x8x1xf32, #tpu.memory_space<vmem>>, %arg23: memref<8x1xf32, #tpu.memory_space<vmem>>, %arg24: memref<1x8x256xf32, #tpu.memory_space<vmem>>) attributes {dimension_semantics = [#tpu.dimension_semantics<parallel>], iteration_bounds = array<i64: 2>, scalar_prefetch = 0 : i64, scratch_operands = 0 : i64, tpu.core_type = #tpu.core_type<tc>, window_params = [{transform_indices = @transform_0, window_bounds = array<i64: 1, 8, 256>}, {pipeline_mode = #tpu.pipeline_mode<synchronous>, transform_indices = @transform_1, window_bounds = array<i64: 1, 256>}, {pipeline_mode = #tpu.pipeline_mode<synchronous>, transform_indices = @transform_2, window_bounds = array<i64: 1, 256>}, {pipeline_mode = #tpu.pipeline_mode<synchronous>, transform_indices = @transform_3, window_bounds = array<i64: 8, 8, 1>}, {pipeline_mode = #tpu.pipeline_mode<synchronous>, transform_indices = @transform_4, window_bounds = array<i64: 8, 1>}, {pipeline_mode = #tpu.pipeline_mode<synchronous>, transform_indices = @transform_5, window_bounds = array<i64: 8, 2, 1>}, {pipeline_mode = #tpu.pipeline_mode<synchronous>, transform_indices = @transform_6, window_bounds = array<i64: 2, 1>}, {pipeline_mode = #tpu.pipeline_mode<synchronous>, transform_indices = @transform_7, window_bounds = array<i64: 2, 8, 1>}, {pipeline_mode = #tpu.pipeline_mode<synchronous>, transform_indices = @transform_8, window_bounds = array<i64: 8, 1>}, {pipeline_mode = #tpu.pipeline_mode<synchronous>, transform_indices = @transform_9, window_bounds = array<i64: 25, 8, 1>}, {pipeline_mode = #tpu.pipeline_mode<synchronous>, transform_indices = @transform_10, window_bounds = array<i64: 8, 1>}, {pipeline_mode = #tpu.pipeline_mode<synchronous>, transform_indices = @transform_11, window_bounds = array<i64: 7, 8, 1>}, {pipeline_mode = #tpu.pipeline_mode<synchronous>, transform_indices = @transform_12, window_bounds = array<i64: 8, 1>}, {pipeline_mode = #tpu.pipeline_mode<synchronous>, transform_indices = @transform_13, window_bounds = array<i64: 7, 8, 1>}, {pipeline_mode = #tpu.pipeline_mode<synchronous>, transform_indices = @transform_14, window_bounds = array<i64: 8, 1>}, {pipeline_mode = #tpu.pipeline_mode<synchronous>, transform_indices = @transform_15, window_bounds = array<i64: 11, 8, 1>}, {pipeline_mode = #tpu.pipeline_mode<synchronous>, transform_indices = @transform_16, window_bounds = array<i64: 8, 1>}, {pipeline_mode = #tpu.pipeline_mode<synchronous>, transform_indices = @transform_17, window_bounds = array<i64: 11, 8, 1>}, {pipeline_mode = #tpu.pipeline_mode<synchronous>, transform_indices = @transform_18, window_bounds = array<i64: 8, 1>}, {pipeline_mode = #tpu.pipeline_mode<synchronous>, transform_indices = @transform_19, window_bounds = array<i64: 21, 8, 1>}, {pipeline_mode = #tpu.pipeline_mode<synchronous>, transform_indices = @transform_20, window_bounds = array<i64: 8, 1>}, {pipeline_mode = #tpu.pipeline_mode<synchronous>, transform_indices = @transform_21, window_bounds = array<i64: 21, 8, 1>}, {pipeline_mode = #tpu.pipeline_mode<synchronous>, transform_indices = @transform_22, window_bounds = array<i64: 8, 1>}, {transform_indices = @transform_23, window_bounds = array<i64: 1, 8, 256>}]} {
    %c0 = arith.constant 0 : index
    %c0_0 = arith.constant 0 : index
    %c0_1 = arith.constant 0 : index
    %0 = vector.load %arg1[%c0, %c0_0, %c0_1] : memref<1x8x256xf32, #tpu.memory_space<vmem>>, vector<1x8x256xf32>
    %1 = vector.shape_cast %0 : vector<1x8x256xf32> to vector<8x256xf32>
    %c0_2 = arith.constant 0 : index
    %c0_3 = arith.constant 0 : index
    %2 = vector.load %arg2[%c0_2, %c0_3] : memref<1x256xi32, #tpu.memory_space<vmem>>, vector<1x256xi32>
    %c0_4 = arith.constant 0 : index
    %c0_5 = arith.constant 0 : index
    %3 = vector.load %arg3[%c0_4, %c0_5] : memref<1x256xi32, #tpu.memory_space<vmem>>, vector<1x256xi32>
    %c0_6 = arith.constant 0 : index
    %c0_7 = arith.constant 0 : index
    %c0_8 = arith.constant 0 : index
    %4 = vector.load %arg4[%c0_6, %c0_7, %c0_8] : memref<8x8x1xf32, #tpu.memory_space<vmem>>, vector<1x8x1xf32>
    %5 = vector.shape_cast %4 : vector<1x8x1xf32> to vector<8x1xf32>
    %6 = vector.extract_strided_slice %1 {offsets = [0, 0], sizes = [1, 256], strides = [1, 1]} : vector<8x256xf32> to vector<1x256xf32>
    %7 = vector.broadcast %5 : vector<8x1xf32> to vector<8x256xf32>
    %8 = vector.broadcast %6 : vector<1x256xf32> to vector<8x256xf32>
    %9 = arith.mulf %7, %8 : vector<8x256xf32>
    %c1 = arith.constant 1 : index
    %c0_9 = arith.constant 0 : index
    %c0_10 = arith.constant 0 : index
    %10 = vector.load %arg4[%c1, %c0_9, %c0_10] : memref<8x8x1xf32, #tpu.memory_space<vmem>>, vector<1x8x1xf32>
    %11 = vector.shape_cast %10 : vector<1x8x1xf32> to vector<8x1xf32>
    %12 = vector.extract_strided_slice %1 {offsets = [1, 0], sizes = [1, 256], strides = [1, 1]} : vector<8x256xf32> to vector<1x256xf32>
    %13 = vector.broadcast %11 : vector<8x1xf32> to vector<8x256xf32>
    %14 = vector.broadcast %12 : vector<1x256xf32> to vector<8x256xf32>
    %15 = arith.mulf %13, %14 : vector<8x256xf32>
    %16 = arith.addf %9, %15 : vector<8x256xf32>
    %c2 = arith.constant 2 : index
    %c0_11 = arith.constant 0 : index
    %c0_12 = arith.constant 0 : index
    %17 = vector.load %arg4[%c2, %c0_11, %c0_12] : memref<8x8x1xf32, #tpu.memory_space<vmem>>, vector<1x8x1xf32>
    %18 = vector.shape_cast %17 : vector<1x8x1xf32> to vector<8x1xf32>
    %19 = vector.extract_strided_slice %1 {offsets = [2, 0], sizes = [1, 256], strides = [1, 1]} : vector<8x256xf32> to vector<1x256xf32>
    %20 = vector.broadcast %18 : vector<8x1xf32> to vector<8x256xf32>
    %21 = vector.broadcast %19 : vector<1x256xf32> to vector<8x256xf32>
    %22 = arith.mulf %20, %21 : vector<8x256xf32>
    %23 = arith.addf %16, %22 : vector<8x256xf32>
    %c3 = arith.constant 3 : index
    %c0_13 = arith.constant 0 : index
    %c0_14 = arith.constant 0 : index
    %24 = vector.load %arg4[%c3, %c0_13, %c0_14] : memref<8x8x1xf32, #tpu.memory_space<vmem>>, vector<1x8x1xf32>
    %25 = vector.shape_cast %24 : vector<1x8x1xf32> to vector<8x1xf32>
    %26 = vector.extract_strided_slice %1 {offsets = [3, 0], sizes = [1, 256], strides = [1, 1]} : vector<8x256xf32> to vector<1x256xf32>
    %27 = vector.broadcast %25 : vector<8x1xf32> to vector<8x256xf32>
    %28 = vector.broadcast %26 : vector<1x256xf32> to vector<8x256xf32>
    %29 = arith.mulf %27, %28 : vector<8x256xf32>
    %30 = arith.addf %23, %29 : vector<8x256xf32>
    %c4 = arith.constant 4 : index
    %c0_15 = arith.constant 0 : index
    %c0_16 = arith.constant 0 : index
    %31 = vector.load %arg4[%c4, %c0_15, %c0_16] : memref<8x8x1xf32, #tpu.memory_space<vmem>>, vector<1x8x1xf32>
    %32 = vector.shape_cast %31 : vector<1x8x1xf32> to vector<8x1xf32>
    %33 = vector.extract_strided_slice %1 {offsets = [4, 0], sizes = [1, 256], strides = [1, 1]} : vector<8x256xf32> to vector<1x256xf32>
    %34 = vector.broadcast %32 : vector<8x1xf32> to vector<8x256xf32>
    %35 = vector.broadcast %33 : vector<1x256xf32> to vector<8x256xf32>
    %36 = arith.mulf %34, %35 : vector<8x256xf32>
    %37 = arith.addf %30, %36 : vector<8x256xf32>
    %c5 = arith.constant 5 : index
    %c0_17 = arith.constant 0 : index
    %c0_18 = arith.constant 0 : index
    %38 = vector.load %arg4[%c5, %c0_17, %c0_18] : memref<8x8x1xf32, #tpu.memory_space<vmem>>, vector<1x8x1xf32>
    %39 = vector.shape_cast %38 : vector<1x8x1xf32> to vector<8x1xf32>
    %40 = vector.extract_strided_slice %1 {offsets = [5, 0], sizes = [1, 256], strides = [1, 1]} : vector<8x256xf32> to vector<1x256xf32>
    %41 = vector.broadcast %39 : vector<8x1xf32> to vector<8x256xf32>
    %42 = vector.broadcast %40 : vector<1x256xf32> to vector<8x256xf32>
    %43 = arith.mulf %41, %42 : vector<8x256xf32>
    %44 = arith.addf %37, %43 : vector<8x256xf32>
    %c6 = arith.constant 6 : index
    %c0_19 = arith.constant 0 : index
    %c0_20 = arith.constant 0 : index
    %45 = vector.load %arg4[%c6, %c0_19, %c0_20] : memref<8x8x1xf32, #tpu.memory_space<vmem>>, vector<1x8x1xf32>
    %46 = vector.shape_cast %45 : vector<1x8x1xf32> to vector<8x1xf32>
    %47 = vector.extract_strided_slice %1 {offsets = [6, 0], sizes = [1, 256], strides = [1, 1]} : vector<8x256xf32> to vector<1x256xf32>
    %48 = vector.broadcast %46 : vector<8x1xf32> to vector<8x256xf32>
    %49 = vector.broadcast %47 : vector<1x256xf32> to vector<8x256xf32>
    %50 = arith.mulf %48, %49 : vector<8x256xf32>
    %51 = arith.addf %44, %50 : vector<8x256xf32>
    %c7 = arith.constant 7 : index
    %c0_21 = arith.constant 0 : index
    %c0_22 = arith.constant 0 : index
    %52 = vector.load %arg4[%c7, %c0_21, %c0_22] : memref<8x8x1xf32, #tpu.memory_space<vmem>>, vector<1x8x1xf32>
    %53 = vector.shape_cast %52 : vector<1x8x1xf32> to vector<8x1xf32>
    %54 = vector.extract_strided_slice %1 {offsets = [7, 0], sizes = [1, 256], strides = [1, 1]} : vector<8x256xf32> to vector<1x256xf32>
    %55 = vector.broadcast %53 : vector<8x1xf32> to vector<8x256xf32>
    %56 = vector.broadcast %54 : vector<1x256xf32> to vector<8x256xf32>
    %57 = arith.mulf %55, %56 : vector<8x256xf32>
    %58 = arith.addf %51, %57 : vector<8x256xf32>
    %c0_23 = arith.constant 0 : index
    %c0_24 = arith.constant 0 : index
    %59 = vector.load %arg5[%c0_23, %c0_24] : memref<8x1xf32, #tpu.memory_space<vmem>>, vector<8x1xf32>
    %60 = vector.broadcast %59 : vector<8x1xf32> to vector<8x256xf32>
    %61 = arith.addf %58, %60 : vector<8x256xf32>
    %cst = arith.constant 0.707106769 : f32
    %62 = vector.broadcast %cst : f32 to vector<8x256xf32>
    %63 = arith.mulf %61, %62 : vector<8x256xf32>
    %64 = math.absf %63 : vector<8x256xf32>
    %cst_25 = arith.constant 0.327591091 : f32
    %65 = vector.broadcast %cst_25 : f32 to vector<8x256xf32>
    %66 = arith.mulf %65, %64 : vector<8x256xf32>
    %cst_26 = arith.constant 1.000000e+00 : f32
    %67 = vector.broadcast %cst_26 : f32 to vector<8x256xf32>
    %68 = arith.addf %67, %66 : vector<8x256xf32>
    %cst_27 = arith.constant 1.000000e+00 : f32
    %69 = vector.broadcast %cst_27 : f32 to vector<8x256xf32>
    %70 = arith.divf %69, %68 : vector<8x256xf32>
    %cst_28 = arith.constant 1.06140542 : f32
    %71 = vector.broadcast %cst_28 : f32 to vector<8x256xf32>
    %72 = arith.mulf %71, %70 : vector<8x256xf32>
    %cst_29 = arith.constant -1.45315206 : f32
    %73 = vector.broadcast %cst_29 : f32 to vector<8x256xf32>
    %74 = arith.addf %72, %73 : vector<8x256xf32>
    %75 = arith.mulf %74, %70 : vector<8x256xf32>
    %cst_30 = arith.constant 1.42141378 : f32
    %76 = vector.broadcast %cst_30 : f32 to vector<8x256xf32>
    %77 = arith.addf %75, %76 : vector<8x256xf32>
    %78 = arith.mulf %77, %70 : vector<8x256xf32>
    %cst_31 = arith.constant -0.284496725 : f32
    %79 = vector.broadcast %cst_31 : f32 to vector<8x256xf32>
    %80 = arith.addf %78, %79 : vector<8x256xf32>
    %81 = arith.mulf %80, %70 : vector<8x256xf32>
    %cst_32 = arith.constant 0.254829586 : f32
    %82 = vector.broadcast %cst_32 : f32 to vector<8x256xf32>
    %83 = arith.addf %81, %82 : vector<8x256xf32>
    %84 = arith.mulf %83, %70 : vector<8x256xf32>
    %85 = arith.mulf %64, %64 : vector<8x256xf32>
    %cst_33 = arith.constant 0.000000e+00 : f32
    %86 = vector.broadcast %cst_33 : f32 to vector<8x256xf32>
    %87 = arith.subf %86, %85 : vector<8x256xf32>
    %88 = math.exp %87 : vector<8x256xf32>
    %89 = arith.mulf %84, %88 : vector<8x256xf32>
    %cst_34 = arith.constant 1.000000e+00 : f32
    %90 = vector.broadcast %cst_34 : f32 to vector<8x256xf32>
    %91 = arith.subf %90, %89 : vector<8x256xf32>
    %cst_35 = arith.constant 0.000000e+00 : f32
    %92 = vector.broadcast %cst_35 : f32 to vector<8x256xf32>
    %93 = arith.cmpf oge, %63, %92 : vector<8x256xf32>
    %cst_36 = arith.constant 0.000000e+00 : f32
    %94 = vector.broadcast %cst_36 : f32 to vector<8x256xf32>
    %95 = arith.subf %94, %91 : vector<8x256xf32>
    %96 = arith.select %93, %91, %95 : vector<8x256xi1>, vector<8x256xf32>
    %cst_37 = arith.constant 5.000000e-01 : f32
    %97 = vector.broadcast %cst_37 : f32 to vector<8x256xf32>
    %98 = arith.mulf %97, %61 : vector<8x256xf32>
    %cst_38 = arith.constant 1.000000e+00 : f32
    %99 = vector.broadcast %cst_38 : f32 to vector<8x256xf32>
    %100 = arith.addf %99, %96 : vector<8x256xf32>
    %101 = arith.mulf %98, %100 : vector<8x256xf32>
    %cst_39 = arith.constant dense<0.000000e+00> : vector<8xf32>
    %102 = vector.multi_reduction <add>, %101, %cst_39 [1] : vector<8x256xf32> to vector<8xf32>
    %103 = vector.shape_cast %102 : vector<8xf32> to vector<8x1xf32>
    %cst_40 = arith.constant 2.560000e+02 : f32
    %104 = vector.broadcast %cst_40 : f32 to vector<8x1xf32>
    %105 = arith.divf %103, %104 : vector<8x1xf32>
    %cst_41 = arith.constant dense<0xFF800000> : vector<8xf32>
    %106 = vector.multi_reduction <maximumf>, %101, %cst_41 [1] : vector<8x256xf32> to vector<8xf32>
    %107 = vector.shape_cast %106 : vector<8xf32> to vector<8x1xf32>
    %c0_42 = arith.constant 0 : index
    %c0_43 = arith.constant 0 : index
    %c0_44 = arith.constant 0 : index
    %108 = vector.load %arg6[%c0_42, %c0_43, %c0_44] : memref<8x2x1xf32, #tpu.memory_space<vmem>>, vector<1x2x1xf32>
    %109 = vector.shape_cast %108 : vector<1x2x1xf32> to vector<2x1xf32>
    %110 = vector.extract_strided_slice %105 {offsets = [0, 0], sizes = [1, 1], strides = [1, 1]} : vector<8x1xf32> to vector<1x1xf32>
    %111 = vector.broadcast %110 : vector<1x1xf32> to vector<2x1xf32>
    %112 = arith.mulf %109, %111 : vector<2x1xf32>
    %c1_45 = arith.constant 1 : index
    %c0_46 = arith.constant 0 : index
    %c0_47 = arith.constant 0 : index
    %113 = vector.load %arg6[%c1_45, %c0_46, %c0_47] : memref<8x2x1xf32, #tpu.memory_space<vmem>>, vector<1x2x1xf32>
    %114 = vector.shape_cast %113 : vector<1x2x1xf32> to vector<2x1xf32>
    %115 = vector.extract_strided_slice %105 {offsets = [1, 0], sizes = [1, 1], strides = [1, 1]} : vector<8x1xf32> to vector<1x1xf32>
    %116 = vector.broadcast %115 : vector<1x1xf32> to vector<2x1xf32>
    %117 = arith.mulf %114, %116 : vector<2x1xf32>
    %118 = arith.addf %112, %117 : vector<2x1xf32>
    %c2_48 = arith.constant 2 : index
    %c0_49 = arith.constant 0 : index
    %c0_50 = arith.constant 0 : index
    %119 = vector.load %arg6[%c2_48, %c0_49, %c0_50] : memref<8x2x1xf32, #tpu.memory_space<vmem>>, vector<1x2x1xf32>
    %120 = vector.shape_cast %119 : vector<1x2x1xf32> to vector<2x1xf32>
    %121 = vector.extract_strided_slice %105 {offsets = [2, 0], sizes = [1, 1], strides = [1, 1]} : vector<8x1xf32> to vector<1x1xf32>
    %122 = vector.broadcast %121 : vector<1x1xf32> to vector<2x1xf32>
    %123 = arith.mulf %120, %122 : vector<2x1xf32>
    %124 = arith.addf %118, %123 : vector<2x1xf32>
    %c3_51 = arith.constant 3 : index
    %c0_52 = arith.constant 0 : index
    %c0_53 = arith.constant 0 : index
    %125 = vector.load %arg6[%c3_51, %c0_52, %c0_53] : memref<8x2x1xf32, #tpu.memory_space<vmem>>, vector<1x2x1xf32>
    %126 = vector.shape_cast %125 : vector<1x2x1xf32> to vector<2x1xf32>
    %127 = vector.extract_strided_slice %105 {offsets = [3, 0], sizes = [1, 1], strides = [1, 1]} : vector<8x1xf32> to vector<1x1xf32>
    %128 = vector.broadcast %127 : vector<1x1xf32> to vector<2x1xf32>
    %129 = arith.mulf %126, %128 : vector<2x1xf32>
    %130 = arith.addf %124, %129 : vector<2x1xf32>
    %c4_54 = arith.constant 4 : index
    %c0_55 = arith.constant 0 : index
    %c0_56 = arith.constant 0 : index
    %131 = vector.load %arg6[%c4_54, %c0_55, %c0_56] : memref<8x2x1xf32, #tpu.memory_space<vmem>>, vector<1x2x1xf32>
    %132 = vector.shape_cast %131 : vector<1x2x1xf32> to vector<2x1xf32>
    %133 = vector.extract_strided_slice %105 {offsets = [4, 0], sizes = [1, 1], strides = [1, 1]} : vector<8x1xf32> to vector<1x1xf32>
    %134 = vector.broadcast %133 : vector<1x1xf32> to vector<2x1xf32>
    %135 = arith.mulf %132, %134 : vector<2x1xf32>
    %136 = arith.addf %130, %135 : vector<2x1xf32>
    %c5_57 = arith.constant 5 : index
    %c0_58 = arith.constant 0 : index
    %c0_59 = arith.constant 0 : index
    %137 = vector.load %arg6[%c5_57, %c0_58, %c0_59] : memref<8x2x1xf32, #tpu.memory_space<vmem>>, vector<1x2x1xf32>
    %138 = vector.shape_cast %137 : vector<1x2x1xf32> to vector<2x1xf32>
    %139 = vector.extract_strided_slice %105 {offsets = [5, 0], sizes = [1, 1], strides = [1, 1]} : vector<8x1xf32> to vector<1x1xf32>
    %140 = vector.broadcast %139 : vector<1x1xf32> to vector<2x1xf32>
    %141 = arith.mulf %138, %140 : vector<2x1xf32>
    %142 = arith.addf %136, %141 : vector<2x1xf32>
    %c6_60 = arith.constant 6 : index
    %c0_61 = arith.constant 0 : index
    %c0_62 = arith.constant 0 : index
    %143 = vector.load %arg6[%c6_60, %c0_61, %c0_62] : memref<8x2x1xf32, #tpu.memory_space<vmem>>, vector<1x2x1xf32>
    %144 = vector.shape_cast %143 : vector<1x2x1xf32> to vector<2x1xf32>
    %145 = vector.extract_strided_slice %105 {offsets = [6, 0], sizes = [1, 1], strides = [1, 1]} : vector<8x1xf32> to vector<1x1xf32>
    %146 = vector.broadcast %145 : vector<1x1xf32> to vector<2x1xf32>
    %147 = arith.mulf %144, %146 : vector<2x1xf32>
    %148 = arith.addf %142, %147 : vector<2x1xf32>
    %c7_63 = arith.constant 7 : index
    %c0_64 = arith.constant 0 : index
    %c0_65 = arith.constant 0 : index
    %149 = vector.load %arg6[%c7_63, %c0_64, %c0_65] : memref<8x2x1xf32, #tpu.memory_space<vmem>>, vector<1x2x1xf32>
    %150 = vector.shape_cast %149 : vector<1x2x1xf32> to vector<2x1xf32>
    %151 = vector.extract_strided_slice %105 {offsets = [7, 0], sizes = [1, 1], strides = [1, 1]} : vector<8x1xf32> to vector<1x1xf32>
    %152 = vector.broadcast %151 : vector<1x1xf32> to vector<2x1xf32>
    %153 = arith.mulf %150, %152 : vector<2x1xf32>
    %154 = arith.addf %148, %153 : vector<2x1xf32>
    %c0_66 = arith.constant 0 : index
    %c0_67 = arith.constant 0 : index
    %155 = vector.load %arg7[%c0_66, %c0_67] : memref<2x1xf32, #tpu.memory_space<vmem>>, vector<2x1xf32>
    %156 = arith.addf %154, %155 : vector<2x1xf32>
    %cst_68 = arith.constant 0.000000e+00 : f32
    %157 = vector.broadcast %cst_68 : f32 to vector<2x1xf32>
    %158 = arith.maximumf %156, %157 : vector<2x1xf32>
    %c0_69 = arith.constant 0 : index
    %c0_70 = arith.constant 0 : index
    %c0_71 = arith.constant 0 : index
    %159 = vector.load %arg8[%c0_69, %c0_70, %c0_71] : memref<2x8x1xf32, #tpu.memory_space<vmem>>, vector<1x8x1xf32>
    %160 = vector.shape_cast %159 : vector<1x8x1xf32> to vector<8x1xf32>
    %161 = vector.extract_strided_slice %158 {offsets = [0, 0], sizes = [1, 1], strides = [1, 1]} : vector<2x1xf32> to vector<1x1xf32>
    %162 = vector.broadcast %161 : vector<1x1xf32> to vector<8x1xf32>
    %163 = arith.mulf %160, %162 : vector<8x1xf32>
    %c1_72 = arith.constant 1 : index
    %c0_73 = arith.constant 0 : index
    %c0_74 = arith.constant 0 : index
    %164 = vector.load %arg8[%c1_72, %c0_73, %c0_74] : memref<2x8x1xf32, #tpu.memory_space<vmem>>, vector<1x8x1xf32>
    %165 = vector.shape_cast %164 : vector<1x8x1xf32> to vector<8x1xf32>
    %166 = vector.extract_strided_slice %158 {offsets = [1, 0], sizes = [1, 1], strides = [1, 1]} : vector<2x1xf32> to vector<1x1xf32>
    %167 = vector.broadcast %166 : vector<1x1xf32> to vector<8x1xf32>
    %168 = arith.mulf %165, %167 : vector<8x1xf32>
    %169 = arith.addf %163, %168 : vector<8x1xf32>
    %c0_75 = arith.constant 0 : index
    %c0_76 = arith.constant 0 : index
    %170 = vector.load %arg9[%c0_75, %c0_76] : memref<8x1xf32, #tpu.memory_space<vmem>>, vector<8x1xf32>
    %171 = arith.addf %169, %170 : vector<8x1xf32>
    %172 = arith.negf %171 : vector<8x1xf32>
    %173 = math.exp %172 : vector<8x1xf32>
    %cst_77 = arith.constant 1.000000e+00 : f32
    %174 = vector.broadcast %cst_77 : f32 to vector<8x1xf32>
    %175 = arith.addf %174, %173 : vector<8x1xf32>
    %176 = arith.divf %174, %175 : vector<8x1xf32>
    %c0_78 = arith.constant 0 : index
    %c0_79 = arith.constant 0 : index
    %c0_80 = arith.constant 0 : index
    %177 = vector.load %arg6[%c0_78, %c0_79, %c0_80] : memref<8x2x1xf32, #tpu.memory_space<vmem>>, vector<1x2x1xf32>
    %178 = vector.shape_cast %177 : vector<1x2x1xf32> to vector<2x1xf32>
    %179 = vector.extract_strided_slice %107 {offsets = [0, 0], sizes = [1, 1], strides = [1, 1]} : vector<8x1xf32> to vector<1x1xf32>
    %180 = vector.broadcast %179 : vector<1x1xf32> to vector<2x1xf32>
    %181 = arith.mulf %178, %180 : vector<2x1xf32>
    %c1_81 = arith.constant 1 : index
    %c0_82 = arith.constant 0 : index
    %c0_83 = arith.constant 0 : index
    %182 = vector.load %arg6[%c1_81, %c0_82, %c0_83] : memref<8x2x1xf32, #tpu.memory_space<vmem>>, vector<1x2x1xf32>
    %183 = vector.shape_cast %182 : vector<1x2x1xf32> to vector<2x1xf32>
    %184 = vector.extract_strided_slice %107 {offsets = [1, 0], sizes = [1, 1], strides = [1, 1]} : vector<8x1xf32> to vector<1x1xf32>
    %185 = vector.broadcast %184 : vector<1x1xf32> to vector<2x1xf32>
    %186 = arith.mulf %183, %185 : vector<2x1xf32>
    %187 = arith.addf %181, %186 : vector<2x1xf32>
    %c2_84 = arith.constant 2 : index
    %c0_85 = arith.constant 0 : index
    %c0_86 = arith.constant 0 : index
    %188 = vector.load %arg6[%c2_84, %c0_85, %c0_86] : memref<8x2x1xf32, #tpu.memory_space<vmem>>, vector<1x2x1xf32>
    %189 = vector.shape_cast %188 : vector<1x2x1xf32> to vector<2x1xf32>
    %190 = vector.extract_strided_slice %107 {offsets = [2, 0], sizes = [1, 1], strides = [1, 1]} : vector<8x1xf32> to vector<1x1xf32>
    %191 = vector.broadcast %190 : vector<1x1xf32> to vector<2x1xf32>
    %192 = arith.mulf %189, %191 : vector<2x1xf32>
    %193 = arith.addf %187, %192 : vector<2x1xf32>
    %c3_87 = arith.constant 3 : index
    %c0_88 = arith.constant 0 : index
    %c0_89 = arith.constant 0 : index
    %194 = vector.load %arg6[%c3_87, %c0_88, %c0_89] : memref<8x2x1xf32, #tpu.memory_space<vmem>>, vector<1x2x1xf32>
    %195 = vector.shape_cast %194 : vector<1x2x1xf32> to vector<2x1xf32>
    %196 = vector.extract_strided_slice %107 {offsets = [3, 0], sizes = [1, 1], strides = [1, 1]} : vector<8x1xf32> to vector<1x1xf32>
    %197 = vector.broadcast %196 : vector<1x1xf32> to vector<2x1xf32>
    %198 = arith.mulf %195, %197 : vector<2x1xf32>
    %199 = arith.addf %193, %198 : vector<2x1xf32>
    %c4_90 = arith.constant 4 : index
    %c0_91 = arith.constant 0 : index
    %c0_92 = arith.constant 0 : index
    %200 = vector.load %arg6[%c4_90, %c0_91, %c0_92] : memref<8x2x1xf32, #tpu.memory_space<vmem>>, vector<1x2x1xf32>
    %201 = vector.shape_cast %200 : vector<1x2x1xf32> to vector<2x1xf32>
    %202 = vector.extract_strided_slice %107 {offsets = [4, 0], sizes = [1, 1], strides = [1, 1]} : vector<8x1xf32> to vector<1x1xf32>
    %203 = vector.broadcast %202 : vector<1x1xf32> to vector<2x1xf32>
    %204 = arith.mulf %201, %203 : vector<2x1xf32>
    %205 = arith.addf %199, %204 : vector<2x1xf32>
    %c5_93 = arith.constant 5 : index
    %c0_94 = arith.constant 0 : index
    %c0_95 = arith.constant 0 : index
    %206 = vector.load %arg6[%c5_93, %c0_94, %c0_95] : memref<8x2x1xf32, #tpu.memory_space<vmem>>, vector<1x2x1xf32>
    %207 = vector.shape_cast %206 : vector<1x2x1xf32> to vector<2x1xf32>
    %208 = vector.extract_strided_slice %107 {offsets = [5, 0], sizes = [1, 1], strides = [1, 1]} : vector<8x1xf32> to vector<1x1xf32>
    %209 = vector.broadcast %208 : vector<1x1xf32> to vector<2x1xf32>
    %210 = arith.mulf %207, %209 : vector<2x1xf32>
    %211 = arith.addf %205, %210 : vector<2x1xf32>
    %c6_96 = arith.constant 6 : index
    %c0_97 = arith.constant 0 : index
    %c0_98 = arith.constant 0 : index
    %212 = vector.load %arg6[%c6_96, %c0_97, %c0_98] : memref<8x2x1xf32, #tpu.memory_space<vmem>>, vector<1x2x1xf32>
    %213 = vector.shape_cast %212 : vector<1x2x1xf32> to vector<2x1xf32>
    %214 = vector.extract_strided_slice %107 {offsets = [6, 0], sizes = [1, 1], strides = [1, 1]} : vector<8x1xf32> to vector<1x1xf32>
    %215 = vector.broadcast %214 : vector<1x1xf32> to vector<2x1xf32>
    %216 = arith.mulf %213, %215 : vector<2x1xf32>
    %217 = arith.addf %211, %216 : vector<2x1xf32>
    %c7_99 = arith.constant 7 : index
    %c0_100 = arith.constant 0 : index
    %c0_101 = arith.constant 0 : index
    %218 = vector.load %arg6[%c7_99, %c0_100, %c0_101] : memref<8x2x1xf32, #tpu.memory_space<vmem>>, vector<1x2x1xf32>
    %219 = vector.shape_cast %218 : vector<1x2x1xf32> to vector<2x1xf32>
    %220 = vector.extract_strided_slice %107 {offsets = [7, 0], sizes = [1, 1], strides = [1, 1]} : vector<8x1xf32> to vector<1x1xf32>
    %221 = vector.broadcast %220 : vector<1x1xf32> to vector<2x1xf32>
    %222 = arith.mulf %219, %221 : vector<2x1xf32>
    %223 = arith.addf %217, %222 : vector<2x1xf32>
    %c0_102 = arith.constant 0 : index
    %c0_103 = arith.constant 0 : index
    %224 = vector.load %arg7[%c0_102, %c0_103] : memref<2x1xf32, #tpu.memory_space<vmem>>, vector<2x1xf32>
    %225 = arith.addf %223, %224 : vector<2x1xf32>
    %cst_104 = arith.constant 0.000000e+00 : f32
    %226 = vector.broadcast %cst_104 : f32 to vector<2x1xf32>
    %227 = arith.maximumf %225, %226 : vector<2x1xf32>
    %c0_105 = arith.constant 0 : index
    %c0_106 = arith.constant 0 : index
    %c0_107 = arith.constant 0 : index
    %228 = vector.load %arg8[%c0_105, %c0_106, %c0_107] : memref<2x8x1xf32, #tpu.memory_space<vmem>>, vector<1x8x1xf32>
    %229 = vector.shape_cast %228 : vector<1x8x1xf32> to vector<8x1xf32>
    %230 = vector.extract_strided_slice %227 {offsets = [0, 0], sizes = [1, 1], strides = [1, 1]} : vector<2x1xf32> to vector<1x1xf32>
    %231 = vector.broadcast %230 : vector<1x1xf32> to vector<8x1xf32>
    %232 = arith.mulf %229, %231 : vector<8x1xf32>
    %c1_108 = arith.constant 1 : index
    %c0_109 = arith.constant 0 : index
    %c0_110 = arith.constant 0 : index
    %233 = vector.load %arg8[%c1_108, %c0_109, %c0_110] : memref<2x8x1xf32, #tpu.memory_space<vmem>>, vector<1x8x1xf32>
    %234 = vector.shape_cast %233 : vector<1x8x1xf32> to vector<8x1xf32>
    %235 = vector.extract_strided_slice %227 {offsets = [1, 0], sizes = [1, 1], strides = [1, 1]} : vector<2x1xf32> to vector<1x1xf32>
    %236 = vector.broadcast %235 : vector<1x1xf32> to vector<8x1xf32>
    %237 = arith.mulf %234, %236 : vector<8x1xf32>
    %238 = arith.addf %232, %237 : vector<8x1xf32>
    %c0_111 = arith.constant 0 : index
    %c0_112 = arith.constant 0 : index
    %239 = vector.load %arg9[%c0_111, %c0_112] : memref<8x1xf32, #tpu.memory_space<vmem>>, vector<8x1xf32>
    %240 = arith.addf %238, %239 : vector<8x1xf32>
    %241 = arith.negf %240 : vector<8x1xf32>
    %242 = math.exp %241 : vector<8x1xf32>
    %cst_113 = arith.constant 1.000000e+00 : f32
    %243 = vector.broadcast %cst_113 : f32 to vector<8x1xf32>
    %244 = arith.addf %243, %242 : vector<8x1xf32>
    %245 = arith.divf %243, %244 : vector<8x1xf32>
    %246 = arith.addf %176, %245 : vector<8x1xf32>
    %247 = vector.broadcast %246 : vector<8x1xf32> to vector<8x256xf32>
    %248 = arith.mulf %247, %101 : vector<8x256xf32>
    %c34_i32 = arith.constant 34 : i32
    %249 = tpu.dynamic_rotate %248 by %c34_i32 dim 1 : vector<8x256xf32>, i32 -> vector<8x256xf32>
    %c2_i32 = arith.constant 2 : i32
    %250 = vector.broadcast %c2_i32 : i32 to vector<1x256xi32>
    %251 = arith.cmpi sge, %2, %250 : vector<1x256xi32>
    %c2_i32_114 = arith.constant 2 : i32
    %252 = vector.broadcast %c2_i32_114 : i32 to vector<1x256xi32>
    %253 = arith.cmpi sge, %3, %252 : vector<1x256xi32>
    %254 = arith.andi %251, %253 : vector<1x256xi1>
    %cst_115 = arith.constant 0.000000e+00 : f32
    %255 = vector.shape_cast %254 : vector<1x256xi1> to vector<1x256xi1>
    %256 = vector.broadcast %255 : vector<1x256xi1> to vector<8x256xi1>
    %257 = vector.broadcast %cst_115 : f32 to vector<8x256xf32>
    %258 = arith.select %256, %249, %257 : vector<8x256xi1>, vector<8x256xf32>
    %c0_116 = arith.constant 0 : index
    %c0_117 = arith.constant 0 : index
    %c0_118 = arith.constant 0 : index
    %259 = vector.load %arg10[%c0_116, %c0_117, %c0_118] : memref<25x8x1xf32, #tpu.memory_space<vmem>>, vector<1x8x1xf32>
    %260 = vector.shape_cast %259 : vector<1x8x1xf32> to vector<8x1xf32>
    %261 = vector.broadcast %260 : vector<8x1xf32> to vector<8x256xf32>
    %262 = arith.mulf %258, %261 : vector<8x256xf32>
    %c33_i32 = arith.constant 33 : i32
    %263 = tpu.dynamic_rotate %248 by %c33_i32 dim 1 : vector<8x256xf32>, i32 -> vector<8x256xf32>
    %c1_i32 = arith.constant 1 : i32
    %264 = vector.broadcast %c1_i32 : i32 to vector<1x256xi32>
    %265 = arith.cmpi sge, %2, %264 : vector<1x256xi32>
    %c2_i32_119 = arith.constant 2 : i32
    %266 = vector.broadcast %c2_i32_119 : i32 to vector<1x256xi32>
    %267 = arith.cmpi sge, %3, %266 : vector<1x256xi32>
    %268 = arith.andi %265, %267 : vector<1x256xi1>
    %cst_120 = arith.constant 0.000000e+00 : f32
    %269 = vector.shape_cast %268 : vector<1x256xi1> to vector<1x256xi1>
    %270 = vector.broadcast %269 : vector<1x256xi1> to vector<8x256xi1>
    %271 = vector.broadcast %cst_120 : f32 to vector<8x256xf32>
    %272 = arith.select %270, %263, %271 : vector<8x256xi1>, vector<8x256xf32>
    %c1_121 = arith.constant 1 : index
    %c0_122 = arith.constant 0 : index
    %c0_123 = arith.constant 0 : index
    %273 = vector.load %arg10[%c1_121, %c0_122, %c0_123] : memref<25x8x1xf32, #tpu.memory_space<vmem>>, vector<1x8x1xf32>
    %274 = vector.shape_cast %273 : vector<1x8x1xf32> to vector<8x1xf32>
    %275 = vector.broadcast %274 : vector<8x1xf32> to vector<8x256xf32>
    %276 = arith.mulf %272, %275 : vector<8x256xf32>
    %277 = arith.addf %262, %276 : vector<8x256xf32>
    %c32_i32 = arith.constant 32 : i32
    %278 = tpu.dynamic_rotate %248 by %c32_i32 dim 1 : vector<8x256xf32>, i32 -> vector<8x256xf32>
    %c2_i32_124 = arith.constant 2 : i32
    %279 = vector.broadcast %c2_i32_124 : i32 to vector<1x256xi32>
    %280 = arith.cmpi sge, %3, %279 : vector<1x256xi32>
    %cst_125 = arith.constant 0.000000e+00 : f32
    %281 = vector.shape_cast %280 : vector<1x256xi1> to vector<1x256xi1>
    %282 = vector.broadcast %281 : vector<1x256xi1> to vector<8x256xi1>
    %283 = vector.broadcast %cst_125 : f32 to vector<8x256xf32>
    %284 = arith.select %282, %278, %283 : vector<8x256xi1>, vector<8x256xf32>
    %c2_126 = arith.constant 2 : index
    %c0_127 = arith.constant 0 : index
    %c0_128 = arith.constant 0 : index
    %285 = vector.load %arg10[%c2_126, %c0_127, %c0_128] : memref<25x8x1xf32, #tpu.memory_space<vmem>>, vector<1x8x1xf32>
    %286 = vector.shape_cast %285 : vector<1x8x1xf32> to vector<8x1xf32>
    %287 = vector.broadcast %286 : vector<8x1xf32> to vector<8x256xf32>
    %288 = arith.mulf %284, %287 : vector<8x256xf32>
    %289 = arith.addf %277, %288 : vector<8x256xf32>
    %c31_i32 = arith.constant 31 : i32
    %290 = tpu.dynamic_rotate %248 by %c31_i32 dim 1 : vector<8x256xf32>, i32 -> vector<8x256xf32>
    %c15_i32 = arith.constant 15 : i32
    %291 = vector.broadcast %c15_i32 : i32 to vector<1x256xi32>
    %292 = arith.cmpi slt, %2, %291 : vector<1x256xi32>
    %c2_i32_129 = arith.constant 2 : i32
    %293 = vector.broadcast %c2_i32_129 : i32 to vector<1x256xi32>
    %294 = arith.cmpi sge, %3, %293 : vector<1x256xi32>
    %295 = arith.andi %292, %294 : vector<1x256xi1>
    %cst_130 = arith.constant 0.000000e+00 : f32
    %296 = vector.shape_cast %295 : vector<1x256xi1> to vector<1x256xi1>
    %297 = vector.broadcast %296 : vector<1x256xi1> to vector<8x256xi1>
    %298 = vector.broadcast %cst_130 : f32 to vector<8x256xf32>
    %299 = arith.select %297, %290, %298 : vector<8x256xi1>, vector<8x256xf32>
    %c3_131 = arith.constant 3 : index
    %c0_132 = arith.constant 0 : index
    %c0_133 = arith.constant 0 : index
    %300 = vector.load %arg10[%c3_131, %c0_132, %c0_133] : memref<25x8x1xf32, #tpu.memory_space<vmem>>, vector<1x8x1xf32>
    %301 = vector.shape_cast %300 : vector<1x8x1xf32> to vector<8x1xf32>
    %302 = vector.broadcast %301 : vector<8x1xf32> to vector<8x256xf32>
    %303 = arith.mulf %299, %302 : vector<8x256xf32>
    %304 = arith.addf %289, %303 : vector<8x256xf32>
    %c30_i32 = arith.constant 30 : i32
    %305 = tpu.dynamic_rotate %248 by %c30_i32 dim 1 : vector<8x256xf32>, i32 -> vector<8x256xf32>
    %c14_i32 = arith.constant 14 : i32
    %306 = vector.broadcast %c14_i32 : i32 to vector<1x256xi32>
    %307 = arith.cmpi slt, %2, %306 : vector<1x256xi32>
    %c2_i32_134 = arith.constant 2 : i32
    %308 = vector.broadcast %c2_i32_134 : i32 to vector<1x256xi32>
    %309 = arith.cmpi sge, %3, %308 : vector<1x256xi32>
    %310 = arith.andi %307, %309 : vector<1x256xi1>
    %cst_135 = arith.constant 0.000000e+00 : f32
    %311 = vector.shape_cast %310 : vector<1x256xi1> to vector<1x256xi1>
    %312 = vector.broadcast %311 : vector<1x256xi1> to vector<8x256xi1>
    %313 = vector.broadcast %cst_135 : f32 to vector<8x256xf32>
    %314 = arith.select %312, %305, %313 : vector<8x256xi1>, vector<8x256xf32>
    %c4_136 = arith.constant 4 : index
    %c0_137 = arith.constant 0 : index
    %c0_138 = arith.constant 0 : index
    %315 = vector.load %arg10[%c4_136, %c0_137, %c0_138] : memref<25x8x1xf32, #tpu.memory_space<vmem>>, vector<1x8x1xf32>
    %316 = vector.shape_cast %315 : vector<1x8x1xf32> to vector<8x1xf32>
    %317 = vector.broadcast %316 : vector<8x1xf32> to vector<8x256xf32>
    %318 = arith.mulf %314, %317 : vector<8x256xf32>
    %319 = arith.addf %304, %318 : vector<8x256xf32>
    %c18_i32 = arith.constant 18 : i32
    %320 = tpu.dynamic_rotate %248 by %c18_i32 dim 1 : vector<8x256xf32>, i32 -> vector<8x256xf32>
    %c2_i32_139 = arith.constant 2 : i32
    %321 = vector.broadcast %c2_i32_139 : i32 to vector<1x256xi32>
    %322 = arith.cmpi sge, %2, %321 : vector<1x256xi32>
    %c1_i32_140 = arith.constant 1 : i32
    %323 = vector.broadcast %c1_i32_140 : i32 to vector<1x256xi32>
    %324 = arith.cmpi sge, %3, %323 : vector<1x256xi32>
    %325 = arith.andi %322, %324 : vector<1x256xi1>
    %cst_141 = arith.constant 0.000000e+00 : f32
    %326 = vector.shape_cast %325 : vector<1x256xi1> to vector<1x256xi1>
    %327 = vector.broadcast %326 : vector<1x256xi1> to vector<8x256xi1>
    %328 = vector.broadcast %cst_141 : f32 to vector<8x256xf32>
    %329 = arith.select %327, %320, %328 : vector<8x256xi1>, vector<8x256xf32>
    %c5_142 = arith.constant 5 : index
    %c0_143 = arith.constant 0 : index
    %c0_144 = arith.constant 0 : index
    %330 = vector.load %arg10[%c5_142, %c0_143, %c0_144] : memref<25x8x1xf32, #tpu.memory_space<vmem>>, vector<1x8x1xf32>
    %331 = vector.shape_cast %330 : vector<1x8x1xf32> to vector<8x1xf32>
    %332 = vector.broadcast %331 : vector<8x1xf32> to vector<8x256xf32>
    %333 = arith.mulf %329, %332 : vector<8x256xf32>
    %334 = arith.addf %319, %333 : vector<8x256xf32>
    %c17_i32 = arith.constant 17 : i32
    %335 = tpu.dynamic_rotate %248 by %c17_i32 dim 1 : vector<8x256xf32>, i32 -> vector<8x256xf32>
    %c1_i32_145 = arith.constant 1 : i32
    %336 = vector.broadcast %c1_i32_145 : i32 to vector<1x256xi32>
    %337 = arith.cmpi sge, %2, %336 : vector<1x256xi32>
    %c1_i32_146 = arith.constant 1 : i32
    %338 = vector.broadcast %c1_i32_146 : i32 to vector<1x256xi32>
    %339 = arith.cmpi sge, %3, %338 : vector<1x256xi32>
    %340 = arith.andi %337, %339 : vector<1x256xi1>
    %cst_147 = arith.constant 0.000000e+00 : f32
    %341 = vector.shape_cast %340 : vector<1x256xi1> to vector<1x256xi1>
    %342 = vector.broadcast %341 : vector<1x256xi1> to vector<8x256xi1>
    %343 = vector.broadcast %cst_147 : f32 to vector<8x256xf32>
    %344 = arith.select %342, %335, %343 : vector<8x256xi1>, vector<8x256xf32>
    %c6_148 = arith.constant 6 : index
    %c0_149 = arith.constant 0 : index
    %c0_150 = arith.constant 0 : index
    %345 = vector.load %arg10[%c6_148, %c0_149, %c0_150] : memref<25x8x1xf32, #tpu.memory_space<vmem>>, vector<1x8x1xf32>
    %346 = vector.shape_cast %345 : vector<1x8x1xf32> to vector<8x1xf32>
    %347 = vector.broadcast %346 : vector<8x1xf32> to vector<8x256xf32>
    %348 = arith.mulf %344, %347 : vector<8x256xf32>
    %349 = arith.addf %334, %348 : vector<8x256xf32>
    %c16_i32 = arith.constant 16 : i32
    %350 = tpu.dynamic_rotate %248 by %c16_i32 dim 1 : vector<8x256xf32>, i32 -> vector<8x256xf32>
    %c1_i32_151 = arith.constant 1 : i32
    %351 = vector.broadcast %c1_i32_151 : i32 to vector<1x256xi32>
    %352 = arith.cmpi sge, %3, %351 : vector<1x256xi32>
    %cst_152 = arith.constant 0.000000e+00 : f32
    %353 = vector.shape_cast %352 : vector<1x256xi1> to vector<1x256xi1>
    %354 = vector.broadcast %353 : vector<1x256xi1> to vector<8x256xi1>
    %355 = vector.broadcast %cst_152 : f32 to vector<8x256xf32>
    %356 = arith.select %354, %350, %355 : vector<8x256xi1>, vector<8x256xf32>
    %c7_153 = arith.constant 7 : index
    %c0_154 = arith.constant 0 : index
    %c0_155 = arith.constant 0 : index
    %357 = vector.load %arg10[%c7_153, %c0_154, %c0_155] : memref<25x8x1xf32, #tpu.memory_space<vmem>>, vector<1x8x1xf32>
    %358 = vector.shape_cast %357 : vector<1x8x1xf32> to vector<8x1xf32>
    %359 = vector.broadcast %358 : vector<8x1xf32> to vector<8x256xf32>
    %360 = arith.mulf %356, %359 : vector<8x256xf32>
    %361 = arith.addf %349, %360 : vector<8x256xf32>
    %c15_i32_156 = arith.constant 15 : i32
    %362 = tpu.dynamic_rotate %248 by %c15_i32_156 dim 1 : vector<8x256xf32>, i32 -> vector<8x256xf32>
    %c15_i32_157 = arith.constant 15 : i32
    %363 = vector.broadcast %c15_i32_157 : i32 to vector<1x256xi32>
    %364 = arith.cmpi slt, %2, %363 : vector<1x256xi32>
    %c1_i32_158 = arith.constant 1 : i32
    %365 = vector.broadcast %c1_i32_158 : i32 to vector<1x256xi32>
    %366 = arith.cmpi sge, %3, %365 : vector<1x256xi32>
    %367 = arith.andi %364, %366 : vector<1x256xi1>
    %cst_159 = arith.constant 0.000000e+00 : f32
    %368 = vector.shape_cast %367 : vector<1x256xi1> to vector<1x256xi1>
    %369 = vector.broadcast %368 : vector<1x256xi1> to vector<8x256xi1>
    %370 = vector.broadcast %cst_159 : f32 to vector<8x256xf32>
    %371 = arith.select %369, %362, %370 : vector<8x256xi1>, vector<8x256xf32>
    %c8 = arith.constant 8 : index
    %c0_160 = arith.constant 0 : index
    %c0_161 = arith.constant 0 : index
    %372 = vector.load %arg10[%c8, %c0_160, %c0_161] : memref<25x8x1xf32, #tpu.memory_space<vmem>>, vector<1x8x1xf32>
    %373 = vector.shape_cast %372 : vector<1x8x1xf32> to vector<8x1xf32>
    %374 = vector.broadcast %373 : vector<8x1xf32> to vector<8x256xf32>
    %375 = arith.mulf %371, %374 : vector<8x256xf32>
    %376 = arith.addf %361, %375 : vector<8x256xf32>
    %c14_i32_162 = arith.constant 14 : i32
    %377 = tpu.dynamic_rotate %248 by %c14_i32_162 dim 1 : vector<8x256xf32>, i32 -> vector<8x256xf32>
    %c14_i32_163 = arith.constant 14 : i32
    %378 = vector.broadcast %c14_i32_163 : i32 to vector<1x256xi32>
    %379 = arith.cmpi slt, %2, %378 : vector<1x256xi32>
    %c1_i32_164 = arith.constant 1 : i32
    %380 = vector.broadcast %c1_i32_164 : i32 to vector<1x256xi32>
    %381 = arith.cmpi sge, %3, %380 : vector<1x256xi32>
    %382 = arith.andi %379, %381 : vector<1x256xi1>
    %cst_165 = arith.constant 0.000000e+00 : f32
    %383 = vector.shape_cast %382 : vector<1x256xi1> to vector<1x256xi1>
    %384 = vector.broadcast %383 : vector<1x256xi1> to vector<8x256xi1>
    %385 = vector.broadcast %cst_165 : f32 to vector<8x256xf32>
    %386 = arith.select %384, %377, %385 : vector<8x256xi1>, vector<8x256xf32>
    %c9 = arith.constant 9 : index
    %c0_166 = arith.constant 0 : index
    %c0_167 = arith.constant 0 : index
    %387 = vector.load %arg10[%c9, %c0_166, %c0_167] : memref<25x8x1xf32, #tpu.memory_space<vmem>>, vector<1x8x1xf32>
    %388 = vector.shape_cast %387 : vector<1x8x1xf32> to vector<8x1xf32>
    %389 = vector.broadcast %388 : vector<8x1xf32> to vector<8x256xf32>
    %390 = arith.mulf %386, %389 : vector<8x256xf32>
    %391 = arith.addf %376, %390 : vector<8x256xf32>
    %c2_i32_168 = arith.constant 2 : i32
    %392 = tpu.dynamic_rotate %248 by %c2_i32_168 dim 1 : vector<8x256xf32>, i32 -> vector<8x256xf32>
    %c2_i32_169 = arith.constant 2 : i32
    %393 = vector.broadcast %c2_i32_169 : i32 to vector<1x256xi32>
    %394 = arith.cmpi sge, %2, %393 : vector<1x256xi32>
    %cst_170 = arith.constant 0.000000e+00 : f32
    %395 = vector.shape_cast %394 : vector<1x256xi1> to vector<1x256xi1>
    %396 = vector.broadcast %395 : vector<1x256xi1> to vector<8x256xi1>
    %397 = vector.broadcast %cst_170 : f32 to vector<8x256xf32>
    %398 = arith.select %396, %392, %397 : vector<8x256xi1>, vector<8x256xf32>
    %c10 = arith.constant 10 : index
    %c0_171 = arith.constant 0 : index
    %c0_172 = arith.constant 0 : index
    %399 = vector.load %arg10[%c10, %c0_171, %c0_172] : memref<25x8x1xf32, #tpu.memory_space<vmem>>, vector<1x8x1xf32>
    %400 = vector.shape_cast %399 : vector<1x8x1xf32> to vector<8x1xf32>
    %401 = vector.broadcast %400 : vector<8x1xf32> to vector<8x256xf32>
    %402 = arith.mulf %398, %401 : vector<8x256xf32>
    %403 = arith.addf %391, %402 : vector<8x256xf32>
    %c1_i32_173 = arith.constant 1 : i32
    %404 = tpu.dynamic_rotate %248 by %c1_i32_173 dim 1 : vector<8x256xf32>, i32 -> vector<8x256xf32>
    %c1_i32_174 = arith.constant 1 : i32
    %405 = vector.broadcast %c1_i32_174 : i32 to vector<1x256xi32>
    %406 = arith.cmpi sge, %2, %405 : vector<1x256xi32>
    %cst_175 = arith.constant 0.000000e+00 : f32
    %407 = vector.shape_cast %406 : vector<1x256xi1> to vector<1x256xi1>
    %408 = vector.broadcast %407 : vector<1x256xi1> to vector<8x256xi1>
    %409 = vector.broadcast %cst_175 : f32 to vector<8x256xf32>
    %410 = arith.select %408, %404, %409 : vector<8x256xi1>, vector<8x256xf32>
    %c11 = arith.constant 11 : index
    %c0_176 = arith.constant 0 : index
    %c0_177 = arith.constant 0 : index
    %411 = vector.load %arg10[%c11, %c0_176, %c0_177] : memref<25x8x1xf32, #tpu.memory_space<vmem>>, vector<1x8x1xf32>
    %412 = vector.shape_cast %411 : vector<1x8x1xf32> to vector<8x1xf32>
    %413 = vector.broadcast %412 : vector<8x1xf32> to vector<8x256xf32>
    %414 = arith.mulf %410, %413 : vector<8x256xf32>
    %415 = arith.addf %403, %414 : vector<8x256xf32>
    %c12 = arith.constant 12 : index
    %c0_178 = arith.constant 0 : index
    %c0_179 = arith.constant 0 : index
    %416 = vector.load %arg10[%c12, %c0_178, %c0_179] : memref<25x8x1xf32, #tpu.memory_space<vmem>>, vector<1x8x1xf32>
    %417 = vector.shape_cast %416 : vector<1x8x1xf32> to vector<8x1xf32>
    %418 = vector.broadcast %417 : vector<8x1xf32> to vector<8x256xf32>
    %419 = arith.mulf %248, %418 : vector<8x256xf32>
    %420 = arith.addf %415, %419 : vector<8x256xf32>
    %c255_i32 = arith.constant 255 : i32
    %421 = tpu.dynamic_rotate %248 by %c255_i32 dim 1 : vector<8x256xf32>, i32 -> vector<8x256xf32>
    %c15_i32_180 = arith.constant 15 : i32
    %422 = vector.broadcast %c15_i32_180 : i32 to vector<1x256xi32>
    %423 = arith.cmpi slt, %2, %422 : vector<1x256xi32>
    %cst_181 = arith.constant 0.000000e+00 : f32
    %424 = vector.shape_cast %423 : vector<1x256xi1> to vector<1x256xi1>
    %425 = vector.broadcast %424 : vector<1x256xi1> to vector<8x256xi1>
    %426 = vector.broadcast %cst_181 : f32 to vector<8x256xf32>
    %427 = arith.select %425, %421, %426 : vector<8x256xi1>, vector<8x256xf32>
    %c13 = arith.constant 13 : index
    %c0_182 = arith.constant 0 : index
    %c0_183 = arith.constant 0 : index
    %428 = vector.load %arg10[%c13, %c0_182, %c0_183] : memref<25x8x1xf32, #tpu.memory_space<vmem>>, vector<1x8x1xf32>
    %429 = vector.shape_cast %428 : vector<1x8x1xf32> to vector<8x1xf32>
    %430 = vector.broadcast %429 : vector<8x1xf32> to vector<8x256xf32>
    %431 = arith.mulf %427, %430 : vector<8x256xf32>
    %432 = arith.addf %420, %431 : vector<8x256xf32>
    %c254_i32 = arith.constant 254 : i32
    %433 = tpu.dynamic_rotate %248 by %c254_i32 dim 1 : vector<8x256xf32>, i32 -> vector<8x256xf32>
    %c14_i32_184 = arith.constant 14 : i32
    %434 = vector.broadcast %c14_i32_184 : i32 to vector<1x256xi32>
    %435 = arith.cmpi slt, %2, %434 : vector<1x256xi32>
    %cst_185 = arith.constant 0.000000e+00 : f32
    %436 = vector.shape_cast %435 : vector<1x256xi1> to vector<1x256xi1>
    %437 = vector.broadcast %436 : vector<1x256xi1> to vector<8x256xi1>
    %438 = vector.broadcast %cst_185 : f32 to vector<8x256xf32>
    %439 = arith.select %437, %433, %438 : vector<8x256xi1>, vector<8x256xf32>
    %c14 = arith.constant 14 : index
    %c0_186 = arith.constant 0 : index
    %c0_187 = arith.constant 0 : index
    %440 = vector.load %arg10[%c14, %c0_186, %c0_187] : memref<25x8x1xf32, #tpu.memory_space<vmem>>, vector<1x8x1xf32>
    %441 = vector.shape_cast %440 : vector<1x8x1xf32> to vector<8x1xf32>
    %442 = vector.broadcast %441 : vector<8x1xf32> to vector<8x256xf32>
    %443 = arith.mulf %439, %442 : vector<8x256xf32>
    %444 = arith.addf %432, %443 : vector<8x256xf32>
    %c242_i32 = arith.constant 242 : i32
    %445 = tpu.dynamic_rotate %248 by %c242_i32 dim 1 : vector<8x256xf32>, i32 -> vector<8x256xf32>
    %c2_i32_188 = arith.constant 2 : i32
    %446 = vector.broadcast %c2_i32_188 : i32 to vector<1x256xi32>
    %447 = arith.cmpi sge, %2, %446 : vector<1x256xi32>
    %c15_i32_189 = arith.constant 15 : i32
    %448 = vector.broadcast %c15_i32_189 : i32 to vector<1x256xi32>
    %449 = arith.cmpi slt, %3, %448 : vector<1x256xi32>
    %450 = arith.andi %447, %449 : vector<1x256xi1>
    %cst_190 = arith.constant 0.000000e+00 : f32
    %451 = vector.shape_cast %450 : vector<1x256xi1> to vector<1x256xi1>
    %452 = vector.broadcast %451 : vector<1x256xi1> to vector<8x256xi1>
    %453 = vector.broadcast %cst_190 : f32 to vector<8x256xf32>
    %454 = arith.select %452, %445, %453 : vector<8x256xi1>, vector<8x256xf32>
    %c15 = arith.constant 15 : index
    %c0_191 = arith.constant 0 : index
    %c0_192 = arith.constant 0 : index
    %455 = vector.load %arg10[%c15, %c0_191, %c0_192] : memref<25x8x1xf32, #tpu.memory_space<vmem>>, vector<1x8x1xf32>
    %456 = vector.shape_cast %455 : vector<1x8x1xf32> to vector<8x1xf32>
    %457 = vector.broadcast %456 : vector<8x1xf32> to vector<8x256xf32>
    %458 = arith.mulf %454, %457 : vector<8x256xf32>
    %459 = arith.addf %444, %458 : vector<8x256xf32>
    %c241_i32 = arith.constant 241 : i32
    %460 = tpu.dynamic_rotate %248 by %c241_i32 dim 1 : vector<8x256xf32>, i32 -> vector<8x256xf32>
    %c1_i32_193 = arith.constant 1 : i32
    %461 = vector.broadcast %c1_i32_193 : i32 to vector<1x256xi32>
    %462 = arith.cmpi sge, %2, %461 : vector<1x256xi32>
    %c15_i32_194 = arith.constant 15 : i32
    %463 = vector.broadcast %c15_i32_194 : i32 to vector<1x256xi32>
    %464 = arith.cmpi slt, %3, %463 : vector<1x256xi32>
    %465 = arith.andi %462, %464 : vector<1x256xi1>
    %cst_195 = arith.constant 0.000000e+00 : f32
    %466 = vector.shape_cast %465 : vector<1x256xi1> to vector<1x256xi1>
    %467 = vector.broadcast %466 : vector<1x256xi1> to vector<8x256xi1>
    %468 = vector.broadcast %cst_195 : f32 to vector<8x256xf32>
    %469 = arith.select %467, %460, %468 : vector<8x256xi1>, vector<8x256xf32>
    %c16 = arith.constant 16 : index
    %c0_196 = arith.constant 0 : index
    %c0_197 = arith.constant 0 : index
    %470 = vector.load %arg10[%c16, %c0_196, %c0_197] : memref<25x8x1xf32, #tpu.memory_space<vmem>>, vector<1x8x1xf32>
    %471 = vector.shape_cast %470 : vector<1x8x1xf32> to vector<8x1xf32>
    %472 = vector.broadcast %471 : vector<8x1xf32> to vector<8x256xf32>
    %473 = arith.mulf %469, %472 : vector<8x256xf32>
    %474 = arith.addf %459, %473 : vector<8x256xf32>
    %c240_i32 = arith.constant 240 : i32
    %475 = tpu.dynamic_rotate %248 by %c240_i32 dim 1 : vector<8x256xf32>, i32 -> vector<8x256xf32>
    %c15_i32_198 = arith.constant 15 : i32
    %476 = vector.broadcast %c15_i32_198 : i32 to vector<1x256xi32>
    %477 = arith.cmpi slt, %3, %476 : vector<1x256xi32>
    %cst_199 = arith.constant 0.000000e+00 : f32
    %478 = vector.shape_cast %477 : vector<1x256xi1> to vector<1x256xi1>
    %479 = vector.broadcast %478 : vector<1x256xi1> to vector<8x256xi1>
    %480 = vector.broadcast %cst_199 : f32 to vector<8x256xf32>
    %481 = arith.select %479, %475, %480 : vector<8x256xi1>, vector<8x256xf32>
    %c17 = arith.constant 17 : index
    %c0_200 = arith.constant 0 : index
    %c0_201 = arith.constant 0 : index
    %482 = vector.load %arg10[%c17, %c0_200, %c0_201] : memref<25x8x1xf32, #tpu.memory_space<vmem>>, vector<1x8x1xf32>
    %483 = vector.shape_cast %482 : vector<1x8x1xf32> to vector<8x1xf32>
    %484 = vector.broadcast %483 : vector<8x1xf32> to vector<8x256xf32>
    %485 = arith.mulf %481, %484 : vector<8x256xf32>
    %486 = arith.addf %474, %485 : vector<8x256xf32>
    %c239_i32 = arith.constant 239 : i32
    %487 = tpu.dynamic_rotate %248 by %c239_i32 dim 1 : vector<8x256xf32>, i32 -> vector<8x256xf32>
    %c15_i32_202 = arith.constant 15 : i32
    %488 = vector.broadcast %c15_i32_202 : i32 to vector<1x256xi32>
    %489 = arith.cmpi slt, %2, %488 : vector<1x256xi32>
    %c15_i32_203 = arith.constant 15 : i32
    %490 = vector.broadcast %c15_i32_203 : i32 to vector<1x256xi32>
    %491 = arith.cmpi slt, %3, %490 : vector<1x256xi32>
    %492 = arith.andi %489, %491 : vector<1x256xi1>
    %cst_204 = arith.constant 0.000000e+00 : f32
    %493 = vector.shape_cast %492 : vector<1x256xi1> to vector<1x256xi1>
    %494 = vector.broadcast %493 : vector<1x256xi1> to vector<8x256xi1>
    %495 = vector.broadcast %cst_204 : f32 to vector<8x256xf32>
    %496 = arith.select %494, %487, %495 : vector<8x256xi1>, vector<8x256xf32>
    %c18 = arith.constant 18 : index
    %c0_205 = arith.constant 0 : index
    %c0_206 = arith.constant 0 : index
    %497 = vector.load %arg10[%c18, %c0_205, %c0_206] : memref<25x8x1xf32, #tpu.memory_space<vmem>>, vector<1x8x1xf32>
    %498 = vector.shape_cast %497 : vector<1x8x1xf32> to vector<8x1xf32>
    %499 = vector.broadcast %498 : vector<8x1xf32> to vector<8x256xf32>
    %500 = arith.mulf %496, %499 : vector<8x256xf32>
    %501 = arith.addf %486, %500 : vector<8x256xf32>
    %c238_i32 = arith.constant 238 : i32
    %502 = tpu.dynamic_rotate %248 by %c238_i32 dim 1 : vector<8x256xf32>, i32 -> vector<8x256xf32>
    %c14_i32_207 = arith.constant 14 : i32
    %503 = vector.broadcast %c14_i32_207 : i32 to vector<1x256xi32>
    %504 = arith.cmpi slt, %2, %503 : vector<1x256xi32>
    %c15_i32_208 = arith.constant 15 : i32
    %505 = vector.broadcast %c15_i32_208 : i32 to vector<1x256xi32>
    %506 = arith.cmpi slt, %3, %505 : vector<1x256xi32>
    %507 = arith.andi %504, %506 : vector<1x256xi1>
    %cst_209 = arith.constant 0.000000e+00 : f32
    %508 = vector.shape_cast %507 : vector<1x256xi1> to vector<1x256xi1>
    %509 = vector.broadcast %508 : vector<1x256xi1> to vector<8x256xi1>
    %510 = vector.broadcast %cst_209 : f32 to vector<8x256xf32>
    %511 = arith.select %509, %502, %510 : vector<8x256xi1>, vector<8x256xf32>
    %c19 = arith.constant 19 : index
    %c0_210 = arith.constant 0 : index
    %c0_211 = arith.constant 0 : index
    %512 = vector.load %arg10[%c19, %c0_210, %c0_211] : memref<25x8x1xf32, #tpu.memory_space<vmem>>, vector<1x8x1xf32>
    %513 = vector.shape_cast %512 : vector<1x8x1xf32> to vector<8x1xf32>
    %514 = vector.broadcast %513 : vector<8x1xf32> to vector<8x256xf32>
    %515 = arith.mulf %511, %514 : vector<8x256xf32>
    %516 = arith.addf %501, %515 : vector<8x256xf32>
    %c226_i32 = arith.constant 226 : i32
    %517 = tpu.dynamic_rotate %248 by %c226_i32 dim 1 : vector<8x256xf32>, i32 -> vector<8x256xf32>
    %c2_i32_212 = arith.constant 2 : i32
    %518 = vector.broadcast %c2_i32_212 : i32 to vector<1x256xi32>
    %519 = arith.cmpi sge, %2, %518 : vector<1x256xi32>
    %c14_i32_213 = arith.constant 14 : i32
    %520 = vector.broadcast %c14_i32_213 : i32 to vector<1x256xi32>
    %521 = arith.cmpi slt, %3, %520 : vector<1x256xi32>
    %522 = arith.andi %519, %521 : vector<1x256xi1>
    %cst_214 = arith.constant 0.000000e+00 : f32
    %523 = vector.shape_cast %522 : vector<1x256xi1> to vector<1x256xi1>
    %524 = vector.broadcast %523 : vector<1x256xi1> to vector<8x256xi1>
    %525 = vector.broadcast %cst_214 : f32 to vector<8x256xf32>
    %526 = arith.select %524, %517, %525 : vector<8x256xi1>, vector<8x256xf32>
    %c20 = arith.constant 20 : index
    %c0_215 = arith.constant 0 : index
    %c0_216 = arith.constant 0 : index
    %527 = vector.load %arg10[%c20, %c0_215, %c0_216] : memref<25x8x1xf32, #tpu.memory_space<vmem>>, vector<1x8x1xf32>
    %528 = vector.shape_cast %527 : vector<1x8x1xf32> to vector<8x1xf32>
    %529 = vector.broadcast %528 : vector<8x1xf32> to vector<8x256xf32>
    %530 = arith.mulf %526, %529 : vector<8x256xf32>
    %531 = arith.addf %516, %530 : vector<8x256xf32>
    %c225_i32 = arith.constant 225 : i32
    %532 = tpu.dynamic_rotate %248 by %c225_i32 dim 1 : vector<8x256xf32>, i32 -> vector<8x256xf32>
    %c1_i32_217 = arith.constant 1 : i32
    %533 = vector.broadcast %c1_i32_217 : i32 to vector<1x256xi32>
    %534 = arith.cmpi sge, %2, %533 : vector<1x256xi32>
    %c14_i32_218 = arith.constant 14 : i32
    %535 = vector.broadcast %c14_i32_218 : i32 to vector<1x256xi32>
    %536 = arith.cmpi slt, %3, %535 : vector<1x256xi32>
    %537 = arith.andi %534, %536 : vector<1x256xi1>
    %cst_219 = arith.constant 0.000000e+00 : f32
    %538 = vector.shape_cast %537 : vector<1x256xi1> to vector<1x256xi1>
    %539 = vector.broadcast %538 : vector<1x256xi1> to vector<8x256xi1>
    %540 = vector.broadcast %cst_219 : f32 to vector<8x256xf32>
    %541 = arith.select %539, %532, %540 : vector<8x256xi1>, vector<8x256xf32>
    %c21 = arith.constant 21 : index
    %c0_220 = arith.constant 0 : index
    %c0_221 = arith.constant 0 : index
    %542 = vector.load %arg10[%c21, %c0_220, %c0_221] : memref<25x8x1xf32, #tpu.memory_space<vmem>>, vector<1x8x1xf32>
    %543 = vector.shape_cast %542 : vector<1x8x1xf32> to vector<8x1xf32>
    %544 = vector.broadcast %543 : vector<8x1xf32> to vector<8x256xf32>
    %545 = arith.mulf %541, %544 : vector<8x256xf32>
    %546 = arith.addf %531, %545 : vector<8x256xf32>
    %c224_i32 = arith.constant 224 : i32
    %547 = tpu.dynamic_rotate %248 by %c224_i32 dim 1 : vector<8x256xf32>, i32 -> vector<8x256xf32>
    %c14_i32_222 = arith.constant 14 : i32
    %548 = vector.broadcast %c14_i32_222 : i32 to vector<1x256xi32>
    %549 = arith.cmpi slt, %3, %548 : vector<1x256xi32>
    %cst_223 = arith.constant 0.000000e+00 : f32
    %550 = vector.shape_cast %549 : vector<1x256xi1> to vector<1x256xi1>
    %551 = vector.broadcast %550 : vector<1x256xi1> to vector<8x256xi1>
    %552 = vector.broadcast %cst_223 : f32 to vector<8x256xf32>
    %553 = arith.select %551, %547, %552 : vector<8x256xi1>, vector<8x256xf32>
    %c22 = arith.constant 22 : index
    %c0_224 = arith.constant 0 : index
    %c0_225 = arith.constant 0 : index
    %554 = vector.load %arg10[%c22, %c0_224, %c0_225] : memref<25x8x1xf32, #tpu.memory_space<vmem>>, vector<1x8x1xf32>
    %555 = vector.shape_cast %554 : vector<1x8x1xf32> to vector<8x1xf32>
    %556 = vector.broadcast %555 : vector<8x1xf32> to vector<8x256xf32>
    %557 = arith.mulf %553, %556 : vector<8x256xf32>
    %558 = arith.addf %546, %557 : vector<8x256xf32>
    %c223_i32 = arith.constant 223 : i32
    %559 = tpu.dynamic_rotate %248 by %c223_i32 dim 1 : vector<8x256xf32>, i32 -> vector<8x256xf32>
    %c15_i32_226 = arith.constant 15 : i32
    %560 = vector.broadcast %c15_i32_226 : i32 to vector<1x256xi32>
    %561 = arith.cmpi slt, %2, %560 : vector<1x256xi32>
    %c14_i32_227 = arith.constant 14 : i32
    %562 = vector.broadcast %c14_i32_227 : i32 to vector<1x256xi32>
    %563 = arith.cmpi slt, %3, %562 : vector<1x256xi32>
    %564 = arith.andi %561, %563 : vector<1x256xi1>
    %cst_228 = arith.constant 0.000000e+00 : f32
    %565 = vector.shape_cast %564 : vector<1x256xi1> to vector<1x256xi1>
    %566 = vector.broadcast %565 : vector<1x256xi1> to vector<8x256xi1>
    %567 = vector.broadcast %cst_228 : f32 to vector<8x256xf32>
    %568 = arith.select %566, %559, %567 : vector<8x256xi1>, vector<8x256xf32>
    %c23 = arith.constant 23 : index
    %c0_229 = arith.constant 0 : index
    %c0_230 = arith.constant 0 : index
    %569 = vector.load %arg10[%c23, %c0_229, %c0_230] : memref<25x8x1xf32, #tpu.memory_space<vmem>>, vector<1x8x1xf32>
    %570 = vector.shape_cast %569 : vector<1x8x1xf32> to vector<8x1xf32>
    %571 = vector.broadcast %570 : vector<8x1xf32> to vector<8x256xf32>
    %572 = arith.mulf %568, %571 : vector<8x256xf32>
    %573 = arith.addf %558, %572 : vector<8x256xf32>
    %c222_i32 = arith.constant 222 : i32
    %574 = tpu.dynamic_rotate %248 by %c222_i32 dim 1 : vector<8x256xf32>, i32 -> vector<8x256xf32>
    %c14_i32_231 = arith.constant 14 : i32
    %575 = vector.broadcast %c14_i32_231 : i32 to vector<1x256xi32>
    %576 = arith.cmpi slt, %2, %575 : vector<1x256xi32>
    %c14_i32_232 = arith.constant 14 : i32
    %577 = vector.broadcast %c14_i32_232 : i32 to vector<1x256xi32>
    %578 = arith.cmpi slt, %3, %577 : vector<1x256xi32>
    %579 = arith.andi %576, %578 : vector<1x256xi1>
    %cst_233 = arith.constant 0.000000e+00 : f32
    %580 = vector.shape_cast %579 : vector<1x256xi1> to vector<1x256xi1>
    %581 = vector.broadcast %580 : vector<1x256xi1> to vector<8x256xi1>
    %582 = vector.broadcast %cst_233 : f32 to vector<8x256xf32>
    %583 = arith.select %581, %574, %582 : vector<8x256xi1>, vector<8x256xf32>
    %c24 = arith.constant 24 : index
    %c0_234 = arith.constant 0 : index
    %c0_235 = arith.constant 0 : index
    %584 = vector.load %arg10[%c24, %c0_234, %c0_235] : memref<25x8x1xf32, #tpu.memory_space<vmem>>, vector<1x8x1xf32>
    %585 = vector.shape_cast %584 : vector<1x8x1xf32> to vector<8x1xf32>
    %586 = vector.broadcast %585 : vector<8x1xf32> to vector<8x256xf32>
    %587 = arith.mulf %583, %586 : vector<8x256xf32>
    %588 = arith.addf %573, %587 : vector<8x256xf32>
    %c0_236 = arith.constant 0 : index
    %c0_237 = arith.constant 0 : index
    %589 = vector.load %arg11[%c0_236, %c0_237] : memref<8x1xf32, #tpu.memory_space<vmem>>, vector<8x1xf32>
    %590 = vector.broadcast %589 : vector<8x1xf32> to vector<8x256xf32>
    %591 = arith.addf %588, %590 : vector<8x256xf32>
    %c3_i32 = arith.constant 3 : i32
    %592 = tpu.dynamic_rotate %591 by %c3_i32 dim 1 : vector<8x256xf32>, i32 -> vector<8x256xf32>
    %c3_i32_238 = arith.constant 3 : i32
    %593 = vector.broadcast %c3_i32_238 : i32 to vector<1x256xi32>
    %594 = arith.cmpi sge, %2, %593 : vector<1x256xi32>
    %cst_239 = arith.constant 0.000000e+00 : f32
    %595 = vector.shape_cast %594 : vector<1x256xi1> to vector<1x256xi1>
    %596 = vector.broadcast %595 : vector<1x256xi1> to vector<8x256xi1>
    %597 = vector.broadcast %cst_239 : f32 to vector<8x256xf32>
    %598 = arith.select %596, %592, %597 : vector<8x256xi1>, vector<8x256xf32>
    %c0_240 = arith.constant 0 : index
    %c0_241 = arith.constant 0 : index
    %c0_242 = arith.constant 0 : index
    %599 = vector.load %arg12[%c0_240, %c0_241, %c0_242] : memref<7x8x1xf32, #tpu.memory_space<vmem>>, vector<1x8x1xf32>
    %600 = vector.shape_cast %599 : vector<1x8x1xf32> to vector<8x1xf32>
    %601 = vector.broadcast %600 : vector<8x1xf32> to vector<8x256xf32>
    %602 = arith.mulf %598, %601 : vector<8x256xf32>
    %c2_i32_243 = arith.constant 2 : i32
    %603 = tpu.dynamic_rotate %591 by %c2_i32_243 dim 1 : vector<8x256xf32>, i32 -> vector<8x256xf32>
    %c2_i32_244 = arith.constant 2 : i32
    %604 = vector.broadcast %c2_i32_244 : i32 to vector<1x256xi32>
    %605 = arith.cmpi sge, %2, %604 : vector<1x256xi32>
    %cst_245 = arith.constant 0.000000e+00 : f32
    %606 = vector.shape_cast %605 : vector<1x256xi1> to vector<1x256xi1>
    %607 = vector.broadcast %606 : vector<1x256xi1> to vector<8x256xi1>
    %608 = vector.broadcast %cst_245 : f32 to vector<8x256xf32>
    %609 = arith.select %607, %603, %608 : vector<8x256xi1>, vector<8x256xf32>
    %c1_246 = arith.constant 1 : index
    %c0_247 = arith.constant 0 : index
    %c0_248 = arith.constant 0 : index
    %610 = vector.load %arg12[%c1_246, %c0_247, %c0_248] : memref<7x8x1xf32, #tpu.memory_space<vmem>>, vector<1x8x1xf32>
    %611 = vector.shape_cast %610 : vector<1x8x1xf32> to vector<8x1xf32>
    %612 = vector.broadcast %611 : vector<8x1xf32> to vector<8x256xf32>
    %613 = arith.mulf %609, %612 : vector<8x256xf32>
    %614 = arith.addf %602, %613 : vector<8x256xf32>
    %c1_i32_249 = arith.constant 1 : i32
    %615 = tpu.dynamic_rotate %591 by %c1_i32_249 dim 1 : vector<8x256xf32>, i32 -> vector<8x256xf32>
    %c1_i32_250 = arith.constant 1 : i32
    %616 = vector.broadcast %c1_i32_250 : i32 to vector<1x256xi32>
    %617 = arith.cmpi sge, %2, %616 : vector<1x256xi32>
    %cst_251 = arith.constant 0.000000e+00 : f32
    %618 = vector.shape_cast %617 : vector<1x256xi1> to vector<1x256xi1>
    %619 = vector.broadcast %618 : vector<1x256xi1> to vector<8x256xi1>
    %620 = vector.broadcast %cst_251 : f32 to vector<8x256xf32>
    %621 = arith.select %619, %615, %620 : vector<8x256xi1>, vector<8x256xf32>
    %c2_252 = arith.constant 2 : index
    %c0_253 = arith.constant 0 : index
    %c0_254 = arith.constant 0 : index
    %622 = vector.load %arg12[%c2_252, %c0_253, %c0_254] : memref<7x8x1xf32, #tpu.memory_space<vmem>>, vector<1x8x1xf32>
    %623 = vector.shape_cast %622 : vector<1x8x1xf32> to vector<8x1xf32>
    %624 = vector.broadcast %623 : vector<8x1xf32> to vector<8x256xf32>
    %625 = arith.mulf %621, %624 : vector<8x256xf32>
    %626 = arith.addf %614, %625 : vector<8x256xf32>
    %c3_255 = arith.constant 3 : index
    %c0_256 = arith.constant 0 : index
    %c0_257 = arith.constant 0 : index
    %627 = vector.load %arg12[%c3_255, %c0_256, %c0_257] : memref<7x8x1xf32, #tpu.memory_space<vmem>>, vector<1x8x1xf32>
    %628 = vector.shape_cast %627 : vector<1x8x1xf32> to vector<8x1xf32>
    %629 = vector.broadcast %628 : vector<8x1xf32> to vector<8x256xf32>
    %630 = arith.mulf %591, %629 : vector<8x256xf32>
    %631 = arith.addf %626, %630 : vector<8x256xf32>
    %c255_i32_258 = arith.constant 255 : i32
    %632 = tpu.dynamic_rotate %591 by %c255_i32_258 dim 1 : vector<8x256xf32>, i32 -> vector<8x256xf32>
    %c15_i32_259 = arith.constant 15 : i32
    %633 = vector.broadcast %c15_i32_259 : i32 to vector<1x256xi32>
    %634 = arith.cmpi slt, %2, %633 : vector<1x256xi32>
    %cst_260 = arith.constant 0.000000e+00 : f32
    %635 = vector.shape_cast %634 : vector<1x256xi1> to vector<1x256xi1>
    %636 = vector.broadcast %635 : vector<1x256xi1> to vector<8x256xi1>
    %637 = vector.broadcast %cst_260 : f32 to vector<8x256xf32>
    %638 = arith.select %636, %632, %637 : vector<8x256xi1>, vector<8x256xf32>
    %c4_261 = arith.constant 4 : index
    %c0_262 = arith.constant 0 : index
    %c0_263 = arith.constant 0 : index
    %639 = vector.load %arg12[%c4_261, %c0_262, %c0_263] : memref<7x8x1xf32, #tpu.memory_space<vmem>>, vector<1x8x1xf32>
    %640 = vector.shape_cast %639 : vector<1x8x1xf32> to vector<8x1xf32>
    %641 = vector.broadcast %640 : vector<8x1xf32> to vector<8x256xf32>
    %642 = arith.mulf %638, %641 : vector<8x256xf32>
    %643 = arith.addf %631, %642 : vector<8x256xf32>
    %c254_i32_264 = arith.constant 254 : i32
    %644 = tpu.dynamic_rotate %591 by %c254_i32_264 dim 1 : vector<8x256xf32>, i32 -> vector<8x256xf32>
    %c14_i32_265 = arith.constant 14 : i32
    %645 = vector.broadcast %c14_i32_265 : i32 to vector<1x256xi32>
    %646 = arith.cmpi slt, %2, %645 : vector<1x256xi32>
    %cst_266 = arith.constant 0.000000e+00 : f32
    %647 = vector.shape_cast %646 : vector<1x256xi1> to vector<1x256xi1>
    %648 = vector.broadcast %647 : vector<1x256xi1> to vector<8x256xi1>
    %649 = vector.broadcast %cst_266 : f32 to vector<8x256xf32>
    %650 = arith.select %648, %644, %649 : vector<8x256xi1>, vector<8x256xf32>
    %c5_267 = arith.constant 5 : index
    %c0_268 = arith.constant 0 : index
    %c0_269 = arith.constant 0 : index
    %651 = vector.load %arg12[%c5_267, %c0_268, %c0_269] : memref<7x8x1xf32, #tpu.memory_space<vmem>>, vector<1x8x1xf32>
    %652 = vector.shape_cast %651 : vector<1x8x1xf32> to vector<8x1xf32>
    %653 = vector.broadcast %652 : vector<8x1xf32> to vector<8x256xf32>
    %654 = arith.mulf %650, %653 : vector<8x256xf32>
    %655 = arith.addf %643, %654 : vector<8x256xf32>
    %c253_i32 = arith.constant 253 : i32
    %656 = tpu.dynamic_rotate %591 by %c253_i32 dim 1 : vector<8x256xf32>, i32 -> vector<8x256xf32>
    %c13_i32 = arith.constant 13 : i32
    %657 = vector.broadcast %c13_i32 : i32 to vector<1x256xi32>
    %658 = arith.cmpi slt, %2, %657 : vector<1x256xi32>
    %cst_270 = arith.constant 0.000000e+00 : f32
    %659 = vector.shape_cast %658 : vector<1x256xi1> to vector<1x256xi1>
    %660 = vector.broadcast %659 : vector<1x256xi1> to vector<8x256xi1>
    %661 = vector.broadcast %cst_270 : f32 to vector<8x256xf32>
    %662 = arith.select %660, %656, %661 : vector<8x256xi1>, vector<8x256xf32>
    %c6_271 = arith.constant 6 : index
    %c0_272 = arith.constant 0 : index
    %c0_273 = arith.constant 0 : index
    %663 = vector.load %arg12[%c6_271, %c0_272, %c0_273] : memref<7x8x1xf32, #tpu.memory_space<vmem>>, vector<1x8x1xf32>
    %664 = vector.shape_cast %663 : vector<1x8x1xf32> to vector<8x1xf32>
    %665 = vector.broadcast %664 : vector<8x1xf32> to vector<8x256xf32>
    %666 = arith.mulf %662, %665 : vector<8x256xf32>
    %667 = arith.addf %655, %666 : vector<8x256xf32>
    %c0_274 = arith.constant 0 : index
    %c0_275 = arith.constant 0 : index
    %668 = vector.load %arg13[%c0_274, %c0_275] : memref<8x1xf32, #tpu.memory_space<vmem>>, vector<8x1xf32>
    %669 = vector.broadcast %668 : vector<8x1xf32> to vector<8x256xf32>
    %670 = arith.addf %667, %669 : vector<8x256xf32>
    %c48_i32 = arith.constant 48 : i32
    %671 = tpu.dynamic_rotate %670 by %c48_i32 dim 1 : vector<8x256xf32>, i32 -> vector<8x256xf32>
    %c3_i32_276 = arith.constant 3 : i32
    %672 = vector.broadcast %c3_i32_276 : i32 to vector<1x256xi32>
    %673 = arith.cmpi sge, %3, %672 : vector<1x256xi32>
    %cst_277 = arith.constant 0.000000e+00 : f32
    %674 = vector.shape_cast %673 : vector<1x256xi1> to vector<1x256xi1>
    %675 = vector.broadcast %674 : vector<1x256xi1> to vector<8x256xi1>
    %676 = vector.broadcast %cst_277 : f32 to vector<8x256xf32>
    %677 = arith.select %675, %671, %676 : vector<8x256xi1>, vector<8x256xf32>
    %c0_278 = arith.constant 0 : index
    %c0_279 = arith.constant 0 : index
    %c0_280 = arith.constant 0 : index
    %678 = vector.load %arg14[%c0_278, %c0_279, %c0_280] : memref<7x8x1xf32, #tpu.memory_space<vmem>>, vector<1x8x1xf32>
    %679 = vector.shape_cast %678 : vector<1x8x1xf32> to vector<8x1xf32>
    %680 = vector.broadcast %679 : vector<8x1xf32> to vector<8x256xf32>
    %681 = arith.mulf %677, %680 : vector<8x256xf32>
    %c32_i32_281 = arith.constant 32 : i32
    %682 = tpu.dynamic_rotate %670 by %c32_i32_281 dim 1 : vector<8x256xf32>, i32 -> vector<8x256xf32>
    %c2_i32_282 = arith.constant 2 : i32
    %683 = vector.broadcast %c2_i32_282 : i32 to vector<1x256xi32>
    %684 = arith.cmpi sge, %3, %683 : vector<1x256xi32>
    %cst_283 = arith.constant 0.000000e+00 : f32
    %685 = vector.shape_cast %684 : vector<1x256xi1> to vector<1x256xi1>
    %686 = vector.broadcast %685 : vector<1x256xi1> to vector<8x256xi1>
    %687 = vector.broadcast %cst_283 : f32 to vector<8x256xf32>
    %688 = arith.select %686, %682, %687 : vector<8x256xi1>, vector<8x256xf32>
    %c1_284 = arith.constant 1 : index
    %c0_285 = arith.constant 0 : index
    %c0_286 = arith.constant 0 : index
    %689 = vector.load %arg14[%c1_284, %c0_285, %c0_286] : memref<7x8x1xf32, #tpu.memory_space<vmem>>, vector<1x8x1xf32>
    %690 = vector.shape_cast %689 : vector<1x8x1xf32> to vector<8x1xf32>
    %691 = vector.broadcast %690 : vector<8x1xf32> to vector<8x256xf32>
    %692 = arith.mulf %688, %691 : vector<8x256xf32>
    %693 = arith.addf %681, %692 : vector<8x256xf32>
    %c16_i32_287 = arith.constant 16 : i32
    %694 = tpu.dynamic_rotate %670 by %c16_i32_287 dim 1 : vector<8x256xf32>, i32 -> vector<8x256xf32>
    %c1_i32_288 = arith.constant 1 : i32
    %695 = vector.broadcast %c1_i32_288 : i32 to vector<1x256xi32>
    %696 = arith.cmpi sge, %3, %695 : vector<1x256xi32>
    %cst_289 = arith.constant 0.000000e+00 : f32
    %697 = vector.shape_cast %696 : vector<1x256xi1> to vector<1x256xi1>
    %698 = vector.broadcast %697 : vector<1x256xi1> to vector<8x256xi1>
    %699 = vector.broadcast %cst_289 : f32 to vector<8x256xf32>
    %700 = arith.select %698, %694, %699 : vector<8x256xi1>, vector<8x256xf32>
    %c2_290 = arith.constant 2 : index
    %c0_291 = arith.constant 0 : index
    %c0_292 = arith.constant 0 : index
    %701 = vector.load %arg14[%c2_290, %c0_291, %c0_292] : memref<7x8x1xf32, #tpu.memory_space<vmem>>, vector<1x8x1xf32>
    %702 = vector.shape_cast %701 : vector<1x8x1xf32> to vector<8x1xf32>
    %703 = vector.broadcast %702 : vector<8x1xf32> to vector<8x256xf32>
    %704 = arith.mulf %700, %703 : vector<8x256xf32>
    %705 = arith.addf %693, %704 : vector<8x256xf32>
    %c3_293 = arith.constant 3 : index
    %c0_294 = arith.constant 0 : index
    %c0_295 = arith.constant 0 : index
    %706 = vector.load %arg14[%c3_293, %c0_294, %c0_295] : memref<7x8x1xf32, #tpu.memory_space<vmem>>, vector<1x8x1xf32>
    %707 = vector.shape_cast %706 : vector<1x8x1xf32> to vector<8x1xf32>
    %708 = vector.broadcast %707 : vector<8x1xf32> to vector<8x256xf32>
    %709 = arith.mulf %670, %708 : vector<8x256xf32>
    %710 = arith.addf %705, %709 : vector<8x256xf32>
    %c240_i32_296 = arith.constant 240 : i32
    %711 = tpu.dynamic_rotate %670 by %c240_i32_296 dim 1 : vector<8x256xf32>, i32 -> vector<8x256xf32>
    %c15_i32_297 = arith.constant 15 : i32
    %712 = vector.broadcast %c15_i32_297 : i32 to vector<1x256xi32>
    %713 = arith.cmpi slt, %3, %712 : vector<1x256xi32>
    %cst_298 = arith.constant 0.000000e+00 : f32
    %714 = vector.shape_cast %713 : vector<1x256xi1> to vector<1x256xi1>
    %715 = vector.broadcast %714 : vector<1x256xi1> to vector<8x256xi1>
    %716 = vector.broadcast %cst_298 : f32 to vector<8x256xf32>
    %717 = arith.select %715, %711, %716 : vector<8x256xi1>, vector<8x256xf32>
    %c4_299 = arith.constant 4 : index
    %c0_300 = arith.constant 0 : index
    %c0_301 = arith.constant 0 : index
    %718 = vector.load %arg14[%c4_299, %c0_300, %c0_301] : memref<7x8x1xf32, #tpu.memory_space<vmem>>, vector<1x8x1xf32>
    %719 = vector.shape_cast %718 : vector<1x8x1xf32> to vector<8x1xf32>
    %720 = vector.broadcast %719 : vector<8x1xf32> to vector<8x256xf32>
    %721 = arith.mulf %717, %720 : vector<8x256xf32>
    %722 = arith.addf %710, %721 : vector<8x256xf32>
    %c224_i32_302 = arith.constant 224 : i32
    %723 = tpu.dynamic_rotate %670 by %c224_i32_302 dim 1 : vector<8x256xf32>, i32 -> vector<8x256xf32>
    %c14_i32_303 = arith.constant 14 : i32
    %724 = vector.broadcast %c14_i32_303 : i32 to vector<1x256xi32>
    %725 = arith.cmpi slt, %3, %724 : vector<1x256xi32>
    %cst_304 = arith.constant 0.000000e+00 : f32
    %726 = vector.shape_cast %725 : vector<1x256xi1> to vector<1x256xi1>
    %727 = vector.broadcast %726 : vector<1x256xi1> to vector<8x256xi1>
    %728 = vector.broadcast %cst_304 : f32 to vector<8x256xf32>
    %729 = arith.select %727, %723, %728 : vector<8x256xi1>, vector<8x256xf32>
    %c5_305 = arith.constant 5 : index
    %c0_306 = arith.constant 0 : index
    %c0_307 = arith.constant 0 : index
    %730 = vector.load %arg14[%c5_305, %c0_306, %c0_307] : memref<7x8x1xf32, #tpu.memory_space<vmem>>, vector<1x8x1xf32>
    %731 = vector.shape_cast %730 : vector<1x8x1xf32> to vector<8x1xf32>
    %732 = vector.broadcast %731 : vector<8x1xf32> to vector<8x256xf32>
    %733 = arith.mulf %729, %732 : vector<8x256xf32>
    %734 = arith.addf %722, %733 : vector<8x256xf32>
    %c208_i32 = arith.constant 208 : i32
    %735 = tpu.dynamic_rotate %670 by %c208_i32 dim 1 : vector<8x256xf32>, i32 -> vector<8x256xf32>
    %c13_i32_308 = arith.constant 13 : i32
    %736 = vector.broadcast %c13_i32_308 : i32 to vector<1x256xi32>
    %737 = arith.cmpi slt, %3, %736 : vector<1x256xi32>
    %cst_309 = arith.constant 0.000000e+00 : f32
    %738 = vector.shape_cast %737 : vector<1x256xi1> to vector<1x256xi1>
    %739 = vector.broadcast %738 : vector<1x256xi1> to vector<8x256xi1>
    %740 = vector.broadcast %cst_309 : f32 to vector<8x256xf32>
    %741 = arith.select %739, %735, %740 : vector<8x256xi1>, vector<8x256xf32>
    %c6_310 = arith.constant 6 : index
    %c0_311 = arith.constant 0 : index
    %c0_312 = arith.constant 0 : index
    %742 = vector.load %arg14[%c6_310, %c0_311, %c0_312] : memref<7x8x1xf32, #tpu.memory_space<vmem>>, vector<1x8x1xf32>
    %743 = vector.shape_cast %742 : vector<1x8x1xf32> to vector<8x1xf32>
    %744 = vector.broadcast %743 : vector<8x1xf32> to vector<8x256xf32>
    %745 = arith.mulf %741, %744 : vector<8x256xf32>
    %746 = arith.addf %734, %745 : vector<8x256xf32>
    %c0_313 = arith.constant 0 : index
    %c0_314 = arith.constant 0 : index
    %747 = vector.load %arg15[%c0_313, %c0_314] : memref<8x1xf32, #tpu.memory_space<vmem>>, vector<8x1xf32>
    %748 = vector.broadcast %747 : vector<8x1xf32> to vector<8x256xf32>
    %749 = arith.addf %746, %748 : vector<8x256xf32>
    %750 = arith.addf %591, %749 : vector<8x256xf32>
    %c5_i32 = arith.constant 5 : i32
    %751 = tpu.dynamic_rotate %591 by %c5_i32 dim 1 : vector<8x256xf32>, i32 -> vector<8x256xf32>
    %c5_i32_315 = arith.constant 5 : i32
    %752 = vector.broadcast %c5_i32_315 : i32 to vector<1x256xi32>
    %753 = arith.cmpi sge, %2, %752 : vector<1x256xi32>
    %cst_316 = arith.constant 0.000000e+00 : f32
    %754 = vector.shape_cast %753 : vector<1x256xi1> to vector<1x256xi1>
    %755 = vector.broadcast %754 : vector<1x256xi1> to vector<8x256xi1>
    %756 = vector.broadcast %cst_316 : f32 to vector<8x256xf32>
    %757 = arith.select %755, %751, %756 : vector<8x256xi1>, vector<8x256xf32>
    %c0_317 = arith.constant 0 : index
    %c0_318 = arith.constant 0 : index
    %c0_319 = arith.constant 0 : index
    %758 = vector.load %arg16[%c0_317, %c0_318, %c0_319] : memref<11x8x1xf32, #tpu.memory_space<vmem>>, vector<1x8x1xf32>
    %759 = vector.shape_cast %758 : vector<1x8x1xf32> to vector<8x1xf32>
    %760 = vector.broadcast %759 : vector<8x1xf32> to vector<8x256xf32>
    %761 = arith.mulf %757, %760 : vector<8x256xf32>
    %c4_i32 = arith.constant 4 : i32
    %762 = tpu.dynamic_rotate %591 by %c4_i32 dim 1 : vector<8x256xf32>, i32 -> vector<8x256xf32>
    %c4_i32_320 = arith.constant 4 : i32
    %763 = vector.broadcast %c4_i32_320 : i32 to vector<1x256xi32>
    %764 = arith.cmpi sge, %2, %763 : vector<1x256xi32>
    %cst_321 = arith.constant 0.000000e+00 : f32
    %765 = vector.shape_cast %764 : vector<1x256xi1> to vector<1x256xi1>
    %766 = vector.broadcast %765 : vector<1x256xi1> to vector<8x256xi1>
    %767 = vector.broadcast %cst_321 : f32 to vector<8x256xf32>
    %768 = arith.select %766, %762, %767 : vector<8x256xi1>, vector<8x256xf32>
    %c1_322 = arith.constant 1 : index
    %c0_323 = arith.constant 0 : index
    %c0_324 = arith.constant 0 : index
    %769 = vector.load %arg16[%c1_322, %c0_323, %c0_324] : memref<11x8x1xf32, #tpu.memory_space<vmem>>, vector<1x8x1xf32>
    %770 = vector.shape_cast %769 : vector<1x8x1xf32> to vector<8x1xf32>
    %771 = vector.broadcast %770 : vector<8x1xf32> to vector<8x256xf32>
    %772 = arith.mulf %768, %771 : vector<8x256xf32>
    %773 = arith.addf %761, %772 : vector<8x256xf32>
    %c3_i32_325 = arith.constant 3 : i32
    %774 = tpu.dynamic_rotate %591 by %c3_i32_325 dim 1 : vector<8x256xf32>, i32 -> vector<8x256xf32>
    %c3_i32_326 = arith.constant 3 : i32
    %775 = vector.broadcast %c3_i32_326 : i32 to vector<1x256xi32>
    %776 = arith.cmpi sge, %2, %775 : vector<1x256xi32>
    %cst_327 = arith.constant 0.000000e+00 : f32
    %777 = vector.shape_cast %776 : vector<1x256xi1> to vector<1x256xi1>
    %778 = vector.broadcast %777 : vector<1x256xi1> to vector<8x256xi1>
    %779 = vector.broadcast %cst_327 : f32 to vector<8x256xf32>
    %780 = arith.select %778, %774, %779 : vector<8x256xi1>, vector<8x256xf32>
    %c2_328 = arith.constant 2 : index
    %c0_329 = arith.constant 0 : index
    %c0_330 = arith.constant 0 : index
    %781 = vector.load %arg16[%c2_328, %c0_329, %c0_330] : memref<11x8x1xf32, #tpu.memory_space<vmem>>, vector<1x8x1xf32>
    %782 = vector.shape_cast %781 : vector<1x8x1xf32> to vector<8x1xf32>
    %783 = vector.broadcast %782 : vector<8x1xf32> to vector<8x256xf32>
    %784 = arith.mulf %780, %783 : vector<8x256xf32>
    %785 = arith.addf %773, %784 : vector<8x256xf32>
    %c2_i32_331 = arith.constant 2 : i32
    %786 = tpu.dynamic_rotate %591 by %c2_i32_331 dim 1 : vector<8x256xf32>, i32 -> vector<8x256xf32>
    %c2_i32_332 = arith.constant 2 : i32
    %787 = vector.broadcast %c2_i32_332 : i32 to vector<1x256xi32>
    %788 = arith.cmpi sge, %2, %787 : vector<1x256xi32>
    %cst_333 = arith.constant 0.000000e+00 : f32
    %789 = vector.shape_cast %788 : vector<1x256xi1> to vector<1x256xi1>
    %790 = vector.broadcast %789 : vector<1x256xi1> to vector<8x256xi1>
    %791 = vector.broadcast %cst_333 : f32 to vector<8x256xf32>
    %792 = arith.select %790, %786, %791 : vector<8x256xi1>, vector<8x256xf32>
    %c3_334 = arith.constant 3 : index
    %c0_335 = arith.constant 0 : index
    %c0_336 = arith.constant 0 : index
    %793 = vector.load %arg16[%c3_334, %c0_335, %c0_336] : memref<11x8x1xf32, #tpu.memory_space<vmem>>, vector<1x8x1xf32>
    %794 = vector.shape_cast %793 : vector<1x8x1xf32> to vector<8x1xf32>
    %795 = vector.broadcast %794 : vector<8x1xf32> to vector<8x256xf32>
    %796 = arith.mulf %792, %795 : vector<8x256xf32>
    %797 = arith.addf %785, %796 : vector<8x256xf32>
    %c1_i32_337 = arith.constant 1 : i32
    %798 = tpu.dynamic_rotate %591 by %c1_i32_337 dim 1 : vector<8x256xf32>, i32 -> vector<8x256xf32>
    %c1_i32_338 = arith.constant 1 : i32
    %799 = vector.broadcast %c1_i32_338 : i32 to vector<1x256xi32>
    %800 = arith.cmpi sge, %2, %799 : vector<1x256xi32>
    %cst_339 = arith.constant 0.000000e+00 : f32
    %801 = vector.shape_cast %800 : vector<1x256xi1> to vector<1x256xi1>
    %802 = vector.broadcast %801 : vector<1x256xi1> to vector<8x256xi1>
    %803 = vector.broadcast %cst_339 : f32 to vector<8x256xf32>
    %804 = arith.select %802, %798, %803 : vector<8x256xi1>, vector<8x256xf32>
    %c4_340 = arith.constant 4 : index
    %c0_341 = arith.constant 0 : index
    %c0_342 = arith.constant 0 : index
    %805 = vector.load %arg16[%c4_340, %c0_341, %c0_342] : memref<11x8x1xf32, #tpu.memory_space<vmem>>, vector<1x8x1xf32>
    %806 = vector.shape_cast %805 : vector<1x8x1xf32> to vector<8x1xf32>
    %807 = vector.broadcast %806 : vector<8x1xf32> to vector<8x256xf32>
    %808 = arith.mulf %804, %807 : vector<8x256xf32>
    %809 = arith.addf %797, %808 : vector<8x256xf32>
    %c5_343 = arith.constant 5 : index
    %c0_344 = arith.constant 0 : index
    %c0_345 = arith.constant 0 : index
    %810 = vector.load %arg16[%c5_343, %c0_344, %c0_345] : memref<11x8x1xf32, #tpu.memory_space<vmem>>, vector<1x8x1xf32>
    %811 = vector.shape_cast %810 : vector<1x8x1xf32> to vector<8x1xf32>
    %812 = vector.broadcast %811 : vector<8x1xf32> to vector<8x256xf32>
    %813 = arith.mulf %591, %812 : vector<8x256xf32>
    %814 = arith.addf %809, %813 : vector<8x256xf32>
    %c255_i32_346 = arith.constant 255 : i32
    %815 = tpu.dynamic_rotate %591 by %c255_i32_346 dim 1 : vector<8x256xf32>, i32 -> vector<8x256xf32>
    %c15_i32_347 = arith.constant 15 : i32
    %816 = vector.broadcast %c15_i32_347 : i32 to vector<1x256xi32>
    %817 = arith.cmpi slt, %2, %816 : vector<1x256xi32>
    %cst_348 = arith.constant 0.000000e+00 : f32
    %818 = vector.shape_cast %817 : vector<1x256xi1> to vector<1x256xi1>
    %819 = vector.broadcast %818 : vector<1x256xi1> to vector<8x256xi1>
    %820 = vector.broadcast %cst_348 : f32 to vector<8x256xf32>
    %821 = arith.select %819, %815, %820 : vector<8x256xi1>, vector<8x256xf32>
    %c6_349 = arith.constant 6 : index
    %c0_350 = arith.constant 0 : index
    %c0_351 = arith.constant 0 : index
    %822 = vector.load %arg16[%c6_349, %c0_350, %c0_351] : memref<11x8x1xf32, #tpu.memory_space<vmem>>, vector<1x8x1xf32>
    %823 = vector.shape_cast %822 : vector<1x8x1xf32> to vector<8x1xf32>
    %824 = vector.broadcast %823 : vector<8x1xf32> to vector<8x256xf32>
    %825 = arith.mulf %821, %824 : vector<8x256xf32>
    %826 = arith.addf %814, %825 : vector<8x256xf32>
    %c254_i32_352 = arith.constant 254 : i32
    %827 = tpu.dynamic_rotate %591 by %c254_i32_352 dim 1 : vector<8x256xf32>, i32 -> vector<8x256xf32>
    %c14_i32_353 = arith.constant 14 : i32
    %828 = vector.broadcast %c14_i32_353 : i32 to vector<1x256xi32>
    %829 = arith.cmpi slt, %2, %828 : vector<1x256xi32>
    %cst_354 = arith.constant 0.000000e+00 : f32
    %830 = vector.shape_cast %829 : vector<1x256xi1> to vector<1x256xi1>
    %831 = vector.broadcast %830 : vector<1x256xi1> to vector<8x256xi1>
    %832 = vector.broadcast %cst_354 : f32 to vector<8x256xf32>
    %833 = arith.select %831, %827, %832 : vector<8x256xi1>, vector<8x256xf32>
    %c7_355 = arith.constant 7 : index
    %c0_356 = arith.constant 0 : index
    %c0_357 = arith.constant 0 : index
    %834 = vector.load %arg16[%c7_355, %c0_356, %c0_357] : memref<11x8x1xf32, #tpu.memory_space<vmem>>, vector<1x8x1xf32>
    %835 = vector.shape_cast %834 : vector<1x8x1xf32> to vector<8x1xf32>
    %836 = vector.broadcast %835 : vector<8x1xf32> to vector<8x256xf32>
    %837 = arith.mulf %833, %836 : vector<8x256xf32>
    %838 = arith.addf %826, %837 : vector<8x256xf32>
    %c253_i32_358 = arith.constant 253 : i32
    %839 = tpu.dynamic_rotate %591 by %c253_i32_358 dim 1 : vector<8x256xf32>, i32 -> vector<8x256xf32>
    %c13_i32_359 = arith.constant 13 : i32
    %840 = vector.broadcast %c13_i32_359 : i32 to vector<1x256xi32>
    %841 = arith.cmpi slt, %2, %840 : vector<1x256xi32>
    %cst_360 = arith.constant 0.000000e+00 : f32
    %842 = vector.shape_cast %841 : vector<1x256xi1> to vector<1x256xi1>
    %843 = vector.broadcast %842 : vector<1x256xi1> to vector<8x256xi1>
    %844 = vector.broadcast %cst_360 : f32 to vector<8x256xf32>
    %845 = arith.select %843, %839, %844 : vector<8x256xi1>, vector<8x256xf32>
    %c8_361 = arith.constant 8 : index
    %c0_362 = arith.constant 0 : index
    %c0_363 = arith.constant 0 : index
    %846 = vector.load %arg16[%c8_361, %c0_362, %c0_363] : memref<11x8x1xf32, #tpu.memory_space<vmem>>, vector<1x8x1xf32>
    %847 = vector.shape_cast %846 : vector<1x8x1xf32> to vector<8x1xf32>
    %848 = vector.broadcast %847 : vector<8x1xf32> to vector<8x256xf32>
    %849 = arith.mulf %845, %848 : vector<8x256xf32>
    %850 = arith.addf %838, %849 : vector<8x256xf32>
    %c252_i32 = arith.constant 252 : i32
    %851 = tpu.dynamic_rotate %591 by %c252_i32 dim 1 : vector<8x256xf32>, i32 -> vector<8x256xf32>
    %c12_i32 = arith.constant 12 : i32
    %852 = vector.broadcast %c12_i32 : i32 to vector<1x256xi32>
    %853 = arith.cmpi slt, %2, %852 : vector<1x256xi32>
    %cst_364 = arith.constant 0.000000e+00 : f32
    %854 = vector.shape_cast %853 : vector<1x256xi1> to vector<1x256xi1>
    %855 = vector.broadcast %854 : vector<1x256xi1> to vector<8x256xi1>
    %856 = vector.broadcast %cst_364 : f32 to vector<8x256xf32>
    %857 = arith.select %855, %851, %856 : vector<8x256xi1>, vector<8x256xf32>
    %c9_365 = arith.constant 9 : index
    %c0_366 = arith.constant 0 : index
    %c0_367 = arith.constant 0 : index
    %858 = vector.load %arg16[%c9_365, %c0_366, %c0_367] : memref<11x8x1xf32, #tpu.memory_space<vmem>>, vector<1x8x1xf32>
    %859 = vector.shape_cast %858 : vector<1x8x1xf32> to vector<8x1xf32>
    %860 = vector.broadcast %859 : vector<8x1xf32> to vector<8x256xf32>
    %861 = arith.mulf %857, %860 : vector<8x256xf32>
    %862 = arith.addf %850, %861 : vector<8x256xf32>
    %c251_i32 = arith.constant 251 : i32
    %863 = tpu.dynamic_rotate %591 by %c251_i32 dim 1 : vector<8x256xf32>, i32 -> vector<8x256xf32>
    %c11_i32 = arith.constant 11 : i32
    %864 = vector.broadcast %c11_i32 : i32 to vector<1x256xi32>
    %865 = arith.cmpi slt, %2, %864 : vector<1x256xi32>
    %cst_368 = arith.constant 0.000000e+00 : f32
    %866 = vector.shape_cast %865 : vector<1x256xi1> to vector<1x256xi1>
    %867 = vector.broadcast %866 : vector<1x256xi1> to vector<8x256xi1>
    %868 = vector.broadcast %cst_368 : f32 to vector<8x256xf32>
    %869 = arith.select %867, %863, %868 : vector<8x256xi1>, vector<8x256xf32>
    %c10_369 = arith.constant 10 : index
    %c0_370 = arith.constant 0 : index
    %c0_371 = arith.constant 0 : index
    %870 = vector.load %arg16[%c10_369, %c0_370, %c0_371] : memref<11x8x1xf32, #tpu.memory_space<vmem>>, vector<1x8x1xf32>
    %871 = vector.shape_cast %870 : vector<1x8x1xf32> to vector<8x1xf32>
    %872 = vector.broadcast %871 : vector<8x1xf32> to vector<8x256xf32>
    %873 = arith.mulf %869, %872 : vector<8x256xf32>
    %874 = arith.addf %862, %873 : vector<8x256xf32>
    %c0_372 = arith.constant 0 : index
    %c0_373 = arith.constant 0 : index
    %875 = vector.load %arg17[%c0_372, %c0_373] : memref<8x1xf32, #tpu.memory_space<vmem>>, vector<8x1xf32>
    %876 = vector.broadcast %875 : vector<8x1xf32> to vector<8x256xf32>
    %877 = arith.addf %874, %876 : vector<8x256xf32>
    %c80_i32 = arith.constant 80 : i32
    %878 = tpu.dynamic_rotate %877 by %c80_i32 dim 1 : vector<8x256xf32>, i32 -> vector<8x256xf32>
    %c5_i32_374 = arith.constant 5 : i32
    %879 = vector.broadcast %c5_i32_374 : i32 to vector<1x256xi32>
    %880 = arith.cmpi sge, %3, %879 : vector<1x256xi32>
    %cst_375 = arith.constant 0.000000e+00 : f32
    %881 = vector.shape_cast %880 : vector<1x256xi1> to vector<1x256xi1>
    %882 = vector.broadcast %881 : vector<1x256xi1> to vector<8x256xi1>
    %883 = vector.broadcast %cst_375 : f32 to vector<8x256xf32>
    %884 = arith.select %882, %878, %883 : vector<8x256xi1>, vector<8x256xf32>
    %c0_376 = arith.constant 0 : index
    %c0_377 = arith.constant 0 : index
    %c0_378 = arith.constant 0 : index
    %885 = vector.load %arg18[%c0_376, %c0_377, %c0_378] : memref<11x8x1xf32, #tpu.memory_space<vmem>>, vector<1x8x1xf32>
    %886 = vector.shape_cast %885 : vector<1x8x1xf32> to vector<8x1xf32>
    %887 = vector.broadcast %886 : vector<8x1xf32> to vector<8x256xf32>
    %888 = arith.mulf %884, %887 : vector<8x256xf32>
    %c64_i32 = arith.constant 64 : i32
    %889 = tpu.dynamic_rotate %877 by %c64_i32 dim 1 : vector<8x256xf32>, i32 -> vector<8x256xf32>
    %c4_i32_379 = arith.constant 4 : i32
    %890 = vector.broadcast %c4_i32_379 : i32 to vector<1x256xi32>
    %891 = arith.cmpi sge, %3, %890 : vector<1x256xi32>
    %cst_380 = arith.constant 0.000000e+00 : f32
    %892 = vector.shape_cast %891 : vector<1x256xi1> to vector<1x256xi1>
    %893 = vector.broadcast %892 : vector<1x256xi1> to vector<8x256xi1>
    %894 = vector.broadcast %cst_380 : f32 to vector<8x256xf32>
    %895 = arith.select %893, %889, %894 : vector<8x256xi1>, vector<8x256xf32>
    %c1_381 = arith.constant 1 : index
    %c0_382 = arith.constant 0 : index
    %c0_383 = arith.constant 0 : index
    %896 = vector.load %arg18[%c1_381, %c0_382, %c0_383] : memref<11x8x1xf32, #tpu.memory_space<vmem>>, vector<1x8x1xf32>
    %897 = vector.shape_cast %896 : vector<1x8x1xf32> to vector<8x1xf32>
    %898 = vector.broadcast %897 : vector<8x1xf32> to vector<8x256xf32>
    %899 = arith.mulf %895, %898 : vector<8x256xf32>
    %900 = arith.addf %888, %899 : vector<8x256xf32>
    %c48_i32_384 = arith.constant 48 : i32
    %901 = tpu.dynamic_rotate %877 by %c48_i32_384 dim 1 : vector<8x256xf32>, i32 -> vector<8x256xf32>
    %c3_i32_385 = arith.constant 3 : i32
    %902 = vector.broadcast %c3_i32_385 : i32 to vector<1x256xi32>
    %903 = arith.cmpi sge, %3, %902 : vector<1x256xi32>
    %cst_386 = arith.constant 0.000000e+00 : f32
    %904 = vector.shape_cast %903 : vector<1x256xi1> to vector<1x256xi1>
    %905 = vector.broadcast %904 : vector<1x256xi1> to vector<8x256xi1>
    %906 = vector.broadcast %cst_386 : f32 to vector<8x256xf32>
    %907 = arith.select %905, %901, %906 : vector<8x256xi1>, vector<8x256xf32>
    %c2_387 = arith.constant 2 : index
    %c0_388 = arith.constant 0 : index
    %c0_389 = arith.constant 0 : index
    %908 = vector.load %arg18[%c2_387, %c0_388, %c0_389] : memref<11x8x1xf32, #tpu.memory_space<vmem>>, vector<1x8x1xf32>
    %909 = vector.shape_cast %908 : vector<1x8x1xf32> to vector<8x1xf32>
    %910 = vector.broadcast %909 : vector<8x1xf32> to vector<8x256xf32>
    %911 = arith.mulf %907, %910 : vector<8x256xf32>
    %912 = arith.addf %900, %911 : vector<8x256xf32>
    %c32_i32_390 = arith.constant 32 : i32
    %913 = tpu.dynamic_rotate %877 by %c32_i32_390 dim 1 : vector<8x256xf32>, i32 -> vector<8x256xf32>
    %c2_i32_391 = arith.constant 2 : i32
    %914 = vector.broadcast %c2_i32_391 : i32 to vector<1x256xi32>
    %915 = arith.cmpi sge, %3, %914 : vector<1x256xi32>
    %cst_392 = arith.constant 0.000000e+00 : f32
    %916 = vector.shape_cast %915 : vector<1x256xi1> to vector<1x256xi1>
    %917 = vector.broadcast %916 : vector<1x256xi1> to vector<8x256xi1>
    %918 = vector.broadcast %cst_392 : f32 to vector<8x256xf32>
    %919 = arith.select %917, %913, %918 : vector<8x256xi1>, vector<8x256xf32>
    %c3_393 = arith.constant 3 : index
    %c0_394 = arith.constant 0 : index
    %c0_395 = arith.constant 0 : index
    %920 = vector.load %arg18[%c3_393, %c0_394, %c0_395] : memref<11x8x1xf32, #tpu.memory_space<vmem>>, vector<1x8x1xf32>
    %921 = vector.shape_cast %920 : vector<1x8x1xf32> to vector<8x1xf32>
    %922 = vector.broadcast %921 : vector<8x1xf32> to vector<8x256xf32>
    %923 = arith.mulf %919, %922 : vector<8x256xf32>
    %924 = arith.addf %912, %923 : vector<8x256xf32>
    %c16_i32_396 = arith.constant 16 : i32
    %925 = tpu.dynamic_rotate %877 by %c16_i32_396 dim 1 : vector<8x256xf32>, i32 -> vector<8x256xf32>
    %c1_i32_397 = arith.constant 1 : i32
    %926 = vector.broadcast %c1_i32_397 : i32 to vector<1x256xi32>
    %927 = arith.cmpi sge, %3, %926 : vector<1x256xi32>
    %cst_398 = arith.constant 0.000000e+00 : f32
    %928 = vector.shape_cast %927 : vector<1x256xi1> to vector<1x256xi1>
    %929 = vector.broadcast %928 : vector<1x256xi1> to vector<8x256xi1>
    %930 = vector.broadcast %cst_398 : f32 to vector<8x256xf32>
    %931 = arith.select %929, %925, %930 : vector<8x256xi1>, vector<8x256xf32>
    %c4_399 = arith.constant 4 : index
    %c0_400 = arith.constant 0 : index
    %c0_401 = arith.constant 0 : index
    %932 = vector.load %arg18[%c4_399, %c0_400, %c0_401] : memref<11x8x1xf32, #tpu.memory_space<vmem>>, vector<1x8x1xf32>
    %933 = vector.shape_cast %932 : vector<1x8x1xf32> to vector<8x1xf32>
    %934 = vector.broadcast %933 : vector<8x1xf32> to vector<8x256xf32>
    %935 = arith.mulf %931, %934 : vector<8x256xf32>
    %936 = arith.addf %924, %935 : vector<8x256xf32>
    %c5_402 = arith.constant 5 : index
    %c0_403 = arith.constant 0 : index
    %c0_404 = arith.constant 0 : index
    %937 = vector.load %arg18[%c5_402, %c0_403, %c0_404] : memref<11x8x1xf32, #tpu.memory_space<vmem>>, vector<1x8x1xf32>
    %938 = vector.shape_cast %937 : vector<1x8x1xf32> to vector<8x1xf32>
    %939 = vector.broadcast %938 : vector<8x1xf32> to vector<8x256xf32>
    %940 = arith.mulf %877, %939 : vector<8x256xf32>
    %941 = arith.addf %936, %940 : vector<8x256xf32>
    %c240_i32_405 = arith.constant 240 : i32
    %942 = tpu.dynamic_rotate %877 by %c240_i32_405 dim 1 : vector<8x256xf32>, i32 -> vector<8x256xf32>
    %c15_i32_406 = arith.constant 15 : i32
    %943 = vector.broadcast %c15_i32_406 : i32 to vector<1x256xi32>
    %944 = arith.cmpi slt, %3, %943 : vector<1x256xi32>
    %cst_407 = arith.constant 0.000000e+00 : f32
    %945 = vector.shape_cast %944 : vector<1x256xi1> to vector<1x256xi1>
    %946 = vector.broadcast %945 : vector<1x256xi1> to vector<8x256xi1>
    %947 = vector.broadcast %cst_407 : f32 to vector<8x256xf32>
    %948 = arith.select %946, %942, %947 : vector<8x256xi1>, vector<8x256xf32>
    %c6_408 = arith.constant 6 : index
    %c0_409 = arith.constant 0 : index
    %c0_410 = arith.constant 0 : index
    %949 = vector.load %arg18[%c6_408, %c0_409, %c0_410] : memref<11x8x1xf32, #tpu.memory_space<vmem>>, vector<1x8x1xf32>
    %950 = vector.shape_cast %949 : vector<1x8x1xf32> to vector<8x1xf32>
    %951 = vector.broadcast %950 : vector<8x1xf32> to vector<8x256xf32>
    %952 = arith.mulf %948, %951 : vector<8x256xf32>
    %953 = arith.addf %941, %952 : vector<8x256xf32>
    %c224_i32_411 = arith.constant 224 : i32
    %954 = tpu.dynamic_rotate %877 by %c224_i32_411 dim 1 : vector<8x256xf32>, i32 -> vector<8x256xf32>
    %c14_i32_412 = arith.constant 14 : i32
    %955 = vector.broadcast %c14_i32_412 : i32 to vector<1x256xi32>
    %956 = arith.cmpi slt, %3, %955 : vector<1x256xi32>
    %cst_413 = arith.constant 0.000000e+00 : f32
    %957 = vector.shape_cast %956 : vector<1x256xi1> to vector<1x256xi1>
    %958 = vector.broadcast %957 : vector<1x256xi1> to vector<8x256xi1>
    %959 = vector.broadcast %cst_413 : f32 to vector<8x256xf32>
    %960 = arith.select %958, %954, %959 : vector<8x256xi1>, vector<8x256xf32>
    %c7_414 = arith.constant 7 : index
    %c0_415 = arith.constant 0 : index
    %c0_416 = arith.constant 0 : index
    %961 = vector.load %arg18[%c7_414, %c0_415, %c0_416] : memref<11x8x1xf32, #tpu.memory_space<vmem>>, vector<1x8x1xf32>
    %962 = vector.shape_cast %961 : vector<1x8x1xf32> to vector<8x1xf32>
    %963 = vector.broadcast %962 : vector<8x1xf32> to vector<8x256xf32>
    %964 = arith.mulf %960, %963 : vector<8x256xf32>
    %965 = arith.addf %953, %964 : vector<8x256xf32>
    %c208_i32_417 = arith.constant 208 : i32
    %966 = tpu.dynamic_rotate %877 by %c208_i32_417 dim 1 : vector<8x256xf32>, i32 -> vector<8x256xf32>
    %c13_i32_418 = arith.constant 13 : i32
    %967 = vector.broadcast %c13_i32_418 : i32 to vector<1x256xi32>
    %968 = arith.cmpi slt, %3, %967 : vector<1x256xi32>
    %cst_419 = arith.constant 0.000000e+00 : f32
    %969 = vector.shape_cast %968 : vector<1x256xi1> to vector<1x256xi1>
    %970 = vector.broadcast %969 : vector<1x256xi1> to vector<8x256xi1>
    %971 = vector.broadcast %cst_419 : f32 to vector<8x256xf32>
    %972 = arith.select %970, %966, %971 : vector<8x256xi1>, vector<8x256xf32>
    %c8_420 = arith.constant 8 : index
    %c0_421 = arith.constant 0 : index
    %c0_422 = arith.constant 0 : index
    %973 = vector.load %arg18[%c8_420, %c0_421, %c0_422] : memref<11x8x1xf32, #tpu.memory_space<vmem>>, vector<1x8x1xf32>
    %974 = vector.shape_cast %973 : vector<1x8x1xf32> to vector<8x1xf32>
    %975 = vector.broadcast %974 : vector<8x1xf32> to vector<8x256xf32>
    %976 = arith.mulf %972, %975 : vector<8x256xf32>
    %977 = arith.addf %965, %976 : vector<8x256xf32>
    %c192_i32 = arith.constant 192 : i32
    %978 = tpu.dynamic_rotate %877 by %c192_i32 dim 1 : vector<8x256xf32>, i32 -> vector<8x256xf32>
    %c12_i32_423 = arith.constant 12 : i32
    %979 = vector.broadcast %c12_i32_423 : i32 to vector<1x256xi32>
    %980 = arith.cmpi slt, %3, %979 : vector<1x256xi32>
    %cst_424 = arith.constant 0.000000e+00 : f32
    %981 = vector.shape_cast %980 : vector<1x256xi1> to vector<1x256xi1>
    %982 = vector.broadcast %981 : vector<1x256xi1> to vector<8x256xi1>
    %983 = vector.broadcast %cst_424 : f32 to vector<8x256xf32>
    %984 = arith.select %982, %978, %983 : vector<8x256xi1>, vector<8x256xf32>
    %c9_425 = arith.constant 9 : index
    %c0_426 = arith.constant 0 : index
    %c0_427 = arith.constant 0 : index
    %985 = vector.load %arg18[%c9_425, %c0_426, %c0_427] : memref<11x8x1xf32, #tpu.memory_space<vmem>>, vector<1x8x1xf32>
    %986 = vector.shape_cast %985 : vector<1x8x1xf32> to vector<8x1xf32>
    %987 = vector.broadcast %986 : vector<8x1xf32> to vector<8x256xf32>
    %988 = arith.mulf %984, %987 : vector<8x256xf32>
    %989 = arith.addf %977, %988 : vector<8x256xf32>
    %c176_i32 = arith.constant 176 : i32
    %990 = tpu.dynamic_rotate %877 by %c176_i32 dim 1 : vector<8x256xf32>, i32 -> vector<8x256xf32>
    %c11_i32_428 = arith.constant 11 : i32
    %991 = vector.broadcast %c11_i32_428 : i32 to vector<1x256xi32>
    %992 = arith.cmpi slt, %3, %991 : vector<1x256xi32>
    %cst_429 = arith.constant 0.000000e+00 : f32
    %993 = vector.shape_cast %992 : vector<1x256xi1> to vector<1x256xi1>
    %994 = vector.broadcast %993 : vector<1x256xi1> to vector<8x256xi1>
    %995 = vector.broadcast %cst_429 : f32 to vector<8x256xf32>
    %996 = arith.select %994, %990, %995 : vector<8x256xi1>, vector<8x256xf32>
    %c10_430 = arith.constant 10 : index
    %c0_431 = arith.constant 0 : index
    %c0_432 = arith.constant 0 : index
    %997 = vector.load %arg18[%c10_430, %c0_431, %c0_432] : memref<11x8x1xf32, #tpu.memory_space<vmem>>, vector<1x8x1xf32>
    %998 = vector.shape_cast %997 : vector<1x8x1xf32> to vector<8x1xf32>
    %999 = vector.broadcast %998 : vector<8x1xf32> to vector<8x256xf32>
    %1000 = arith.mulf %996, %999 : vector<8x256xf32>
    %1001 = arith.addf %989, %1000 : vector<8x256xf32>
    %c0_433 = arith.constant 0 : index
    %c0_434 = arith.constant 0 : index
    %1002 = vector.load %arg19[%c0_433, %c0_434] : memref<8x1xf32, #tpu.memory_space<vmem>>, vector<8x1xf32>
    %1003 = vector.broadcast %1002 : vector<8x1xf32> to vector<8x256xf32>
    %1004 = arith.addf %1001, %1003 : vector<8x256xf32>
    %1005 = arith.addf %750, %1004 : vector<8x256xf32>
    %c10_i32 = arith.constant 10 : i32
    %1006 = tpu.dynamic_rotate %591 by %c10_i32 dim 1 : vector<8x256xf32>, i32 -> vector<8x256xf32>
    %c10_i32_435 = arith.constant 10 : i32
    %1007 = vector.broadcast %c10_i32_435 : i32 to vector<1x256xi32>
    %1008 = arith.cmpi sge, %2, %1007 : vector<1x256xi32>
    %cst_436 = arith.constant 0.000000e+00 : f32
    %1009 = vector.shape_cast %1008 : vector<1x256xi1> to vector<1x256xi1>
    %1010 = vector.broadcast %1009 : vector<1x256xi1> to vector<8x256xi1>
    %1011 = vector.broadcast %cst_436 : f32 to vector<8x256xf32>
    %1012 = arith.select %1010, %1006, %1011 : vector<8x256xi1>, vector<8x256xf32>
    %c0_437 = arith.constant 0 : index
    %c0_438 = arith.constant 0 : index
    %c0_439 = arith.constant 0 : index
    %1013 = vector.load %arg20[%c0_437, %c0_438, %c0_439] : memref<21x8x1xf32, #tpu.memory_space<vmem>>, vector<1x8x1xf32>
    %1014 = vector.shape_cast %1013 : vector<1x8x1xf32> to vector<8x1xf32>
    %1015 = vector.broadcast %1014 : vector<8x1xf32> to vector<8x256xf32>
    %1016 = arith.mulf %1012, %1015 : vector<8x256xf32>
    %c9_i32 = arith.constant 9 : i32
    %1017 = tpu.dynamic_rotate %591 by %c9_i32 dim 1 : vector<8x256xf32>, i32 -> vector<8x256xf32>
    %c9_i32_440 = arith.constant 9 : i32
    %1018 = vector.broadcast %c9_i32_440 : i32 to vector<1x256xi32>
    %1019 = arith.cmpi sge, %2, %1018 : vector<1x256xi32>
    %cst_441 = arith.constant 0.000000e+00 : f32
    %1020 = vector.shape_cast %1019 : vector<1x256xi1> to vector<1x256xi1>
    %1021 = vector.broadcast %1020 : vector<1x256xi1> to vector<8x256xi1>
    %1022 = vector.broadcast %cst_441 : f32 to vector<8x256xf32>
    %1023 = arith.select %1021, %1017, %1022 : vector<8x256xi1>, vector<8x256xf32>
    %c1_442 = arith.constant 1 : index
    %c0_443 = arith.constant 0 : index
    %c0_444 = arith.constant 0 : index
    %1024 = vector.load %arg20[%c1_442, %c0_443, %c0_444] : memref<21x8x1xf32, #tpu.memory_space<vmem>>, vector<1x8x1xf32>
    %1025 = vector.shape_cast %1024 : vector<1x8x1xf32> to vector<8x1xf32>
    %1026 = vector.broadcast %1025 : vector<8x1xf32> to vector<8x256xf32>
    %1027 = arith.mulf %1023, %1026 : vector<8x256xf32>
    %1028 = arith.addf %1016, %1027 : vector<8x256xf32>
    %c8_i32 = arith.constant 8 : i32
    %1029 = tpu.dynamic_rotate %591 by %c8_i32 dim 1 : vector<8x256xf32>, i32 -> vector<8x256xf32>
    %c8_i32_445 = arith.constant 8 : i32
    %1030 = vector.broadcast %c8_i32_445 : i32 to vector<1x256xi32>
    %1031 = arith.cmpi sge, %2, %1030 : vector<1x256xi32>
    %cst_446 = arith.constant 0.000000e+00 : f32
    %1032 = vector.shape_cast %1031 : vector<1x256xi1> to vector<1x256xi1>
    %1033 = vector.broadcast %1032 : vector<1x256xi1> to vector<8x256xi1>
    %1034 = vector.broadcast %cst_446 : f32 to vector<8x256xf32>
    %1035 = arith.select %1033, %1029, %1034 : vector<8x256xi1>, vector<8x256xf32>
    %c2_447 = arith.constant 2 : index
    %c0_448 = arith.constant 0 : index
    %c0_449 = arith.constant 0 : index
    %1036 = vector.load %arg20[%c2_447, %c0_448, %c0_449] : memref<21x8x1xf32, #tpu.memory_space<vmem>>, vector<1x8x1xf32>
    %1037 = vector.shape_cast %1036 : vector<1x8x1xf32> to vector<8x1xf32>
    %1038 = vector.broadcast %1037 : vector<8x1xf32> to vector<8x256xf32>
    %1039 = arith.mulf %1035, %1038 : vector<8x256xf32>
    %1040 = arith.addf %1028, %1039 : vector<8x256xf32>
    %c7_i32 = arith.constant 7 : i32
    %1041 = tpu.dynamic_rotate %591 by %c7_i32 dim 1 : vector<8x256xf32>, i32 -> vector<8x256xf32>
    %c7_i32_450 = arith.constant 7 : i32
    %1042 = vector.broadcast %c7_i32_450 : i32 to vector<1x256xi32>
    %1043 = arith.cmpi sge, %2, %1042 : vector<1x256xi32>
    %cst_451 = arith.constant 0.000000e+00 : f32
    %1044 = vector.shape_cast %1043 : vector<1x256xi1> to vector<1x256xi1>
    %1045 = vector.broadcast %1044 : vector<1x256xi1> to vector<8x256xi1>
    %1046 = vector.broadcast %cst_451 : f32 to vector<8x256xf32>
    %1047 = arith.select %1045, %1041, %1046 : vector<8x256xi1>, vector<8x256xf32>
    %c3_452 = arith.constant 3 : index
    %c0_453 = arith.constant 0 : index
    %c0_454 = arith.constant 0 : index
    %1048 = vector.load %arg20[%c3_452, %c0_453, %c0_454] : memref<21x8x1xf32, #tpu.memory_space<vmem>>, vector<1x8x1xf32>
    %1049 = vector.shape_cast %1048 : vector<1x8x1xf32> to vector<8x1xf32>
    %1050 = vector.broadcast %1049 : vector<8x1xf32> to vector<8x256xf32>
    %1051 = arith.mulf %1047, %1050 : vector<8x256xf32>
    %1052 = arith.addf %1040, %1051 : vector<8x256xf32>
    %c6_i32 = arith.constant 6 : i32
    %1053 = tpu.dynamic_rotate %591 by %c6_i32 dim 1 : vector<8x256xf32>, i32 -> vector<8x256xf32>
    %c6_i32_455 = arith.constant 6 : i32
    %1054 = vector.broadcast %c6_i32_455 : i32 to vector<1x256xi32>
    %1055 = arith.cmpi sge, %2, %1054 : vector<1x256xi32>
    %cst_456 = arith.constant 0.000000e+00 : f32
    %1056 = vector.shape_cast %1055 : vector<1x256xi1> to vector<1x256xi1>
    %1057 = vector.broadcast %1056 : vector<1x256xi1> to vector<8x256xi1>
    %1058 = vector.broadcast %cst_456 : f32 to vector<8x256xf32>
    %1059 = arith.select %1057, %1053, %1058 : vector<8x256xi1>, vector<8x256xf32>
    %c4_457 = arith.constant 4 : index
    %c0_458 = arith.constant 0 : index
    %c0_459 = arith.constant 0 : index
    %1060 = vector.load %arg20[%c4_457, %c0_458, %c0_459] : memref<21x8x1xf32, #tpu.memory_space<vmem>>, vector<1x8x1xf32>
    %1061 = vector.shape_cast %1060 : vector<1x8x1xf32> to vector<8x1xf32>
    %1062 = vector.broadcast %1061 : vector<8x1xf32> to vector<8x256xf32>
    %1063 = arith.mulf %1059, %1062 : vector<8x256xf32>
    %1064 = arith.addf %1052, %1063 : vector<8x256xf32>
    %c5_i32_460 = arith.constant 5 : i32
    %1065 = tpu.dynamic_rotate %591 by %c5_i32_460 dim 1 : vector<8x256xf32>, i32 -> vector<8x256xf32>
    %c5_i32_461 = arith.constant 5 : i32
    %1066 = vector.broadcast %c5_i32_461 : i32 to vector<1x256xi32>
    %1067 = arith.cmpi sge, %2, %1066 : vector<1x256xi32>
    %cst_462 = arith.constant 0.000000e+00 : f32
    %1068 = vector.shape_cast %1067 : vector<1x256xi1> to vector<1x256xi1>
    %1069 = vector.broadcast %1068 : vector<1x256xi1> to vector<8x256xi1>
    %1070 = vector.broadcast %cst_462 : f32 to vector<8x256xf32>
    %1071 = arith.select %1069, %1065, %1070 : vector<8x256xi1>, vector<8x256xf32>
    %c5_463 = arith.constant 5 : index
    %c0_464 = arith.constant 0 : index
    %c0_465 = arith.constant 0 : index
    %1072 = vector.load %arg20[%c5_463, %c0_464, %c0_465] : memref<21x8x1xf32, #tpu.memory_space<vmem>>, vector<1x8x1xf32>
    %1073 = vector.shape_cast %1072 : vector<1x8x1xf32> to vector<8x1xf32>
    %1074 = vector.broadcast %1073 : vector<8x1xf32> to vector<8x256xf32>
    %1075 = arith.mulf %1071, %1074 : vector<8x256xf32>
    %1076 = arith.addf %1064, %1075 : vector<8x256xf32>
    %c4_i32_466 = arith.constant 4 : i32
    %1077 = tpu.dynamic_rotate %591 by %c4_i32_466 dim 1 : vector<8x256xf32>, i32 -> vector<8x256xf32>
    %c4_i32_467 = arith.constant 4 : i32
    %1078 = vector.broadcast %c4_i32_467 : i32 to vector<1x256xi32>
    %1079 = arith.cmpi sge, %2, %1078 : vector<1x256xi32>
    %cst_468 = arith.constant 0.000000e+00 : f32
    %1080 = vector.shape_cast %1079 : vector<1x256xi1> to vector<1x256xi1>
    %1081 = vector.broadcast %1080 : vector<1x256xi1> to vector<8x256xi1>
    %1082 = vector.broadcast %cst_468 : f32 to vector<8x256xf32>
    %1083 = arith.select %1081, %1077, %1082 : vector<8x256xi1>, vector<8x256xf32>
    %c6_469 = arith.constant 6 : index
    %c0_470 = arith.constant 0 : index
    %c0_471 = arith.constant 0 : index
    %1084 = vector.load %arg20[%c6_469, %c0_470, %c0_471] : memref<21x8x1xf32, #tpu.memory_space<vmem>>, vector<1x8x1xf32>
    %1085 = vector.shape_cast %1084 : vector<1x8x1xf32> to vector<8x1xf32>
    %1086 = vector.broadcast %1085 : vector<8x1xf32> to vector<8x256xf32>
    %1087 = arith.mulf %1083, %1086 : vector<8x256xf32>
    %1088 = arith.addf %1076, %1087 : vector<8x256xf32>
    %c3_i32_472 = arith.constant 3 : i32
    %1089 = tpu.dynamic_rotate %591 by %c3_i32_472 dim 1 : vector<8x256xf32>, i32 -> vector<8x256xf32>
    %c3_i32_473 = arith.constant 3 : i32
    %1090 = vector.broadcast %c3_i32_473 : i32 to vector<1x256xi32>
    %1091 = arith.cmpi sge, %2, %1090 : vector<1x256xi32>
    %cst_474 = arith.constant 0.000000e+00 : f32
    %1092 = vector.shape_cast %1091 : vector<1x256xi1> to vector<1x256xi1>
    %1093 = vector.broadcast %1092 : vector<1x256xi1> to vector<8x256xi1>
    %1094 = vector.broadcast %cst_474 : f32 to vector<8x256xf32>
    %1095 = arith.select %1093, %1089, %1094 : vector<8x256xi1>, vector<8x256xf32>
    %c7_475 = arith.constant 7 : index
    %c0_476 = arith.constant 0 : index
    %c0_477 = arith.constant 0 : index
    %1096 = vector.load %arg20[%c7_475, %c0_476, %c0_477] : memref<21x8x1xf32, #tpu.memory_space<vmem>>, vector<1x8x1xf32>
    %1097 = vector.shape_cast %1096 : vector<1x8x1xf32> to vector<8x1xf32>
    %1098 = vector.broadcast %1097 : vector<8x1xf32> to vector<8x256xf32>
    %1099 = arith.mulf %1095, %1098 : vector<8x256xf32>
    %1100 = arith.addf %1088, %1099 : vector<8x256xf32>
    %c2_i32_478 = arith.constant 2 : i32
    %1101 = tpu.dynamic_rotate %591 by %c2_i32_478 dim 1 : vector<8x256xf32>, i32 -> vector<8x256xf32>
    %c2_i32_479 = arith.constant 2 : i32
    %1102 = vector.broadcast %c2_i32_479 : i32 to vector<1x256xi32>
    %1103 = arith.cmpi sge, %2, %1102 : vector<1x256xi32>
    %cst_480 = arith.constant 0.000000e+00 : f32
    %1104 = vector.shape_cast %1103 : vector<1x256xi1> to vector<1x256xi1>
    %1105 = vector.broadcast %1104 : vector<1x256xi1> to vector<8x256xi1>
    %1106 = vector.broadcast %cst_480 : f32 to vector<8x256xf32>
    %1107 = arith.select %1105, %1101, %1106 : vector<8x256xi1>, vector<8x256xf32>
    %c8_481 = arith.constant 8 : index
    %c0_482 = arith.constant 0 : index
    %c0_483 = arith.constant 0 : index
    %1108 = vector.load %arg20[%c8_481, %c0_482, %c0_483] : memref<21x8x1xf32, #tpu.memory_space<vmem>>, vector<1x8x1xf32>
    %1109 = vector.shape_cast %1108 : vector<1x8x1xf32> to vector<8x1xf32>
    %1110 = vector.broadcast %1109 : vector<8x1xf32> to vector<8x256xf32>
    %1111 = arith.mulf %1107, %1110 : vector<8x256xf32>
    %1112 = arith.addf %1100, %1111 : vector<8x256xf32>
    %c1_i32_484 = arith.constant 1 : i32
    %1113 = tpu.dynamic_rotate %591 by %c1_i32_484 dim 1 : vector<8x256xf32>, i32 -> vector<8x256xf32>
    %c1_i32_485 = arith.constant 1 : i32
    %1114 = vector.broadcast %c1_i32_485 : i32 to vector<1x256xi32>
    %1115 = arith.cmpi sge, %2, %1114 : vector<1x256xi32>
    %cst_486 = arith.constant 0.000000e+00 : f32
    %1116 = vector.shape_cast %1115 : vector<1x256xi1> to vector<1x256xi1>
    %1117 = vector.broadcast %1116 : vector<1x256xi1> to vector<8x256xi1>
    %1118 = vector.broadcast %cst_486 : f32 to vector<8x256xf32>
    %1119 = arith.select %1117, %1113, %1118 : vector<8x256xi1>, vector<8x256xf32>
    %c9_487 = arith.constant 9 : index
    %c0_488 = arith.constant 0 : index
    %c0_489 = arith.constant 0 : index
    %1120 = vector.load %arg20[%c9_487, %c0_488, %c0_489] : memref<21x8x1xf32, #tpu.memory_space<vmem>>, vector<1x8x1xf32>
    %1121 = vector.shape_cast %1120 : vector<1x8x1xf32> to vector<8x1xf32>
    %1122 = vector.broadcast %1121 : vector<8x1xf32> to vector<8x256xf32>
    %1123 = arith.mulf %1119, %1122 : vector<8x256xf32>
    %1124 = arith.addf %1112, %1123 : vector<8x256xf32>
    %c10_490 = arith.constant 10 : index
    %c0_491 = arith.constant 0 : index
    %c0_492 = arith.constant 0 : index
    %1125 = vector.load %arg20[%c10_490, %c0_491, %c0_492] : memref<21x8x1xf32, #tpu.memory_space<vmem>>, vector<1x8x1xf32>
    %1126 = vector.shape_cast %1125 : vector<1x8x1xf32> to vector<8x1xf32>
    %1127 = vector.broadcast %1126 : vector<8x1xf32> to vector<8x256xf32>
    %1128 = arith.mulf %591, %1127 : vector<8x256xf32>
    %1129 = arith.addf %1124, %1128 : vector<8x256xf32>
    %c255_i32_493 = arith.constant 255 : i32
    %1130 = tpu.dynamic_rotate %591 by %c255_i32_493 dim 1 : vector<8x256xf32>, i32 -> vector<8x256xf32>
    %c15_i32_494 = arith.constant 15 : i32
    %1131 = vector.broadcast %c15_i32_494 : i32 to vector<1x256xi32>
    %1132 = arith.cmpi slt, %2, %1131 : vector<1x256xi32>
    %cst_495 = arith.constant 0.000000e+00 : f32
    %1133 = vector.shape_cast %1132 : vector<1x256xi1> to vector<1x256xi1>
    %1134 = vector.broadcast %1133 : vector<1x256xi1> to vector<8x256xi1>
    %1135 = vector.broadcast %cst_495 : f32 to vector<8x256xf32>
    %1136 = arith.select %1134, %1130, %1135 : vector<8x256xi1>, vector<8x256xf32>
    %c11_496 = arith.constant 11 : index
    %c0_497 = arith.constant 0 : index
    %c0_498 = arith.constant 0 : index
    %1137 = vector.load %arg20[%c11_496, %c0_497, %c0_498] : memref<21x8x1xf32, #tpu.memory_space<vmem>>, vector<1x8x1xf32>
    %1138 = vector.shape_cast %1137 : vector<1x8x1xf32> to vector<8x1xf32>
    %1139 = vector.broadcast %1138 : vector<8x1xf32> to vector<8x256xf32>
    %1140 = arith.mulf %1136, %1139 : vector<8x256xf32>
    %1141 = arith.addf %1129, %1140 : vector<8x256xf32>
    %c254_i32_499 = arith.constant 254 : i32
    %1142 = tpu.dynamic_rotate %591 by %c254_i32_499 dim 1 : vector<8x256xf32>, i32 -> vector<8x256xf32>
    %c14_i32_500 = arith.constant 14 : i32
    %1143 = vector.broadcast %c14_i32_500 : i32 to vector<1x256xi32>
    %1144 = arith.cmpi slt, %2, %1143 : vector<1x256xi32>
    %cst_501 = arith.constant 0.000000e+00 : f32
    %1145 = vector.shape_cast %1144 : vector<1x256xi1> to vector<1x256xi1>
    %1146 = vector.broadcast %1145 : vector<1x256xi1> to vector<8x256xi1>
    %1147 = vector.broadcast %cst_501 : f32 to vector<8x256xf32>
    %1148 = arith.select %1146, %1142, %1147 : vector<8x256xi1>, vector<8x256xf32>
    %c12_502 = arith.constant 12 : index
    %c0_503 = arith.constant 0 : index
    %c0_504 = arith.constant 0 : index
    %1149 = vector.load %arg20[%c12_502, %c0_503, %c0_504] : memref<21x8x1xf32, #tpu.memory_space<vmem>>, vector<1x8x1xf32>
    %1150 = vector.shape_cast %1149 : vector<1x8x1xf32> to vector<8x1xf32>
    %1151 = vector.broadcast %1150 : vector<8x1xf32> to vector<8x256xf32>
    %1152 = arith.mulf %1148, %1151 : vector<8x256xf32>
    %1153 = arith.addf %1141, %1152 : vector<8x256xf32>
    %c253_i32_505 = arith.constant 253 : i32
    %1154 = tpu.dynamic_rotate %591 by %c253_i32_505 dim 1 : vector<8x256xf32>, i32 -> vector<8x256xf32>
    %c13_i32_506 = arith.constant 13 : i32
    %1155 = vector.broadcast %c13_i32_506 : i32 to vector<1x256xi32>
    %1156 = arith.cmpi slt, %2, %1155 : vector<1x256xi32>
    %cst_507 = arith.constant 0.000000e+00 : f32
    %1157 = vector.shape_cast %1156 : vector<1x256xi1> to vector<1x256xi1>
    %1158 = vector.broadcast %1157 : vector<1x256xi1> to vector<8x256xi1>
    %1159 = vector.broadcast %cst_507 : f32 to vector<8x256xf32>
    %1160 = arith.select %1158, %1154, %1159 : vector<8x256xi1>, vector<8x256xf32>
    %c13_508 = arith.constant 13 : index
    %c0_509 = arith.constant 0 : index
    %c0_510 = arith.constant 0 : index
    %1161 = vector.load %arg20[%c13_508, %c0_509, %c0_510] : memref<21x8x1xf32, #tpu.memory_space<vmem>>, vector<1x8x1xf32>
    %1162 = vector.shape_cast %1161 : vector<1x8x1xf32> to vector<8x1xf32>
    %1163 = vector.broadcast %1162 : vector<8x1xf32> to vector<8x256xf32>
    %1164 = arith.mulf %1160, %1163 : vector<8x256xf32>
    %1165 = arith.addf %1153, %1164 : vector<8x256xf32>
    %c252_i32_511 = arith.constant 252 : i32
    %1166 = tpu.dynamic_rotate %591 by %c252_i32_511 dim 1 : vector<8x256xf32>, i32 -> vector<8x256xf32>
    %c12_i32_512 = arith.constant 12 : i32
    %1167 = vector.broadcast %c12_i32_512 : i32 to vector<1x256xi32>
    %1168 = arith.cmpi slt, %2, %1167 : vector<1x256xi32>
    %cst_513 = arith.constant 0.000000e+00 : f32
    %1169 = vector.shape_cast %1168 : vector<1x256xi1> to vector<1x256xi1>
    %1170 = vector.broadcast %1169 : vector<1x256xi1> to vector<8x256xi1>
    %1171 = vector.broadcast %cst_513 : f32 to vector<8x256xf32>
    %1172 = arith.select %1170, %1166, %1171 : vector<8x256xi1>, vector<8x256xf32>
    %c14_514 = arith.constant 14 : index
    %c0_515 = arith.constant 0 : index
    %c0_516 = arith.constant 0 : index
    %1173 = vector.load %arg20[%c14_514, %c0_515, %c0_516] : memref<21x8x1xf32, #tpu.memory_space<vmem>>, vector<1x8x1xf32>
    %1174 = vector.shape_cast %1173 : vector<1x8x1xf32> to vector<8x1xf32>
    %1175 = vector.broadcast %1174 : vector<8x1xf32> to vector<8x256xf32>
    %1176 = arith.mulf %1172, %1175 : vector<8x256xf32>
    %1177 = arith.addf %1165, %1176 : vector<8x256xf32>
    %c251_i32_517 = arith.constant 251 : i32
    %1178 = tpu.dynamic_rotate %591 by %c251_i32_517 dim 1 : vector<8x256xf32>, i32 -> vector<8x256xf32>
    %c11_i32_518 = arith.constant 11 : i32
    %1179 = vector.broadcast %c11_i32_518 : i32 to vector<1x256xi32>
    %1180 = arith.cmpi slt, %2, %1179 : vector<1x256xi32>
    %cst_519 = arith.constant 0.000000e+00 : f32
    %1181 = vector.shape_cast %1180 : vector<1x256xi1> to vector<1x256xi1>
    %1182 = vector.broadcast %1181 : vector<1x256xi1> to vector<8x256xi1>
    %1183 = vector.broadcast %cst_519 : f32 to vector<8x256xf32>
    %1184 = arith.select %1182, %1178, %1183 : vector<8x256xi1>, vector<8x256xf32>
    %c15_520 = arith.constant 15 : index
    %c0_521 = arith.constant 0 : index
    %c0_522 = arith.constant 0 : index
    %1185 = vector.load %arg20[%c15_520, %c0_521, %c0_522] : memref<21x8x1xf32, #tpu.memory_space<vmem>>, vector<1x8x1xf32>
    %1186 = vector.shape_cast %1185 : vector<1x8x1xf32> to vector<8x1xf32>
    %1187 = vector.broadcast %1186 : vector<8x1xf32> to vector<8x256xf32>
    %1188 = arith.mulf %1184, %1187 : vector<8x256xf32>
    %1189 = arith.addf %1177, %1188 : vector<8x256xf32>
    %c250_i32 = arith.constant 250 : i32
    %1190 = tpu.dynamic_rotate %591 by %c250_i32 dim 1 : vector<8x256xf32>, i32 -> vector<8x256xf32>
    %c10_i32_523 = arith.constant 10 : i32
    %1191 = vector.broadcast %c10_i32_523 : i32 to vector<1x256xi32>
    %1192 = arith.cmpi slt, %2, %1191 : vector<1x256xi32>
    %cst_524 = arith.constant 0.000000e+00 : f32
    %1193 = vector.shape_cast %1192 : vector<1x256xi1> to vector<1x256xi1>
    %1194 = vector.broadcast %1193 : vector<1x256xi1> to vector<8x256xi1>
    %1195 = vector.broadcast %cst_524 : f32 to vector<8x256xf32>
    %1196 = arith.select %1194, %1190, %1195 : vector<8x256xi1>, vector<8x256xf32>
    %c16_525 = arith.constant 16 : index
    %c0_526 = arith.constant 0 : index
    %c0_527 = arith.constant 0 : index
    %1197 = vector.load %arg20[%c16_525, %c0_526, %c0_527] : memref<21x8x1xf32, #tpu.memory_space<vmem>>, vector<1x8x1xf32>
    %1198 = vector.shape_cast %1197 : vector<1x8x1xf32> to vector<8x1xf32>
    %1199 = vector.broadcast %1198 : vector<8x1xf32> to vector<8x256xf32>
    %1200 = arith.mulf %1196, %1199 : vector<8x256xf32>
    %1201 = arith.addf %1189, %1200 : vector<8x256xf32>
    %c249_i32 = arith.constant 249 : i32
    %1202 = tpu.dynamic_rotate %591 by %c249_i32 dim 1 : vector<8x256xf32>, i32 -> vector<8x256xf32>
    %c9_i32_528 = arith.constant 9 : i32
    %1203 = vector.broadcast %c9_i32_528 : i32 to vector<1x256xi32>
    %1204 = arith.cmpi slt, %2, %1203 : vector<1x256xi32>
    %cst_529 = arith.constant 0.000000e+00 : f32
    %1205 = vector.shape_cast %1204 : vector<1x256xi1> to vector<1x256xi1>
    %1206 = vector.broadcast %1205 : vector<1x256xi1> to vector<8x256xi1>
    %1207 = vector.broadcast %cst_529 : f32 to vector<8x256xf32>
    %1208 = arith.select %1206, %1202, %1207 : vector<8x256xi1>, vector<8x256xf32>
    %c17_530 = arith.constant 17 : index
    %c0_531 = arith.constant 0 : index
    %c0_532 = arith.constant 0 : index
    %1209 = vector.load %arg20[%c17_530, %c0_531, %c0_532] : memref<21x8x1xf32, #tpu.memory_space<vmem>>, vector<1x8x1xf32>
    %1210 = vector.shape_cast %1209 : vector<1x8x1xf32> to vector<8x1xf32>
    %1211 = vector.broadcast %1210 : vector<8x1xf32> to vector<8x256xf32>
    %1212 = arith.mulf %1208, %1211 : vector<8x256xf32>
    %1213 = arith.addf %1201, %1212 : vector<8x256xf32>
    %c248_i32 = arith.constant 248 : i32
    %1214 = tpu.dynamic_rotate %591 by %c248_i32 dim 1 : vector<8x256xf32>, i32 -> vector<8x256xf32>
    %c8_i32_533 = arith.constant 8 : i32
    %1215 = vector.broadcast %c8_i32_533 : i32 to vector<1x256xi32>
    %1216 = arith.cmpi slt, %2, %1215 : vector<1x256xi32>
    %cst_534 = arith.constant 0.000000e+00 : f32
    %1217 = vector.shape_cast %1216 : vector<1x256xi1> to vector<1x256xi1>
    %1218 = vector.broadcast %1217 : vector<1x256xi1> to vector<8x256xi1>
    %1219 = vector.broadcast %cst_534 : f32 to vector<8x256xf32>
    %1220 = arith.select %1218, %1214, %1219 : vector<8x256xi1>, vector<8x256xf32>
    %c18_535 = arith.constant 18 : index
    %c0_536 = arith.constant 0 : index
    %c0_537 = arith.constant 0 : index
    %1221 = vector.load %arg20[%c18_535, %c0_536, %c0_537] : memref<21x8x1xf32, #tpu.memory_space<vmem>>, vector<1x8x1xf32>
    %1222 = vector.shape_cast %1221 : vector<1x8x1xf32> to vector<8x1xf32>
    %1223 = vector.broadcast %1222 : vector<8x1xf32> to vector<8x256xf32>
    %1224 = arith.mulf %1220, %1223 : vector<8x256xf32>
    %1225 = arith.addf %1213, %1224 : vector<8x256xf32>
    %c247_i32 = arith.constant 247 : i32
    %1226 = tpu.dynamic_rotate %591 by %c247_i32 dim 1 : vector<8x256xf32>, i32 -> vector<8x256xf32>
    %c7_i32_538 = arith.constant 7 : i32
    %1227 = vector.broadcast %c7_i32_538 : i32 to vector<1x256xi32>
    %1228 = arith.cmpi slt, %2, %1227 : vector<1x256xi32>
    %cst_539 = arith.constant 0.000000e+00 : f32
    %1229 = vector.shape_cast %1228 : vector<1x256xi1> to vector<1x256xi1>
    %1230 = vector.broadcast %1229 : vector<1x256xi1> to vector<8x256xi1>
    %1231 = vector.broadcast %cst_539 : f32 to vector<8x256xf32>
    %1232 = arith.select %1230, %1226, %1231 : vector<8x256xi1>, vector<8x256xf32>
    %c19_540 = arith.constant 19 : index
    %c0_541 = arith.constant 0 : index
    %c0_542 = arith.constant 0 : index
    %1233 = vector.load %arg20[%c19_540, %c0_541, %c0_542] : memref<21x8x1xf32, #tpu.memory_space<vmem>>, vector<1x8x1xf32>
    %1234 = vector.shape_cast %1233 : vector<1x8x1xf32> to vector<8x1xf32>
    %1235 = vector.broadcast %1234 : vector<8x1xf32> to vector<8x256xf32>
    %1236 = arith.mulf %1232, %1235 : vector<8x256xf32>
    %1237 = arith.addf %1225, %1236 : vector<8x256xf32>
    %c246_i32 = arith.constant 246 : i32
    %1238 = tpu.dynamic_rotate %591 by %c246_i32 dim 1 : vector<8x256xf32>, i32 -> vector<8x256xf32>
    %c6_i32_543 = arith.constant 6 : i32
    %1239 = vector.broadcast %c6_i32_543 : i32 to vector<1x256xi32>
    %1240 = arith.cmpi slt, %2, %1239 : vector<1x256xi32>
    %cst_544 = arith.constant 0.000000e+00 : f32
    %1241 = vector.shape_cast %1240 : vector<1x256xi1> to vector<1x256xi1>
    %1242 = vector.broadcast %1241 : vector<1x256xi1> to vector<8x256xi1>
    %1243 = vector.broadcast %cst_544 : f32 to vector<8x256xf32>
    %1244 = arith.select %1242, %1238, %1243 : vector<8x256xi1>, vector<8x256xf32>
    %c20_545 = arith.constant 20 : index
    %c0_546 = arith.constant 0 : index
    %c0_547 = arith.constant 0 : index
    %1245 = vector.load %arg20[%c20_545, %c0_546, %c0_547] : memref<21x8x1xf32, #tpu.memory_space<vmem>>, vector<1x8x1xf32>
    %1246 = vector.shape_cast %1245 : vector<1x8x1xf32> to vector<8x1xf32>
    %1247 = vector.broadcast %1246 : vector<8x1xf32> to vector<8x256xf32>
    %1248 = arith.mulf %1244, %1247 : vector<8x256xf32>
    %1249 = arith.addf %1237, %1248 : vector<8x256xf32>
    %c0_548 = arith.constant 0 : index
    %c0_549 = arith.constant 0 : index
    %1250 = vector.load %arg21[%c0_548, %c0_549] : memref<8x1xf32, #tpu.memory_space<vmem>>, vector<8x1xf32>
    %1251 = vector.broadcast %1250 : vector<8x1xf32> to vector<8x256xf32>
    %1252 = arith.addf %1249, %1251 : vector<8x256xf32>
    %c160_i32 = arith.constant 160 : i32
    %1253 = tpu.dynamic_rotate %1252 by %c160_i32 dim 1 : vector<8x256xf32>, i32 -> vector<8x256xf32>
    %c10_i32_550 = arith.constant 10 : i32
    %1254 = vector.broadcast %c10_i32_550 : i32 to vector<1x256xi32>
    %1255 = arith.cmpi sge, %3, %1254 : vector<1x256xi32>
    %cst_551 = arith.constant 0.000000e+00 : f32
    %1256 = vector.shape_cast %1255 : vector<1x256xi1> to vector<1x256xi1>
    %1257 = vector.broadcast %1256 : vector<1x256xi1> to vector<8x256xi1>
    %1258 = vector.broadcast %cst_551 : f32 to vector<8x256xf32>
    %1259 = arith.select %1257, %1253, %1258 : vector<8x256xi1>, vector<8x256xf32>
    %c0_552 = arith.constant 0 : index
    %c0_553 = arith.constant 0 : index
    %c0_554 = arith.constant 0 : index
    %1260 = vector.load %arg22[%c0_552, %c0_553, %c0_554] : memref<21x8x1xf32, #tpu.memory_space<vmem>>, vector<1x8x1xf32>
    %1261 = vector.shape_cast %1260 : vector<1x8x1xf32> to vector<8x1xf32>
    %1262 = vector.broadcast %1261 : vector<8x1xf32> to vector<8x256xf32>
    %1263 = arith.mulf %1259, %1262 : vector<8x256xf32>
    %c144_i32 = arith.constant 144 : i32
    %1264 = tpu.dynamic_rotate %1252 by %c144_i32 dim 1 : vector<8x256xf32>, i32 -> vector<8x256xf32>
    %c9_i32_555 = arith.constant 9 : i32
    %1265 = vector.broadcast %c9_i32_555 : i32 to vector<1x256xi32>
    %1266 = arith.cmpi sge, %3, %1265 : vector<1x256xi32>
    %cst_556 = arith.constant 0.000000e+00 : f32
    %1267 = vector.shape_cast %1266 : vector<1x256xi1> to vector<1x256xi1>
    %1268 = vector.broadcast %1267 : vector<1x256xi1> to vector<8x256xi1>
    %1269 = vector.broadcast %cst_556 : f32 to vector<8x256xf32>
    %1270 = arith.select %1268, %1264, %1269 : vector<8x256xi1>, vector<8x256xf32>
    %c1_557 = arith.constant 1 : index
    %c0_558 = arith.constant 0 : index
    %c0_559 = arith.constant 0 : index
    %1271 = vector.load %arg22[%c1_557, %c0_558, %c0_559] : memref<21x8x1xf32, #tpu.memory_space<vmem>>, vector<1x8x1xf32>
    %1272 = vector.shape_cast %1271 : vector<1x8x1xf32> to vector<8x1xf32>
    %1273 = vector.broadcast %1272 : vector<8x1xf32> to vector<8x256xf32>
    %1274 = arith.mulf %1270, %1273 : vector<8x256xf32>
    %1275 = arith.addf %1263, %1274 : vector<8x256xf32>
    %c128_i32 = arith.constant 128 : i32
    %1276 = tpu.dynamic_rotate %1252 by %c128_i32 dim 1 : vector<8x256xf32>, i32 -> vector<8x256xf32>
    %c8_i32_560 = arith.constant 8 : i32
    %1277 = vector.broadcast %c8_i32_560 : i32 to vector<1x256xi32>
    %1278 = arith.cmpi sge, %3, %1277 : vector<1x256xi32>
    %cst_561 = arith.constant 0.000000e+00 : f32
    %1279 = vector.shape_cast %1278 : vector<1x256xi1> to vector<1x256xi1>
    %1280 = vector.broadcast %1279 : vector<1x256xi1> to vector<8x256xi1>
    %1281 = vector.broadcast %cst_561 : f32 to vector<8x256xf32>
    %1282 = arith.select %1280, %1276, %1281 : vector<8x256xi1>, vector<8x256xf32>
    %c2_562 = arith.constant 2 : index
    %c0_563 = arith.constant 0 : index
    %c0_564 = arith.constant 0 : index
    %1283 = vector.load %arg22[%c2_562, %c0_563, %c0_564] : memref<21x8x1xf32, #tpu.memory_space<vmem>>, vector<1x8x1xf32>
    %1284 = vector.shape_cast %1283 : vector<1x8x1xf32> to vector<8x1xf32>
    %1285 = vector.broadcast %1284 : vector<8x1xf32> to vector<8x256xf32>
    %1286 = arith.mulf %1282, %1285 : vector<8x256xf32>
    %1287 = arith.addf %1275, %1286 : vector<8x256xf32>
    %c112_i32 = arith.constant 112 : i32
    %1288 = tpu.dynamic_rotate %1252 by %c112_i32 dim 1 : vector<8x256xf32>, i32 -> vector<8x256xf32>
    %c7_i32_565 = arith.constant 7 : i32
    %1289 = vector.broadcast %c7_i32_565 : i32 to vector<1x256xi32>
    %1290 = arith.cmpi sge, %3, %1289 : vector<1x256xi32>
    %cst_566 = arith.constant 0.000000e+00 : f32
    %1291 = vector.shape_cast %1290 : vector<1x256xi1> to vector<1x256xi1>
    %1292 = vector.broadcast %1291 : vector<1x256xi1> to vector<8x256xi1>
    %1293 = vector.broadcast %cst_566 : f32 to vector<8x256xf32>
    %1294 = arith.select %1292, %1288, %1293 : vector<8x256xi1>, vector<8x256xf32>
    %c3_567 = arith.constant 3 : index
    %c0_568 = arith.constant 0 : index
    %c0_569 = arith.constant 0 : index
    %1295 = vector.load %arg22[%c3_567, %c0_568, %c0_569] : memref<21x8x1xf32, #tpu.memory_space<vmem>>, vector<1x8x1xf32>
    %1296 = vector.shape_cast %1295 : vector<1x8x1xf32> to vector<8x1xf32>
    %1297 = vector.broadcast %1296 : vector<8x1xf32> to vector<8x256xf32>
    %1298 = arith.mulf %1294, %1297 : vector<8x256xf32>
    %1299 = arith.addf %1287, %1298 : vector<8x256xf32>
    %c96_i32 = arith.constant 96 : i32
    %1300 = tpu.dynamic_rotate %1252 by %c96_i32 dim 1 : vector<8x256xf32>, i32 -> vector<8x256xf32>
    %c6_i32_570 = arith.constant 6 : i32
    %1301 = vector.broadcast %c6_i32_570 : i32 to vector<1x256xi32>
    %1302 = arith.cmpi sge, %3, %1301 : vector<1x256xi32>
    %cst_571 = arith.constant 0.000000e+00 : f32
    %1303 = vector.shape_cast %1302 : vector<1x256xi1> to vector<1x256xi1>
    %1304 = vector.broadcast %1303 : vector<1x256xi1> to vector<8x256xi1>
    %1305 = vector.broadcast %cst_571 : f32 to vector<8x256xf32>
    %1306 = arith.select %1304, %1300, %1305 : vector<8x256xi1>, vector<8x256xf32>
    %c4_572 = arith.constant 4 : index
    %c0_573 = arith.constant 0 : index
    %c0_574 = arith.constant 0 : index
    %1307 = vector.load %arg22[%c4_572, %c0_573, %c0_574] : memref<21x8x1xf32, #tpu.memory_space<vmem>>, vector<1x8x1xf32>
    %1308 = vector.shape_cast %1307 : vector<1x8x1xf32> to vector<8x1xf32>
    %1309 = vector.broadcast %1308 : vector<8x1xf32> to vector<8x256xf32>
    %1310 = arith.mulf %1306, %1309 : vector<8x256xf32>
    %1311 = arith.addf %1299, %1310 : vector<8x256xf32>
    %c80_i32_575 = arith.constant 80 : i32
    %1312 = tpu.dynamic_rotate %1252 by %c80_i32_575 dim 1 : vector<8x256xf32>, i32 -> vector<8x256xf32>
    %c5_i32_576 = arith.constant 5 : i32
    %1313 = vector.broadcast %c5_i32_576 : i32 to vector<1x256xi32>
    %1314 = arith.cmpi sge, %3, %1313 : vector<1x256xi32>
    %cst_577 = arith.constant 0.000000e+00 : f32
    %1315 = vector.shape_cast %1314 : vector<1x256xi1> to vector<1x256xi1>
    %1316 = vector.broadcast %1315 : vector<1x256xi1> to vector<8x256xi1>
    %1317 = vector.broadcast %cst_577 : f32 to vector<8x256xf32>
    %1318 = arith.select %1316, %1312, %1317 : vector<8x256xi1>, vector<8x256xf32>
    %c5_578 = arith.constant 5 : index
    %c0_579 = arith.constant 0 : index
    %c0_580 = arith.constant 0 : index
    %1319 = vector.load %arg22[%c5_578, %c0_579, %c0_580] : memref<21x8x1xf32, #tpu.memory_space<vmem>>, vector<1x8x1xf32>
    %1320 = vector.shape_cast %1319 : vector<1x8x1xf32> to vector<8x1xf32>
    %1321 = vector.broadcast %1320 : vector<8x1xf32> to vector<8x256xf32>
    %1322 = arith.mulf %1318, %1321 : vector<8x256xf32>
    %1323 = arith.addf %1311, %1322 : vector<8x256xf32>
    %c64_i32_581 = arith.constant 64 : i32
    %1324 = tpu.dynamic_rotate %1252 by %c64_i32_581 dim 1 : vector<8x256xf32>, i32 -> vector<8x256xf32>
    %c4_i32_582 = arith.constant 4 : i32
    %1325 = vector.broadcast %c4_i32_582 : i32 to vector<1x256xi32>
    %1326 = arith.cmpi sge, %3, %1325 : vector<1x256xi32>
    %cst_583 = arith.constant 0.000000e+00 : f32
    %1327 = vector.shape_cast %1326 : vector<1x256xi1> to vector<1x256xi1>
    %1328 = vector.broadcast %1327 : vector<1x256xi1> to vector<8x256xi1>
    %1329 = vector.broadcast %cst_583 : f32 to vector<8x256xf32>
    %1330 = arith.select %1328, %1324, %1329 : vector<8x256xi1>, vector<8x256xf32>
    %c6_584 = arith.constant 6 : index
    %c0_585 = arith.constant 0 : index
    %c0_586 = arith.constant 0 : index
    %1331 = vector.load %arg22[%c6_584, %c0_585, %c0_586] : memref<21x8x1xf32, #tpu.memory_space<vmem>>, vector<1x8x1xf32>
    %1332 = vector.shape_cast %1331 : vector<1x8x1xf32> to vector<8x1xf32>
    %1333 = vector.broadcast %1332 : vector<8x1xf32> to vector<8x256xf32>
    %1334 = arith.mulf %1330, %1333 : vector<8x256xf32>
    %1335 = arith.addf %1323, %1334 : vector<8x256xf32>
    %c48_i32_587 = arith.constant 48 : i32
    %1336 = tpu.dynamic_rotate %1252 by %c48_i32_587 dim 1 : vector<8x256xf32>, i32 -> vector<8x256xf32>
    %c3_i32_588 = arith.constant 3 : i32
    %1337 = vector.broadcast %c3_i32_588 : i32 to vector<1x256xi32>
    %1338 = arith.cmpi sge, %3, %1337 : vector<1x256xi32>
    %cst_589 = arith.constant 0.000000e+00 : f32
    %1339 = vector.shape_cast %1338 : vector<1x256xi1> to vector<1x256xi1>
    %1340 = vector.broadcast %1339 : vector<1x256xi1> to vector<8x256xi1>
    %1341 = vector.broadcast %cst_589 : f32 to vector<8x256xf32>
    %1342 = arith.select %1340, %1336, %1341 : vector<8x256xi1>, vector<8x256xf32>
    %c7_590 = arith.constant 7 : index
    %c0_591 = arith.constant 0 : index
    %c0_592 = arith.constant 0 : index
    %1343 = vector.load %arg22[%c7_590, %c0_591, %c0_592] : memref<21x8x1xf32, #tpu.memory_space<vmem>>, vector<1x8x1xf32>
    %1344 = vector.shape_cast %1343 : vector<1x8x1xf32> to vector<8x1xf32>
    %1345 = vector.broadcast %1344 : vector<8x1xf32> to vector<8x256xf32>
    %1346 = arith.mulf %1342, %1345 : vector<8x256xf32>
    %1347 = arith.addf %1335, %1346 : vector<8x256xf32>
    %c32_i32_593 = arith.constant 32 : i32
    %1348 = tpu.dynamic_rotate %1252 by %c32_i32_593 dim 1 : vector<8x256xf32>, i32 -> vector<8x256xf32>
    %c2_i32_594 = arith.constant 2 : i32
    %1349 = vector.broadcast %c2_i32_594 : i32 to vector<1x256xi32>
    %1350 = arith.cmpi sge, %3, %1349 : vector<1x256xi32>
    %cst_595 = arith.constant 0.000000e+00 : f32
    %1351 = vector.shape_cast %1350 : vector<1x256xi1> to vector<1x256xi1>
    %1352 = vector.broadcast %1351 : vector<1x256xi1> to vector<8x256xi1>
    %1353 = vector.broadcast %cst_595 : f32 to vector<8x256xf32>
    %1354 = arith.select %1352, %1348, %1353 : vector<8x256xi1>, vector<8x256xf32>
    %c8_596 = arith.constant 8 : index
    %c0_597 = arith.constant 0 : index
    %c0_598 = arith.constant 0 : index
    %1355 = vector.load %arg22[%c8_596, %c0_597, %c0_598] : memref<21x8x1xf32, #tpu.memory_space<vmem>>, vector<1x8x1xf32>
    %1356 = vector.shape_cast %1355 : vector<1x8x1xf32> to vector<8x1xf32>
    %1357 = vector.broadcast %1356 : vector<8x1xf32> to vector<8x256xf32>
    %1358 = arith.mulf %1354, %1357 : vector<8x256xf32>
    %1359 = arith.addf %1347, %1358 : vector<8x256xf32>
    %c16_i32_599 = arith.constant 16 : i32
    %1360 = tpu.dynamic_rotate %1252 by %c16_i32_599 dim 1 : vector<8x256xf32>, i32 -> vector<8x256xf32>
    %c1_i32_600 = arith.constant 1 : i32
    %1361 = vector.broadcast %c1_i32_600 : i32 to vector<1x256xi32>
    %1362 = arith.cmpi sge, %3, %1361 : vector<1x256xi32>
    %cst_601 = arith.constant 0.000000e+00 : f32
    %1363 = vector.shape_cast %1362 : vector<1x256xi1> to vector<1x256xi1>
    %1364 = vector.broadcast %1363 : vector<1x256xi1> to vector<8x256xi1>
    %1365 = vector.broadcast %cst_601 : f32 to vector<8x256xf32>
    %1366 = arith.select %1364, %1360, %1365 : vector<8x256xi1>, vector<8x256xf32>
    %c9_602 = arith.constant 9 : index
    %c0_603 = arith.constant 0 : index
    %c0_604 = arith.constant 0 : index
    %1367 = vector.load %arg22[%c9_602, %c0_603, %c0_604] : memref<21x8x1xf32, #tpu.memory_space<vmem>>, vector<1x8x1xf32>
    %1368 = vector.shape_cast %1367 : vector<1x8x1xf32> to vector<8x1xf32>
    %1369 = vector.broadcast %1368 : vector<8x1xf32> to vector<8x256xf32>
    %1370 = arith.mulf %1366, %1369 : vector<8x256xf32>
    %1371 = arith.addf %1359, %1370 : vector<8x256xf32>
    %c10_605 = arith.constant 10 : index
    %c0_606 = arith.constant 0 : index
    %c0_607 = arith.constant 0 : index
    %1372 = vector.load %arg22[%c10_605, %c0_606, %c0_607] : memref<21x8x1xf32, #tpu.memory_space<vmem>>, vector<1x8x1xf32>
    %1373 = vector.shape_cast %1372 : vector<1x8x1xf32> to vector<8x1xf32>
    %1374 = vector.broadcast %1373 : vector<8x1xf32> to vector<8x256xf32>
    %1375 = arith.mulf %1252, %1374 : vector<8x256xf32>
    %1376 = arith.addf %1371, %1375 : vector<8x256xf32>
    %c240_i32_608 = arith.constant 240 : i32
    %1377 = tpu.dynamic_rotate %1252 by %c240_i32_608 dim 1 : vector<8x256xf32>, i32 -> vector<8x256xf32>
    %c15_i32_609 = arith.constant 15 : i32
    %1378 = vector.broadcast %c15_i32_609 : i32 to vector<1x256xi32>
    %1379 = arith.cmpi slt, %3, %1378 : vector<1x256xi32>
    %cst_610 = arith.constant 0.000000e+00 : f32
    %1380 = vector.shape_cast %1379 : vector<1x256xi1> to vector<1x256xi1>
    %1381 = vector.broadcast %1380 : vector<1x256xi1> to vector<8x256xi1>
    %1382 = vector.broadcast %cst_610 : f32 to vector<8x256xf32>
    %1383 = arith.select %1381, %1377, %1382 : vector<8x256xi1>, vector<8x256xf32>
    %c11_611 = arith.constant 11 : index
    %c0_612 = arith.constant 0 : index
    %c0_613 = arith.constant 0 : index
    %1384 = vector.load %arg22[%c11_611, %c0_612, %c0_613] : memref<21x8x1xf32, #tpu.memory_space<vmem>>, vector<1x8x1xf32>
    %1385 = vector.shape_cast %1384 : vector<1x8x1xf32> to vector<8x1xf32>
    %1386 = vector.broadcast %1385 : vector<8x1xf32> to vector<8x256xf32>
    %1387 = arith.mulf %1383, %1386 : vector<8x256xf32>
    %1388 = arith.addf %1376, %1387 : vector<8x256xf32>
    %c224_i32_614 = arith.constant 224 : i32
    %1389 = tpu.dynamic_rotate %1252 by %c224_i32_614 dim 1 : vector<8x256xf32>, i32 -> vector<8x256xf32>
    %c14_i32_615 = arith.constant 14 : i32
    %1390 = vector.broadcast %c14_i32_615 : i32 to vector<1x256xi32>
    %1391 = arith.cmpi slt, %3, %1390 : vector<1x256xi32>
    %cst_616 = arith.constant 0.000000e+00 : f32
    %1392 = vector.shape_cast %1391 : vector<1x256xi1> to vector<1x256xi1>
    %1393 = vector.broadcast %1392 : vector<1x256xi1> to vector<8x256xi1>
    %1394 = vector.broadcast %cst_616 : f32 to vector<8x256xf32>
    %1395 = arith.select %1393, %1389, %1394 : vector<8x256xi1>, vector<8x256xf32>
    %c12_617 = arith.constant 12 : index
    %c0_618 = arith.constant 0 : index
    %c0_619 = arith.constant 0 : index
    %1396 = vector.load %arg22[%c12_617, %c0_618, %c0_619] : memref<21x8x1xf32, #tpu.memory_space<vmem>>, vector<1x8x1xf32>
    %1397 = vector.shape_cast %1396 : vector<1x8x1xf32> to vector<8x1xf32>
    %1398 = vector.broadcast %1397 : vector<8x1xf32> to vector<8x256xf32>
    %1399 = arith.mulf %1395, %1398 : vector<8x256xf32>
    %1400 = arith.addf %1388, %1399 : vector<8x256xf32>
    %c208_i32_620 = arith.constant 208 : i32
    %1401 = tpu.dynamic_rotate %1252 by %c208_i32_620 dim 1 : vector<8x256xf32>, i32 -> vector<8x256xf32>
    %c13_i32_621 = arith.constant 13 : i32
    %1402 = vector.broadcast %c13_i32_621 : i32 to vector<1x256xi32>
    %1403 = arith.cmpi slt, %3, %1402 : vector<1x256xi32>
    %cst_622 = arith.constant 0.000000e+00 : f32
    %1404 = vector.shape_cast %1403 : vector<1x256xi1> to vector<1x256xi1>
    %1405 = vector.broadcast %1404 : vector<1x256xi1> to vector<8x256xi1>
    %1406 = vector.broadcast %cst_622 : f32 to vector<8x256xf32>
    %1407 = arith.select %1405, %1401, %1406 : vector<8x256xi1>, vector<8x256xf32>
    %c13_623 = arith.constant 13 : index
    %c0_624 = arith.constant 0 : index
    %c0_625 = arith.constant 0 : index
    %1408 = vector.load %arg22[%c13_623, %c0_624, %c0_625] : memref<21x8x1xf32, #tpu.memory_space<vmem>>, vector<1x8x1xf32>
    %1409 = vector.shape_cast %1408 : vector<1x8x1xf32> to vector<8x1xf32>
    %1410 = vector.broadcast %1409 : vector<8x1xf32> to vector<8x256xf32>
    %1411 = arith.mulf %1407, %1410 : vector<8x256xf32>
    %1412 = arith.addf %1400, %1411 : vector<8x256xf32>
    %c192_i32_626 = arith.constant 192 : i32
    %1413 = tpu.dynamic_rotate %1252 by %c192_i32_626 dim 1 : vector<8x256xf32>, i32 -> vector<8x256xf32>
    %c12_i32_627 = arith.constant 12 : i32
    %1414 = vector.broadcast %c12_i32_627 : i32 to vector<1x256xi32>
    %1415 = arith.cmpi slt, %3, %1414 : vector<1x256xi32>
    %cst_628 = arith.constant 0.000000e+00 : f32
    %1416 = vector.shape_cast %1415 : vector<1x256xi1> to vector<1x256xi1>
    %1417 = vector.broadcast %1416 : vector<1x256xi1> to vector<8x256xi1>
    %1418 = vector.broadcast %cst_628 : f32 to vector<8x256xf32>
    %1419 = arith.select %1417, %1413, %1418 : vector<8x256xi1>, vector<8x256xf32>
    %c14_629 = arith.constant 14 : index
    %c0_630 = arith.constant 0 : index
    %c0_631 = arith.constant 0 : index
    %1420 = vector.load %arg22[%c14_629, %c0_630, %c0_631] : memref<21x8x1xf32, #tpu.memory_space<vmem>>, vector<1x8x1xf32>
    %1421 = vector.shape_cast %1420 : vector<1x8x1xf32> to vector<8x1xf32>
    %1422 = vector.broadcast %1421 : vector<8x1xf32> to vector<8x256xf32>
    %1423 = arith.mulf %1419, %1422 : vector<8x256xf32>
    %1424 = arith.addf %1412, %1423 : vector<8x256xf32>
    %c176_i32_632 = arith.constant 176 : i32
    %1425 = tpu.dynamic_rotate %1252 by %c176_i32_632 dim 1 : vector<8x256xf32>, i32 -> vector<8x256xf32>
    %c11_i32_633 = arith.constant 11 : i32
    %1426 = vector.broadcast %c11_i32_633 : i32 to vector<1x256xi32>
    %1427 = arith.cmpi slt, %3, %1426 : vector<1x256xi32>
    %cst_634 = arith.constant 0.000000e+00 : f32
    %1428 = vector.shape_cast %1427 : vector<1x256xi1> to vector<1x256xi1>
    %1429 = vector.broadcast %1428 : vector<1x256xi1> to vector<8x256xi1>
    %1430 = vector.broadcast %cst_634 : f32 to vector<8x256xf32>
    %1431 = arith.select %1429, %1425, %1430 : vector<8x256xi1>, vector<8x256xf32>
    %c15_635 = arith.constant 15 : index
    %c0_636 = arith.constant 0 : index
    %c0_637 = arith.constant 0 : index
    %1432 = vector.load %arg22[%c15_635, %c0_636, %c0_637] : memref<21x8x1xf32, #tpu.memory_space<vmem>>, vector<1x8x1xf32>
    %1433 = vector.shape_cast %1432 : vector<1x8x1xf32> to vector<8x1xf32>
    %1434 = vector.broadcast %1433 : vector<8x1xf32> to vector<8x256xf32>
    %1435 = arith.mulf %1431, %1434 : vector<8x256xf32>
    %1436 = arith.addf %1424, %1435 : vector<8x256xf32>
    %c160_i32_638 = arith.constant 160 : i32
    %1437 = tpu.dynamic_rotate %1252 by %c160_i32_638 dim 1 : vector<8x256xf32>, i32 -> vector<8x256xf32>
    %c10_i32_639 = arith.constant 10 : i32
    %1438 = vector.broadcast %c10_i32_639 : i32 to vector<1x256xi32>
    %1439 = arith.cmpi slt, %3, %1438 : vector<1x256xi32>
    %cst_640 = arith.constant 0.000000e+00 : f32
    %1440 = vector.shape_cast %1439 : vector<1x256xi1> to vector<1x256xi1>
    %1441 = vector.broadcast %1440 : vector<1x256xi1> to vector<8x256xi1>
    %1442 = vector.broadcast %cst_640 : f32 to vector<8x256xf32>
    %1443 = arith.select %1441, %1437, %1442 : vector<8x256xi1>, vector<8x256xf32>
    %c16_641 = arith.constant 16 : index
    %c0_642 = arith.constant 0 : index
    %c0_643 = arith.constant 0 : index
    %1444 = vector.load %arg22[%c16_641, %c0_642, %c0_643] : memref<21x8x1xf32, #tpu.memory_space<vmem>>, vector<1x8x1xf32>
    %1445 = vector.shape_cast %1444 : vector<1x8x1xf32> to vector<8x1xf32>
    %1446 = vector.broadcast %1445 : vector<8x1xf32> to vector<8x256xf32>
    %1447 = arith.mulf %1443, %1446 : vector<8x256xf32>
    %1448 = arith.addf %1436, %1447 : vector<8x256xf32>
    %c144_i32_644 = arith.constant 144 : i32
    %1449 = tpu.dynamic_rotate %1252 by %c144_i32_644 dim 1 : vector<8x256xf32>, i32 -> vector<8x256xf32>
    %c9_i32_645 = arith.constant 9 : i32
    %1450 = vector.broadcast %c9_i32_645 : i32 to vector<1x256xi32>
    %1451 = arith.cmpi slt, %3, %1450 : vector<1x256xi32>
    %cst_646 = arith.constant 0.000000e+00 : f32
    %1452 = vector.shape_cast %1451 : vector<1x256xi1> to vector<1x256xi1>
    %1453 = vector.broadcast %1452 : vector<1x256xi1> to vector<8x256xi1>
    %1454 = vector.broadcast %cst_646 : f32 to vector<8x256xf32>
    %1455 = arith.select %1453, %1449, %1454 : vector<8x256xi1>, vector<8x256xf32>
    %c17_647 = arith.constant 17 : index
    %c0_648 = arith.constant 0 : index
    %c0_649 = arith.constant 0 : index
    %1456 = vector.load %arg22[%c17_647, %c0_648, %c0_649] : memref<21x8x1xf32, #tpu.memory_space<vmem>>, vector<1x8x1xf32>
    %1457 = vector.shape_cast %1456 : vector<1x8x1xf32> to vector<8x1xf32>
    %1458 = vector.broadcast %1457 : vector<8x1xf32> to vector<8x256xf32>
    %1459 = arith.mulf %1455, %1458 : vector<8x256xf32>
    %1460 = arith.addf %1448, %1459 : vector<8x256xf32>
    %c128_i32_650 = arith.constant 128 : i32
    %1461 = tpu.dynamic_rotate %1252 by %c128_i32_650 dim 1 : vector<8x256xf32>, i32 -> vector<8x256xf32>
    %c8_i32_651 = arith.constant 8 : i32
    %1462 = vector.broadcast %c8_i32_651 : i32 to vector<1x256xi32>
    %1463 = arith.cmpi slt, %3, %1462 : vector<1x256xi32>
    %cst_652 = arith.constant 0.000000e+00 : f32
    %1464 = vector.shape_cast %1463 : vector<1x256xi1> to vector<1x256xi1>
    %1465 = vector.broadcast %1464 : vector<1x256xi1> to vector<8x256xi1>
    %1466 = vector.broadcast %cst_652 : f32 to vector<8x256xf32>
    %1467 = arith.select %1465, %1461, %1466 : vector<8x256xi1>, vector<8x256xf32>
    %c18_653 = arith.constant 18 : index
    %c0_654 = arith.constant 0 : index
    %c0_655 = arith.constant 0 : index
    %1468 = vector.load %arg22[%c18_653, %c0_654, %c0_655] : memref<21x8x1xf32, #tpu.memory_space<vmem>>, vector<1x8x1xf32>
    %1469 = vector.shape_cast %1468 : vector<1x8x1xf32> to vector<8x1xf32>
    %1470 = vector.broadcast %1469 : vector<8x1xf32> to vector<8x256xf32>
    %1471 = arith.mulf %1467, %1470 : vector<8x256xf32>
    %1472 = arith.addf %1460, %1471 : vector<8x256xf32>
    %c112_i32_656 = arith.constant 112 : i32
    %1473 = tpu.dynamic_rotate %1252 by %c112_i32_656 dim 1 : vector<8x256xf32>, i32 -> vector<8x256xf32>
    %c7_i32_657 = arith.constant 7 : i32
    %1474 = vector.broadcast %c7_i32_657 : i32 to vector<1x256xi32>
    %1475 = arith.cmpi slt, %3, %1474 : vector<1x256xi32>
    %cst_658 = arith.constant 0.000000e+00 : f32
    %1476 = vector.shape_cast %1475 : vector<1x256xi1> to vector<1x256xi1>
    %1477 = vector.broadcast %1476 : vector<1x256xi1> to vector<8x256xi1>
    %1478 = vector.broadcast %cst_658 : f32 to vector<8x256xf32>
    %1479 = arith.select %1477, %1473, %1478 : vector<8x256xi1>, vector<8x256xf32>
    %c19_659 = arith.constant 19 : index
    %c0_660 = arith.constant 0 : index
    %c0_661 = arith.constant 0 : index
    %1480 = vector.load %arg22[%c19_659, %c0_660, %c0_661] : memref<21x8x1xf32, #tpu.memory_space<vmem>>, vector<1x8x1xf32>
    %1481 = vector.shape_cast %1480 : vector<1x8x1xf32> to vector<8x1xf32>
    %1482 = vector.broadcast %1481 : vector<8x1xf32> to vector<8x256xf32>
    %1483 = arith.mulf %1479, %1482 : vector<8x256xf32>
    %1484 = arith.addf %1472, %1483 : vector<8x256xf32>
    %c96_i32_662 = arith.constant 96 : i32
    %1485 = tpu.dynamic_rotate %1252 by %c96_i32_662 dim 1 : vector<8x256xf32>, i32 -> vector<8x256xf32>
    %c6_i32_663 = arith.constant 6 : i32
    %1486 = vector.broadcast %c6_i32_663 : i32 to vector<1x256xi32>
    %1487 = arith.cmpi slt, %3, %1486 : vector<1x256xi32>
    %cst_664 = arith.constant 0.000000e+00 : f32
    %1488 = vector.shape_cast %1487 : vector<1x256xi1> to vector<1x256xi1>
    %1489 = vector.broadcast %1488 : vector<1x256xi1> to vector<8x256xi1>
    %1490 = vector.broadcast %cst_664 : f32 to vector<8x256xf32>
    %1491 = arith.select %1489, %1485, %1490 : vector<8x256xi1>, vector<8x256xf32>
    %c20_665 = arith.constant 20 : index
    %c0_666 = arith.constant 0 : index
    %c0_667 = arith.constant 0 : index
    %1492 = vector.load %arg22[%c20_665, %c0_666, %c0_667] : memref<21x8x1xf32, #tpu.memory_space<vmem>>, vector<1x8x1xf32>
    %1493 = vector.shape_cast %1492 : vector<1x8x1xf32> to vector<8x1xf32>
    %1494 = vector.broadcast %1493 : vector<8x1xf32> to vector<8x256xf32>
    %1495 = arith.mulf %1491, %1494 : vector<8x256xf32>
    %1496 = arith.addf %1484, %1495 : vector<8x256xf32>
    %c0_668 = arith.constant 0 : index
    %c0_669 = arith.constant 0 : index
    %1497 = vector.load %arg23[%c0_668, %c0_669] : memref<8x1xf32, #tpu.memory_space<vmem>>, vector<8x1xf32>
    %1498 = vector.broadcast %1497 : vector<8x1xf32> to vector<8x256xf32>
    %1499 = arith.addf %1496, %1498 : vector<8x256xf32>
    %1500 = arith.addf %1005, %1499 : vector<8x256xf32>
    %c0_670 = arith.constant 0 : index
    %c0_671 = arith.constant 0 : index
    %c0_672 = arith.constant 0 : index
    %1501 = vector.load %arg4[%c0_670, %c0_671, %c0_672] : memref<8x8x1xf32, #tpu.memory_space<vmem>>, vector<1x8x1xf32>
    %1502 = vector.shape_cast %1501 : vector<1x8x1xf32> to vector<8x1xf32>
    %1503 = vector.extract_strided_slice %1500 {offsets = [0, 0], sizes = [1, 256], strides = [1, 1]} : vector<8x256xf32> to vector<1x256xf32>
    %1504 = vector.broadcast %1502 : vector<8x1xf32> to vector<8x256xf32>
    %1505 = vector.broadcast %1503 : vector<1x256xf32> to vector<8x256xf32>
    %1506 = arith.mulf %1504, %1505 : vector<8x256xf32>
    %c1_673 = arith.constant 1 : index
    %c0_674 = arith.constant 0 : index
    %c0_675 = arith.constant 0 : index
    %1507 = vector.load %arg4[%c1_673, %c0_674, %c0_675] : memref<8x8x1xf32, #tpu.memory_space<vmem>>, vector<1x8x1xf32>
    %1508 = vector.shape_cast %1507 : vector<1x8x1xf32> to vector<8x1xf32>
    %1509 = vector.extract_strided_slice %1500 {offsets = [1, 0], sizes = [1, 256], strides = [1, 1]} : vector<8x256xf32> to vector<1x256xf32>
    %1510 = vector.broadcast %1508 : vector<8x1xf32> to vector<8x256xf32>
    %1511 = vector.broadcast %1509 : vector<1x256xf32> to vector<8x256xf32>
    %1512 = arith.mulf %1510, %1511 : vector<8x256xf32>
    %1513 = arith.addf %1506, %1512 : vector<8x256xf32>
    %c2_676 = arith.constant 2 : index
    %c0_677 = arith.constant 0 : index
    %c0_678 = arith.constant 0 : index
    %1514 = vector.load %arg4[%c2_676, %c0_677, %c0_678] : memref<8x8x1xf32, #tpu.memory_space<vmem>>, vector<1x8x1xf32>
    %1515 = vector.shape_cast %1514 : vector<1x8x1xf32> to vector<8x1xf32>
    %1516 = vector.extract_strided_slice %1500 {offsets = [2, 0], sizes = [1, 256], strides = [1, 1]} : vector<8x256xf32> to vector<1x256xf32>
    %1517 = vector.broadcast %1515 : vector<8x1xf32> to vector<8x256xf32>
    %1518 = vector.broadcast %1516 : vector<1x256xf32> to vector<8x256xf32>
    %1519 = arith.mulf %1517, %1518 : vector<8x256xf32>
    %1520 = arith.addf %1513, %1519 : vector<8x256xf32>
    %c3_679 = arith.constant 3 : index
    %c0_680 = arith.constant 0 : index
    %c0_681 = arith.constant 0 : index
    %1521 = vector.load %arg4[%c3_679, %c0_680, %c0_681] : memref<8x8x1xf32, #tpu.memory_space<vmem>>, vector<1x8x1xf32>
    %1522 = vector.shape_cast %1521 : vector<1x8x1xf32> to vector<8x1xf32>
    %1523 = vector.extract_strided_slice %1500 {offsets = [3, 0], sizes = [1, 256], strides = [1, 1]} : vector<8x256xf32> to vector<1x256xf32>
    %1524 = vector.broadcast %1522 : vector<8x1xf32> to vector<8x256xf32>
    %1525 = vector.broadcast %1523 : vector<1x256xf32> to vector<8x256xf32>
    %1526 = arith.mulf %1524, %1525 : vector<8x256xf32>
    %1527 = arith.addf %1520, %1526 : vector<8x256xf32>
    %c4_682 = arith.constant 4 : index
    %c0_683 = arith.constant 0 : index
    %c0_684 = arith.constant 0 : index
    %1528 = vector.load %arg4[%c4_682, %c0_683, %c0_684] : memref<8x8x1xf32, #tpu.memory_space<vmem>>, vector<1x8x1xf32>
    %1529 = vector.shape_cast %1528 : vector<1x8x1xf32> to vector<8x1xf32>
    %1530 = vector.extract_strided_slice %1500 {offsets = [4, 0], sizes = [1, 256], strides = [1, 1]} : vector<8x256xf32> to vector<1x256xf32>
    %1531 = vector.broadcast %1529 : vector<8x1xf32> to vector<8x256xf32>
    %1532 = vector.broadcast %1530 : vector<1x256xf32> to vector<8x256xf32>
    %1533 = arith.mulf %1531, %1532 : vector<8x256xf32>
    %1534 = arith.addf %1527, %1533 : vector<8x256xf32>
    %c5_685 = arith.constant 5 : index
    %c0_686 = arith.constant 0 : index
    %c0_687 = arith.constant 0 : index
    %1535 = vector.load %arg4[%c5_685, %c0_686, %c0_687] : memref<8x8x1xf32, #tpu.memory_space<vmem>>, vector<1x8x1xf32>
    %1536 = vector.shape_cast %1535 : vector<1x8x1xf32> to vector<8x1xf32>
    %1537 = vector.extract_strided_slice %1500 {offsets = [5, 0], sizes = [1, 256], strides = [1, 1]} : vector<8x256xf32> to vector<1x256xf32>
    %1538 = vector.broadcast %1536 : vector<8x1xf32> to vector<8x256xf32>
    %1539 = vector.broadcast %1537 : vector<1x256xf32> to vector<8x256xf32>
    %1540 = arith.mulf %1538, %1539 : vector<8x256xf32>
    %1541 = arith.addf %1534, %1540 : vector<8x256xf32>
    %c6_688 = arith.constant 6 : index
    %c0_689 = arith.constant 0 : index
    %c0_690 = arith.constant 0 : index
    %1542 = vector.load %arg4[%c6_688, %c0_689, %c0_690] : memref<8x8x1xf32, #tpu.memory_space<vmem>>, vector<1x8x1xf32>
    %1543 = vector.shape_cast %1542 : vector<1x8x1xf32> to vector<8x1xf32>
    %1544 = vector.extract_strided_slice %1500 {offsets = [6, 0], sizes = [1, 256], strides = [1, 1]} : vector<8x256xf32> to vector<1x256xf32>
    %1545 = vector.broadcast %1543 : vector<8x1xf32> to vector<8x256xf32>
    %1546 = vector.broadcast %1544 : vector<1x256xf32> to vector<8x256xf32>
    %1547 = arith.mulf %1545, %1546 : vector<8x256xf32>
    %1548 = arith.addf %1541, %1547 : vector<8x256xf32>
    %c7_691 = arith.constant 7 : index
    %c0_692 = arith.constant 0 : index
    %c0_693 = arith.constant 0 : index
    %1549 = vector.load %arg4[%c7_691, %c0_692, %c0_693] : memref<8x8x1xf32, #tpu.memory_space<vmem>>, vector<1x8x1xf32>
    %1550 = vector.shape_cast %1549 : vector<1x8x1xf32> to vector<8x1xf32>
    %1551 = vector.extract_strided_slice %1500 {offsets = [7, 0], sizes = [1, 256], strides = [1, 1]} : vector<8x256xf32> to vector<1x256xf32>
    %1552 = vector.broadcast %1550 : vector<8x1xf32> to vector<8x256xf32>
    %1553 = vector.broadcast %1551 : vector<1x256xf32> to vector<8x256xf32>
    %1554 = arith.mulf %1552, %1553 : vector<8x256xf32>
    %1555 = arith.addf %1548, %1554 : vector<8x256xf32>
    %c0_694 = arith.constant 0 : index
    %c0_695 = arith.constant 0 : index
    %1556 = vector.load %arg5[%c0_694, %c0_695] : memref<8x1xf32, #tpu.memory_space<vmem>>, vector<8x1xf32>
    %1557 = vector.broadcast %1556 : vector<8x1xf32> to vector<8x256xf32>
    %1558 = arith.addf %1555, %1557 : vector<8x256xf32>
    %1559 = arith.mulf %1558, %248 : vector<8x256xf32>
    %c0_696 = arith.constant 0 : index
    %c0_697 = arith.constant 0 : index
    %c0_698 = arith.constant 0 : index
    %1560 = vector.load %arg4[%c0_696, %c0_697, %c0_698] : memref<8x8x1xf32, #tpu.memory_space<vmem>>, vector<1x8x1xf32>
    %1561 = vector.shape_cast %1560 : vector<1x8x1xf32> to vector<8x1xf32>
    %1562 = vector.extract_strided_slice %1559 {offsets = [0, 0], sizes = [1, 256], strides = [1, 1]} : vector<8x256xf32> to vector<1x256xf32>
    %1563 = vector.broadcast %1561 : vector<8x1xf32> to vector<8x256xf32>
    %1564 = vector.broadcast %1562 : vector<1x256xf32> to vector<8x256xf32>
    %1565 = arith.mulf %1563, %1564 : vector<8x256xf32>
    %c1_699 = arith.constant 1 : index
    %c0_700 = arith.constant 0 : index
    %c0_701 = arith.constant 0 : index
    %1566 = vector.load %arg4[%c1_699, %c0_700, %c0_701] : memref<8x8x1xf32, #tpu.memory_space<vmem>>, vector<1x8x1xf32>
    %1567 = vector.shape_cast %1566 : vector<1x8x1xf32> to vector<8x1xf32>
    %1568 = vector.extract_strided_slice %1559 {offsets = [1, 0], sizes = [1, 256], strides = [1, 1]} : vector<8x256xf32> to vector<1x256xf32>
    %1569 = vector.broadcast %1567 : vector<8x1xf32> to vector<8x256xf32>
    %1570 = vector.broadcast %1568 : vector<1x256xf32> to vector<8x256xf32>
    %1571 = arith.mulf %1569, %1570 : vector<8x256xf32>
    %1572 = arith.addf %1565, %1571 : vector<8x256xf32>
    %c2_702 = arith.constant 2 : index
    %c0_703 = arith.constant 0 : index
    %c0_704 = arith.constant 0 : index
    %1573 = vector.load %arg4[%c2_702, %c0_703, %c0_704] : memref<8x8x1xf32, #tpu.memory_space<vmem>>, vector<1x8x1xf32>
    %1574 = vector.shape_cast %1573 : vector<1x8x1xf32> to vector<8x1xf32>
    %1575 = vector.extract_strided_slice %1559 {offsets = [2, 0], sizes = [1, 256], strides = [1, 1]} : vector<8x256xf32> to vector<1x256xf32>
    %1576 = vector.broadcast %1574 : vector<8x1xf32> to vector<8x256xf32>
    %1577 = vector.broadcast %1575 : vector<1x256xf32> to vector<8x256xf32>
    %1578 = arith.mulf %1576, %1577 : vector<8x256xf32>
    %1579 = arith.addf %1572, %1578 : vector<8x256xf32>
    %c3_705 = arith.constant 3 : index
    %c0_706 = arith.constant 0 : index
    %c0_707 = arith.constant 0 : index
    %1580 = vector.load %arg4[%c3_705, %c0_706, %c0_707] : memref<8x8x1xf32, #tpu.memory_space<vmem>>, vector<1x8x1xf32>
    %1581 = vector.shape_cast %1580 : vector<1x8x1xf32> to vector<8x1xf32>
    %1582 = vector.extract_strided_slice %1559 {offsets = [3, 0], sizes = [1, 256], strides = [1, 1]} : vector<8x256xf32> to vector<1x256xf32>
    %1583 = vector.broadcast %1581 : vector<8x1xf32> to vector<8x256xf32>
    %1584 = vector.broadcast %1582 : vector<1x256xf32> to vector<8x256xf32>
    %1585 = arith.mulf %1583, %1584 : vector<8x256xf32>
    %1586 = arith.addf %1579, %1585 : vector<8x256xf32>
    %c4_708 = arith.constant 4 : index
    %c0_709 = arith.constant 0 : index
    %c0_710 = arith.constant 0 : index
    %1587 = vector.load %arg4[%c4_708, %c0_709, %c0_710] : memref<8x8x1xf32, #tpu.memory_space<vmem>>, vector<1x8x1xf32>
    %1588 = vector.shape_cast %1587 : vector<1x8x1xf32> to vector<8x1xf32>
    %1589 = vector.extract_strided_slice %1559 {offsets = [4, 0], sizes = [1, 256], strides = [1, 1]} : vector<8x256xf32> to vector<1x256xf32>
    %1590 = vector.broadcast %1588 : vector<8x1xf32> to vector<8x256xf32>
    %1591 = vector.broadcast %1589 : vector<1x256xf32> to vector<8x256xf32>
    %1592 = arith.mulf %1590, %1591 : vector<8x256xf32>
    %1593 = arith.addf %1586, %1592 : vector<8x256xf32>
    %c5_711 = arith.constant 5 : index
    %c0_712 = arith.constant 0 : index
    %c0_713 = arith.constant 0 : index
    %1594 = vector.load %arg4[%c5_711, %c0_712, %c0_713] : memref<8x8x1xf32, #tpu.memory_space<vmem>>, vector<1x8x1xf32>
    %1595 = vector.shape_cast %1594 : vector<1x8x1xf32> to vector<8x1xf32>
    %1596 = vector.extract_strided_slice %1559 {offsets = [5, 0], sizes = [1, 256], strides = [1, 1]} : vector<8x256xf32> to vector<1x256xf32>
    %1597 = vector.broadcast %1595 : vector<8x1xf32> to vector<8x256xf32>
    %1598 = vector.broadcast %1596 : vector<1x256xf32> to vector<8x256xf32>
    %1599 = arith.mulf %1597, %1598 : vector<8x256xf32>
    %1600 = arith.addf %1593, %1599 : vector<8x256xf32>
    %c6_714 = arith.constant 6 : index
    %c0_715 = arith.constant 0 : index
    %c0_716 = arith.constant 0 : index
    %1601 = vector.load %arg4[%c6_714, %c0_715, %c0_716] : memref<8x8x1xf32, #tpu.memory_space<vmem>>, vector<1x8x1xf32>
    %1602 = vector.shape_cast %1601 : vector<1x8x1xf32> to vector<8x1xf32>
    %1603 = vector.extract_strided_slice %1559 {offsets = [6, 0], sizes = [1, 256], strides = [1, 1]} : vector<8x256xf32> to vector<1x256xf32>
    %1604 = vector.broadcast %1602 : vector<8x1xf32> to vector<8x256xf32>
    %1605 = vector.broadcast %1603 : vector<1x256xf32> to vector<8x256xf32>
    %1606 = arith.mulf %1604, %1605 : vector<8x256xf32>
    %1607 = arith.addf %1600, %1606 : vector<8x256xf32>
    %c7_717 = arith.constant 7 : index
    %c0_718 = arith.constant 0 : index
    %c0_719 = arith.constant 0 : index
    %1608 = vector.load %arg4[%c7_717, %c0_718, %c0_719] : memref<8x8x1xf32, #tpu.memory_space<vmem>>, vector<1x8x1xf32>
    %1609 = vector.shape_cast %1608 : vector<1x8x1xf32> to vector<8x1xf32>
    %1610 = vector.extract_strided_slice %1559 {offsets = [7, 0], sizes = [1, 256], strides = [1, 1]} : vector<8x256xf32> to vector<1x256xf32>
    %1611 = vector.broadcast %1609 : vector<8x1xf32> to vector<8x256xf32>
    %1612 = vector.broadcast %1610 : vector<1x256xf32> to vector<8x256xf32>
    %1613 = arith.mulf %1611, %1612 : vector<8x256xf32>
    %1614 = arith.addf %1607, %1613 : vector<8x256xf32>
    %c0_720 = arith.constant 0 : index
    %c0_721 = arith.constant 0 : index
    %1615 = vector.load %arg5[%c0_720, %c0_721] : memref<8x1xf32, #tpu.memory_space<vmem>>, vector<8x1xf32>
    %1616 = vector.broadcast %1615 : vector<8x1xf32> to vector<8x256xf32>
    %1617 = arith.addf %1614, %1616 : vector<8x256xf32>
    %c0_722 = arith.constant 0 : index
    %c0_723 = arith.constant 0 : index
    %c0_724 = arith.constant 0 : index
    %1618 = vector.load %arg24[%c0_722, %c0_723, %c0_724] : memref<1x8x256xf32, #tpu.memory_space<vmem>>, vector<1x8x256xf32>
    %1619 = vector.shape_cast %1618 : vector<1x8x256xf32> to vector<8x256xf32>
    %1620 = vector.shape_cast %1617 : vector<8x256xf32> to vector<1x8x256xf32>
    tpu.vector_store %arg24[%c0_722, %c0_723, %c0_724], %1620 {strides = array<i32>} : memref<1x8x256xf32, #tpu.memory_space<vmem>>, vector<1x8x256xf32>,
    return
  }
  func.func @transform_0(%arg0: i32) -> (i32, i32, i32) {
    %c0_i32 = arith.constant 0 : i32
    %c0_i32_0 = arith.constant 0 : i32
    %c0_i32_1 = arith.constant 0 : i32
    return %arg0, %c0_i32, %c0_i32_0 : i32, i32, i32
  }
  func.func @transform_1(%arg0: i32) -> (i32, i32) {
    %c0_i32 = arith.constant 0 : i32
    %c0_i32_0 = arith.constant 0 : i32
    %c0_i32_1 = arith.constant 0 : i32
    return %c0_i32, %c0_i32_0 : i32, i32
  }
  func.func @transform_2(%arg0: i32) -> (i32, i32) {
    %c0_i32 = arith.constant 0 : i32
    %c0_i32_0 = arith.constant 0 : i32
    %c0_i32_1 = arith.constant 0 : i32
    return %c0_i32, %c0_i32_0 : i32, i32
  }
  func.func @transform_3(%arg0: i32) -> (i32, i32, i32) {
    %c0_i32 = arith.constant 0 : i32
    %c0_i32_0 = arith.constant 0 : i32
    %c0_i32_1 = arith.constant 0 : i32
    %c0_i32_2 = arith.constant 0 : i32
    return %c0_i32, %c0_i32_0, %c0_i32_1 : i32, i32, i32
  }
  func.func @transform_4(%arg0: i32) -> (i32, i32) {
    %c0_i32 = arith.constant 0 : i32
    %c0_i32_0 = arith.constant 0 : i32
    %c0_i32_1 = arith.constant 0 : i32
    return %c0_i32, %c0_i32_0 : i32, i32
  }
  func.func @transform_5(%arg0: i32) -> (i32, i32, i32) {
    %c0_i32 = arith.constant 0 : i32
    %c0_i32_0 = arith.constant 0 : i32
    %c0_i32_1 = arith.constant 0 : i32
    %c0_i32_2 = arith.constant 0 : i32
    return %c0_i32, %c0_i32_0, %c0_i32_1 : i32, i32, i32
  }
  func.func @transform_6(%arg0: i32) -> (i32, i32) {
    %c0_i32 = arith.constant 0 : i32
    %c0_i32_0 = arith.constant 0 : i32
    %c0_i32_1 = arith.constant 0 : i32
    return %c0_i32, %c0_i32_0 : i32, i32
  }
  func.func @transform_7(%arg0: i32) -> (i32, i32, i32) {
    %c0_i32 = arith.constant 0 : i32
    %c0_i32_0 = arith.constant 0 : i32
    %c0_i32_1 = arith.constant 0 : i32
    %c0_i32_2 = arith.constant 0 : i32
    return %c0_i32, %c0_i32_0, %c0_i32_1 : i32, i32, i32
  }
  func.func @transform_8(%arg0: i32) -> (i32, i32) {
    %c0_i32 = arith.constant 0 : i32
    %c0_i32_0 = arith.constant 0 : i32
    %c0_i32_1 = arith.constant 0 : i32
    return %c0_i32, %c0_i32_0 : i32, i32
  }
  func.func @transform_9(%arg0: i32) -> (i32, i32, i32) {
    %c0_i32 = arith.constant 0 : i32
    %c0_i32_0 = arith.constant 0 : i32
    %c0_i32_1 = arith.constant 0 : i32
    %c0_i32_2 = arith.constant 0 : i32
    return %c0_i32, %c0_i32_0, %c0_i32_1 : i32, i32, i32
  }
  func.func @transform_10(%arg0: i32) -> (i32, i32) {
    %c0_i32 = arith.constant 0 : i32
    %c0_i32_0 = arith.constant 0 : i32
    %c0_i32_1 = arith.constant 0 : i32
    return %c0_i32, %c0_i32_0 : i32, i32
  }
  func.func @transform_11(%arg0: i32) -> (i32, i32, i32) {
    %c0_i32 = arith.constant 0 : i32
    %c0_i32_0 = arith.constant 0 : i32
    %c0_i32_1 = arith.constant 0 : i32
    %c0_i32_2 = arith.constant 0 : i32
    return %c0_i32, %c0_i32_0, %c0_i32_1 : i32, i32, i32
  }
  func.func @transform_12(%arg0: i32) -> (i32, i32) {
    %c0_i32 = arith.constant 0 : i32
    %c0_i32_0 = arith.constant 0 : i32
    %c0_i32_1 = arith.constant 0 : i32
    return %c0_i32, %c0_i32_0 : i32, i32
  }
  func.func @transform_13(%arg0: i32) -> (i32, i32, i32) {
    %c0_i32 = arith.constant 0 : i32
    %c0_i32_0 = arith.constant 0 : i32
    %c0_i32_1 = arith.constant 0 : i32
    %c0_i32_2 = arith.constant 0 : i32
    return %c0_i32, %c0_i32_0, %c0_i32_1 : i32, i32, i32
  }
  func.func @transform_14(%arg0: i32) -> (i32, i32) {
    %c0_i32 = arith.constant 0 : i32
    %c0_i32_0 = arith.constant 0 : i32
    %c0_i32_1 = arith.constant 0 : i32
    return %c0_i32, %c0_i32_0 : i32, i32
  }
  func.func @transform_15(%arg0: i32) -> (i32, i32, i32) {
    %c0_i32 = arith.constant 0 : i32
    %c0_i32_0 = arith.constant 0 : i32
    %c0_i32_1 = arith.constant 0 : i32
    %c0_i32_2 = arith.constant 0 : i32
    return %c0_i32, %c0_i32_0, %c0_i32_1 : i32, i32, i32
  }
  func.func @transform_16(%arg0: i32) -> (i32, i32) {
    %c0_i32 = arith.constant 0 : i32
    %c0_i32_0 = arith.constant 0 : i32
    %c0_i32_1 = arith.constant 0 : i32
    return %c0_i32, %c0_i32_0 : i32, i32
  }
  func.func @transform_17(%arg0: i32) -> (i32, i32, i32) {
    %c0_i32 = arith.constant 0 : i32
    %c0_i32_0 = arith.constant 0 : i32
    %c0_i32_1 = arith.constant 0 : i32
    %c0_i32_2 = arith.constant 0 : i32
    return %c0_i32, %c0_i32_0, %c0_i32_1 : i32, i32, i32
  }
  func.func @transform_18(%arg0: i32) -> (i32, i32) {
    %c0_i32 = arith.constant 0 : i32
    %c0_i32_0 = arith.constant 0 : i32
    %c0_i32_1 = arith.constant 0 : i32
    return %c0_i32, %c0_i32_0 : i32, i32
  }
  func.func @transform_19(%arg0: i32) -> (i32, i32, i32) {
    %c0_i32 = arith.constant 0 : i32
    %c0_i32_0 = arith.constant 0 : i32
    %c0_i32_1 = arith.constant 0 : i32
    %c0_i32_2 = arith.constant 0 : i32
    return %c0_i32, %c0_i32_0, %c0_i32_1 : i32, i32, i32
  }
  func.func @transform_20(%arg0: i32) -> (i32, i32) {
    %c0_i32 = arith.constant 0 : i32
    %c0_i32_0 = arith.constant 0 : i32
    %c0_i32_1 = arith.constant 0 : i32
    return %c0_i32, %c0_i32_0 : i32, i32
  }
  func.func @transform_21(%arg0: i32) -> (i32, i32, i32) {
    %c0_i32 = arith.constant 0 : i32
    %c0_i32_0 = arith.constant 0 : i32
    %c0_i32_1 = arith.constant 0 : i32
    %c0_i32_2 = arith.constant 0 : i32
    return %c0_i32, %c0_i32_0, %c0_i32_1 : i32, i32, i32
  }
  func.func @transform_22(%arg0: i32) -> (i32, i32) {
    %c0_i32 = arith.constant 0 : i32
    %c0_i32_0 = arith.constant 0 : i32
    %c0_i32_1 = arith.constant 0 : i32
    return %c0_i32, %c0_i32_0 : i32, i32
  }
  func.func @transform_23(%arg0: i32) -> (i32, i32, i32) {
    %c0_i32 = arith.constant 0 : i32
    %c0_i32_0 = arith.constant 0 : i32
    %c0_i32_1 = arith.constant 0 : i32
    return %arg0, %c0_i32, %c0_i32_0 : i32, i32, i32
  }
}

</mosaic_0001>

<bundles_post_ra>
// kernel: tpu_custom_call.1
= control target key start
LH: loop header
LB: loop body
LE: loop exit
PB: predicated region body
PF: predicated region fallthrough
CT: control target
= control target key end

     0   :  { %s7410_s0 = inlined_call_operand.vmem [shape: f32[2,8,256], index: 0, kind: input, shape index: {}]   ;;  %s7411_s1 = inlined_call_operand.vmem [shape: s32[1,256], index: 1, kind: input, shape index: {}]   ;;  %s7412_s2 = inlined_call_operand.vmem [shape: s32[1,256], index: 2, kind: input, shape index: {}]   ;;  %s7413_s3 = inlined_call_operand.vmem [shape: f32[8,8,1], index: 3, kind: input, shape index: {}]   ;;  %s7414_s4 = inlined_call_operand.vmem [shape: f32[8,1], index: 4, kind: input, shape index: {}]   ;;  %s7415_s5 = inlined_call_operand.vmem [shape: f32[8,2,1], index: 5, kind: input, shape index: {}]   ;;  %s7416_s6 = inlined_call_operand.vmem [shape: f32[2,1], index: 6, kind: input, shape index: {}]   ;;  %s7417_s7 = inlined_call_operand.vmem [shape: f32[2,8,1], index: 7, kind: input, shape index: {}]   ;;  %s7418_s8 = inlined_call_operand.vmem [shape: f32[8,1], index: 8, kind: input, shape index: {}]   ;;  %s7419_s9 = inlined_call_operand.vmem [shape: f32[25,8,1], index: 9, kind: input, shape index: {}]   ;;  %s7420_s10 = inlined_call_operand.vmem [shape: f32[8,1], index: 10, kind: input, shape index: {}]   ;;  %s7421_s11 = inlined_call_operand.vmem [shape: f32[7,8,1], index: 11, kind: input, shape index: {}]   ;;  %s7422_s12 = inlined_call_operand.vmem [shape: f32[8,1], index: 12, kind: input, shape index: {}]   ;;  %s7423_s13 = inlined_call_operand.vmem [shape: f32[7,8,1], index: 13, kind: input, shape index: {}]   ;;  %s7424_s14 = inlined_call_operand.vmem [shape: f32[8,1], index: 14, kind: input, shape index: {}]   ;;  %s7425_s15 = inlined_call_operand.vmem [shape: f32[11,8,1], index: 15, kind: input, shape index: {}]   ;;  %s7426_s16 = inlined_call_operand.vmem [shape: f32[8,1], index: 16, kind: input, shape index: {}]   ;;  %s7427_s17 = inlined_call_operand.vmem [shape: f32[11,8,1], index: 17, kind: input, shape index: {}]   ;;  %s7428_s18 = inlined_call_operand.vmem [shape: f32[8,1], index: 18, kind: input, shape index: {}]   ;;  %s7429_s19 = inlined_call_operand.vmem [shape: f32[21,8,1], index: 19, kind: input, shape index: {}]   ;;  %s7430_s20 = inlined_call_operand.vmem [shape: f32[8,1], index: 20, kind: input, shape index: {}]   ;;  %s7431_s21 = inlined_call_operand.vmem [shape: f32[21,8,1], index: 21, kind: input, shape index: {}]   ;;  %s7432_s22 = inlined_call_operand.vmem [shape: f32[8,1], index: 22, kind: input, shape index: {}]   ;;  %s7433_s23 = inlined_call_operand.hbm [shape: f32[2,8,256], index: 23, kind: output, shape index: {}]  }
   0x1   :  { %7646 = sst [smem:[#allocation102_spill]] %s7410_s0 }
   0x2   :  { %7647 = sst [smem:[#allocation103_spill]] %s7411_s1 }
   0x3   :  { %7648 = sst [smem:[#allocation104_spill]] %s7412_s2 }
   0x4   :  { %7649 = sst [smem:[#allocation105_spill]] %s7413_s3 }
   0x5   :  { %7650 = sst [smem:[#allocation106_spill]] %s7414_s4 }
   0x6   :  { %7651 = sst [smem:[#allocation107_spill]] %s7415_s5 }
   0x7   :  { %7652 = sst [smem:[#allocation108_spill]] %s7416_s6 }
   0x8   :  { %7653 = sst [smem:[#allocation109_spill]] %s7417_s7 }
   0x9   :  { %7654 = sst [smem:[#allocation110_spill]] %s7418_s8 }
   0xa   :  { %28 = vsyncpa [#allocation3], 0 }
   0xb   :  { %30 = vsyncpa [#allocation3 + $0x1], 0  ;;  %s4256_s4 = smov 0   ;;  %s4258_s30 = smov 0  }
   0xc   :  { %s4260_s24 = smov 0   ;;  %s4262_s25 = smov 0  }
   0xd LB: > { %7655 = sst [smem:[#allocation5_spill]] %s4077_s4  ;;  %s4277_s5 = sadd.s32 4294967295, %s4089_s25   ;;  %s4089_s25 = sphi %s4262_s25, %s8303_s25   ;;  %s4085_s24 = sphi %s4260_s24, %s8305_s24   ;;  %s4081_s30 = sphi %s4258_s30, %s8307_s30   ;;  %s4077_s4 = sphi %s4256_s4, %s8306_s4  }
   0xe   : > { %7656 = sst [smem:[#allocation6_spill]] %s4085_s24  ;;  %s3799_s1 = sadd.s32 4294967294, %s4089_s25  }
   0xf   : > { %7657 = sst [smem:[#allocation7_spill]] %s4089_s25  ;;  %s4281_s26 = sadd.s32 1, %s4089_s25  }
  0x10   : > { %7658 = sst [smem:[#allocation8_spill]] %s4281_s26  ;;  %s531_s2 = sadd.s32 1, %s4085_s24 }
  0x11   : > { %s528_s6 = ssub.s32 %s4089_s25, %s4281_s26  ;;  %p541_p0 = scmp.ne.s32.totalorder %s4085_s24, %s4081_s30 }
  0x12   : > { %p529_p1 = scmp.eq.s32.totalorder %s528_s6, 0  ;;  %p542_p2 = scmp.eq.s32.totalorder %s4277_s5, 1 }
  0x13   : > { %p547_p3 = scmp.ne.s32.totalorder %s4081_s30, %s4077_s4  ;;  %p548_p4 = scmp.eq.s32.totalorder %s3799_s1, 1 }
  0x14   : > { %s4292_s27 = scalar_select %p529_p1, %s4085_s24, %s531_s2  }
  0x15   : > { %p4294_p5 = por %p542_p2, %p541_p0  ;;  %p4298_p6 = por %p548_p4, %p547_p3 }
  0x16   : > { %7659 = sst [smem:[#allocation9_spill]] %s4292_s27  ;;  %p3802_p7 = scmp.ge.s32.totalorder %s4089_s25, 1 }
  0x17   : > { %s7661_s28 = scalar_select %p4298_p6, 1, 0 }
  0x18   : > { %p640_p8 = scmp.lt.s32.totalorder %s4089_s25, 3 }
  0x19   : > { %7662 = sst [smem:[#allocation10_spill]] %s7661_s28 }
  0x1a   : > { %p641_p9 = pnand %p3802_p7, %p640_p8 }
  0x1c   : > { %644 = sbr.rel (%p641_p9) target bundleno = 1254 (0x4e6), region = 112 }
  0x21   : > { %s7663_s0 = sld [smem:[#allocation105_spill]]  ;;  %v7446_v2 = vmov 0   ;;  %v3823_v9 = vld [vmem:[%s7419_s9 + $0x8] sm:$0xff]  ;;  %v3825_v11 = vld [vmem:[%s7419_s9 + $0x18] sm:$0xff]  ;;  %v1119_v12 = vld [vmem:[%s7419_s9] sm:$0xff]  ;;  %p704_p10 = scmp.lt.s32.totalorder %s4277_s5, 1  ;;  %v7445_v34 = vlaneseq }
  0x22   : > { %4010 = vset.pattern.permute.xlu1 %v7446_v2  ;;  %4009 = vset.pattern.permute.xlu0 %v7446_v2  ;;  %s7664_s6 = sld [smem:[#allocation106_spill]]  ;;  %v3827_v13 = vld [vmem:[%s7419_s9 + $0x28] sm:$0xff]  ;;  %v3824_v14 = vld [vmem:[%s7419_s9 + $0x10] sm:$0xff]  ;;  %v3829_v15 = vld [vmem:[%s7419_s9 + $0x38] sm:$0xff]  ;;  %s7493_s3 = smov 32  }
  0x23   : > { %v3826_v16 = vld [vmem:[%s7419_s9 + $0x20] sm:$0xff]  ;;  %v3831_v17 = vld [vmem:[%s7419_s9 + $0x48] sm:$0xff]  ;;  %v3828_v18 = vld [vmem:[%s7419_s9 + $0x30] sm:$0xff]  ;;  %s705_s4 = scalar_select %p704_p10, %s4277_s5, 1  ;;  %v720_v35 = vshrl.u32 %v7445_v34, 7 }
  0x24   : > { %v3833_v19 = vld [vmem:[%s7419_s9 + $0x58] sm:$0xff]  ;;  %v3830_v20 = vld [vmem:[%s7419_s9 + $0x40] sm:$0xff]  ;;  %v3835_v21 = vld [vmem:[%s7419_s9 + $0x68] sm:$0xff]  ;;  %s7665_s24 = sld [smem:[#allocation102_spill]]  ;;  %s4095_s25 = smov 31  }
  0x25   : > { %v3832_v22 = vld [vmem:[%s7419_s9 + $0x50] sm:$0xff]  ;;  %v3837_v23 = vld [vmem:[%s7419_s9 + $0x78] sm:$0xff]  ;;  %v3834_v24 = vld [vmem:[%s7419_s9 + $0x60] sm:$0xff]  ;;  %s3924_s28 = sshll.u32 %s705_s4, 4  ;;  %v4411_v36 = vsub.s32 0, %v720_v35  ;;  %v4413_v37 = vsub.s32 1, %v720_v35 }
  0x26   : > { %v3839_v25 = vld [vmem:[%s7419_s9 + $0x88] sm:$0xff]  ;;  %v3836_v26 = vld [vmem:[%s7419_s9 + $0x70] sm:$0xff]  ;;  %v3841_v27 = vld [vmem:[%s7419_s9 + $0x98] sm:$0xff]  ;;  %v4415_v40 = vsub.s32 2, %v720_v35  ;;  %v4421_v43 = vsub.s32 3, %v720_v35  ;;  %v4427_v48 = vsub.s32 4, %v720_v35 }
  0x27   : > { %v3807_v0 = vld [vmem:[%s7663_s0 + $0x10] sm:$0xff]  ;;  %v713_v1 = vld [vmem:[%s7663_s0] sm:$0xff]  ;;  %v3808_v3 = vld [vmem:[%s7663_s0 + $0x18] sm:$0xff]  ;;  %v4437_v55 = vsub.s32 5, %v720_v35  ;;  %v4445_v62 = vsub.s32 6, %v720_v35  ;;  %s7692_s1 = sld [smem:[#allocation107_spill]] }
  0x28   : > { %752 = vperm.xlu1 %4010, %v3807_v0   ;;  %716 = vperm.xlu0 %4009, %v713_v1   ;;  %v3806_v4 = vld [vmem:[%s7663_s0 + $0x8] sm:$0xff]  ;;  %v3809_v6 = vld [vmem:[%s7663_s0 + $0x20] sm:$0xff]  ;;  %v3812_v7 = vld [vmem:[%s7663_s0 + $0x38] sm:$0xff]  ;;  %7666 = vst [vmem:[#allocation11_spill] sm:$0xff] %v4415_v40  ;;  %s7693_s29 = sld [smem:[#allocation108_spill]]  ;;  %s4096_s4 = smov 30  }
  0x29   : > { %v3810_v5 = vld [vmem:[%s7663_s0 + $0x28] sm:$0xff]  ;;  %v3811_v8 = vld [vmem:[%s7663_s0 + $0x30] sm:$0xff]  ;;  %v862_v10 = vld [vmem:[%s7664_s6] sm:$0xff]  ;;  %7669 = vst [vmem:[#allocation14_spill] sm:$0xff] %v4421_v43  ;;  %s7694_s6 = sld [smem:[#allocation109_spill]]  ;;  %s4098_s27 = smov 17  }
  0x2a   : > { %v3838_v28 = vld [vmem:[%s7419_s9 + $0x80] sm:$0xff]  ;;  %v3843_v29 = vld [vmem:[%s7419_s9 + $0xa8] sm:$0xff]  ;;  %v3840_v30 = vld [vmem:[%s7419_s9 + $0x90] sm:$0xff]  ;;  %s708_s26 = scalar_lea.vmem %s7665_s24, %s3924_s28  ;;  %7670 = vst [vmem:[#allocation15_spill] sm:$0xff] %v4427_v48  ;;  %s7695_s8 = sld [smem:[#allocation110_spill]] }
  0x2b   : > { %v3845_v31 = vld [vmem:[%s7419_s9 + $0xb8] sm:$0xff]  ;;  %v3842_v32 = vld [vmem:[%s7419_s9 + $0xa0] sm:$0xff]  ;;  %v3844_v33 = vld [vmem:[%s7419_s9 + $0xb0] sm:$0xff]  ;;  %7673 = vst [vmem:[#allocation18_spill] sm:$0xff] %v4437_v55  ;;  %s4097_s28 = smov 18   ;;  %s7490_s2 = smov 16  }
  0x2c   : > { %771 = vperm.xlu1 %4010, %v3808_v3   ;;  %733 = vperm.xlu0 %4009, %v3806_v4   ;;  %v709_v38 = vld [vmem:[%s708_s26] sm:$0xff]  ;;  %v710_v39 = vld [vmem:[%s708_s26 + $0x8] sm:$0xff]  ;;  %7674 = vst [vmem:[#allocation19_spill] sm:$0xff] %v4445_v62  ;;  %s4092_s26 = smov 33   ;;  %s4100_s24 = smov 15  }
  0x2d   : > { %v722_v44 = vrot.slane %v709_v38, %v4411_v36  ;;  %v726_v45 = vrot.slane %v710_v39, %v4411_v36  ;;  %v739_v46 = vrot.slane %v709_v38, %v4413_v37  ;;  %v743_v47 = vrot.slane %v710_v39, %v4413_v37  ;;  %v3817_v34 = vld [vmem:[%s7692_s1 + $0xa] sm:$0x3]  ;;  %s4129_s0 = smov 120  }
  0x2e   : > { %v758_v49 = vrot.slane %v709_v38, %v4415_v40  ;;  %v762_v50 = vrot.slane %v710_v39, %v4415_v40  ;;  %v777_v52 = vrot.slane %v709_v38, %v4421_v43  ;;  %v781_v53 = vrot.slane %v710_v39, %v4421_v43 }
  0x2f   : > { %v796_v60 = vrot.slane %v709_v38, %v4427_v48  ;;  %v800_v61 = vrot.slane %v710_v39, %v4427_v48 }
  0x30   : > { %809 = vperm.xlu1 %4010, %v3810_v5   ;;  %790 = vperm.xlu0 %4009, %v3809_v6   ;;  %v815_v5 = vrot.slane %v709_v38, %v4437_v55  ;;  %v819_v6 = vrot.slane %v710_v39, %v4437_v55 }
  0x34   : > { %847 = vperm.xlu1 %4010, %v3812_v7   ;;  %828 = vperm.xlu0 %4009, %v3811_v8   ;;  %v4455_v8 = vsub.s32 7, %v720_v35 }
  0x36   : > { %7677 = vst [vmem:[#allocation22_spill] sm:$0xff] %v4455_v8 }
  0x38   : > { %1153 = vperm.xlu1 %4010, %v3823_v9   ;;  %865 = vperm.xlu0 %4009, %v862_v10  }
  0x3c   : > { %1217 = vperm.xlu1 %4010, %v3825_v11   ;;  %1122 = vperm.xlu0 %4009, %v1119_v12  }
  0x40   : > { %1283 = vperm.xlu1 %4010, %v3827_v13   ;;  %1184 = vperm.xlu0 %4009, %v3824_v14   ;;  %v834_v13 = vrot.slane %v709_v38, %v4445_v62  ;;  %v838_v14 = vrot.slane %v710_v39, %v4445_v62 }
  0x44   : > { %1346 = vperm.xlu1 %4010, %v3829_v15   ;;  %1250 = vperm.xlu0 %4009, %v3826_v16  }
  0x48   : > { %1410 = vperm.xlu1 %4010, %v3831_v17   ;;  %1315 = vperm.xlu0 %4009, %v3828_v18  }
  0x4c   : > { %1472 = vperm.xlu1 %4010, %v3833_v19   ;;  %1378 = vperm.xlu0 %4009, %v3830_v20   ;;  %v853_v20 = vrot.slane %v709_v38, %v4455_v8 }
  0x50   : > { %1514 = vperm.xlu1 %4010, %v3835_v21   ;;  %1441 = vperm.xlu0 %4009, %v3832_v22   ;;  %v857_v21 = vrot.slane %v710_v39, %v4455_v8 }
  0x54   : > { %1578 = vperm.xlu1 %4010, %v3837_v23   ;;  %1483 = vperm.xlu0 %4009, %v3834_v24  }
  0x58   : > { %1641 = vperm.xlu1 %4010, %v3839_v25   ;;  %1545 = vperm.xlu0 %4009, %v3836_v26  }
  0x5c   : > { %1705 = vperm.xlu1 %4010, %v3841_v27   ;;  %1610 = vperm.xlu0 %4009, %v3838_v28  }
  0x60   : > { %1770 = vperm.xlu1 %4010, %v3843_v29   ;;  %1673 = vperm.xlu0 %4009, %v3840_v30  }
  0x64   : > { %1833 = vperm.xlu1 %4010, %v3845_v31   ;;  %1738 = vperm.xlu0 %4009, %v3842_v32  }
  0x68   : > { %1801 = vperm.xlu0 %4009, %v3844_v33  }
  0xa3   : > { %v4417_v41 = vpop.permute.xlu1 %752  ;;  %v4419_v42 = vpop.permute.xlu0 %716 }
  0xa4   : > { %7667 = vst [vmem:[#allocation12_spill] sm:$0xff] %v4417_v41  ;;  %7668 = vst [vmem:[#allocation13_spill] sm:$0xff] %v4419_v42  ;;  %v727_v56 = vmul.f32 %v722_v44, %v4419_v42  ;;  %v728_v57 = vmul.f32 %v726_v45, %v4419_v42  ;;  %v763_v63 = vmul.f32 %v758_v49, %v4417_v41 }
  0xa5   : > { %v764_v0 = vmul.f32 %v762_v50, %v4417_v41 }
  0xa7   : > { %v4431_v51 = vpop.permute.xlu1 %771  ;;  %v4435_v54 = vpop.permute.xlu0 %733 }
  0xa8   : > { %7671 = vst [vmem:[#allocation16_spill] sm:$0xff] %v4431_v51  ;;  %7672 = vst [vmem:[#allocation17_spill] sm:$0xff] %v4435_v54  ;;  %v744_v58 = vmul.f32 %v739_v46, %v4435_v54  ;;  %v745_v59 = vmul.f32 %v743_v47, %v4435_v54  ;;  %v782_v9 = vmul.f32 %v777_v52, %v4431_v51 }
  0xa9   : > { %v783_v10 = vmul.f32 %v781_v53, %v4431_v51 }
  0xaa   : > { %v746_v1 = vadd.f32 %v744_v58, %v727_v56  ;;  %v747_v3 = vadd.f32 %v745_v59, %v728_v57 }
  0xab   : > { %v4449_v4 = vpop.permute.xlu1 %809  ;;  %v4453_v7 = vpop.permute.xlu0 %790 }
  0xac   : > { %7675 = vst [vmem:[#allocation20_spill] sm:$0xff] %v4449_v4  ;;  %7676 = vst [vmem:[#allocation21_spill] sm:$0xff] %v4453_v7  ;;  %v765_v11 = vadd.f32 %v763_v63, %v746_v1  ;;  %v766_v12 = vadd.f32 %v764_v0, %v747_v3  ;;  %v801_v17 = vmul.f32 %v796_v60, %v4453_v7 }
  0xad   : > { %v802_v18 = vmul.f32 %v800_v61, %v4453_v7  ;;  %v820_v22 = vmul.f32 %v815_v5, %v4449_v4  ;;  %v821_v23 = vmul.f32 %v819_v6, %v4449_v4 }
  0xae   : > { %v784_v15 = vadd.f32 %v782_v9, %v765_v11  ;;  %v785_v16 = vadd.f32 %v783_v10, %v766_v12 }
  0xaf   : > { %v4463_v19 = vpop.permute.xlu0 %828  ;;  %v4469_v26 = vpop.permute.xlu1 %847 }
  0xb0   : > { %7678 = vst [vmem:[#allocation23_spill] sm:$0xff] %v4463_v19  ;;  %v803_v24 = vadd.f32 %v801_v17, %v784_v15  ;;  %v804_v25 = vadd.f32 %v802_v18, %v785_v16  ;;  %7679 = vst [vmem:[#allocation24_spill] sm:$0xff] %v4469_v26  ;;  %v839_v27 = vmul.f32 %v834_v13, %v4463_v19 }
  0xb1   : > { %v840_v28 = vmul.f32 %v838_v14, %v4463_v19  ;;  %v858_v33 = vmul.f32 %v853_v20, %v4469_v26  ;;  %v859_v35 = vmul.f32 %v857_v21, %v4469_v26 }
  0xb2   : > { %v822_v29 = vadd.f32 %v820_v22, %v803_v24  ;;  %v823_v30 = vadd.f32 %v821_v23, %v804_v25 }
  0xb3   : > { %v4475_v44 = vpop.permute.xlu0 %865 }
  0xb4   : > { %v841_v31 = vadd.f32 %v839_v27, %v822_v29  ;;  %v842_v32 = vadd.f32 %v840_v28, %v823_v30  ;;  %7680 = vst [vmem:[#allocation25_spill] sm:$0xff] %v4475_v44 }
  0xb6   : > { %v860_v38 = vadd.f32 %v858_v33, %v841_v31  ;;  %v861_v39 = vadd.f32 %v859_v35, %v842_v32 }
  0xb8   : > { %v868_v45 = vadd.f32 %v4475_v44, %v860_v38  ;;  %v869_v46 = vadd.f32 %v4475_v44, %v861_v39 }
  0xba   : > { %v870_v47 = vmul.f32 0.70710677, %v868_v45  ;;  %v871_v49 = vmul.f32 0.70710677, %v869_v46 }
  0xbc   : > { %v872_v50 = vand.u32 2147483647, %v870_v47  ;;  %v873_v52 = vand.u32 2147483647, %v871_v49  ;;  %vm912_vm0 = vcmp.ge.f32.partialorder %v870_v47, 0.0  ;;  %vm913_vm1 = vcmp.ge.f32.partialorder %v871_v49, 0.0 }
  0xbd   : > { %v1872_v47 = vld [vmem:[%s7420_s10] sm:$0xff]  ;;  %v3849_v49 = vld [vmem:[%s7421_s11 + $0x18] sm:$0xff] }
  0xbe   : > { %v874_v53 = vmul.f32 0.3275911, %v872_v50  ;;  %v875_v56 = vmul.f32 0.3275911, %v873_v52  ;;  %v900_v59 = vmul.f32 %v872_v50, %v872_v50  ;;  %v901_v60 = vmul.f32 %v873_v52, %v873_v52 }
  0xbf   : > { %v918_v52 = vmul.f32 0.5, %v868_v45  ;;  %v3847_v45 = vld [vmem:[%s7421_s11 + $0x8] sm:$0xff] }
  0xc0   : > { %v876_v57 = vadd.f32 1.0, %v874_v53  ;;  %v877_v58 = vadd.f32 1.0, %v875_v56  ;;  %v902_v61 = vsub.f32 0.0, %v900_v59  ;;  %v903_v63 = vsub.f32 0.0, %v901_v60 }
  0xc1   : > { %v919_v56 = vmul.f32 0.5, %v869_v46  ;;  %v3846_v46 = vld [vmem:[%s7419_s9 + $0xc0] sm:$0xff] }
  0xc2   : > { %4011 = vrcp.f32 %v876_v57  ;;  %v904_v5 = vmul.f32 1.442695, %v902_v61  ;;  %v906_v9 = vmul.f32 1.442695, %v903_v63  ;;  %v1901_v63 = vld [vmem:[%s7421_s11] sm:$0xff] }
  0xc3   : > { %4013 = vrcp.f32 %v877_v58 }
  0xc4   : > { %4015 = vpow2.f32 %v904_v5  ;;  %v3850_v5 = vld [vmem:[%s7421_s11 + $0x20] sm:$0xff] }
  0xc5   : > { %4017 = vpow2.f32 %v906_v9  ;;  %v3852_v9 = vld [vmem:[%s7421_s11 + $0x30] sm:$0xff] }
  0xcf   : > { %v4012_v0 = vpop.eup %4011 }
  0xd0   : > { %v4014_v1 = vpop.eup %4013  ;;  %v882_v3 = vmul.f32 1.0614054, %v4012_v0 }
  0xd1   : > { %v883_v6 = vmul.f32 1.0614054, %v4014_v1  ;;  %v4016_v27 = vpop.eup %4015 }
  0xd2   : > { %v884_v10 = vadd.f32 -1.4531521, %v882_v3  ;;  %v4018_v29 = vpop.eup %4017  ;;  %v2028_v3 = vld [vmem:[%s7422_s12] sm:$0xff] }
  0xd3   : > { %v885_v11 = vadd.f32 -1.4531521, %v883_v6  ;;  %v3853_v6 = vld [vmem:[%s7423_s13 + $0x8] sm:$0xff] }
  0xd4   : > { %v886_v12 = vmul.f32 %v4012_v0, %v884_v10  ;;  %v3855_v10 = vld [vmem:[%s7423_s13 + $0x18] sm:$0xff] }
  0xd5   : > { %v887_v13 = vmul.f32 %v4014_v1, %v885_v11  ;;  %v2057_v11 = vld [vmem:[%s7423_s13] sm:$0xff] }
  0xd6   : > { %v888_v14 = vadd.f32 1.4214138, %v886_v12  ;;  %v3857_v12 = vld [vmem:[%s7423_s13 + $0x28] sm:$0xff] }
  0xd7   : > { %v889_v15 = vadd.f32 1.4214138, %v887_v13  ;;  %v3854_v13 = vld [vmem:[%s7423_s13 + $0x10] sm:$0xff] }
  0xd8   : > { %v890_v16 = vmul.f32 %v4012_v0, %v888_v14  ;;  %v2184_v14 = vld [vmem:[%s7424_s14] sm:$0xff] }
  0xd9   : > { %v891_v17 = vmul.f32 %v4014_v1, %v889_v15  ;;  %v3856_v15 = vld [vmem:[%s7423_s13 + $0x20] sm:$0xff] }
  0xda   : > { %v892_v18 = vadd.f32 -0.28449672, %v890_v16  ;;  %v3859_v16 = vld [vmem:[%s7425_s15 + $0x8] sm:$0xff] }
  0xdb   : > { %v893_v20 = vadd.f32 -0.28449672, %v891_v17  ;;  %v3858_v17 = vld [vmem:[%s7423_s13 + $0x30] sm:$0xff] }
  0xdc   : > { %v894_v21 = vmul.f32 %v4012_v0, %v892_v18  ;;  %v3861_v18 = vld [vmem:[%s7425_s15 + $0x18] sm:$0xff] }
  0xdd   : > { %v895_v22 = vmul.f32 %v4014_v1, %v893_v20  ;;  %v2215_v20 = vld [vmem:[%s7425_s15] sm:$0xff] }
  0xde   : > { %v896_v23 = vadd.f32 0.2548296, %v894_v21  ;;  %v3863_v21 = vld [vmem:[%s7425_s15 + $0x28] sm:$0xff] }
  0xdf   : > { %v897_v24 = vadd.f32 0.2548296, %v895_v22  ;;  %v3860_v22 = vld [vmem:[%s7425_s15 + $0x10] sm:$0xff] }
  0xe0   : > { %v898_v25 = vmul.f32 %v4012_v0, %v896_v23  ;;  %v3851_v0 = vld [vmem:[%s7421_s11 + $0x28] sm:$0xff]  ;;  %v3865_v23 = vld [vmem:[%s7425_s15 + $0x38] sm:$0xff] }
  0xe1   : > { %v899_v28 = vmul.f32 %v4014_v1, %v897_v24  ;;  %v3848_v1 = vld [vmem:[%s7421_s11 + $0x10] sm:$0xff]  ;;  %v3862_v24 = vld [vmem:[%s7425_s15 + $0x20] sm:$0xff] }
  0xe2   : > { %v908_v30 = vmul.f32 %v4016_v27, %v898_v25  ;;  %v3867_v25 = vld [vmem:[%s7425_s15 + $0x48] sm:$0xff]  ;;  %v4565_v27 = vpop.permute.xlu0 %1122 }
  0xe3   : > { %v909_v31 = vmul.f32 %v4018_v29, %v899_v28  ;;  %v3864_v28 = vld [vmem:[%s7425_s15 + $0x30] sm:$0xff]  ;;  %v4570_v29 = vpop.permute.xlu1 %1153 }
  0xe4   : > { %v910_v32 = vsub.f32 1.0, %v908_v30  ;;  %v2396_v30 = vld [vmem:[%s7426_s16] sm:$0xff] }
  0xe5   : > { %v911_v33 = vsub.f32 1.0, %v909_v31  ;;  %v3866_v31 = vld [vmem:[%s7425_s15 + $0x40] sm:$0xff] }
  0xe6   : > { %v914_v35 = vsub.f32 0.0, %v910_v32 }
  0xe7   : > { %v915_v38 = vsub.f32 0.0, %v911_v33 }
  0xe8   : > { %v916_v39 = vsel %vm912_vm0, %v910_v32, %v914_v35  ;;  %v4578_v32 = vpop.permute.xlu0 %1184  ;;  %v4583_v35 = vpop.permute.xlu1 %1217 }
  0xe9   : > { %v917_v50 = vsel %vm913_vm1, %v911_v33, %v915_v38  ;;  %v920_v53 = vadd.f32 1.0, %v916_v39  ;;  %v3869_v33 = vld [vmem:[%s7427_s17 + $0x8] sm:$0xff]  ;;  %v3868_v38 = vld [vmem:[%s7425_s15 + $0x50] sm:$0xff]  ;;  %v3871_v39 = vld [vmem:[%s7427_s17 + $0x18] sm:$0xff] }
  0xea   : > { %v921_v57 = vadd.f32 1.0, %v917_v50 }
  0xeb   : > { %v4479_v58 = vmul.f32 %v920_v53, %v918_v52  ;;  %v2424_v52 = vld [vmem:[%s7427_s17] sm:$0xff] }
  0xec   : > { %v4481_v59 = vmul.f32 %v921_v57, %v919_v56  ;;  %v4591_v50 = vpop.permute.xlu0 %1250  ;;  %v4596_v53 = vpop.permute.xlu1 %1283  ;;  %v3873_v56 = vld [vmem:[%s7427_s17 + $0x28] sm:$0xff]  ;;  %v3870_v57 = vld [vmem:[%s7427_s17 + $0x10] sm:$0xff] }
  0xee   : > { %v929_v60 = vmax.f32 %v4479_v58, %v4481_v59  ;;  %v924_v61 = vadd.f32 %v4481_v59, %v4479_v58 }
  0xf0   : > { %930 = vmax.xlane.f32.xlu0 %v929_v60  ;;  %925 = vadd.xlane.f32.xlu1 %v924_v61  ;;  %v4604_v60 = vpop.permute.xlu0 %1315  ;;  %v3875_v61 = vld [vmem:[%s7427_s17 + $0x38] sm:$0xff] }
 0x101   : > { %1875 = vperm.xlu1 %4010, %v1872_v47   ;;  %v4609_v47 = vpop.permute.xlu1 %1346 }
 0x105   : > { %1921 = vperm.xlu1 %4010, %v3847_v45   ;;  %v3872_v45 = vld [vmem:[%s7427_s17 + $0x20] sm:$0xff] }
 0x106   : > { %1865 = vperm.xlu0 %4009, %v3846_v46   ;;  %v2664_v46 = vld [vmem:[%s7429_s19] sm:$0xff] }
 0x109   : > { %1951 = vperm.xlu1 %4010, %v3849_v49   ;;  %v4617_v49 = vpop.permute.xlu0 %1378 }
 0x10a   : > { %1904 = vperm.xlu0 %4009, %v1901_v63   ;;  %v3874_v63 = vld [vmem:[%s7427_s17 + $0x30] sm:$0xff] }
 0x10d   : > { %1989 = vperm.xlu1 %4010, %v3851_v0   ;;  %v4622_v0 = vpop.permute.xlu1 %1410 }
 0x10e   : > { %1940 = vperm.xlu0 %4009, %v3848_v1   ;;  %v3880_v1 = vld [vmem:[%s7429_s19 + $0x10] sm:$0xff] }
 0x111   : > { %2031 = vperm.xlu1 %4010, %v2028_v3   ;;  %v3876_v3 = vld [vmem:[%s7427_s17 + $0x40] sm:$0xff] }
 0x112   : > { %1970 = vperm.xlu0 %4009, %v3850_v5   ;;  %v4630_v5 = vpop.permute.xlu0 %1441 }
 0x115   : > { %2077 = vperm.xlu1 %4010, %v3853_v6   ;;  %v3882_v6 = vld [vmem:[%s7429_s19 + $0x20] sm:$0xff] }
 0x116   : > { %2021 = vperm.xlu0 %4009, %v3852_v9   ;;  %v4635_v9 = vpop.permute.xlu1 %1472 }
 0x119   : > { %2107 = vperm.xlu1 %4010, %v3855_v10   ;;  %v3879_v10 = vld [vmem:[%s7429_s19 + $0x8] sm:$0xff] }
 0x11a   : > { %2060 = vperm.xlu0 %4009, %v2057_v11   ;;  %v3884_v11 = vld [vmem:[%s7429_s19 + $0x30] sm:$0xff] }
 0x11d   : > { %2145 = vperm.xlu1 %4010, %v3857_v12   ;;  %v4643_v12 = vpop.permute.xlu0 %1483 }
 0x11e   : > { %2096 = vperm.xlu0 %4009, %v3854_v13   ;;  %v3881_v13 = vld [vmem:[%s7429_s19 + $0x18] sm:$0xff] }
 0x121   : > { %2187 = vperm.xlu1 %4010, %v2184_v14   ;;  %v4648_v14 = vpop.permute.xlu1 %1514 }
 0x122   : > { %2126 = vperm.xlu0 %4009, %v3856_v15   ;;  %7681 = vst [vmem:[#allocation26_spill] sm:$0xff] %v4648_v14  ;;  %v3886_v15 = vld [vmem:[%s7429_s19 + $0x40] sm:$0xff] }
 0x125   : > { %2248 = vperm.xlu1 %4010, %v3859_v16   ;;  %v3883_v16 = vld [vmem:[%s7429_s19 + $0x28] sm:$0xff] }
 0x126   : > { %2177 = vperm.xlu0 %4009, %v3858_v17   ;;  %v4656_v17 = vpop.permute.xlu0 %1545 }
 0x127   : > { %7682 = vst [vmem:[#allocation27_spill] sm:$0xff] %v4656_v17 }
 0x129   : > { %2270 = vperm.xlu1 %4010, %v3861_v18   ;;  %v3888_v18 = vld [vmem:[%s7429_s19 + $0x50] sm:$0xff] }
 0x12a   : > { %2218 = vperm.xlu0 %4009, %v2215_v20   ;;  %v4661_v20 = vpop.permute.xlu1 %1578 }
 0x12b   : > { %7683 = vst [vmem:[#allocation28_spill] sm:$0xff] %v4661_v20 }
 0x12d   : > { %2292 = vperm.xlu1 %4010, %v3863_v21   ;;  %v3885_v21 = vld [vmem:[%s7429_s19 + $0x38] sm:$0xff] }
 0x12e   : > { %2259 = vperm.xlu0 %4009, %v3860_v22   ;;  %v3890_v22 = vld [vmem:[%s7429_s19 + $0x60] sm:$0xff] }
 0x131   : > { %2314 = vperm.xlu1 %4010, %v3865_v23   ;;  %v4669_v23 = vpop.permute.xlu0 %1610 }
 0x132   : > { %2281 = vperm.xlu0 %4009, %v3862_v24   ;;  %7684 = vst [vmem:[#allocation29_spill] sm:$0xff] %v4669_v23  ;;  %v3887_v24 = vld [vmem:[%s7429_s19 + $0x48] sm:$0xff] }
 0x135   : > { %2357 = vperm.xlu1 %4010, %v3867_v25   ;;  %v4674_v25 = vpop.permute.xlu1 %1641 }
 0x136   : > { %2303 = vperm.xlu0 %4009, %v3864_v28   ;;  %7685 = vst [vmem:[#allocation30_spill] sm:$0xff] %v4674_v25  ;;  %v3892_v28 = vld [vmem:[%s7429_s19 + $0x70] sm:$0xff] }
 0x139   : > { %2399 = vperm.xlu1 %4010, %v2396_v30   ;;  %v3889_v30 = vld [vmem:[%s7429_s19 + $0x58] sm:$0xff] }
 0x13a   : > { %2325 = vperm.xlu0 %4009, %v3866_v31   ;;  %v4682_v31 = vpop.permute.xlu0 %1673 }
 0x13b   : > { %7686 = vst [vmem:[#allocation31_spill] sm:$0xff] %v4682_v31 }
 0x13d   : > { %2457 = vperm.xlu1 %4010, %v3869_v33   ;;  %v3894_v33 = vld [vmem:[%s7429_s19 + $0x80] sm:$0xff] }
 0x13e   : > { %2389 = vperm.xlu0 %4009, %v3868_v38   ;;  %v4687_v38 = vpop.permute.xlu1 %1705 }
 0x13f   : > { %7687 = vst [vmem:[#allocation32_spill] sm:$0xff] %v4687_v38 }
 0x141   : > { %2495 = vperm.xlu1 %4010, %v3871_v39   ;;  %v3896_v39 = vld [vmem:[%s7429_s19 + $0x90] sm:$0xff] }
 0x142   : > { %2427 = vperm.xlu0 %4009, %v2424_v52   ;;  %v4692_v52 = vpop.permute.xlu0 %1738 }
 0x143   : > { %7688 = vst [vmem:[#allocation33_spill] sm:$0xff] %v4692_v52 }
 0x145   : > { %2525 = vperm.xlu1 %4010, %v3873_v56   ;;  %v4694_v56 = vpop.permute.xlu1 %1770 }
 0x146   : > { %2476 = vperm.xlu0 %4009, %v3870_v57   ;;  %7689 = vst [vmem:[#allocation34_spill] sm:$0xff] %v4694_v56  ;;  %v3898_v57 = vld [vmem:[%s7429_s19 + $0xa0] sm:$0xff] }
 0x149   : > { %2563 = vperm.xlu1 %4010, %v3875_v61   ;;  %v4699_v61 = vpop.permute.xlu0 %1801 }
 0x14a   : > { %2514 = vperm.xlu0 %4009, %v3872_v45   ;;  %7690 = vst [vmem:[#allocation35_spill] sm:$0xff] %v4699_v61  ;;  %v4701_v45 = vpop.permute.xlu1 %1833  ;;  %v7843_v61 = vmov 0 }
 0x14b   : > { %7691 = vst [vmem:[#allocation36_spill] sm:$0xff] %v4701_v45 }
 0x14d   : > { %2667 = vperm.xlu1 %4010, %v2664_v46   ;;  %v932_v46 = vld [vmem:[%s7692_s1] sm:$0x3] }
 0x14e   : > { %2544 = vperm.xlu0 %4009, %v3874_v63   ;;  %v3813_v63 = vld [vmem:[%s7692_s1 + $0x2] sm:$0x3] }
 0x151   : > { %2729 = vperm.xlu1 %4010, %v3880_v1  }
 0x152   : > { %2576 = vperm.xlu0 %4009, %v3876_v3  }
 0x155   : > { %2793 = vperm.xlu1 %4010, %v3882_v6  }
 0x156   : > { %2697 = vperm.xlu0 %4009, %v3879_v10  }
 0x159   : > { %2815 = vperm.xlu1 %4010, %v3884_v11   ;;  %v3814_v11 = vld [vmem:[%s7692_s1 + $0x4] sm:$0x3] }
 0x15a   : > { %2761 = vperm.xlu0 %4009, %v3881_v13  }
 0x15d   : > { %2837 = vperm.xlu1 %4010, %v3886_v15  }
 0x15e   : > { %2804 = vperm.xlu0 %4009, %v3883_v16   ;;  %v3815_v16 = vld [vmem:[%s7692_s1 + $0x6] sm:$0x3] }
 0x161   : > { %2859 = vperm.xlu1 %4010, %v3888_v18  }
 0x162   : > { %2826 = vperm.xlu0 %4009, %v3885_v21  }
 0x165   : > { %2881 = vperm.xlu1 %4010, %v3890_v22  }
 0x166   : > { %2848 = vperm.xlu0 %4009, %v3887_v24   ;;  %v3816_v24 = vld [vmem:[%s7692_s1 + $0x8] sm:$0x3] }
 0x169   : > { %2903 = vperm.xlu1 %4010, %v3892_v28  }
 0x16a   : > { %2870 = vperm.xlu0 %4009, %v3889_v30  }
 0x16d   : > { %2946 = vperm.xlu1 %4010, %v3894_v33  }
 0x171   : > { %3010 = vperm.xlu1 %4010, %v3896_v39  }
 0x175   : > { %3074 = vperm.xlu1 %4010, %v3898_v57  }
 0x179   : > { %v931_v1 = vpop.xlane.xlu0 %930  ;;  %v926_v15 = vpop.xlane.xlu1 %925 }
 0x17a   : > { %v1022_v3 = vrot.slane %v931_v1, %v4411_v36  ;;  %v1027_v6 = vrot.slane %v931_v1, %v4413_v37  ;;  %v1033_v10 = vrot.slane %v931_v1, %v4415_v40  ;;  %v1039_v13 = vrot.slane %v931_v1, %v4421_v43 }
 0x17b   : > { %v1045_v22 = vrot.slane %v931_v1, %v4427_v48  ;;  %v928_v33 = vmul.f32 0.00390625, %v926_v15  ;;  %v1051_v57 = vrot.slane %v931_v1, %v4437_v55  ;;  %v1057_v19 = vrot.slane %v931_v1, %v4445_v62 }
 0x17c   : > { %v1023_v18 = vmul.f32 %v1022_v3, %v932_v46  ;;  %v1028_v21 = vmul.f32 %v3813_v63, %v1027_v6  ;;  %v1034_v30 = vmul.f32 %v3814_v11, %v1033_v10  ;;  %v1040_v39 = vmul.f32 %v3815_v16, %v1039_v13  ;;  %v3818_v10 = vld [vmem:[%s7692_s1 + $0xc] sm:$0x3] }
 0x17d   : > { %v936_v3 = vrot.slane %v928_v33, %v4411_v36  ;;  %v943_v6 = vrot.slane %v928_v33, %v4413_v37  ;;  %v951_v44 = vrot.slane %v928_v33, %v4415_v40  ;;  %v1046_v26 = vmul.f32 %v3816_v24, %v1045_v22 }
 0x17e   : > { %v1029_v28 = vadd.f32 %v1028_v21, %v1023_v18  ;;  %v959_v21 = vrot.slane %v928_v33, %v4421_v43  ;;  %v1052_v4 = vmul.f32 %v3817_v34, %v1051_v57  ;;  %v967_v41 = vrot.slane %v928_v33, %v4427_v48 }
 0x17f   : > { %v937_v15 = vmul.f32 %v936_v3, %v932_v46  ;;  %v944_v18 = vmul.f32 %v3813_v63, %v943_v6  ;;  %v952_v51 = vmul.f32 %v3814_v11, %v951_v44  ;;  %v1058_v54 = vmul.f32 %v3818_v10, %v1057_v19 }
 0x180   : > { %v1035_v2 = vadd.f32 %v1034_v30, %v1029_v28  ;;  %v1063_v28 = vrot.slane %v931_v1, %v4455_v8  ;;  %v3819_v30 = vld [vmem:[%s7692_s1 + $0xe] sm:$0x3]  ;;  %v975_v46 = vrot.slane %v928_v33, %v4437_v55  ;;  %v968_v3 = vmul.f32 %v3816_v24, %v967_v41  ;;  %s4130_s1 = smov 119  }
 0x181   : > { %v945_v22 = vadd.f32 %v944_v18, %v937_v15  ;;  %v983_v1 = vrot.slane %v928_v33, %v4445_v62  ;;  %v991_v19 = vrot.slane %v928_v33, %v4455_v8  ;;  %v3820_v41 = vld [vmem:[%s7694_s6 + $0x8] sm:$0xff]  ;;  %v1011_v18 = vld [vmem:[%s7695_s8] sm:$0xff] }
 0x182   : > { %v1041_v13 = vadd.f32 %v1040_v39, %v1035_v2  ;;  %v960_v2 = vmul.f32 %v3815_v16, %v959_v21  ;;  %v1064_v63 = vmul.f32 %v3819_v30, %v1063_v28  ;;  %v976_v11 = vmul.f32 %v3817_v34, %v975_v46 }
 0x183   : > { %v953_v40 = vadd.f32 %v952_v51, %v945_v22  ;;  %v984_v51 = vmul.f32 %v3818_v10, %v983_v1 }
 0x184   : > { %v1047_v7 = vadd.f32 %v1046_v26, %v1041_v13  ;;  %v994_v26 = vld [vmem:[%s7693_s29] sm:$0x3]  ;;  %v992_v13 = vmul.f32 %v3819_v30, %v991_v19  ;;  %s4093_s29 = smov 34  }
 0x185   : > { %v961_v57 = vadd.f32 %v960_v2, %v953_v40  ;;  %v997_v40 = vld [vmem:[%s7694_s6] sm:$0xff]  ;;  %s4131_s6 = smov 118  }
 0x186   : > { %v1053_v42 = vadd.f32 %v1052_v4, %v1047_v7 }
 0x187   : > { %v969_v44 = vadd.f32 %v968_v3, %v961_v57 }
 0x188   : > { %v1059_v39 = vadd.f32 %v1058_v54, %v1053_v42 }
 0x189   : > { %v977_v7 = vadd.f32 %v976_v11, %v969_v44 }
 0x18a   : > { %v1065_v6 = vadd.f32 %v1064_v63, %v1059_v39 }
 0x18b   : > { %v985_v16 = vadd.f32 %v984_v51, %v977_v7 }
 0x18c   : > { %v1066_v4 = vadd.f32 %v1065_v6, %v994_v26 }
 0x18d   : > { %v993_v42 = vadd.f32 %v992_v13, %v985_v16 }
 0x18e   : > { %v1067_v15 = vmax.f32 %v1066_v4, 0.0 }
 0x18f   : > { %v995_v24 = vadd.f32 %v994_v26, %v993_v42  ;;  %v4759_v26 = vpop.permute.xlu0 %1865  ;;  %v3891_v42 = vld [vmem:[%s7429_s19 + $0x68] sm:$0xff] }
 0x190   : > { %v1071_v54 = vrot.slane %v1067_v15, %v4411_v36  ;;  %v1076_v34 = vrot.slane %v1067_v15, %v4413_v37  ;;  %7696 = vst [vmem:[#allocation37_spill] sm:$0xff] %v4759_v26 }
 0x191   : > { %v996_v21 = vmax.f32 %v995_v24, 0.0  ;;  %v3895_v24 = vld [vmem:[%s7429_s19 + $0x88] sm:$0xff] }
 0x192   : > { %v1072_v33 = vmul.f32 %v1071_v54, %v997_v40  ;;  %v1077_v10 = vmul.f32 %v3820_v41, %v1076_v34  ;;  %v3893_v34 = vld [vmem:[%s7429_s19 + $0x78] sm:$0xff] }
 0x193   : > { %v1001_v30 = vrot.slane %v996_v21, %v4411_v36  ;;  %v1008_v22 = vrot.slane %v996_v21, %v4413_v37  ;;  %v4761_v6 = vpop.permute.xlu0 %1904  ;;  %v3081_v21 = vld [vmem:[%s7430_s20] sm:$0xff] }
 0x194   : > { %v1078_v28 = vadd.f32 %v1077_v10, %v1072_v33  ;;  %7697 = vst [vmem:[#allocation38_spill] sm:$0xff] %v4761_v6  ;;  %v3897_v10 = vld [vmem:[%s7429_s19 + $0x98] sm:$0xff]  ;;  %v7775_v6 = vmov 0 }
 0x195   : > { %v1002_v46 = vmul.f32 %v1001_v30, %v997_v40  ;;  %v1009_v63 = vmul.f32 %v3820_v41, %v1008_v22 }
 0x196   : > { %v1079_v2 = vadd.f32 %v1078_v28, %v1011_v18 }
 0x197   : > { %v1010_v57 = vadd.f32 %v1009_v63, %v1002_v46  ;;  %v4763_v4 = vpop.permute.xlu0 %1940 }
 0x198   : > { %v3822_v39 = vmul.f32 -1.442695, %v1079_v2  ;;  %7698 = vst [vmem:[#allocation39_spill] sm:$0xff] %v4763_v4 }
 0x199   : > { %v1012_v3 = vadd.f32 %v1011_v18, %v1010_v57  ;;  %v4806_v57 = vpop.permute.xlu1 %1875 }
 0x19a   : > { %4019 = vpow2.f32 %v3822_v39  ;;  %7712 = vst [vmem:[#allocation53_spill] sm:$0xff] %v4806_v57 }
 0x19b   : > { %v3821_v1 = vmul.f32 -1.442695, %v1012_v3  ;;  %v4765_v7 = vpop.permute.xlu0 %1970 }
 0x19c   : > { %7699 = vst [vmem:[#allocation40_spill] sm:$0xff] %v4765_v7 }
 0x19d   : > { %4021 = vpow2.f32 %v3821_v1  ;;  %v4810_v1 = vpop.permute.xlu1 %1921 }
 0x19e   : > { %7714 = vst [vmem:[#allocation55_spill] sm:$0xff] %v4810_v1 }
 0x19f   : > { %v4767_v16 = vpop.permute.xlu0 %2021 }
 0x1a0   : > { %7700 = vst [vmem:[#allocation41_spill] sm:$0xff] %v4767_v16 }
 0x1a3   : > { %v4769_v41 = vpop.permute.xlu0 %2060 }
 0x1a4   : > { %7701 = vst [vmem:[#allocation42_spill] sm:$0xff] %v4769_v41 }
 0x1a7   : > { %v4020_v44 = vpop.eup %4019  ;;  %v4774_v54 = vpop.permute.xlu0 %2096 }
 0x1a8   : > { %v1083_v11 = vadd.f32 1.0, %v4020_v44  ;;  %7702 = vst [vmem:[#allocation43_spill] sm:$0xff] %v4774_v54 }
 0x1aa   : > { %v4022_v19 = vpop.eup %4021  ;;  %4023 = vrcp.f32 %v1083_v11  ;;  %v4814_v11 = vpop.permute.xlu1 %1951 }
 0x1ab   : > { %v1016_v51 = vadd.f32 1.0, %v4022_v19  ;;  %v4782_v33 = vpop.permute.xlu0 %2126  ;;  %7716 = vst [vmem:[#allocation57_spill] sm:$0xff] %v4814_v11 }
 0x1ac   : > { %7703 = vst [vmem:[#allocation44_spill] sm:$0xff] %v4782_v33 }
 0x1ad   : > { %4025 = vrcp.f32 %v1016_v51 }
 0x1ae   : > { %v4818_v51 = vpop.permute.xlu1 %1989 }
 0x1af   : > { %v4787_v18 = vpop.permute.xlu0 %2177  ;;  %7718 = vst [vmem:[#allocation59_spill] sm:$0xff] %v4818_v51 }
 0x1b0   : > { %7704 = vst [vmem:[#allocation45_spill] sm:$0xff] %v4787_v18 }
 0x1b3   : > { %v4792_v28 = vpop.permute.xlu0 %2218 }
 0x1b4   : > { %7705 = vst [vmem:[#allocation46_spill] sm:$0xff] %v4792_v28 }
 0x1b7   : > { %v4024_v13 = vpop.eup %4023  ;;  %v4794_v30 = vpop.permute.xlu0 %2259 }
 0x1b8   : > { %7706 = vst [vmem:[#allocation47_spill] sm:$0xff] %v4794_v30 }
 0x1ba   : > { %v4026_v15 = vpop.eup %4025 }
 0x1bb   : > { %v1086_v40 = vadd.f32 %v4026_v15, %v4024_v13  ;;  %v4796_v22 = vpop.permute.xlu0 %2281  ;;  %v4822_v15 = vpop.permute.xlu1 %2031 }
 0x1bc   : > { %7707 = vst [vmem:[#allocation48_spill] sm:$0xff] %v4796_v22  ;;  %7720 = vst [vmem:[#allocation61_spill] sm:$0xff] %v4822_v15 }
 0x1bd   : > { %1089 = vperm.xlu0 %4009, %v1086_v40  }
 0x1bf   : > { %v4798_v2 = vpop.permute.xlu0 %2303 }
 0x1c0   : > { %7708 = vst [vmem:[#allocation49_spill] sm:$0xff] %v4798_v2 }
 0x1c1   : > { %2892 = vperm.xlu0 %4009, %v3891_v42   ;;  %v4826_v42 = vpop.permute.xlu1 %2077 }
 0x1c2   : > { %7722 = vst [vmem:[#allocation63_spill] sm:$0xff] %v4826_v42 }
 0x1c3   : > { %v4800_v46 = vpop.permute.xlu0 %2325 }
 0x1c4   : > { %7709 = vst [vmem:[#allocation50_spill] sm:$0xff] %v4800_v46 }
 0x1c5   : > { %2914 = vperm.xlu0 %4009, %v3893_v34  }
 0x1c7   : > { %v4802_v63 = vpop.permute.xlu0 %2389 }
 0x1c8   : > { %7710 = vst [vmem:[#allocation51_spill] sm:$0xff] %v4802_v63  ;;  %v7764_v63 = vlaneseq }
 0x1c9   : > { %2978 = vperm.xlu0 %4009, %v3895_v24   ;;  %v4830_v24 = vpop.permute.xlu1 %2107 }
 0x1ca   : > { %7724 = vst [vmem:[#allocation65_spill] sm:$0xff] %v4830_v24 }
 0x1cb   : > { %v4804_v39 = vpop.permute.xlu0 %2427 }
 0x1cc   : > { %7711 = vst [vmem:[#allocation52_spill] sm:$0xff] %v4804_v39 }
 0x1cd   : > { %3042 = vperm.xlu0 %4009, %v3897_v10  }
 0x1cf   : > { %v4808_v3 = vpop.permute.xlu0 %2476 }
 0x1d0   : > { %7713 = vst [vmem:[#allocation54_spill] sm:$0xff] %v4808_v3 }
 0x1d1   : > { %3084 = vperm.xlu0 %4009, %v3081_v21   ;;  %v4834_v21 = vpop.permute.xlu1 %2145 }
 0x1d2   : > { %7726 = vst [vmem:[#allocation67_spill] sm:$0xff] %v4834_v21 }
 0x1d3   : > { %v4812_v44 = vpop.permute.xlu0 %2514 }
 0x1d4   : > { %7715 = vst [vmem:[#allocation56_spill] sm:$0xff] %v4812_v44 }
 0x1d5   : > { %v4838_v62 = vpop.permute.xlu1 %2187 }
 0x1d6   : > { %7728 = vst [vmem:[#allocation69_spill] sm:$0xff] %v4838_v62 }
 0x1d7   : > { %v4816_v19 = vpop.permute.xlu0 %2544 }
 0x1d8   : > { %7717 = vst [vmem:[#allocation58_spill] sm:$0xff] %v4816_v19 }
 0x1d9   : > { %v4842_v48 = vpop.permute.xlu1 %2248 }
 0x1da   : > { %7730 = vst [vmem:[#allocation71_spill] sm:$0xff] %v4842_v48 }
 0x1db   : > { %v4820_v13 = vpop.permute.xlu0 %2576 }
 0x1dc   : > { %7719 = vst [vmem:[#allocation60_spill] sm:$0xff] %v4820_v13 }
 0x1dd   : > { %v4846_v13 = vpop.permute.xlu1 %2270 }
 0x1de   : > { %7732 = vst [vmem:[#allocation73_spill] sm:$0xff] %v4846_v13 }
 0x1df   : > { %v4824_v40 = vpop.permute.xlu0 %2697 }
 0x1e0   : > { %7721 = vst [vmem:[#allocation62_spill] sm:$0xff] %v4824_v40 }
 0x1e1   : > { %v4856_v62 = vpop.permute.xlu1 %2292 }
 0x1e2   : > { %7735 = vst [vmem:[#allocation76_spill] sm:$0xff] %v4856_v62 }
 0x1e3   : > { %v4828_v34 = vpop.permute.xlu0 %2761 }
 0x1e4   : > { %7723 = vst [vmem:[#allocation64_spill] sm:$0xff] %v4828_v34 }
 0x1e5   : > { %v4861_v39 = vpop.permute.xlu1 %2314 }
 0x1e6   : > { %7736 = vst [vmem:[#allocation77_spill] sm:$0xff] %v4861_v39 }
 0x1e7   : > { %v4832_v10 = vpop.permute.xlu0 %2804 }
 0x1e8   : > { %7725 = vst [vmem:[#allocation66_spill] sm:$0xff] %v4832_v10 }
 0x1eb   : > { %v4836_v8 = vpop.permute.xlu0 %2826 }
 0x1ec   : > { %7727 = vst [vmem:[#allocation68_spill] sm:$0xff] %v4836_v8 }
 0x1ef   : > { %v4840_v55 = vpop.permute.xlu0 %2848 }
 0x1f0   : > { %7729 = vst [vmem:[#allocation70_spill] sm:$0xff] %v4840_v55 }
 0x1f3   : > { %v4844_v43 = vpop.permute.xlu0 %2870 }
 0x1f4   : > { %7731 = vst [vmem:[#allocation72_spill] sm:$0xff] %v4844_v43  ;;  %v3899_v43 = vld [vmem:[%s7431_s21 + $0x8] sm:$0xff] }
 0x238   : > { %v1090_v19 = vpop.permute.xlu0 %1089 }
 0x239   : > { %v4849_v44 = vmul.f32 %v1090_v19, %v4479_v58  ;;  %v4852_v3 = vmul.f32 %v1090_v19, %v4481_v59  ;;  %v4868_v58 = vpop.permute.xlu1 %2357 }
 0x23a   : > { %7737 = vst [vmem:[#allocation78_spill] sm:$0xff] %v4868_v58  ;;  %v5034_v58 = vand.u32 127, %v7764_v63 }
 0x23b   : > { %7733 = vst [vmem:[#allocation74_spill] sm:$0xff] %v4849_v44  ;;  %7734 = vst [vmem:[#allocation75_spill] sm:$0xff] %v4852_v3  ;;  %1129 = vrot.lane.b32.xlu0 %v4852_v3, %s4092_s26  ;;  %1094 = vrot.lane.b32.xlu1 %v4849_v44, %s4093_s29  ;;  %v5115_v57 = vmul.f32 %v4643_v12, %v4852_v3 }
 0x23c   : > { %v4943_v41 = vpop.permute.xlu0 %2892  ;;  %vm1100_vm12 = vcmp.lt.s32.totalorder %v5034_v58, 34  ;;  %vm1131_vm15 = vcmp.lt.s32.totalorder %v5034_v58, 33 }
 0x23d   : > { %v4872_v59 = vpop.permute.xlu1 %2399  ;;  %7750 = vst [vmem:[#allocation91_spill] sm:$0xff] %v4943_v41  ;;  %v3901_v41 = vld [vmem:[%s7431_s21 + $0x18] sm:$0xff] }
 0x23e   : > { %7738 = vst [vmem:[#allocation79_spill] sm:$0xff] %v4872_v59 }
 0x23f   : > { %1160 = vrot.lane.b32.xlu0 %v4849_v44, %s7493_s3  ;;  %1096 = vrot.lane.b32.xlu1 %v4852_v3, %s4093_s29  ;;  %s7524_s29 = smov 2  }
 0x240   : > { %v4953_v55 = vpop.permute.xlu0 %2914 }
 0x241   : > { %v4879_v19 = vpop.permute.xlu1 %2457  ;;  %7752 = vst [vmem:[#allocation93_spill] sm:$0xff] %v4953_v55 }
 0x242   : > { %7739 = vst [vmem:[#allocation80_spill] sm:$0xff] %v4879_v19 }
 0x243   : > { %1193 = vrot.lane.b32.xlu0 %v4852_v3, %s4095_s25  ;;  %1127 = vrot.lane.b32.xlu1 %v4849_v44, %s4092_s26  ;;  %s4101_s26 = smov 14  }
 0x245   : > { %v4883_v18 = vpop.permute.xlu1 %2495 }
 0x246   : > { %7740 = vst [vmem:[#allocation81_spill] sm:$0xff] %v4883_v18 }
 0x247   : > { %1224 = vrot.lane.b32.xlu0 %v4849_v44, %s4096_s4  ;;  %1162 = vrot.lane.b32.xlu1 %v4852_v3, %s7493_s3  ;;  %s4110_s3 = smov 110  }
 0x249   : > { %v4891_v19 = vpop.permute.xlu1 %2525 }
 0x24a   : > { %7741 = vst [vmem:[#allocation82_spill] sm:$0xff] %v4891_v19 }
 0x24b   : > { %1259 = vrot.lane.b32.xlu0 %v4852_v3, %s4097_s28  ;;  %1191 = vrot.lane.b32.xlu1 %v4849_v44, %s4095_s25  ;;  %s7509_s25 = smov 1  }
 0x24d   : > { %v4896_v18 = vpop.permute.xlu1 %2563 }
 0x24e   : > { %7742 = vst [vmem:[#allocation83_spill] sm:$0xff] %v4896_v18 }
 0x24f   : > { %1290 = vrot.lane.b32.xlu0 %v4849_v44, %s4098_s27  ;;  %1226 = vrot.lane.b32.xlu1 %v4852_v3, %s4096_s4  ;;  %s7503_s4 = smov 127  }
 0x251   : > { %v4906_v19 = vpop.permute.xlu1 %2667 }
 0x252   : > { %7743 = vst [vmem:[#allocation84_spill] sm:$0xff] %v4906_v19 }
 0x253   : > { %1324 = vrot.lane.b32.xlu0 %v4852_v3, %s7490_s2  ;;  %1257 = vrot.lane.b32.xlu1 %v4849_v44, %s4097_s28  ;;  %s7495_s28 = smov 126  }
 0x255   : > { %v4911_v18 = vpop.permute.xlu1 %2729 }
 0x256   : > { %7744 = vst [vmem:[#allocation85_spill] sm:$0xff] %v4911_v18  ;;  %v7763_v18 = vmov 0  }
 0x257   : > { %1353 = vrot.lane.b32.xlu0 %v4849_v44, %s4100_s24  ;;  %1292 = vrot.lane.b32.xlu1 %v4852_v3, %s4098_s27  ;;  %s4106_s27 = smov 114  }
 0x259   : > { %v4919_v21 = vpop.permute.xlu1 %2793 }
 0x25a   : > { %7745 = vst [vmem:[#allocation86_spill] sm:$0xff] %v4919_v21 }
 0x25b   : > { %1387 = vrot.lane.b32.xlu0 %v4852_v3, %s4101_s26  ;;  %1322 = vrot.lane.b32.xlu1 %v4849_v44, %s7490_s2  ;;  %s4109_s2 = smov 111  }
 0x25d   : > { %v4923_v33 = vpop.permute.xlu1 %2815 }
 0x25e   : > { %7746 = vst [vmem:[#allocation87_spill] sm:$0xff] %v4923_v33  ;;  %v3902_v33 = vld [vmem:[%s7431_s21 + $0x20] sm:$0xff] }
 0x25f   : > { %1417 = vrot.lane.b32.xlu0 %v4849_v44, %s7524_s29  ;;  %1355 = vrot.lane.b32.xlu1 %v4852_v3, %s4100_s24  ;;  %s4107_s24 = smov 113  }
 0x261   : > { %v4930_v24 = vpop.permute.xlu1 %2837 }
 0x262   : > { %7747 = vst [vmem:[#allocation88_spill] sm:$0xff] %v4930_v24 }
 0x263   : > { %1450 = vrot.lane.b32.xlu0 %v4852_v3, %s7509_s25  ;;  %1385 = vrot.lane.b32.xlu1 %v4849_v44, %s4101_s26  ;;  %s7499_s26 = smov 112  }
 0x265   : > { %v4934_v54 = vpop.permute.xlu1 %2859 }
 0x266   : > { %7748 = vst [vmem:[#allocation89_spill] sm:$0xff] %v4934_v54 }
 0x267   : > { %1492 = vrot.lane.b32.xlu0 %v4852_v3, %s7503_s4  ;;  %1419 = vrot.lane.b32.xlu1 %v4852_v3, %s7524_s29 }
 0x269   : > { %v4941_v42 = vpop.permute.xlu1 %2881 }
 0x26a   : > { %7749 = vst [vmem:[#allocation90_spill] sm:$0xff] %v4941_v42  ;;  %v3903_v42 = vld [vmem:[%s7431_s21 + $0x28] sm:$0xff] }
 0x26b   : > { %1521 = vrot.lane.b32.xlu0 %v4849_v44, %s7495_s28  ;;  %1448 = vrot.lane.b32.xlu1 %v4849_v44, %s7509_s25  ;;  %s7761_s25 = sld [smem:[#allocation104_spill]] }
 0x26d   : > { %v4951_v54 = vpop.permute.xlu1 %2903 }
 0x26e   : > { %7751 = vst [vmem:[#allocation92_spill] sm:$0xff] %v4951_v54  ;;  %v3109_v54 = vld [vmem:[%s7431_s21] sm:$0xff] }
 0x26f   : > { %1554 = vrot.lane.b32.xlu0 %v4852_v3, %s4106_s27  ;;  %1490 = vrot.lane.b32.xlu1 %v4849_v44, %s7503_s4  ;;  %s7759_s4 = sld [smem:[#allocation103_spill]] }
 0x271   : > { %v4966_v24 = vpop.permute.xlu1 %2946  ;;  %s7762_s29 = smov %s7761_s25 }
 0x272   : > { %7753 = vst [vmem:[#allocation94_spill] sm:$0xff] %v4966_v24 }
 0x273   : > { %1585 = vrot.lane.b32.xlu0 %v4849_v44, %s4107_s24  ;;  %1523 = vrot.lane.b32.xlu1 %v4852_v3, %s7495_s28  ;;  %s4111_s28 = smov 98  }
 0x275   : > { %v4973_v55 = vpop.permute.xlu1 %3010 }
 0x276   : > { %7755 = vst [vmem:[#allocation96_spill] sm:$0xff] %v4973_v55 }
 0x277   : > { %1619 = vrot.lane.b32.xlu0 %v4852_v3, %s7499_s26  ;;  %1552 = vrot.lane.b32.xlu1 %v4849_v44, %s4106_s27  ;;  %s4112_s27 = smov 97  }
 0x279   : > { %v4980_v10 = vpop.permute.xlu1 %3074 }
 0x27a   : > { %7757 = vst [vmem:[#allocation98_spill] sm:$0xff] %v4980_v10 }
 0x27b   : > { %1648 = vrot.lane.b32.xlu0 %v4849_v44, %s4109_s2  ;;  %1587 = vrot.lane.b32.xlu1 %v4852_v3, %s4107_s24  ;;  %s7511_s24 = smov 96  }
 0x27f   : > { %1682 = vrot.lane.b32.xlu0 %v4852_v3, %s4110_s3  ;;  %1617 = vrot.lane.b32.xlu1 %v4849_v44, %s7499_s26  ;;  %s4114_s26 = smov 95  }
 0x283   : > { %1712 = vrot.lane.b32.xlu0 %v4849_v44, %s4111_s28  ;;  %1650 = vrot.lane.b32.xlu1 %v4852_v3, %s4109_s2  ;;  %s4115_s2 = smov 94  }
 0x287   : > { %1747 = vrot.lane.b32.xlu0 %v4852_v3, %s4112_s27  ;;  %1680 = vrot.lane.b32.xlu1 %v4849_v44, %s4110_s3  ;;  %s7760_s3 = smov %s7759_s4 }
 0x28b   : > { %1777 = vrot.lane.b32.xlu0 %v4849_v44, %s7511_s24  ;;  %1714 = vrot.lane.b32.xlu1 %v4852_v3, %s4111_s28  ;;  %s4117_s28 = smov 125  }
 0x28f   : > { %1810 = vrot.lane.b32.xlu0 %v4852_v3, %s4114_s26  ;;  %1745 = vrot.lane.b32.xlu1 %v4849_v44, %s4112_s27  ;;  %s7946_s27 = smov 1  }
 0x293   : > { %1840 = vrot.lane.b32.xlu0 %v4849_v44, %s4115_s2  ;;  %1779 = vrot.lane.b32.xlu1 %v4852_v3, %s7511_s24  ;;  %s4116_s24 = smov 3  }
 0x297   : > { %3141 = vperm.xlu0 %4009, %v3899_v43   ;;  %1808 = vrot.lane.b32.xlu1 %v4849_v44, %s4114_s26  ;;  %v4968_v43 = vpop.permute.xlu0 %2978  ;;  %s7948_s26 = smov 126  }
 0x298   : > { %7754 = vst [vmem:[#allocation95_spill] sm:$0xff] %v4968_v43 }
 0x29b   : > { %3197 = vperm.xlu0 %4009, %v3901_v41   ;;  %1842 = vrot.lane.b32.xlu1 %v4852_v3, %s4115_s2  ;;  %v3900_v41 = vld [vmem:[%s7431_s21 + $0x10] sm:$0xff]  ;;  %v4975_v8 = vpop.permute.xlu0 %3042  ;;  %s7945_s2 = smov 2  }
 0x29c   : > { %7756 = vst [vmem:[#allocation97_spill] sm:$0xff] %v4975_v8 }
 0x29f   : > { %3247 = vperm.xlu0 %4009, %v3903_v42   ;;  %3112 = vperm.xlu1 %4010, %v3109_v54   ;;  %v4982_v24 = vpop.permute.xlu0 %3084 }
 0x2a0   : > { %7758 = vst [vmem:[#allocation99_spill] sm:$0xff] %v4982_v24  ;;  %v5004_v24 = vld [vmem:[%s7761_s25] sm:$0x3]  ;;  %s4118_s25 = smov 5  }
 0x2a1   : > { %vm1104_vm3 = vcmp.ge.s32.totalorder %v5004_v24, 2  ;;  %vm1264_vm11 = vcmp.ge.s32.totalorder %v5004_v24, 1 }
 0x2a2   : > { %v1167_v22 = vsel %vm1104_vm3, 1, %v7763_v18  ;;  %v1329_v26 = vsel %vm1264_vm11, 1, %v7763_v18 }
 0x2a3   : > { %3166 = vperm.xlu1 %4010, %v3900_v41   ;;  %v1171_v28 = vrot.slane %v1167_v22, %v4411_v36  ;;  %v1175_v15 = vrot.slane %v1167_v22, %v4413_v37  ;;  %v1333_v25 = vrot.slane %v1329_v26, %v4411_v36 }
 0x2a7   : > { %3228 = vperm.xlu1 %4010, %v3902_v33   ;;  %v4999_v33 = vld [vmem:[%s7759_s4] sm:$0x3]  ;;  %s7947_s4 = smov 127  }
 0x2a8   : > { %vm7553_vm2 = vcmp.ge.s32.totalorder %v4999_v33, 2  ;;  %vm7551_vm4 = vcmp.ge.s32.totalorder %v4999_v33, 1  ;;  %vm7557_vm7 = vcmp.lt.s32.totalorder %v4999_v33, 15  ;;  %vm7569_vm8 = vcmp.lt.s32.totalorder %v4999_v33, 14 }
 0x2a9   : > { %vm1105_vm5 = vmand %vm7553_vm2, %vm1104_vm3 }
 0x2aa   : > { %vm1135_vm6 = vmand %vm7551_vm4, %vm1104_vm3  ;;  %v1106_v19 = vsel %vm1105_vm5, 1, %v7763_v18 }
 0x2ab   : > { %v1136_v40 = vsel %vm1135_vm6, 1, %v7763_v18  ;;  %vm1199_vm9 = vmand %vm7557_vm7, %vm1104_vm3  ;;  %v1110_v2 = vrot.slane %v1106_v19, %v4411_v36  ;;  %v1114_v63 = vrot.slane %v1106_v19, %v4413_v37 }
 0x2ac   : > { %vm1232_vm10 = vmand %vm7569_vm8, %vm1104_vm3  ;;  %v1140_v13 = vrot.slane %v1136_v40, %v4411_v36  ;;  %v1144_v30 = vrot.slane %v1136_v40, %v4413_v37  ;;  %v1200_v48 = vsel %vm1199_vm9, 1, %v7763_v18 }
 0x2ad   : > { %v4984_v42 = vpop.permute.xlu0 %1129  ;;  %v4986_v54 = vpop.permute.xlu1 %1094  ;;  %v1233_v16 = vsel %vm1232_vm10, 1, %v7763_v18  ;;  %vm1265_vm13 = vmand %vm7553_vm2, %vm1264_vm11  ;;  %vm5065_vm14 = vcmp.eq.s32.totalorder %v1110_v2, 1  ;;  %v1204_v7 = vrot.slane %v1200_v48, %v4411_v36  ;;  %v1208_v22 = vrot.slane %v1200_v48, %v4413_v37 }
 0x2ae   : > { %vm5072_vm0 = vcmp.eq.s32.totalorder %v1114_v63, 1  ;;  %vm5076_vm1 = vcmp.eq.s32.totalorder %v1140_v13, 1  ;;  %vm5080_vm3 = vcmp.eq.s32.totalorder %v1144_v30, 1  ;;  %vm1297_vm6 = vmand %vm7551_vm4, %vm1264_vm11  ;;  %v1237_v48 = vrot.slane %v1233_v16, %v4411_v36 }
 0x2af   : > { %v1241_v2 = vrot.slane %v1233_v16, %v4413_v37  ;;  %v1266_v13 = vsel %vm1265_vm13, 1, %v7763_v18  ;;  %vm1360_vm9 = vmand %vm7557_vm7, %vm1264_vm11  ;;  %v5098_v30 = vmul.f32 %v4643_v12, %v4849_v44  ;;  %vm5100_vm10 = vcmp.eq.s32.totalorder %v1171_v28, 1 }
 0x2b0   : > { %v7773_v63 = vmov 0  ;;  %vm5104_vm4 = vcmp.eq.s32.totalorder %v1175_v15, 1  ;;  %vm5117_vm13 = vcmp.eq.s32.totalorder %v1204_v7, 1  ;;  %vm5121_vm7 = vcmp.eq.s32.totalorder %v1208_v22, 1  ;;  %vm5139_vm5 = vmand %vm7569_vm8, %vm1264_vm11 }
 0x2b1   : > { %v4988_v43 = vpop.permute.xlu0 %1160  ;;  %v4990_v21 = vpop.permute.xlu1 %1096  ;;  %v7774_v63 = vsel %vm5100_vm10, 4294967295, %v7773_v63  ;;  %v7776_v6 = vsel %vm5104_vm4, 4294967295, %v7775_v6  ;;  %v1298_v15 = vsel %vm1297_vm6, 1, %v7763_v18  ;;  %vm1228_vm2 = vcmp.lt.s32.totalorder %v5034_v58, 30 }
 0x2b2   : > { %v1270_v45 = vrot.slane %v1266_v13, %v4411_v36  ;;  %v1274_v12 = vrot.slane %v1266_v13, %v4413_v37  ;;  %v5133_v7 = vsel %vm1360_vm9, 1, %v7763_v18  ;;  %vm5151_vm6 = vcmp.eq.s32.totalorder %v1237_v48, 1 }
 0x2b3   : > { %vm5155_vm9 = vcmp.eq.s32.totalorder %v1241_v2, 1  ;;  %vm1261_vm11 = vcmp.lt.s32.totalorder %v5034_v58, 18  ;;  %v1302_v52 = vrot.slane %v1298_v15, %v4411_v36  ;;  %v1306_v38 = vrot.slane %v1298_v15, %v4413_v37 }
 0x2b4   : > { %v1101_v48 = vsel %vm1100_vm12, %v4986_v54, %v4990_v21  ;;  %v1102_v2 = vsel %vm1100_vm12, %v4990_v21, %v4986_v54  ;;  %v1365_v15 = vrot.slane %v5133_v7, %v4411_v36  ;;  %vm7787_vm8 = vcmp.lt.s32.totalorder %v5034_v58, 32 }
 0x2b5   : > { %v4992_v55 = vpop.permute.xlu0 %1193  ;;  %v4994_v41 = vpop.permute.xlu1 %1127  ;;  %vm7788_vm12 = vmmov %vm7787_vm8  ;;  %v7800_v28 = vmov 0  ;;  %v7829_v22 = vmov 0 }
 0x2b6   : > { %v1132_v3 = vsel %vm1131_vm15, %v4994_v41, %v4984_v42  ;;  %v1133_v13 = vsel %vm1131_vm15, %v4984_v42, %v4994_v41  ;;  %v1337_v42 = vrot.slane %v1329_v26, %v4413_v37  ;;  %v1393_v26 = vsel %vm5139_vm5, 1, %v7763_v18 }
 0x2b7   : > { %v1147_v23 = vsel %vm5076_vm1, %v1133_v13, 0.0  ;;  %v1148_v20 = vsel %vm5080_vm3, %v1132_v3, 0.0  ;;  %vm5194_vm15 = vcmp.eq.s32.totalorder %v1270_v45, 1  ;;  %vm5198_vm5 = vcmp.eq.s32.totalorder %v1274_v12, 1 }
 0x2b8   : > { %vm7793_vm1 = vcmp.lt.s32.totalorder %v5034_v58, 31  ;;  %vm7795_vm3 = vcmp.ge.s32.totalorder %v4999_v33, 2  ;;  %v1118_v12 = vsel %vm5072_vm0, %v1101_v48, 0.0  ;;  %v1397_v40 = vrot.slane %v1393_v26, %v4411_v36 }
 0x2b9   : > { %v5008_v10 = vpop.permute.xlu0 %1224  ;;  %v5010_v8 = vpop.permute.xlu1 %1162  ;;  %v1424_v45 = vsel %vm7795_vm3, 1, %v7763_v18  ;;  %v1156_v62 = vmul.f32 %v4570_v29, %v1147_v23  ;;  %vm5261_vm0 = vcmp.eq.s32.totalorder %v1337_v42, 1 }
 0x2ba   : > { %v1165_v21 = vsel %vm7787_vm8, %v4988_v43, %v5010_v8  ;;  %v1166_v54 = vsel %vm7788_vm12, %v5010_v8, %v4988_v43  ;;  %vm7794_vm8 = vmmov %vm7793_vm1  ;;  %v1369_v8 = vrot.slane %v5133_v7, %v4413_v37  ;;  %v1117_v43 = vsel %vm5065_vm14, %v1102_v2, 0.0 }
 0x2bb   : > { %vm5219_vm12 = vcmp.eq.s32.totalorder %v1302_v52, 1  ;;  %v1401_v7 = vrot.slane %v1393_v26, %v4413_v37  ;;  %v1157_v52 = vmul.f32 %v4570_v29, %v1148_v20  ;;  %v1179_v48 = vsel %vm5104_vm4, %v1165_v21, 0.0 }
 0x2bc   : > { %v1428_v26 = vrot.slane %v1424_v45, %v4411_v36  ;;  %v1432_v23 = vrot.slane %v1424_v45, %v4413_v37  ;;  %v1125_v29 = vmul.f32 %v4565_v27, %v1117_v43  ;;  %v1126_v20 = vmul.f32 %v4565_v27, %v1118_v12 }
 0x2bd   : > { %v5021_v34 = vpop.permute.xlu0 %1259  ;;  %v5024_v59 = vpop.permute.xlu1 %1191  ;;  %vm5276_vm14 = vcmp.eq.s32.totalorder %v1365_v15, 1 }
 0x2be   : > { %v1196_v4 = vsel %vm7793_vm1, %v5024_v59, %v4992_v55  ;;  %v1197_v3 = vsel %vm7794_vm8, %v4992_v55, %v5024_v59  ;;  %vm5223_vm1 = vcmp.eq.s32.totalorder %v1306_v38, 1  ;;  %v1178_v38 = vsel %vm5100_vm10, %v1166_v54, 0.0 }
 0x2bf   : > { %v1211_v2 = vsel %vm5117_vm13, %v1197_v3, 0.0  ;;  %v1212_v14 = vsel %vm5121_vm7, %v1196_v4, 0.0  ;;  %vm5257_vm7 = vcmp.eq.s32.totalorder %v1333_v25, 1  ;;  %v7802_v54 = vmov 0 }
 0x2c0   : > { %v7801_v28 = vsel %vm5257_vm7, 4294967295, %v7800_v28  ;;  %v7803_v54 = vsel %vm5261_vm0, 4294967295, %v7802_v54  ;;  %v1187_v27 = vmul.f32 %v4578_v32, %v1178_v38  ;;  %v1188_v4 = vmul.f32 %v4578_v32, %v1179_v48 }
 0x2c1   : > { %v5036_v46 = vpop.permute.xlu0 %1290  ;;  %v5038_v39 = vpop.permute.xlu1 %1226  ;;  %v1220_v42 = vmul.f32 %v4583_v35, %v1211_v2  ;;  %v1221_v43 = vmul.f32 %v4583_v35, %v1212_v14  ;;  %vm5280_vm8 = vcmp.eq.s32.totalorder %v1369_v8, 1  ;;  %vm5297_vm13 = vcmp.eq.s32.totalorder %v1397_v40, 1 }
 0x2c2   : > { %v1229_v21 = vsel %vm1228_vm2, %v5008_v10, %v5038_v39  ;;  %v1230_v44 = vsel %vm1228_vm2, %v5038_v39, %v5008_v10  ;;  %vm7804_vm2 = vcmp.ge.s32.totalorder %v4999_v33, 1  ;;  %v1158_v39 = vadd.f32 %v1156_v62, %v1125_v29 }
 0x2c3   : > { %v1455_v25 = vsel %vm7804_vm2, 1, %v7763_v18  ;;  %v1159_v10 = vadd.f32 %v1157_v52, %v1126_v20  ;;  %v1244_v38 = vsel %vm5151_vm6, %v1230_v44, 0.0  ;;  %v1245_v48 = vsel %vm5155_vm9, %v1229_v21, 0.0 }
 0x2c4   : > { %vm5301_vm6 = vcmp.eq.s32.totalorder %v1401_v7, 1  ;;  %v1459_v56 = vrot.slane %v1455_v25, %v4411_v36  ;;  %v1463_v15 = vrot.slane %v1455_v25, %v4413_v37  ;;  %vm7813_vm9 = vcmp.lt.s32.totalorder %v4999_v33, 15 }
 0x2c5   : > { %v5057_v51 = vpop.permute.xlu0 %1324  ;;  %v5063_v19 = vpop.permute.xlu1 %1257  ;;  %v5310_v8 = vsel %vm7813_vm9, 1, %v7763_v18  ;;  %v1190_v40 = vadd.f32 %v1188_v4, %v1159_v10  ;;  %vm7815_vm2 = vcmp.lt.s32.totalorder %v5034_v58, 17  ;;  %v1253_v20 = vmul.f32 %v4591_v50, %v1244_v38 }
 0x2c6   : > { %v1262_v62 = vsel %vm1261_vm11, %v5063_v19, %v5021_v34  ;;  %v1263_v35 = vsel %vm1261_vm11, %v5021_v34, %v5063_v19  ;;  %vm7814_vm11 = vcmp.lt.s32.totalorder %v4999_v33, 14  ;;  %v1189_v19 = vadd.f32 %v1187_v27, %v1158_v39  ;;  %vm7816_vm3 = vmmov %vm7815_vm2 }
 0x2c7   : > { %v5315_v34 = vsel %vm7814_vm11, 1, %v7763_v18  ;;  %v1254_v21 = vmul.f32 %v4591_v50, %v1245_v48  ;;  %v1277_v44 = vsel %vm5194_vm15, %v1263_v35, 0.0  ;;  %v1278_v27 = vsel %vm5198_vm5, %v1262_v62, 0.0 }
 0x2c8   : > { %vm7821_vm11 = vcmp.lt.s32.totalorder %v5004_v24, 15  ;;  %vm7822_vm9 = vcmp.ge.s32.totalorder %v4999_v33, 2  ;;  %v1222_v17 = vadd.f32 %v1220_v42, %v1189_v19  ;;  %v1501_v11 = vrot.slane %v5310_v8, %v4411_v36 }
 0x2c9   : > { %v5109_v16 = vpop.permute.xlu0 %1353  ;;  %v5111_v1 = vpop.permute.xlu1 %1292  ;;  %vm5346_vm4 = vmand %vm7822_vm9, %vm7821_vm11  ;;  %vm7825_vm15 = vcmp.lt.s32.totalorder %v5034_v58, 16  ;;  %vm5366_vm9 = vcmp.eq.s32.totalorder %v1459_v56, 1  ;;  %v7827_v42 = vmov 0  ;;  %vm5370_vm11 = vcmp.eq.s32.totalorder %v1463_v15, 1 }
 0x2ca   : > { %v1295_v7 = vsel %vm7815_vm2, %v5036_v46, %v5111_v1  ;;  %v1296_v52 = vsel %vm7816_vm3, %v5111_v1, %v5036_v46  ;;  %vm5334_vm2 = vcmp.eq.s32.totalorder %v1428_v26, 1  ;;  %vm5338_vm3 = vcmp.eq.s32.totalorder %v1432_v23, 1  ;;  %vm7826_vm5 = vmmov %vm7825_vm15 }
 0x2cb   : > { %v7819_v46 = vmov 0  ;;  %v1223_v1 = vadd.f32 %v1221_v43, %v1190_v40  ;;  %v1505_v26 = vrot.slane %v5310_v8, %v4413_v37  ;;  %v1309_v23 = vsel %vm5219_vm12, %v1296_v52, 0.0 }
 0x2cc   : > { %v7820_v46 = vsel %vm5338_vm3, 4294967295, %v7819_v46  ;;  %v1310_v25 = vsel %vm5223_vm1, %v1295_v7, 0.0  ;;  %v7828_v42 = vsel %vm5366_vm9, 4294967295, %v7827_v42  ;;  %v7830_v22 = vsel %vm5370_vm11, 4294967295, %v7829_v22 }
 0x2cd   : > { %v5162_v31 = vpop.permute.xlu0 %1387  ;;  %v5166_v41 = vpop.permute.xlu1 %1322  ;;  %v1286_v13 = vmul.f32 %v4596_v53, %v1277_v44  ;;  %v1287_v43 = vmul.f32 %v4596_v53, %v1278_v27  ;;  %v1532_v62 = vrot.slane %v5315_v34, %v4411_v36  ;;  %v1256_v35 = vadd.f32 %v1254_v21, %v1223_v1 }
 0x2ce   : > { %v1327_v39 = vsel %vm7825_vm15, %v5166_v41, %v5057_v51  ;;  %v1328_v10 = vsel %vm7826_vm5, %v5057_v51, %v5166_v41  ;;  %v5383_v51 = vsel %vm5346_vm4, 1, %v7763_v18  ;;  %v1255_v41 = vadd.f32 %v1253_v20, %v1222_v17 }
 0x2cf   : > { %vm7831_vm12 = vcmp.lt.s32.totalorder %v5034_v58, 15  ;;  %v1318_v15 = vmul.f32 %v4604_v60, %v1309_v23  ;;  %v1319_v8 = vmul.f32 %v4604_v60, %v1310_v25  ;;  %v1340_v19 = vsel %vm5257_vm7, %v1328_v10, 0.0 }
 0x2d0   : > { %vm7832_vm1 = vmmov %vm7831_vm12  ;;  %v1341_v40 = vsel %vm5261_vm0, %v1327_v39, 0.0  ;;  %vm7833_vm4 = vcmp.lt.s32.totalorder %v5034_v58, 14  ;;  %v1565_v60 = vrot.slane %v5383_v51, %v4411_v36  ;;  %v1289_v20 = vadd.f32 %v1287_v43, %v1256_v35 }
 0x2d1   : > { %v5228_v55 = vpop.permute.xlu0 %1417  ;;  %v5230_v59 = vpop.permute.xlu1 %1355  ;;  %vm7834_vm15 = vmmov %vm7833_vm4  ;;  %v1349_v17 = vmul.f32 %v4609_v47, %v1340_v19  ;;  %vm7835_vm5 = vcmp.lt.s32.totalorder %v5034_v58, 2  ;;  %vm7860_vm7 = vcmp.ge.s32.totalorder %v4999_v33, 2 }
 0x2d2   : > { %v1358_v56 = vsel %vm7831_vm12, %v5109_v16, %v5230_v59  ;;  %v1359_v53 = vsel %vm7832_vm1, %v5230_v59, %v5109_v16  ;;  %v1536_v16 = vrot.slane %v5315_v34, %v4413_v37  ;;  %v1288_v59 = vadd.f32 %v1286_v13, %v1255_v41  ;;  %vm7836_vm12 = vmmov %vm7835_vm5 }
 0x2d3   : > { %v1372_v21 = vsel %vm5276_vm14, %v1359_v53, 0.0  ;;  %v1373_v44 = vsel %vm5280_vm8, %v1358_v56, 0.0  ;;  %vm7837_vm1 = vcmp.lt.s32.totalorder %v5004_v24, 15  ;;  %vm7838_vm8 = vcmp.ge.s32.totalorder %v4999_v33, 1 }
 0x2d4   : > { %v1320_v32 = vadd.f32 %v1318_v15, %v1288_v59  ;;  %vm5504_vm0 = vcmp.eq.s32.totalorder %v1565_v60, 1 }
 0x2d5   : > { %v5267_v3 = vpop.permute.xlu0 %1450  ;;  %v1386_v45 = vpop.permute.xlu1 %1385 }
 0x2d6   : > { %v1390_v7 = vsel %vm7833_vm4, %v1386_v45, %v5162_v31  ;;  %v1391_v52 = vsel %vm7834_vm15, %v5162_v31, %v1386_v45  ;;  %v1350_v31 = vmul.f32 %v4609_v47, %v1341_v40  ;;  %vm5428_vm4 = vmand %vm7838_vm8, %vm7837_vm1  ;;  %v1321_v47 = vadd.f32 %v1319_v8, %v1289_v20 }
 0x2d7   : > { %v1404_v1 = vsel %vm5297_vm13, %v1391_v52, 0.0  ;;  %v1405_v23 = vsel %vm5301_vm6, %v1390_v7, 0.0  ;;  %vm7841_vm15 = vcmp.lt.s32.totalorder %v5034_v58, 1  ;;  %vm5448_vm13 = vcmp.eq.s32.totalorder %v1501_v11, 1 }
 0x2d8   : > { %v7844_v61 = vsel %vm5448_vm13, 4294967295, %v7843_v61  ;;  %vm5452_vm6 = vcmp.eq.s32.totalorder %v1505_v26, 1  ;;  %v1351_v11 = vadd.f32 %v1349_v17, %v1320_v32  ;;  %v1352_v41 = vadd.f32 %v1350_v31, %v1321_v47 }
 0x2d9   : > { %v5325_v2 = vpop.permute.xlu0 %1492  ;;  %v1420_v29 = vpop.permute.xlu1 %1419  ;;  %v1413_v35 = vmul.f32 %v4622_v0, %v1404_v1  ;;  %v1414_v26 = vmul.f32 %v4622_v0, %v1405_v23  ;;  %vm7847_vm8 = vcmp.lt.s32.totalorder %v4999_v33, 15  ;;  %v7895_v1 = vld [vmem:[#allocation27_spill] sm:$0xff] }
 0x2da   : > { %v1422_v45 = vsel %vm7835_vm5, %v5228_v55, %v1420_v29  ;;  %v1423_v34 = vsel %vm7836_vm12, %v1420_v29, %v5228_v55  ;;  %v1381_v55 = vmul.f32 %v4617_v49, %v1372_v21  ;;  %v1382_v29 = vmul.f32 %v4617_v49, %v1373_v44  ;;  %vm7842_vm5 = vmmov %vm7841_vm15 }
 0x2db   : > { %v1435_v10 = vsel %vm5334_vm2, %v1423_v34, 0.0  ;;  %v1436_v14 = vsel %vm5338_vm3, %v1422_v45, 0.0  ;;  %v7845_v49 = vmov 0  ;;  %vm5480_vm12 = vcmp.eq.s32.totalorder %v1532_v62, 1 }
 0x2dc   : > { %v7846_v49 = vsel %vm5452_vm6, 4294967295, %v7845_v49  ;;  %v1383_v15 = vadd.f32 %v1381_v55, %v1351_v11  ;;  %v1384_v8 = vadd.f32 %v1382_v29, %v1352_v41  ;;  %v1444_v0 = vmul.f32 %v4630_v5, %v1435_v10 }
 0x2dd   : > { %v5376_v38 = vpop.permute.xlu0 %1521  ;;  %v1449_v48 = vpop.permute.xlu1 %1448  ;;  %v1445_v19 = vmul.f32 %v4630_v5, %v1436_v14  ;;  %v7871_v11 = vmov 0  ;;  %v7874_v41 = vmov 0 }
 0x2de   : > { %v1453_v25 = vsel %vm7841_vm15, %v1449_v48, %v5267_v3  ;;  %v1454_v39 = vsel %vm7842_vm5, %v5267_v3, %v1449_v48  ;;  %v1569_v3 = vrot.slane %v5383_v51, %v4413_v37  ;;  %v1593_v48 = vsel %vm5428_vm4, 1, %v7763_v18  ;;  %vm1655_vm15 = vmand %vm7847_vm8, %vm7837_vm1 }
 0x2df   : > { %v1466_v56 = vsel %vm5366_vm9, %v1454_v39, 0.0  ;;  %v1467_v51 = vsel %vm5370_vm11, %v1453_v25, 0.0  ;;  %vm7848_vm4 = vmmov %vm7837_vm1  ;;  %vm5484_vm1 = vcmp.eq.s32.totalorder %v1536_v16, 1  ;;  %v1597_v20 = vrot.slane %v1593_v48, %v4411_v36 }
 0x2e0   : > { %v1624_v53 = vsel %vm7848_vm4, 1, %v7763_v18  ;;  %v1601_v21 = vrot.slane %v1593_v48, %v4413_v37  ;;  %v1656_v44 = vsel %vm1655_vm15, 1, %v7763_v18  ;;  %v1415_v17 = vadd.f32 %v1413_v35, %v1383_v15  ;;  %vm7853_vm8 = vmmov %vm7848_vm4 }
 0x2e1   : > { %v5413_v27 = vpop.permute.xlu0 %1554  ;;  %v1491_v50 = vpop.permute.xlu1 %1490  ;;  %v1416_v31 = vadd.f32 %v1414_v26, %v1384_v8  ;;  %v1475_v5 = vmul.f32 %v4635_v9, %v1466_v56  ;;  %v1476_v62 = vmul.f32 %v4635_v9, %v1467_v51  ;;  %vm7854_vm4 = vcmp.lt.s32.totalorder %v4999_v33, 14 }
 0x2e2   : > { %vm5499_vm14 = vmand %vm7854_vm4, %vm7853_vm8  ;;  %v1628_v34 = vrot.slane %v1624_v53, %v4411_v36  ;;  %v1632_v12 = vrot.slane %v1624_v53, %v4413_v37  ;;  %vm7859_vm15 = vcmp.lt.s32.totalorder %v5004_v24, 14  ;;  %v1446_v32 = vadd.f32 %v1444_v0, %v1415_v17 }
 0x2e3   : > { %vm5514_vm10 = vmand %vm7860_vm7, %vm7859_vm15  ;;  %v1447_v47 = vadd.f32 %v1445_v19, %v1416_v31  ;;  %vm5518_vm8 = vcmp.eq.s32.totalorder %v1569_v3, 1  ;;  %vm7865_vm5 = vcmp.lt.s32.totalorder %v5034_v58, 127  ;;  %vm5531_vm7 = vcmp.eq.s32.totalorder %v1597_v20, 1 }
 0x2e4   : > { %v1495_v60 = vsel %vm7865_vm5, %v1491_v50, %v5325_v2  ;;  %vm7866_vm11 = vmmov %vm7865_vm5  ;;  %vm5535_vm15 = vcmp.eq.s32.totalorder %v1601_v21, 1  ;;  %v1660_v10 = vrot.slane %v1656_v44, %v4411_v36  ;;  %v1664_v14 = vrot.slane %v1656_v44, %v4413_v37 }
 0x2e5   : > { %v5456_v13 = vpop.permute.xlu0 %1585  ;;  %v1524_v43 = vpop.permute.xlu1 %1523  ;;  %v1496_v23 = vsel %vm7866_vm11, %v5325_v2, %v1491_v50  ;;  %v1477_v3 = vadd.f32 %v1475_v5, %v1446_v32  ;;  %v1478_v48 = vadd.f32 %v1476_v62, %v1447_v47  ;;  %v1688_v2 = vsel %vm5499_vm14, 1, %v7763_v18  ;;  %v7887_v5 = vld [vmem:[#allocation26_spill] sm:$0xff] }
 0x2e6   : > { %v1721_v50 = vsel %vm5514_vm10, 1, %v7763_v18  ;;  %vm5548_vm5 = vcmp.eq.s32.totalorder %v1628_v34, 1  ;;  %vm5552_vm4 = vcmp.eq.s32.totalorder %v1632_v12, 1  ;;  %v1508_v35 = vsel %vm5448_vm13, %v1495_v60, 0.0 }
 0x2e7   : > { %v7872_v11 = vsel %vm5548_vm5, 4294967295, %v7871_v11  ;;  %v7875_v41 = vsel %vm5552_vm4, 4294967295, %v7874_v41  ;;  %v1509_v26 = vsel %vm5452_vm6, %v1496_v23, 0.0  ;;  %vm7877_vm10 = vcmp.lt.s32.totalorder %v5034_v58, 126 }
 0x2e8   : > { %7873 = vst [vmem:[#allocation100_spill] sm:$0xff] %v7872_v11  ;;  %7876 = vst [vmem:[#allocation101_spill] sm:$0xff] %v7875_v41  ;;  %v1526_v56 = vsel %vm7877_vm10, %v5376_v38, %v1524_v43  ;;  %v1692_v8 = vrot.slane %v1688_v2, %v4411_v36  ;;  %v1696_v0 = vrot.slane %v1688_v2, %v4413_v37  ;;  %vm7879_vm9 = vcmp.lt.s32.totalorder %v5004_v24, 14 }
 0x2e9   : > { %v5488_v52 = vpop.permute.xlu0 %1619  ;;  %v1553_v59 = vpop.permute.xlu1 %1552  ;;  %vm7878_vm14 = vmmov %vm7877_vm10  ;;  %v1725_v19 = vrot.slane %v1721_v50, %v4411_v36  ;;  %v1729_v20 = vrot.slane %v1721_v50, %v4413_v37  ;;  %vm7880_vm11 = vcmp.ge.s32.totalorder %v4999_v33, 1  ;;  %v1488_v21 = vadd.f32 %v5098_v30, %v1477_v3 }
 0x2ea   : > { %v1527_v51 = vsel %vm7878_vm14, %v1524_v43, %v5376_v38  ;;  %vm1752_vm10 = vmand %vm7880_vm11, %vm7879_vm9  ;;  %v1489_v38 = vadd.f32 %v5115_v57, %v1478_v48  ;;  %vm7881_vm14 = vcmp.lt.s32.totalorder %v5034_v58, 114  ;;  %vm5585_vm13 = vcmp.eq.s32.totalorder %v1660_v10, 1 }
 0x2eb   : > { %v1557_v43 = vsel %vm7881_vm14, %v1553_v59, %v5413_v27  ;;  %vm7882_vm6 = vmmov %vm7881_vm14  ;;  %vm5589_vm3 = vcmp.eq.s32.totalorder %v1664_v14, 1  ;;  %v1517_v30 = vmul.f32 %v7887_v5, %v1508_v35  ;;  %v1518_v57 = vmul.f32 %v7887_v5, %v1509_v26  ;;  %v7902_v26 = vld [vmem:[#allocation28_spill] sm:$0xff] }
 0x2ec   : > { %v1558_v44 = vsel %vm7882_vm6, %v5413_v27, %v1553_v59  ;;  %v1539_v62 = vsel %vm5480_vm12, %v1526_v56, 0.0  ;;  %v1540_v16 = vsel %vm5484_vm1, %v1527_v51, 0.0  ;;  %vm1684_vm9 = vcmp.lt.s32.totalorder %v5034_v58, 110 }
 0x2ed   : > { %v5529_v55 = vpop.permute.xlu0 %1648  ;;  %v1588_v39 = vpop.permute.xlu1 %1587  ;;  %v1753_v27 = vsel %vm1752_vm10, 1, %v7763_v18  ;;  %vm7888_vm11 = vcmp.lt.s32.totalorder %v5004_v24, 14  ;;  %v1572_v34 = vsel %vm5504_vm0, %v1557_v43, 0.0  ;;  %v1573_v12 = vsel %vm5518_vm8, %v1558_v44, 0.0  ;;  %v7905_v44 = vld [vmem:[#allocation29_spill] sm:$0xff] }
 0x2ee   : > { %v5605_v59 = vsel %vm7888_vm11, 1, %v7763_v18  ;;  %vm7889_vm14 = vcmp.lt.s32.totalorder %v5034_v58, 113  ;;  %vm5617_vm10 = vcmp.eq.s32.totalorder %v1692_v8, 1  ;;  %vm5621_vm11 = vcmp.eq.s32.totalorder %v1696_v0, 1 }
 0x2ef   : > { %v1590_v9 = vsel %vm7889_vm14, %v5456_v13, %v1588_v39  ;;  %vm7890_vm6 = vmmov %vm7889_vm14  ;;  %v1548_v10 = vmul.f32 %v7895_v1, %v1539_v62  ;;  %v1549_v14 = vmul.f32 %v7895_v1, %v1540_v16  ;;  %vm7896_vm0 = vcmp.lt.s32.totalorder %v5034_v58, 112 }
 0x2f0   : > { %v1591_v32 = vsel %vm7890_vm6, %v1588_v39, %v5456_v13  ;;  %vm7897_vm8 = vmmov %vm7896_vm0  ;;  %v1519_v39 = vadd.f32 %v1517_v30, %v1488_v21  ;;  %v1520_v48 = vadd.f32 %v1518_v57, %v1489_v38  ;;  %vm5633_vm6 = vcmp.eq.s32.totalorder %v1725_v19, 1 }
 0x2f1   : > { %v5567_v53 = vpop.permute.xlu0 %1682  ;;  %v1618_v15 = vpop.permute.xlu1 %1617  ;;  %vm5637_vm14 = vcmp.eq.s32.totalorder %v1729_v20, 1  ;;  %v1757_v35 = vrot.slane %v1753_v27, %v4411_v36  ;;  %v1581_v56 = vmul.f32 %v7902_v26, %v1572_v34  ;;  %v1582_v51 = vmul.f32 %v7902_v26, %v1573_v12  ;;  %v7906_v34 = vld [vmem:[#allocation30_spill] sm:$0xff] }
 0x2f2   : > { %v1622_v3 = vsel %vm7896_vm0, %v1618_v15, %v5488_v52  ;;  %v1623_v13 = vsel %vm7897_vm8, %v5488_v52, %v1618_v15  ;;  %v1604_v8 = vsel %vm5531_vm7, %v1590_v9, 0.0  ;;  %v1605_v52 = vsel %vm5535_vm15, %v1591_v32, 0.0 }
 0x2f3   : > { %v1635_v15 = vsel %vm5548_vm5, %v1622_v3, 0.0  ;;  %v1636_v0 = vsel %vm5552_vm4, %v1623_v13, 0.0  ;;  %v1761_v20 = vrot.slane %v1753_v27, %v4413_v37  ;;  %v1788_v21 = vrot.slane %v5605_v59, %v4411_v36 }
 0x2f4   : > { %v1550_v38 = vadd.f32 %v1548_v10, %v1519_v39  ;;  %v1551_v43 = vadd.f32 %v1549_v14, %v1520_v48  ;;  %vm7903_vm7 = vcmp.lt.s32.totalorder %v5034_v58, 111  ;;  %v1613_v5 = vmul.f32 %v7905_v44, %v1604_v8  ;;  %v7918_v39 = vld [vmem:[#allocation31_spill] sm:$0xff]  ;;  %v7930_v10 = vld [vmem:[#allocation34_spill] sm:$0xff] }
 0x2f5   : > { %v1713_v47 = vpop.permute.xlu0 %1712  ;;  %v1651_v60 = vpop.permute.xlu1 %1650  ;;  %vm7904_vm15 = vmmov %vm7903_vm7  ;;  %v1614_v30 = vmul.f32 %v7905_v44, %v1605_v52  ;;  %v1792_v62 = vrot.slane %v5605_v59, %v4413_v37  ;;  %v1644_v12 = vmul.f32 %v7906_v34, %v1635_v15  ;;  %v1645_v9 = vmul.f32 %v7906_v34, %v1636_v0  ;;  %v7927_v44 = vld [vmem:[#allocation33_spill] sm:$0xff] }
 0x2f6   : > { %v1653_v29 = vsel %vm7903_vm7, %v5529_v55, %v1651_v60  ;;  %v1654_v25 = vsel %vm7904_vm15, %v1651_v60, %v5529_v55  ;;  %v1583_v16 = vadd.f32 %v1581_v56, %v1550_v38  ;;  %v1584_v27 = vadd.f32 %v1582_v51, %v1551_v43 }
 0x2f7   : > { %v1667_v32 = vsel %vm5585_vm13, %v1653_v29, 0.0  ;;  %v1668_v55 = vsel %vm5589_vm3, %v1654_v25, 0.0  ;;  %vm5678_vm8 = vcmp.eq.s32.totalorder %v1757_v35, 1  ;;  %vm5682_vm7 = vcmp.eq.s32.totalorder %v1761_v20, 1  ;;  %v7926_v20 = vld [vmem:[#allocation32_spill] sm:$0xff] }
 0x2f8   : > { %vm5687_vm3 = vcmp.eq.s32.totalorder %v1788_v21, 1  ;;  %v7911_v17 = vmov 0  ;;  %vm7914_vm15 = vcmp.lt.s32.totalorder %v5004_v24, 14  ;;  %vm7915_vm0 = vcmp.lt.s32.totalorder %v4999_v33, 15 }
 0x2f9   : > { %v1681_v19 = vpop.permute.xlu1 %1680  ;;  %v1748_v57 = vpop.permute.xlu0 %1747  ;;  %v7912_v17 = vsel %vm5687_vm3, 4294967295, %v7911_v17  ;;  %v1616_v31 = vadd.f32 %v1614_v30, %v1584_v27  ;;  %vm7916_vm4 = vcmp.lt.s32.totalorder %v5034_v58, 98  ;;  %v1676_v48 = vmul.f32 %v7918_v39, %v1667_v32 }
 0x2fa   : > { %v1685_v60 = vsel %vm1684_vm9, %v1681_v19, %v5567_v53  ;;  %v1686_v59 = vsel %vm1684_vm9, %v5567_v53, %v1681_v19  ;;  %7913 = vst [vmem:[#allocation26_spill] sm:$0xff] %v7912_v17  ;;  %vm1815_vm9 = vmand %vm7915_vm0, %vm7914_vm15  ;;  %v1615_v53 = vadd.f32 %v1613_v5, %v1583_v16  ;;  %v1677_v35 = vmul.f32 %v7918_v39, %v1668_v55 }
 0x2fb   : > { %vm7917_vm5 = vmmov %vm7916_vm4  ;;  %v1699_v26 = vsel %vm5617_vm10, %v1685_v60, 0.0  ;;  %v1700_v56 = vsel %vm5621_vm11, %v1686_v59, 0.0  ;;  %v1647_v8 = vadd.f32 %v1645_v9, %v1616_v31  ;;  %v1816_v0 = vsel %vm1815_vm9, 1, %v7763_v18 }
 0x2fc   : > { %vm7919_vm0 = vmmov %vm7914_vm15  ;;  %vm7920_vm15 = vcmp.lt.s32.totalorder %v4999_v33, 14  ;;  %v1646_v51 = vadd.f32 %v1644_v12, %v1615_v53  ;;  %v1708_v21 = vmul.f32 %v7926_v20, %v1699_v26  ;;  %v1709_v38 = vmul.f32 %v7926_v20, %v1700_v56 }
 0x2fd   : > { %v1715_v1 = vpop.permute.xlu1 %1714  ;;  %vm1847_vm13 = vmand %vm7920_vm15, %vm7919_vm0  ;;  %v1778_v52 = vpop.permute.xlu0 %1777  ;;  %vm1812_vm11 = vcmp.lt.s32.totalorder %v5034_v58, 95  ;;  %v1679_v2 = vadd.f32 %v1677_v35, %v1647_v8  ;;  %v1820_v25 = vrot.slane %v1816_v0, %v4411_v36  ;;  %v1824_v50 = vrot.slane %v1816_v0, %v4413_v37  ;;  %v7935_v35 = vld [vmem:[#allocation35_spill] sm:$0xff] }
 0x2fe   : > { %v1717_v3 = vsel %vm7916_vm4, %v1713_v47, %v1715_v1  ;;  %v1718_v13 = vsel %vm7917_vm5, %v1715_v1, %v1713_v47  ;;  %vm5709_vm4 = vcmp.eq.s32.totalorder %v1792_v62, 1  ;;  %v7921_v47 = vmov 0 }
 0x2ff   : > { %v7922_v47 = vsel %vm5709_vm4, 4294967295, %v7921_v47  ;;  %v1732_v23 = vsel %vm5633_vm6, %v1717_v3, 0.0  ;;  %v1733_v45 = vsel %vm5637_vm14, %v1718_v13, 0.0  ;;  %vm7924_vm5 = vcmp.lt.s32.totalorder %v5034_v58, 97 }
 0x300   : > { %7923 = vst [vmem:[#allocation27_spill] sm:$0xff] %v7922_v47  ;;  %vm7925_vm10 = vmmov %vm7924_vm5  ;;  %v1848_v43 = vsel %vm1847_vm13, 1, %v7763_v18  ;;  %v1678_v29 = vadd.f32 %v1676_v48, %v1646_v51  ;;  %v1741_v5 = vmul.f32 %v7927_v44, %v1732_v23  ;;  %v1742_v30 = vmul.f32 %v7927_v44, %v1733_v45  ;;  %v8023_v47 = vld [vmem:[#allocation50_spill] sm:$0xff] }
 0x301   : > { %v1746_v15 = vpop.permute.xlu1 %1745  ;;  %vm7928_vm6 = vcmp.lt.s32.totalorder %v5034_v58, 96  ;;  %v1852_v12 = vrot.slane %v1848_v43, %v4411_v36  ;;  %v1856_v9 = vrot.slane %v1848_v43, %v4413_v37  ;;  %v1711_v55 = vadd.f32 %v1709_v38, %v1679_v2  ;;  %v1811_v60 = vpop.permute.xlu0 %1810 }
 0x302   : > { %v1750_v24 = vsel %vm7924_vm5, %v1746_v15, %v1748_v57  ;;  %v1751_v19 = vsel %vm7925_vm10, %v1748_v57, %v1746_v15  ;;  %vm7929_vm14 = vmmov %vm7928_vm6  ;;  %v1710_v32 = vadd.f32 %v1708_v21, %v1678_v29  ;;  %vm1844_vm13 = vcmp.lt.s32.totalorder %v5034_v58, 94 }
 0x303   : > { %v1764_v57 = vsel %vm5678_vm8, %v1750_v24, 0.0  ;;  %v1765_v62 = vsel %vm5682_vm7, %v1751_v19, 0.0  ;;  %vm5746_vm8 = vcmp.eq.s32.totalorder %v1820_v25, 1  ;;  %vm5750_vm7 = vcmp.eq.s32.totalorder %v1824_v50, 1  ;;  %v7940_v19 = vld [vmem:[#allocation36_spill] sm:$0xff] }
 0x304   : > { %v1773_v14 = vmul.f32 %v7930_v10, %v1764_v57  ;;  %v1774_v53 = vmul.f32 %v7930_v10, %v1765_v62  ;;  %v1743_v13 = vadd.f32 %v1741_v5, %v1710_v32  ;;  %v1744_v39 = vadd.f32 %v1742_v30, %v1711_v55  ;;  %v7941_v62 = vld [vmem:[#allocation37_spill] sm:$0xff]  ;;  %v3907_v10 = vld [vmem:[%s7431_s21 + $0x48] sm:$0xff] }
 0x305   : > { %v1780_v16 = vpop.permute.xlu1 %1779  ;;  %vm5765_vm9 = vcmp.eq.s32.totalorder %v1852_v12, 1  ;;  %vm5769_vm0 = vcmp.eq.s32.totalorder %v1856_v9, 1  ;;  %v1841_v38 = vpop.permute.xlu0 %1840  ;;  %v7942_v9 = vld [vmem:[#allocation53_spill] sm:$0xff]  ;;  %vm1887_vm15 = vcmp.ge.s32.totalorder %v4999_v33, 3  ;;  %vm1884_vm5 = vcmp.lt.s32.totalorder %v5034_v58, 3 }
 0x306   : > { %v1782_v27 = vsel %vm7928_vm6, %v1778_v52, %v1780_v16  ;;  %v1783_v34 = vsel %vm7929_vm14, %v1780_v16, %v1778_v52  ;;  %v1775_v45 = vadd.f32 %v1773_v14, %v1743_v13  ;;  %v1776_v24 = vadd.f32 %v1774_v53, %v1744_v39  ;;  %v3908_v14 = vld [vmem:[%s7431_s21 + $0x50] sm:$0xff] }
 0x307   : > { %v1795_v59 = vsel %vm5687_vm3, %v1782_v27, 0.0  ;;  %v1796_v1 = vsel %vm5709_vm4, %v1783_v34, 0.0  ;;  %vm7955_vm6 = vcmp.lt.s32.totalorder %v5034_v58, 2 }
 0x308   : > { %v1804_v26 = vmul.f32 %v7935_v35, %v1795_v59  ;;  %v1805_v56 = vmul.f32 %v7935_v35, %v1796_v1  ;;  %v3905_v59 = vld [vmem:[%s7431_s21 + $0x38] sm:$0xff]  ;;  %v3906_v1 = vld [vmem:[%s7431_s21 + $0x40] sm:$0xff]  ;;  %v1888_v35 = vsel %vm1887_vm15, 1, %v7763_v18  ;;  %vm7956_vm14 = vmmov %vm7955_vm6 }
 0x309   : > { %v1809_v48 = vpop.permute.xlu1 %1808 }
 0x30a   : > { %v1813_v51 = vsel %vm1812_vm11, %v1809_v48, %v1811_v60  ;;  %v1814_v8 = vsel %vm1812_vm11, %v1811_v60, %v1809_v48  ;;  %v1806_v29 = vadd.f32 %v1804_v26, %v1775_v45  ;;  %v1807_v2 = vadd.f32 %v1805_v56, %v1776_v24  ;;  %v3904_v60 = vld [vmem:[%s7431_s21 + $0x30] sm:$0xff] }
 0x30b   : > { %v1827_v52 = vsel %vm5746_vm8, %v1813_v51, 0.0  ;;  %v1828_v15 = vsel %vm5750_vm7, %v1814_v8, 0.0  ;;  %v1892_v26 = vrot.slane %v1888_v35, %v4411_v36  ;;  %v1896_v56 = vrot.slane %v1888_v35, %v4413_v37 }
 0x30c   : > { %v1836_v20 = vmul.f32 %v7940_v19, %v1827_v52  ;;  %v1837_v21 = vmul.f32 %v7940_v19, %v1828_v15  ;;  %vm7957_vm8 = vnez %v7820_v46  ;;  %vm2003_vm7 = vcmp.lt.s32.totalorder %v4999_v33, 13 }
 0x30d   : > { %v1843_v43 = vpop.permute.xlu1 %1842  ;;  %vm1897_vm10 = vcmp.eq.s32.totalorder %v1892_v26, 1  ;;  %vm1898_vm11 = vcmp.eq.s32.totalorder %v1896_v56, 1 }
 0x30e   : > { %v1845_v25 = vsel %vm1844_vm13, %v1841_v38, %v1843_v43  ;;  %v1846_v50 = vsel %vm1844_vm13, %v1843_v43, %v1841_v38  ;;  %v1838_v30 = vadd.f32 %v1836_v20, %v1806_v29  ;;  %v1839_v57 = vadd.f32 %v1837_v21, %v1807_v2  ;;  %v7958_v43 = vld [vmem:[#allocation55_spill] sm:$0xff] }
 0x30f   : > { %v1859_v44 = vsel %vm5765_vm9, %v1845_v25, 0.0  ;;  %v1860_v5 = vsel %vm5769_vm0, %v1846_v50, 0.0  ;;  %vm7962_vm9 = vnez %v7828_v42  ;;  %vm7963_vm0 = vnez %v7830_v22 }
 0x310   : > { %v1868_v16 = vmul.f32 %v7941_v62, %v1859_v44  ;;  %v1869_v27 = vmul.f32 %v7941_v62, %v1860_v5  ;;  %v7959_v44 = vld [vmem:[#allocation38_spill] sm:$0xff]  ;;  %v2004_v62 = vsel %vm2003_vm7, 1, %v7763_v18  ;;  %vm7972_vm7 = vcmp.lt.s32.totalorder %v5034_v58, 126 }
 0x312   : > { %v1870_v34 = vadd.f32 %v1868_v16, %v1838_v30  ;;  %v1871_v12 = vadd.f32 %v1869_v27, %v1839_v57  ;;  %v5854_v53 = vpop.permute.xlu0 %3141 }
 0x313   : > { %7949 = vst [vmem:[#allocation30_spill] sm:$0xff] %v5854_v53 }
 0x314   : > { %v5786_v32 = vadd.f32 %v7942_v9, %v1870_v34  ;;  %v5789_v55 = vadd.f32 %v7942_v9, %v1871_v12  ;;  %v7964_v34 = vld [vmem:[#allocation39_spill] sm:$0xff] }
 0x316   : > { %7943 = vst [vmem:[#allocation28_spill] sm:$0xff] %v5786_v32  ;;  %7944 = vst [vmem:[#allocation29_spill] sm:$0xff] %v5789_v55  ;;  %1882 = vrot.lane.b32.xlu1 %v5789_v55, %s4116_s24  ;;  %1880 = vrot.lane.b32.xlu0 %v5786_v32, %s4116_s24  ;;  %s4119_s24 = smov 4   ;;  %v5858_v3 = vpop.permute.xlu0 %3197 }
 0x317   : > { %7951 = vst [vmem:[#allocation32_spill] sm:$0xff] %v5858_v3 }
 0x31a   : > { %1909 = vrot.lane.b32.xlu1 %v5786_v32, %s7945_s2  ;;  %1911 = vrot.lane.b32.xlu0 %v5789_v55, %s7945_s2  ;;  %s4120_s2 = smov 124   ;;  %v5856_v31 = vpop.permute.xlu1 %3112  ;;  %v5863_v39 = vpop.permute.xlu0 %3247 }
 0x31b   : > { %7950 = vst [vmem:[#allocation31_spill] sm:$0xff] %v5856_v31  ;;  %7953 = vst [vmem:[#allocation34_spill] sm:$0xff] %v5863_v39 }
 0x31e   : > { %1930 = vrot.lane.b32.xlu1 %v5789_v55, %s7946_s27  ;;  %1928 = vrot.lane.b32.xlu0 %v5786_v32, %s7946_s27  ;;  %s4121_s27 = smov 123   ;;  %v5860_v13 = vpop.permute.xlu1 %3166 }
 0x31f   : > { %7952 = vst [vmem:[#allocation33_spill] sm:$0xff] %v5860_v13  ;;  %v8002_v13 = vld [vmem:[#allocation48_spill] sm:$0xff] }
 0x322   : > { %1960 = vrot.lane.b32.xlu1 %v5789_v55, %s7947_s4  ;;  %1958 = vrot.lane.b32.xlu0 %v5786_v32, %s7947_s4  ;;  %s4122_s4 = smov 10   ;;  %v5865_v48 = vpop.permute.xlu1 %3228 }
 0x323   : > { %7954 = vst [vmem:[#allocation35_spill] sm:$0xff] %v5865_v48 }
 0x326   : > { %1977 = vrot.lane.b32.xlu1 %v5786_v32, %s7948_s26  ;;  %1979 = vrot.lane.b32.xlu0 %v5789_v55, %s7948_s26  ;;  %s4123_s26 = smov 9  }
 0x32a   : > { %1998 = vrot.lane.b32.xlu1 %v5789_v55, %s4117_s28  ;;  %1996 = vrot.lane.b32.xlu0 %v5786_v32, %s4117_s28  ;;  %s4124_s28 = smov 8  }
 0x32e   : > { %2196 = vrot.lane.b32.xlu1 %v5789_v55, %s4118_s25  ;;  %2194 = vrot.lane.b32.xlu0 %v5786_v32, %s4118_s25  ;;  %s4125_s25 = smov 7  }
 0x332   : > { %2223 = vrot.lane.b32.xlu1 %v5786_v32, %s4119_s24  ;;  %2225 = vrot.lane.b32.xlu0 %v5789_v55, %s4119_s24  ;;  %s4126_s24 = smov 6  }
 0x336   : > { %2332 = vrot.lane.b32.xlu1 %v5786_v32, %s4120_s2  ;;  %2334 = vrot.lane.b32.xlu0 %v5789_v55, %s4120_s2  ;;  %s4127_s2 = smov 122  }
 0x33a   : > { %2366 = vrot.lane.b32.xlu1 %v5789_v55, %s4121_s27  ;;  %2364 = vrot.lane.b32.xlu0 %v5786_v32, %s4121_s27  ;;  %s4128_s27 = smov 121  }
 0x33e   : > { %2645 = vrot.lane.b32.xlu1 %v5789_v55, %s4122_s4  ;;  %2643 = vrot.lane.b32.xlu0 %v5786_v32, %s4122_s4 }
 0x342   : > { %2674 = vrot.lane.b32.xlu1 %v5789_v55, %s4123_s26  ;;  %2672 = vrot.lane.b32.xlu0 %v5786_v32, %s4123_s26  ;;  %s3925_s26 = sshll.u32 %s4277_s5, 8  ;;  %s4135_s5 = smov [#allocation2]  }
 0x346   : > { %2704 = vrot.lane.b32.xlu1 %v5786_v32, %s4124_s28  ;;  %2706 = vrot.lane.b32.xlu0 %v5789_v55, %s4124_s28  ;;  %s4132_s28 = smov 48  }
 0x34a   : > { %2738 = vrot.lane.b32.xlu1 %v5789_v55, %s4125_s25  ;;  %2736 = vrot.lane.b32.xlu0 %v5786_v32, %s4125_s25  ;;  %s7996_s25 = smov 32  }
 0x34e   : > { %2768 = vrot.lane.b32.xlu1 %v5786_v32, %s4126_s24  ;;  %2770 = vrot.lane.b32.xlu0 %v5789_v55, %s4126_s24  ;;  %s8003_s24 = smov 16  }
 0x352   : > { %3266 = vperm.xlu1 %4010, %v3904_v60   ;;  %3285 = vperm.xlu0 %4009, %v3905_v59   ;;  %v7965_v59 = vld [vmem:[#allocation57_spill] sm:$0xff] }
 0x353   : > { %v1954_v42 = vmul.f32 %v7965_v59, %v5786_v32 }
 0x356   : > { %3298 = vperm.xlu1 %4010, %v3906_v1   ;;  %3311 = vperm.xlu0 %4009, %v3907_v10   ;;  %v1955_v1 = vmul.f32 %v7965_v59, %v5789_v55  ;;  %v5920_v10 = vld [vmem:[%s7760_s3] sm:$0x3] }
 0x357   : > { %vm2201_vm15 = vcmp.ge.s32.totalorder %v5920_v10, 5 }
 0x35a   : > { %3322 = vperm.xlu1 %4010, %v3908_v14   ;;  %2923 = vrot.lane.b32.xlu0 %v5789_v55, %s4127_s2 }
 0x35e   : > { %2921 = vrot.lane.b32.xlu1 %v5786_v32, %s4127_s2  ;;  %2953 = vrot.lane.b32.xlu0 %v5786_v32, %s4128_s27  ;;  %s8017_s2 = smov 112  }
 0x362   : > { %2955 = vrot.lane.b32.xlu1 %v5789_v55, %s4128_s27  ;;  %2987 = vrot.lane.b32.xlu0 %v5789_v55, %s4129_s0  ;;  %s8024_s27 = smov 96  }
 0x366   : > { %2985 = vrot.lane.b32.xlu1 %v5786_v32, %s4129_s0  ;;  %3017 = vrot.lane.b32.xlu0 %v5786_v32, %s4130_s1  ;;  %s4133_s0 = smov 80  }
 0x36a   : > { %3019 = vrot.lane.b32.xlu1 %v5789_v55, %s4130_s1  ;;  %3049 = vrot.lane.b32.xlu0 %v5786_v32, %s4131_s6  ;;  %s4134_s1 = smov 64  }
 0x36e   : > { %3051 = vrot.lane.b32.xlu1 %v5789_v55, %s4131_s6  ;;  %s701_s6 = sand.u32 1, %s4081_s30  }
 0x36f   : > { %s3803_s4 = sshll.u32 %s701_s6, 4 }
 0x388   : > { %v1881_v51 = vpop.permute.xlu0 %1880  ;;  %v1883_v8 = vpop.permute.xlu1 %1882 }
 0x389   : > { %v1885_v52 = vsel %vm1884_vm5, %v1881_v51, %v1883_v8  ;;  %v1886_v15 = vsel %vm1884_vm5, %v1883_v8, %v1881_v51  ;;  %vm7966_vm5 = vcmp.lt.s32.totalorder %v5034_v58, 127 }
 0x38a   : > { %v5875_v19 = vsel %vm1897_vm10, %v1886_v15, 0.0  ;;  %v5877_v20 = vsel %vm1898_vm11, %v1885_v52, 0.0  ;;  %vm7967_vm10 = vmmov %vm7966_vm5  ;;  %vm7968_vm11 = vnez %v7844_v61  ;;  %v2008_v52 = vrot.slane %v2004_v62, %v4411_v36 }
 0x38b   : > { %v1907_v5 = vmul.f32 %v7959_v44, %v5875_v19  ;;  %v1908_v4 = vmul.f32 %v7959_v44, %v5877_v20  ;;  %v2012_v15 = vrot.slane %v2004_v62, %v4413_v37 }
 0x38c   : > { %v1912_v0 = vpop.permute.xlu0 %1911  ;;  %v1910_v23 = vpop.permute.xlu1 %1909 }
 0x38d   : > { %v1913_v45 = vsel %vm7955_vm6, %v1910_v23, %v1912_v0  ;;  %v1914_v24 = vsel %vm7956_vm14, %v1912_v0, %v1910_v23  ;;  %vm7969_vm6 = vnez %v7846_v49  ;;  %vm2000_vm14 = vcmp.lt.s32.totalorder %v5034_v58, 125  ;;  %v7970_v0 = vld [vmem:[#allocation76_spill] sm:$0xff] }
 0x38e   : > { %v5881_v21 = vsel %vm5334_vm2, %v1914_v24, 0.0  ;;  %v5885_v38 = vsel %vm7957_vm8, %v1913_v45, 0.0  ;;  %vm7960_vm2 = vcmp.lt.s32.totalorder %v5034_v58, 1  ;;  %v5940_v23 = vmul.f32 %v7970_v0, %v5786_v32 }
 0x38f   : > { %v1924_v29 = vmul.f32 %v7958_v43, %v5881_v21  ;;  %v1925_v2 = vmul.f32 %v7958_v43, %v5885_v38  ;;  %vm7961_vm13 = vmmov %vm7960_vm2  ;;  %v5944_v45 = vmul.f32 %v7970_v0, %v5789_v55  ;;  %vm2230_vm8 = vcmp.ge.s32.totalorder %v5920_v10, 4  ;;  %v7979_v0 = vld [vmem:[#allocation41_spill] sm:$0xff] }
 0x390   : > { %v1929_v25 = vpop.permute.xlu0 %1928  ;;  %v1931_v50 = vpop.permute.xlu1 %1930  ;;  %v2231_v7 = vsel %vm2230_vm8, 1, %v7763_v18  ;;  %vm2679_vm8 = vcmp.ge.s32.totalorder %v5920_v10, 9 }
 0x391   : > { %v1932_v46 = vsel %vm7960_vm2, %v1929_v25, %v1931_v50  ;;  %v1933_v30 = vsel %vm7961_vm13, %v1931_v50, %v1929_v25  ;;  %v1926_v16 = vadd.f32 %v1924_v29, %v1907_v5  ;;  %v1927_v27 = vadd.f32 %v1925_v2, %v1908_v4  ;;  %v7971_v2 = vld [vmem:[#allocation40_spill] sm:$0xff]  ;;  %vm7973_vm2 = vmmov %vm7972_vm7 }
 0x392   : > { %v5902_v57 = vsel %vm7962_vm9, %v1933_v30, 0.0  ;;  %v5906_v33 = vsel %vm7963_vm0, %v1932_v46, 0.0  ;;  %v2202_v29 = vsel %vm2201_vm15, 1, %v7763_v18  ;;  %vm5966_vm13 = vcmp.eq.s32.totalorder %v2008_v52, 1 }
 0x393   : > { %v1943_v12 = vmul.f32 %v7964_v34, %v5902_v57  ;;  %v1944_v9 = vmul.f32 %v7964_v34, %v5906_v33  ;;  %vm5970_vm9 = vcmp.eq.s32.totalorder %v2012_v15, 1  ;;  %vm2371_vm0 = vcmp.lt.s32.totalorder %v5920_v10, 11 }
 0x394   : > { %v1959_v60 = vpop.permute.xlu0 %1958  ;;  %v1961_v22 = vpop.permute.xlu1 %1960  ;;  %v2284_v31 = vmul.f32 %v8002_v13, %v5902_v57 }
 0x395   : > { %v1945_v14 = vadd.f32 %v1943_v12, %v1926_v16  ;;  %v1946_v35 = vadd.f32 %v1944_v9, %v1927_v27  ;;  %v1962_v26 = vsel %vm7966_vm5, %v1959_v60, %v1961_v22  ;;  %v1963_v56 = vsel %vm7967_vm10, %v1961_v22, %v1959_v60  ;;  %v7978_v16 = vld [vmem:[#allocation59_spill] sm:$0xff] }
 0x396   : > { %v5929_v51 = vsel %vm7968_vm11, %v1962_v26, 0.0  ;;  %v5933_v8 = vsel %vm7969_vm6, %v1963_v56, 0.0  ;;  %v2206_v9 = vrot.slane %v2202_v29, %v4411_v36  ;;  %v2210_v60 = vrot.slane %v2202_v29, %v4413_v37  ;;  %v7990_v29 = vld [vmem:[#allocation71_spill] sm:$0xff] }
 0x397   : > { %v1956_v61 = vadd.f32 %v1954_v42, %v1945_v14  ;;  %v1957_v24 = vadd.f32 %v1955_v1, %v1946_v35  ;;  %v1973_v25 = vmul.f32 %v7971_v2, %v5929_v51  ;;  %v1974_v50 = vmul.f32 %v7971_v2, %v5933_v8 }
 0x398   : > { %v1980_v43 = vpop.permute.xlu0 %1979  ;;  %v1978_v49 = vpop.permute.xlu1 %1977  ;;  %v2235_v26 = vrot.slane %v2231_v7, %v4411_v36  ;;  %v2239_v56 = vrot.slane %v2231_v7, %v4413_v37  ;;  %vm6002_vm15 = vcmp.eq.s32.totalorder %v2206_v9, 1  ;;  %vm6006_vm5 = vcmp.eq.s32.totalorder %v2210_v60, 1 }
 0x399   : > { %v1981_v44 = vsel %vm7972_vm7, %v1978_v49, %v1980_v43  ;;  %v1982_v5 = vsel %vm7973_vm2, %v1980_v43, %v1978_v49  ;;  %v1975_v59 = vadd.f32 %v1973_v25, %v1956_v61  ;;  %v1976_v42 = vadd.f32 %v1974_v50, %v1957_v24 }
 0x39a   : > { %v5960_v4 = vsel %vm5480_vm12, %v1981_v44, 0.0  ;;  %v5964_v46 = vsel %vm5484_vm1, %v1982_v5, 0.0  ;;  %vm2198_vm12 = vcmp.lt.s32.totalorder %v5034_v58, 5  ;;  %vm2339_vm1 = vcmp.lt.s32.totalorder %v5920_v10, 12 }
 0x39b   : > { %v1992_v27 = vmul.f32 %v7978_v16, %v5960_v4  ;;  %v1993_v40 = vmul.f32 %v7978_v16, %v5964_v46  ;;  %v2340_v25 = vsel %vm2339_vm1, 1, %v7763_v18  ;;  %v2372_v50 = vsel %vm2371_vm0, 1, %v7763_v18 }
 0x39c   : > { %v1997_v34 = vpop.permute.xlu0 %1996  ;;  %v1999_v12 = vpop.permute.xlu1 %1998  ;;  %vm2227_vm10 = vcmp.lt.s32.totalorder %v5034_v58, 4  ;;  %vm6021_vm11 = vcmp.eq.s32.totalorder %v2235_v26, 1  ;;  %vm6025_vm6 = vcmp.eq.s32.totalorder %v2239_v56, 1  ;;  %vm2336_vm7 = vcmp.lt.s32.totalorder %v5034_v58, 124 }
 0x39d   : > { %v2001_v1 = vsel %vm2000_vm14, %v1997_v34, %v1999_v12  ;;  %v2002_v22 = vsel %vm2000_vm14, %v1999_v12, %v1997_v34  ;;  %v1994_v52 = vadd.f32 %v1992_v27, %v1975_v59  ;;  %v1995_v15 = vadd.f32 %v1993_v40, %v1976_v42  ;;  %v7988_v40 = vld [vmem:[#allocation61_spill] sm:$0xff] }
 0x39e   : > { %v5990_v14 = vsel %vm5966_vm13, %v2001_v1, 0.0  ;;  %v5994_v35 = vsel %vm5970_vm9, %v2002_v22, 0.0  ;;  %vm2650_vm14 = vcmp.ge.s32.totalorder %v5920_v10, 10  ;;  %v2344_v12 = vrot.slane %v2340_v25, %v4411_v36 }
 0x39f   : > { %v2024_v61 = vmul.f32 %v7979_v0, %v5990_v14  ;;  %v2025_v24 = vmul.f32 %v7979_v0, %v5994_v35  ;;  %v2348_v1 = vrot.slane %v2340_v25, %v4413_v37  ;;  %v2376_v22 = vrot.slane %v2372_v50, %v4411_v36 }
 0x3a0   : > { %v2195_v43 = vpop.permute.xlu0 %2194  ;;  %v2197_v2 = vpop.permute.xlu1 %2196  ;;  %vm2711_vm2 = vcmp.ge.s32.totalorder %v5920_v10, 8  ;;  %vm2743_vm13 = vcmp.ge.s32.totalorder %v5920_v10, 7  ;;  %vm6077_vm9 = vcmp.eq.s32.totalorder %v2344_v12, 1  ;;  %vm2368_vm1 = vcmp.lt.s32.totalorder %v5034_v58, 123  ;;  %v7995_v12 = vld [vmem:[#allocation47_spill] sm:$0xff] }
 0x3a1   : > { %v2026_v44 = vadd.f32 %v2024_v61, %v1994_v52  ;;  %v2027_v5 = vadd.f32 %v2025_v24, %v1995_v15  ;;  %v2199_v30 = vsel %vm2198_vm12, %v2195_v43, %v2197_v2  ;;  %v2200_v62 = vsel %vm2198_vm12, %v2197_v2, %v2195_v43  ;;  %v7989_v24 = vld [vmem:[#allocation46_spill] sm:$0xff] }
 0x3a2   : > { %v6040_v9 = vsel %vm6002_vm15, %v2200_v62, 0.0  ;;  %v6044_v60 = vsel %vm6006_vm5, %v2199_v30, 0.0  ;;  %v2651_v52 = vsel %vm2650_vm14, 1, %v7763_v18  ;;  %v2680_v61 = vsel %vm2679_vm8, 1, %v7763_v18 }
 0x3a3   : > { %v6031_v7 = vadd.f32 %v7988_v40, %v2026_v44  ;;  %v6034_v34 = vadd.f32 %v7988_v40, %v2027_v5  ;;  %v2221_v43 = vmul.f32 %v7989_v24, %v6040_v9  ;;  %v2222_v49 = vmul.f32 %v7989_v24, %v6044_v60 }
 0x3a4   : > { %v2226_v59 = vpop.permute.xlu0 %2225  ;;  %v2224_v42 = vpop.permute.xlu1 %2223  ;;  %vm6081_vm12 = vcmp.eq.s32.totalorder %v2348_v1, 1  ;;  %v2380_v16 = vrot.slane %v2372_v50, %v4413_v37  ;;  %v2655_v27 = vrot.slane %v2651_v52, %v4411_v36  ;;  %v2712_v40 = vsel %vm2711_vm2, 1, %v7763_v18 }
 0x3a5   : > { %v2228_v26 = vsel %vm2227_vm10, %v2224_v42, %v2226_v59  ;;  %v2229_v56 = vsel %vm2227_vm10, %v2226_v59, %v2224_v42  ;;  %2038 = vrot.lane.b32.xlu1 %v6034_v34, %s4132_s28  ;;  %2036 = vrot.lane.b32.xlu0 %v6031_v7, %s4132_s28  ;;  %v2262_v59 = vmul.f32 %v7995_v12, %v5875_v19  ;;  %vm6097_vm0 = vcmp.eq.s32.totalorder %v2376_v22, 1 }
 0x3a6   : > { %v6059_v15 = vsel %vm6021_vm11, %v2229_v56, 0.0  ;;  %v6063_v0 = vsel %vm6025_vm6, %v2228_v26, 0.0  ;;  %v2263_v42 = vmul.f32 %v7995_v12, %v5877_v20  ;;  %v2659_v50 = vrot.slane %v2651_v52, %v4413_v37 }
 0x3a7   : > { %v2251_v2 = vmul.f32 %v7990_v29, %v6059_v15  ;;  %v2252_v25 = vmul.f32 %v7990_v29, %v6063_v0  ;;  %v2684_v24 = vrot.slane %v2680_v61, %v4411_v36  ;;  %v2688_v29 = vrot.slane %v2680_v61, %v4413_v37 }
 0x3a8   : > { %v2335_v44 = vpop.permute.xlu0 %2334  ;;  %v2333_v62 = vpop.permute.xlu1 %2332  ;;  %vm6113_vm15 = vcmp.eq.s32.totalorder %v2380_v16, 1  ;;  %v2716_v61 = vrot.slane %v2712_v40, %v4411_v36  ;;  %v2720_v3 = vrot.slane %v2712_v40, %v4413_v37  ;;  %vm6128_vm10 = vcmp.eq.s32.totalorder %v2655_v27, 1 }
 0x3a9   : > { %v2253_v1 = vadd.f32 %v2251_v2, %v2221_v43  ;;  %v2254_v26 = vadd.f32 %v2252_v25, %v2222_v49  ;;  %2065 = vrot.lane.b32.xlu1 %v6031_v7, %s7996_s25  ;;  %2067 = vrot.lane.b32.xlu0 %v6034_v34, %s7996_s25  ;;  %v2744_v43 = vsel %vm2743_vm13, 1, %v7763_v18  ;;  %v7999_v49 = vld [vmem:[#allocation73_spill] sm:$0xff]  ;;  %vm6132_vm11 = vcmp.eq.s32.totalorder %v2659_v50, 1 }
 0x3aa   : > { %v2273_v2 = vmul.f32 %v7999_v49, %v5881_v21  ;;  %v2274_v22 = vmul.f32 %v7999_v49, %v5885_v38  ;;  %v2285_v49 = vmul.f32 %v8002_v13, %v5906_v33  ;;  %vm2676_vm6 = vcmp.lt.s32.totalorder %v5034_v58, 9 }
 0x3ab   : > { %v2264_v25 = vadd.f32 %v2262_v59, %v2253_v1  ;;  %v2265_v12 = vadd.f32 %v2263_v42, %v2254_v26  ;;  %vm6137_vm14 = vcmp.eq.s32.totalorder %v2684_v24, 1  ;;  %vm6141_vm8 = vcmp.eq.s32.totalorder %v2688_v29, 1 }
 0x3ac   : > { %v2365_v39 = vpop.permute.xlu0 %2364  ;;  %v2367_v52 = vpop.permute.xlu1 %2366  ;;  %v2748_v26 = vrot.slane %v2744_v43, %v4411_v36  ;;  %v2752_v50 = vrot.slane %v2744_v43, %v4413_v37  ;;  %vm2775_vm13 = vcmp.ge.s32.totalorder %v5920_v10, 6  ;;  %v2337_v29 = vsel %vm2336_vm7, %v2333_v62, %v2335_v44 }
 0x3ad   : > { %v2275_v59 = vadd.f32 %v2273_v2, %v2264_v25  ;;  %v2276_v42 = vadd.f32 %v2274_v22, %v2265_v12  ;;  %2086 = vrot.lane.b32.xlu1 %v6034_v34, %s8003_s24  ;;  %2084 = vrot.lane.b32.xlu0 %v6031_v7, %s8003_s24  ;;  %v8012_v22 = vld [vmem:[#allocation49_spill] sm:$0xff]  ;;  %v2338_v12 = vsel %vm2336_vm7, %v2335_v44, %v2333_v62  ;;  %vm6157_vm5 = vcmp.eq.s32.totalorder %v2716_v61, 1 }
 0x3ae   : > { %v2306_v24 = vmul.f32 %v8012_v22, %v5929_v51  ;;  %v2307_v25 = vmul.f32 %v8012_v22, %v5933_v8  ;;  %vm6161_vm2 = vcmp.eq.s32.totalorder %v2720_v3, 1  ;;  %v2369_v53 = vsel %vm2368_vm1, %v2365_v39, %v2367_v52  ;;  %v8018_v62 = vld [vmem:[#allocation77_spill] sm:$0xff] }
 0x3af   : > { %v2286_v27 = vadd.f32 %v2284_v31, %v2275_v59  ;;  %v2287_v2 = vadd.f32 %v2285_v49, %v2276_v42  ;;  %v2370_v44 = vsel %vm2368_vm1, %v2367_v52, %v2365_v39  ;;  %v2317_v61 = vmul.f32 %v8018_v62, %v5960_v4 }
 0x3b0   : > { %v2644_v31 = vpop.permute.xlu0 %2643  ;;  %v2646_v49 = vpop.permute.xlu1 %2645  ;;  %v2318_v3 = vmul.f32 %v8018_v62, %v5964_v46  ;;  %v6187_v52 = vsel %vm6077_vm9, %v2337_v29, 0.0  ;;  %vm6193_vm1 = vcmp.eq.s32.totalorder %v2748_v26, 1  ;;  %vm6197_vm7 = vcmp.eq.s32.totalorder %v2752_v50, 1 }
 0x3b1   : > { %v2297_v42 = vadd.f32 %v5940_v23, %v2286_v27  ;;  %v2298_v22 = vadd.f32 %v5944_v45, %v2287_v2  ;;  %2116 = vrot.lane.b32.xlu1 %v6034_v34, %s8017_s2  ;;  %2114 = vrot.lane.b32.xlu0 %v6031_v7, %s8017_s2  ;;  %v6183_v23 = vsel %vm2775_vm13, 1, %v7763_v18  ;;  %v6191_v27 = vsel %vm6081_vm12, %v2338_v12, 0.0 }
 0x3b2   : > { %v2329_v5 = vmul.f32 %v8023_v47, %v5994_v35  ;;  %v6211_v30 = vsel %vm6113_vm15, %v2370_v44, 0.0  ;;  %vm8026_vm9 = vcmp.lt.s32.totalorder %v5034_v58, 10  ;;  %v2780_v17 = vrot.slane %v6183_v23, %v4411_v36 }
 0x3b3   : > { %v2308_v39 = vadd.f32 %v2306_v24, %v2297_v42  ;;  %v2309_v45 = vadd.f32 %v2307_v25, %v2298_v22  ;;  %v2328_v24 = vmul.f32 %v8023_v47, %v5990_v14  ;;  %v6207_v25 = vsel %vm6097_vm0, %v2369_v53, 0.0  ;;  %v8025_v47 = vld [vmem:[#allocation78_spill] sm:$0xff]  ;;  %vm8027_vm12 = vmmov %vm8026_vm9 }
 0x3b4   : > { %v2673_v26 = vpop.permute.xlu0 %2672  ;;  %v2675_v29 = vpop.permute.xlu1 %2674  ;;  %v2360_v53 = vmul.f32 %v8025_v47, %v6187_v52  ;;  %v2361_v48 = vmul.f32 %v8025_v47, %v6191_v27  ;;  %v2648_v56 = vsel %vm8026_vm9, %v2644_v31, %v2646_v49  ;;  %v2649_v44 = vsel %vm8027_vm12, %v2646_v49, %v2644_v31 }
 0x3b5   : > { %v2319_v50 = vadd.f32 %v2317_v61, %v2308_v39  ;;  %v2320_v12 = vadd.f32 %v2318_v3, %v2309_v45  ;;  %v2677_v42 = vsel %vm2676_vm6, %v2673_v26, %v2675_v29  ;;  %v2678_v22 = vsel %vm2676_vm6, %v2675_v29, %v2673_v26  ;;  %2133 = vrot.lane.b32.xlu1 %v6031_v7, %s8024_s27  ;;  %v8028_v26 = vld [vmem:[#allocation51_spill] sm:$0xff] }
 0x3b6   : > { %2135 = vrot.lane.b32.xlu0 %v6034_v34, %s8024_s27  ;;  %vm2772_vm0 = vcmp.lt.s32.totalorder %v5034_v58, 6  ;;  %v2691_v39 = vsel %vm6137_vm14, %v2678_v22, 0.0  ;;  %v2692_v45 = vsel %vm6141_vm8, %v2677_v42, 0.0  ;;  %v2392_v29 = vmul.f32 %v8028_v26, %v6207_v25 }
 0x3b7   : > { %v2330_v61 = vadd.f32 %v2328_v24, %v2319_v50  ;;  %v2331_v3 = vadd.f32 %v2329_v5, %v2320_v12  ;;  %v2393_v47 = vmul.f32 %v8028_v26, %v6211_v30  ;;  %v2784_v24 = vrot.slane %v6183_v23, %v4413_v37  ;;  %v8029_v12 = vld [vmem:[#allocation62_spill] sm:$0xff] }
 0x3b8   : > { %v2707_v31 = vpop.permute.xlu0 %2706  ;;  %v2705_v49 = vpop.permute.xlu1 %2704  ;;  %v2662_v1 = vsel %vm6128_vm10, %v2649_v44, 0.0  ;;  %v2663_v50 = vsel %vm6132_vm11, %v2648_v56, 0.0  ;;  %v2700_v42 = vmul.f32 %v8029_v12, %v2691_v39  ;;  %v2701_v22 = vmul.f32 %v8029_v12, %v2692_v45  ;;  %v8032_v56 = vld [vmem:[#allocation84_spill] sm:$0xff]  ;;  %v8034_v12 = vld [vmem:[#allocation79_spill] sm:$0xff] }
 0x3b9   : > { %v2362_v5 = vadd.f32 %v2360_v53, %v2330_v61  ;;  %v2363_v13 = vadd.f32 %v2361_v48, %v2331_v3  ;;  %2154 = vrot.lane.b32.xlu1 %v6034_v34, %s4133_s0  ;;  %vm8030_vm15 = vcmp.lt.s32.totalorder %v5034_v58, 8  ;;  %v2670_v44 = vmul.f32 %v8032_v56, %v2662_v1  ;;  %v8033_v3 = vld [vmem:[#allocation85_spill] sm:$0xff] }
 0x3ba   : > { %v2709_v26 = vsel %vm8030_vm15, %v2705_v49, %v2707_v31  ;;  %vm8031_vm6 = vmmov %vm8030_vm15  ;;  %2152 = vrot.lane.b32.xlu0 %v6031_v7, %s4133_s0  ;;  %v2671_v61 = vmul.f32 %v8032_v56, %v2663_v50  ;;  %vm6278_vm11 = vcmp.eq.s32.totalorder %v2780_v17, 1  ;;  %vm2786_vm14 = vcmp.eq.s32.totalorder %v2784_v24, 1 }
 0x3bb   : > { %v2710_v23 = vsel %vm8031_vm6, %v2707_v31, %v2705_v49  ;;  %v2394_v16 = vadd.f32 %v2392_v29, %v2362_v5  ;;  %v2395_v40 = vadd.f32 %v2393_v47, %v2363_v13  ;;  %v2724_v48 = vsel %vm6161_vm2, %v2709_v26, 0.0  ;;  %v8039_v26 = vld [vmem:[#allocation64_spill] sm:$0xff] }
 0x3bc   : > { %v2723_v53 = vsel %vm6157_vm5, %v2710_v23, 0.0  ;;  %v2733_v45 = vmul.f32 %v8033_v3, %v2724_v48  ;;  %v2737_v31 = vpop.permute.xlu0 %2736  ;;  %v2739_v49 = vpop.permute.xlu1 %2738  ;;  %vm8035_vm5 = vcmp.lt.s32.totalorder %v5034_v58, 7  ;;  %v2702_v47 = vadd.f32 %v2700_v42, %v2670_v44 }
 0x3bd   : > { %v2732_v39 = vmul.f32 %v8033_v3, %v2723_v53  ;;  %v6265_v41 = vadd.f32 %v8034_v12, %v2394_v16  ;;  %v6268_v29 = vadd.f32 %v8034_v12, %v2395_v40  ;;  %v2741_v59 = vsel %vm8035_vm5, %v2737_v31, %v2739_v49  ;;  %vm8036_vm10 = vmmov %vm8035_vm5 }
 0x3be   : > { %v2742_v43 = vsel %vm8036_vm10, %v2739_v49, %v2737_v31  ;;  %v2756_v13 = vsel %vm6197_vm7, %v2741_v59, 0.0  ;;  %v2703_v50 = vadd.f32 %v2701_v22, %v2671_v61  ;;  %v8040_v61 = vld [vmem:[#allocation86_spill] sm:$0xff]  ;;  %v8042_v59 = vld [vmem:[#allocation87_spill] sm:$0xff]  ;;  %vm2928_vm8 = vcmp.lt.s32.totalorder %v5920_v10, 10 }
 0x3bf   : > { %v2755_v5 = vsel %vm6193_vm1, %v2742_v43, 0.0  ;;  %v2765_v16 = vmul.f32 %v8039_v26, %v2756_v13  ;;  %2406 = vrot.lane.b32.xlu1 %v6268_v29, %s4133_s0  ;;  %2404 = vrot.lane.b32.xlu0 %v6265_v41, %s4133_s0  ;;  %v2734_v2 = vadd.f32 %v2732_v39, %v2702_v47  ;;  %v8041_v39 = vld [vmem:[#allocation66_spill] sm:$0xff]  ;;  %v2818_v43 = vmul.f32 %v8042_v59, %v6059_v15  ;;  %v8044_v15 = vld [vmem:[#allocation88_spill] sm:$0xff] }
 0x3c0   : > { %v2764_v23 = vmul.f32 %v8039_v26, %v2755_v5  ;;  %v2771_v42 = vpop.permute.xlu0 %2770  ;;  %v2769_v62 = vpop.permute.xlu1 %2768  ;;  %v2735_v40 = vadd.f32 %v2733_v45, %v2703_v50  ;;  %v2807_v45 = vmul.f32 %v8041_v39, %v6040_v9  ;;  %v2808_v31 = vmul.f32 %v8041_v39, %v6044_v60  ;;  %v8043_v9 = vld [vmem:[#allocation68_spill] sm:$0xff] }
 0x3c1   : > { %v2773_v17 = vsel %vm2772_vm0, %v2769_v62, %v2771_v42  ;;  %v2774_v22 = vsel %vm2772_vm0, %v2771_v42, %v2769_v62  ;;  %v2819_v47 = vmul.f32 %v8042_v59, %v6063_v0  ;;  %v2829_v1 = vmul.f32 %v8043_v9, %v5875_v19  ;;  %v8045_v19 = vld [vmem:[#allocation70_spill] sm:$0xff] }
 0x3c2   : > { %v2766_v53 = vadd.f32 %v2764_v23, %v2734_v2  ;;  %v2787_v48 = vsel %vm6278_vm11, %v2774_v22, 0.0  ;;  %v2788_v56 = vsel %vm2786_vm14, %v2773_v17, 0.0  ;;  %v2767_v44 = vadd.f32 %v2765_v16, %v2735_v40  ;;  %v8046_v17 = vld [vmem:[#allocation89_spill] sm:$0xff] }
 0x3c3   : > { %v2796_v3 = vmul.f32 %v8040_v61, %v2787_v48  ;;  %v2797_v24 = vmul.f32 %v8040_v61, %v2788_v56  ;;  %2432 = vrot.lane.b32.xlu1 %v6265_v41, %s4134_s1  ;;  %2434 = vrot.lane.b32.xlu0 %v6268_v29, %s4134_s1  ;;  %v2830_v60 = vmul.f32 %v8043_v9, %v5877_v20  ;;  %v8047_v56 = vld [vmem:[#allocation72_spill] sm:$0xff]  ;;  %vm2960_vm2 = vcmp.lt.s32.totalorder %v5920_v10, 9 }
 0x3c4   : > { %v2840_v23 = vmul.f32 %v8044_v15, %v5881_v21  ;;  %v2841_v0 = vmul.f32 %v8044_v15, %v5885_v38  ;;  %v2851_v20 = vmul.f32 %v8045_v19, %v5902_v57  ;;  %v2852_v42 = vmul.f32 %v8045_v19, %v5906_v33 }
 0x3c5   : > { %v2798_v49 = vadd.f32 %v2796_v3, %v2766_v53  ;;  %v2799_v12 = vadd.f32 %v2797_v24, %v2767_v44  ;;  %v2862_v22 = vmul.f32 %v8046_v17, %v5786_v32  ;;  %v2863_v57 = vmul.f32 %v8046_v17, %v5789_v55 }
 0x3c6   : > { %v2929_v33 = vsel %vm2928_vm8, 1, %v7763_v18  ;;  %v2873_v44 = vmul.f32 %v8047_v56, %v5929_v51  ;;  %v2874_v61 = vmul.f32 %v8047_v56, %v5933_v8  ;;  %vm2992_vm13 = vcmp.lt.s32.totalorder %v5920_v10, 8 }
 0x3c7   : > { %v2809_v5 = vadd.f32 %v2807_v45, %v2798_v49  ;;  %v2810_v13 = vadd.f32 %v2808_v31, %v2799_v12  ;;  %2466 = vrot.lane.b32.xlu1 %v6268_v29, %s4132_s28  ;;  %2464 = vrot.lane.b32.xlu0 %v6265_v41, %s4132_s28  ;;  %v8048_v31 = vld [vmem:[#allocation90_spill] sm:$0xff]  ;;  %v2933_v59 = vrot.slane %v2929_v33, %v4411_v36  ;;  %vm2925_vm7 = vcmp.lt.s32.totalorder %v5034_v58, 122 }
 0x3c8   : > { %v2884_v49 = vmul.f32 %v8048_v31, %v5960_v4  ;;  %v2885_v12 = vmul.f32 %v8048_v31, %v5964_v46  ;;  %v8049_v46 = vld [vmem:[#allocation91_spill] sm:$0xff]  ;;  %vm3024_vm9 = vcmp.lt.s32.totalorder %v5920_v10, 7  ;;  %vm2957_vm0 = vcmp.lt.s32.totalorder %v5034_v58, 121 }
 0x3c9   : > { %v2820_v50 = vadd.f32 %v2818_v43, %v2809_v5  ;;  %v2821_v26 = vadd.f32 %v2819_v47, %v2810_v13  ;;  %v2961_v13 = vsel %vm2960_vm2, 1, %v7763_v18  ;;  %v2895_v9 = vmul.f32 %v8049_v46, %v5990_v14 }
 0x3ca   : > { %v2965_v15 = vrot.slane %v2961_v13, %v4411_v36  ;;  %vm6376_vm1 = vcmp.eq.s32.totalorder %v2933_v59, 1  ;;  %vm3056_vm5 = vcmp.lt.s32.totalorder %v5920_v10, 6  ;;  %vm2989_vm10 = vcmp.lt.s32.totalorder %v5034_v58, 120 }
 0x3cb   : > { %v2831_v16 = vadd.f32 %v2829_v1, %v2820_v50  ;;  %v2832_v2 = vadd.f32 %v2830_v60, %v2821_v26  ;;  %2483 = vrot.lane.b32.xlu1 %v6265_v41, %s7996_s25  ;;  %2485 = vrot.lane.b32.xlu0 %v6268_v29, %s7996_s25  ;;  %v2896_v1 = vmul.f32 %v8049_v46, %v5994_v35  ;;  %vm3021_vm8 = vcmp.lt.s32.totalorder %v5034_v58, 119 }
 0x3cc   : > { %v2937_v60 = vrot.slane %v2929_v33, %v4413_v37  ;;  %vm6393_vm15 = vcmp.eq.s32.totalorder %v2965_v15, 1 }
 0x3cd   : > { %v2842_v21 = vadd.f32 %v2840_v23, %v2831_v16  ;;  %v2843_v62 = vadd.f32 %v2841_v0, %v2832_v2  ;;  %v6329_v40 = vpop.permute.xlu0 %3285  ;;  %v6331_v38 = vpop.permute.xlu1 %3266  ;;  %v2993_v23 = vsel %vm2992_vm13, 1, %v7763_v18  ;;  %v2969_v16 = vrot.slane %v2961_v13, %v4413_v37  ;;  %v8052_v2 = vld [vmem:[#allocation92_spill] sm:$0xff] }
 0x3ce   : > { %v2906_v19 = vmul.f32 %v8052_v2, %v6187_v52  ;;  %vm6386_vm12 = vcmp.eq.s32.totalorder %v2937_v60, 1  ;;  %v2997_v17 = vrot.slane %v2993_v23, %v4411_v36  ;;  %v3025_v52 = vsel %vm3024_vm9, 1, %v7763_v18 }
 0x3cf   : > { %v2853_v53 = vadd.f32 %v2851_v20, %v2842_v21  ;;  %v2854_v48 = vadd.f32 %v2852_v42, %v2843_v62  ;;  %2504 = vrot.lane.b32.xlu1 %v6268_v29, %s8003_s24  ;;  %2502 = vrot.lane.b32.xlu0 %v6265_v41, %s8003_s24  ;;  %v2907_v20 = vmul.f32 %v8052_v2, %v6191_v27  ;;  %v8057_v27 = vld [vmem:[#allocation93_spill] sm:$0xff]  ;;  %vm6402_vm6 = vcmp.eq.s32.totalorder %v2969_v16, 1 }
 0x3d0   : > { %v2917_v33 = vmul.f32 %v8057_v27, %v6207_v25  ;;  %v2918_v56 = vmul.f32 %v8057_v27, %v6211_v30  ;;  %vm6416_vm11 = vcmp.eq.s32.totalorder %v2997_v17, 1  ;;  %v3033_v59 = vrot.slane %v3025_v52, %v4413_v37  ;;  %v8070_v17 = vld [vmem:[#allocation96_spill] sm:$0xff] }
 0x3d1   : > { %v6346_v3 = vpop.permute.xlu0 %3311  ;;  %v6348_v24 = vpop.permute.xlu1 %3298  ;;  %v2864_v39 = vadd.f32 %v2862_v22, %v2853_v53  ;;  %v2865_v45 = vadd.f32 %v2863_v57, %v2854_v48  ;;  %v3001_v22 = vrot.slane %v2993_v23, %v4413_v37 }
 0x3d2   : > { %vm6446_vm13 = vcmp.eq.s32.totalorder %v3033_v59, 1 }
 0x3d3   : > { %2534 = vrot.lane.b32.xlu1 %v6268_v29, %s8017_s2  ;;  %2532 = vrot.lane.b32.xlu0 %v6265_v41, %s8017_s2  ;;  %v2875_v51 = vadd.f32 %v2873_v44, %v2864_v39  ;;  %v2876_v8 = vadd.f32 %v2874_v61, %v2865_v45  ;;  %vm6420_vm14 = vcmp.eq.s32.totalorder %v3001_v22, 1 }
 0x3d5   : > { %v2924_v43 = vpop.permute.xlu0 %2923  ;;  %v6360_v47 = vpop.permute.xlu1 %3322  ;;  %v2886_v5 = vadd.f32 %v2884_v49, %v2875_v51  ;;  %v2887_v4 = vadd.f32 %v2885_v12, %v2876_v8  ;;  %v3029_v12 = vrot.slane %v3025_v52, %v4411_v36 }
 0x3d7   : > { %2551 = vrot.lane.b32.xlu1 %v6265_v41, %s8024_s27  ;;  %2553 = vrot.lane.b32.xlu0 %v6268_v29, %s8024_s27  ;;  %v2897_v50 = vadd.f32 %v2895_v9, %v2886_v5  ;;  %v2898_v26 = vadd.f32 %v2896_v1, %v2887_v4  ;;  %v8064_v5 = vld [vmem:[#allocation94_spill] sm:$0xff]  ;;  %vm6442_vm2 = vcmp.eq.s32.totalorder %v3029_v12, 1 }
 0x3d9   : > { %v2954_v14 = vpop.permute.xlu0 %2953  ;;  %v2922_v35 = vpop.permute.xlu1 %2921  ;;  %v2908_v53 = vadd.f32 %v2906_v19, %v2897_v50  ;;  %v2909_v48 = vadd.f32 %v2907_v20, %v2898_v26  ;;  %v3914_v19 = vld [vmem:[%s7431_s21 + $0x80] sm:$0xff]  ;;  %v3913_v20 = vld [vmem:[%s7431_s21 + $0x78] sm:$0xff] }
 0x3da   : > { %v2926_v21 = vsel %vm2925_vm7, %v2922_v35, %v2924_v43  ;;  %v2927_v62 = vsel %vm2925_vm7, %v2924_v43, %v2922_v35  ;;  %v3057_v43 = vsel %vm3056_vm5, 1, %v7763_v18  ;;  %v8065_v35 = vld [vmem:[#allocation95_spill] sm:$0xff]  ;;  %vm3053_vm7 = vcmp.lt.s32.totalorder %v5034_v58, 118 }
 0x3db   : > { %v2940_v45 = vsel %vm6376_vm1, %v2926_v21, 0.0  ;;  %v2941_v31 = vsel %vm6386_vm12, %v2927_v62, 0.0  ;;  %v2919_v51 = vadd.f32 %v2917_v33, %v2908_v53  ;;  %v2920_v8 = vadd.f32 %v2918_v56, %v2909_v48  ;;  %v3878_v56 = vld [vmem:[%s7427_s17 + $0x50] sm:$0xff] }
 0x3dc   : > { %v2949_v4 = vmul.f32 %v8064_v5, %v2940_v45  ;;  %v2950_v13 = vmul.f32 %v8064_v5, %v2941_v31  ;;  %v3065_v0 = vrot.slane %v3057_v43, %v4413_v37  ;;  %vm8084_vm5 = vcmp.lt.s32.totalorder %v5034_v58, 32 }
 0x3dd   : > { %v2988_v44 = vpop.permute.xlu0 %2987  ;;  %v2956_v39 = vpop.permute.xlu1 %2955 }
 0x3de   : > { %v2958_v25 = vsel %vm2957_vm0, %v2954_v14, %v2956_v39  ;;  %v2959_v30 = vsel %vm2957_vm0, %v2956_v39, %v2954_v14  ;;  %v3061_v14 = vrot.slane %v3057_v43, %v4411_v36  ;;  %v2951_v42 = vadd.f32 %v2949_v4, %v2919_v51  ;;  %v8075_v39 = vld [vmem:[#allocation97_spill] sm:$0xff]  ;;  %v8076_v4 = vld [vmem:[#allocation98_spill] sm:$0xff] }
 0x3df   : > { %v2972_v46 = vsel %vm6393_vm15, %v2958_v25, 0.0  ;;  %v2973_v9 = vsel %vm6402_vm6, %v2959_v30, 0.0  ;;  %v2952_v21 = vadd.f32 %v2950_v13, %v2920_v8  ;;  %vm6465_vm9 = vcmp.eq.s32.totalorder %v3065_v0, 1  ;;  %v3912_v0 = vld [vmem:[%s7431_s21 + $0x70] sm:$0xff] }
 0x3e0   : > { %v2981_v16 = vmul.f32 %v8065_v35, %v2972_v46  ;;  %v2982_v2 = vmul.f32 %v8065_v35, %v2973_v9  ;;  %vm6461_vm1 = vcmp.eq.s32.totalorder %v3061_v14, 1  ;;  %v3909_v14 = vld [vmem:[%s7431_s21 + $0x58] sm:$0xff]  ;;  %v3911_v35 = vld [vmem:[%s7431_s21 + $0x68] sm:$0xff]  ;;  %vm7604_vm0 = vcmp.lt.s32.totalorder %v5034_v58, 48 }
 0x3e1   : > { %v2986_v1 = vpop.permute.xlu1 %2985  ;;  %v3018_v26 = vpop.permute.xlu0 %3017 }
 0x3e2   : > { %v2990_v60 = vsel %vm2989_vm10, %v2986_v1, %v2988_v44  ;;  %v2991_v50 = vsel %vm2989_vm10, %v2988_v44, %v2986_v1  ;;  %v2983_v44 = vadd.f32 %v2981_v16, %v2951_v42  ;;  %v2984_v61 = vadd.f32 %v2982_v2, %v2952_v21  ;;  %v6538_v16 = vld [vmem:[%s7762_s29] sm:$0x3]  ;;  %vm8085_vm10 = vmmov %vm8084_vm5 }
 0x3e3   : > { %v3004_v15 = vsel %vm6416_vm11, %v2990_v60, 0.0  ;;  %v3005_v23 = vsel %vm6420_vm14, %v2991_v50, 0.0  ;;  %v8077_v60 = vld [vmem:[#allocation99_spill] sm:$0xff]  ;;  %vm2043_vm12 = vcmp.ge.s32.totalorder %v6538_v16, 3  ;;  %vm8086_vm11 = vnez %v7774_v63 }
 0x3e4   : > { %v3013_v22 = vmul.f32 %v8070_v17, %v3004_v15  ;;  %v3014_v53 = vmul.f32 %v8070_v17, %v3005_v23  ;;  %v2044_v2 = vsel %vm2043_vm12, 1, %v7763_v18  ;;  %vm8087_vm14 = vnez %v7776_v6 }
 0x3e5   : > { %v3020_v62 = vpop.permute.xlu1 %3019  ;;  %v3050_v25 = vpop.permute.xlu0 %3049  ;;  %v2048_v42 = vrot.slane %v2044_v2, %v4411_v36  ;;  %v2052_v21 = vrot.slane %v2044_v2, %v4413_v37 }
 0x3e6   : > { %v3022_v48 = vsel %vm3021_vm8, %v3018_v26, %v3020_v62  ;;  %v3023_v57 = vsel %vm3021_vm8, %v3020_v62, %v3018_v26  ;;  %v3015_v49 = vadd.f32 %v3013_v22, %v2983_v44  ;;  %v3016_v10 = vadd.f32 %v3014_v53, %v2984_v61  ;;  %v3877_v22 = vld [vmem:[%s7427_s17 + $0x48] sm:$0xff]  ;;  %v3916_v44 = vld [vmem:[%s7431_s21 + $0x90] sm:$0xff] }
 0x3e7   : > { %v3036_v52 = vsel %vm6442_vm2, %v3022_v48, 0.0  ;;  %v3037_v27 = vsel %vm6446_vm13, %v3023_v57, 0.0  ;;  %v3915_v53 = vld [vmem:[%s7431_s21 + $0x88] sm:$0xff]  ;;  %vm6561_vm15 = vcmp.eq.s32.totalorder %v2048_v42, 1  ;;  %vm6565_vm6 = vcmp.eq.s32.totalorder %v2052_v21, 1  ;;  %v3519_v42 = vld [vmem:[%s7432_s22] sm:$0xff] }
 0x3e8   : > { %v3045_v45 = vmul.f32 %v8075_v39, %v3036_v52  ;;  %v3046_v31 = vmul.f32 %v8075_v39, %v3037_v27  ;;  %v8080_v52 = vmov 0  ;;  %v8082_v27 = vmov 0  ;;  %v2633_v21 = vld [vmem:[%s7428_s18] sm:$0xff] }
 0x3e9   : > { %v3052_v30 = vpop.permute.xlu1 %3051  ;;  %v8081_v52 = vsel %vm6561_vm15, 4294967295, %v8080_v52  ;;  %v8083_v27 = vsel %vm6565_vm6, 4294967295, %v8082_v27  ;;  %vm2159_vm8 = vcmp.lt.s32.totalorder %v6538_v16, 13  ;;  %vm8090_vm2 = vcmp.lt.s32.totalorder %v5034_v58, 16 }
 0x3ea   : > { %v3054_v12 = vsel %vm3053_vm7, %v3050_v25, %v3052_v30  ;;  %v3055_v51 = vsel %vm3053_vm7, %v3052_v30, %v3050_v25  ;;  %v3047_v43 = vadd.f32 %v3045_v45, %v3015_v49  ;;  %v3048_v5 = vadd.f32 %v3046_v31, %v3016_v10  ;;  %v8088_v10 = vld [vmem:[#allocation42_spill] sm:$0xff]  ;;  %vm8091_vm13 = vmmov %vm8090_vm2 }
 0x3eb   : > { %v3068_v8 = vsel %vm6461_vm1, %v3054_v12, 0.0  ;;  %v3069_v59 = vsel %vm6465_vm9, %v3055_v51, 0.0  ;;  %vm8092_vm7 = vnez %v7801_v28  ;;  %vm8093_vm1 = vnez %v7803_v54 }
 0x3ec   : > { %v3077_v13 = vmul.f32 %v8076_v4, %v3068_v8  ;;  %v3078_v46 = vmul.f32 %v8076_v4, %v3069_v59  ;;  %v8089_v8 = vld [vmem:[#allocation63_spill] sm:$0xff]  ;;  %vm8096_vm9 = vcmp.lt.s32.totalorder %v5034_v58, 112 }
 0x3ed   : > { %v3918_v4 = vld [vmem:[%s7431_s21 + $0xa0] sm:$0xff]  ;;  %vm8097_vm12 = vmmov %vm8096_vm9 }
 0x3ee   : > { %v3079_v9 = vadd.f32 %v3077_v13, %v3047_v43  ;;  %v3080_v1 = vadd.f32 %v3078_v46, %v3048_v5  ;;  %v3917_v13 = vld [vmem:[%s7431_s21 + $0x98] sm:$0xff] }
 0x3f0   : > { %v6482_v50 = vadd.f32 %v8077_v60, %v3079_v9  ;;  %v6485_v26 = vadd.f32 %v8077_v60, %v3080_v1 }
 0x3f2   : > { %3091 = vrot.lane.b32.xlu1 %v6485_v26, %s7996_s25  ;;  %3089 = vrot.lane.b32.xlu0 %v6482_v50, %s7996_s25  ;;  %v6493_v15 = vmul.f32 %v6360_v47, %v6485_v26  ;;  %v6497_v23 = vmul.f32 %v6360_v47, %v6482_v50  ;;  %v3910_v47 = vld [vmem:[%s7431_s21 + $0x60] sm:$0xff]  ;;  %s703_s25 = scalar_lea.vmem [#allocation2], %s3803_s4  ;;  %s4033_s4 = sshll.u32 %s4135_s5, 4  ;;  %s4034_s4 = int_to_ptr.vmem [resolvable:$false] %s4033_s4 }
 0x3f3   : > { %s4035_s3 = scalar_lea.vmem %s4034_s4, 512 }
 0x3f4   : > { %8078 = vst [vmem:[#allocation36_spill] sm:$0xff] %v6493_v15  ;;  %8079 = vst [vmem:[#allocation37_spill] sm:$0xff] %v6497_v23  ;;  %v8179_v23 = vld [vmem:[#allocation32_spill] sm:$0xff] }
 0x3f6   : > { %3119 = vrot.lane.b32.xlu1 %v6485_v26, %s8003_s24  ;;  %3117 = vrot.lane.b32.xlu0 %v6482_v50, %s8003_s24  ;;  %s3740_s24 = sshll.u32 %s703_s25, 4  ;;  %s3741_s24 = int_to_ptr.vmem [resolvable:$true] %s3740_s24 }
 0x3f7   : > { %p4036_p0 = scmp.lt.s32.totalorder %s3741_s24, %s4034_s4 }
 0x3fa   : > { %3175 = vrot.lane.b32.xlu1 %v6485_v26, %s8017_s2  ;;  %3173 = vrot.lane.b32.xlu0 %v6482_v50, %s8017_s2 }
 0x3fe   : > { %3204 = vrot.lane.b32.xlu1 %v6482_v50, %s8024_s27  ;;  %3206 = vrot.lane.b32.xlu0 %v6485_v26, %s8024_s27 }
 0x402   : > { %3237 = vrot.lane.b32.xlu1 %v6485_v26, %s4133_s0  ;;  %3235 = vrot.lane.b32.xlu0 %v6482_v50, %s4133_s0  ;;  %s7373_s0 = scalar_lea.hbm %s7433_s23, %s3925_s26 }
 0x406   : > { %3254 = vrot.lane.b32.xlu1 %v6482_v50, %s4134_s1  ;;  %3256 = vrot.lane.b32.xlu0 %v6485_v26, %s4134_s1  ;;  %s3726_s1 = scalar_lea.sflag [#allocation3], %s701_s6 }
 0x40a   : > { %3275 = vrot.lane.b32.xlu1 %v6485_v26, %s4132_s28  ;;  %3273 = vrot.lane.b32.xlu0 %v6482_v50, %s4132_s28  ;;  %s4029_s28 = scalar_lea.vmem %s3741_s24, 256 }
 0x40b   : > { %p4030_p11 = scmp.ne.s32.totalorder %s3741_s24, %s4029_s28  ;;  %p4037_p1 = scmp.lt.s32.totalorder %s4035_s3, %s4029_s28 }
 0x40d   : > { %p4031_p12 = pnand %p4030_p11, %p4294_p5  ;;  %p4038_p2 = por %p4037_p1, %p4036_p0 }
 0x40e   : > { %3348 = vperm.xlu1 %4010, %v3910_v47   ;;  %3335 = vperm.xlu0 %4009, %v3909_v14  }
 0x40f   : > { %p4032_p13 = pneg %p4031_p12 }
 0x411   : > { %p4039_p3 = pnand %p4038_p2, %p4032_p13 }
 0x412   : > { %3374 = vperm.xlu1 %4010, %v3912_v0   ;;  %3361 = vperm.xlu0 %4009, %v3911_v35   ;;  %v8094_v35 = vld [vmem:[#allocation43_spill] sm:$0xff] }
 0x416   : > { %3412 = vperm.xlu1 %4010, %v3914_v19   ;;  %3387 = vperm.xlu0 %4009, %v3913_v20  }
 0x417   : > { %v2037_v62 = vpop.permute.xlu0 %2036  ;;  %v2039_v17 = vpop.permute.xlu1 %2038 }
 0x418   : > { %v2041_v48 = vsel %vm7604_vm0, %v2037_v62, %v2039_v17  ;;  %v2042_v57 = vsel %vm7604_vm0, %v2039_v17, %v2037_v62  ;;  %v2160_v62 = vsel %vm2159_vm8, 1, %v7763_v18  ;;  %vm8102_vm8 = vcmp.lt.s32.totalorder %v5034_v58, 96 }
 0x419   : > { %v2055_v61 = vsel %vm6561_vm15, %v2042_v57, 0.0  ;;  %v2056_v39 = vsel %vm6565_vm6, %v2041_v48, 0.0  ;;  %vm2439_vm0 = vcmp.ge.s32.totalorder %v6538_v16, 4 }
 0x41a   : > { %2601 = vperm.xlu1 %4010, %v3877_v22   ;;  %3437 = vperm.xlu0 %4009, %v3915_v53   ;;  %v2063_v12 = vmul.f32 %v8088_v10, %v2055_v61  ;;  %v2064_v51 = vmul.f32 %v8088_v10, %v2056_v39  ;;  %v8095_v22 = vld [vmem:[#allocation65_spill] sm:$0xff] }
 0x41b   : > { %v2066_v33 = vpop.permute.xlu1 %2065  ;;  %v2068_v45 = vpop.permute.xlu0 %2067  ;;  %v2110_v53 = vmul.f32 %v8095_v22, %v6031_v7  ;;  %v2111_v48 = vmul.f32 %v8095_v22, %v6034_v34  ;;  %v8099_v39 = vld [vmem:[#allocation101_spill] sm:$0xff]  ;;  %v2164_v7 = vrot.slane %v2160_v62, %v4411_v36  ;;  %v2168_v34 = vrot.slane %v2160_v62, %v4413_v37 }
 0x41c   : > { %v2069_v31 = vsel %vm8084_vm5, %v2066_v33, %v2068_v45  ;;  %v2070_v25 = vsel %vm8085_vm10, %v2068_v45, %v2066_v33  ;;  %vm8098_vm5 = vnez %v7872_v11  ;;  %vm8100_vm10 = vnez %v8099_v39  ;;  %v8113_v22 = vld [vmem:[#allocation45_spill] sm:$0xff] }
 0x41d   : > { %v2071_v30 = vsel %vm8086_vm11, %v2070_v25, 0.0  ;;  %v2072_v49 = vsel %vm8087_vm14, %v2069_v31, 0.0 }
 0x41e   : > { %2626 = vperm.xlu1 %4010, %v3878_v56   ;;  %3462 = vperm.xlu0 %4009, %v3916_v44   ;;  %v2080_v59 = vmul.f32 %v8089_v8, %v2071_v30  ;;  %v2081_v43 = vmul.f32 %v8089_v8, %v2072_v49  ;;  %v8101_v30 = vld [vmem:[#allocation44_spill] sm:$0xff] }
 0x41f   : > { %v2087_v5 = vpop.permute.xlu1 %2086  ;;  %v2085_v46 = vpop.permute.xlu0 %2084 }
 0x420   : > { %v2082_v9 = vadd.f32 %v2080_v59, %v2063_v12  ;;  %v2083_v1 = vadd.f32 %v2081_v43, %v2064_v51  ;;  %v2088_v60 = vsel %vm8090_vm2, %v2085_v46, %v2087_v5  ;;  %v2089_v47 = vsel %vm8091_vm13, %v2087_v5, %v2085_v46  ;;  %vm8103_vm2 = vmmov %vm8102_vm8 }
 0x421   : > { %v2090_v14 = vsel %vm8092_vm7, %v2089_v47, 0.0  ;;  %v2091_v0 = vsel %vm8093_vm1, %v2088_v60, 0.0  ;;  %vm7605_vm13 = vcmp.lt.s32.totalorder %v5034_v58, 80  ;;  %vm3210_vm1 = vcmp.ge.s32.totalorder %v6538_v16, 6 }
 0x422   : > { %3512 = vperm.xlu1 %4010, %v3918_v4   ;;  %3487 = vperm.xlu0 %4009, %v3917_v13   ;;  %v2099_v2 = vmul.f32 %v8094_v35, %v2090_v14  ;;  %v2100_v19 = vmul.f32 %v8094_v35, %v2091_v0  ;;  %v8107_v14 = vmov 0  ;;  %v8110_v0 = vmov 0 }
 0x423   : > { %v2117_v20 = vpop.permute.xlu1 %2116  ;;  %v2115_v17 = vpop.permute.xlu0 %2114  ;;  %vm8140_vm7 = vcmp.lt.s32.totalorder %v5034_v58, 32  ;;  %v3211_v4 = vsel %vm3210_vm1, 1, %v7763_v18  ;;  %vm3469_vm1 = vcmp.lt.s32.totalorder %v6538_v16, 7 }
 0x424   : > { %v2101_v57 = vadd.f32 %v2099_v2, %v2082_v9  ;;  %v2102_v33 = vadd.f32 %v2100_v19, %v2083_v1  ;;  %v2118_v56 = vsel %vm8096_vm9, %v2115_v17, %v2117_v20  ;;  %v2119_v44 = vsel %vm8097_vm12, %v2117_v20, %v2115_v17  ;;  %v8106_v1 = vld [vmem:[#allocation67_spill] sm:$0xff] }
 0x425   : > { %v2120_v61 = vsel %vm8098_vm5, %v2118_v56, 0.0  ;;  %v2121_v45 = vsel %vm8100_vm10, %v2119_v44, 0.0  ;;  %vm6642_vm9 = vcmp.eq.s32.totalorder %v2164_v7, 1  ;;  %vm6646_vm12 = vcmp.eq.s32.totalorder %v2168_v34, 1 }
 0x426   : > { %3522 = vperm.xlu1 %4010, %v3519_v42   ;;  %2636 = vperm.xlu0 %4009, %v2633_v21   ;;  %v2112_v31 = vadd.f32 %v2110_v53, %v2101_v57  ;;  %v2113_v25 = vadd.f32 %v2111_v48, %v2102_v33  ;;  %v2129_v49 = vmul.f32 %v8101_v30, %v2120_v61  ;;  %v8108_v14 = vsel %vm6642_vm9, 4294967295, %v8107_v14 }
 0x427   : > { %v2130_v10 = vmul.f32 %v8101_v30, %v2121_v45  ;;  %v2134_v12 = vpop.permute.xlu1 %2133  ;;  %8109 = vst [vmem:[#allocation53_spill] sm:$0xff] %v8108_v14  ;;  %v8111_v0 = vsel %vm6646_vm12, 4294967295, %v8110_v0  ;;  %vm3179_vm10 = vcmp.ge.s32.totalorder %v6538_v16, 7  ;;  %vm2608_vm5 = vcmp.lt.s32.totalorder %v6538_v16, 11 }
 0x428   : > { %v2136_v51 = vpop.permute.xlu0 %2135  ;;  %v2131_v8 = vadd.f32 %v2129_v49, %v2112_v31  ;;  %8112 = vst [vmem:[#allocation55_spill] sm:$0xff] %v8111_v0 }
 0x429   : > { %v2132_v59 = vadd.f32 %v2130_v10, %v2113_v25  ;;  %v2137_v43 = vsel %vm8102_vm8, %v2134_v12, %v2136_v51  ;;  %v2138_v5 = vsel %vm8103_vm2, %v2136_v51, %v2134_v12  ;;  %vm3148_vm8 = vcmp.ge.s32.totalorder %v6538_v16, 8 }
 0x42a   : > { %v2139_v13 = vsel %vm5687_vm3, %v2137_v43, 0.0  ;;  %v2140_v9 = vsel %vm5709_vm4, %v2138_v5, 0.0  ;;  %v3149_v10 = vsel %vm3148_vm8, 1, %v7763_v18  ;;  %vm3444_vm2 = vcmp.lt.s32.totalorder %v6538_v16, 8 }
 0x42b   : > { %v2148_v60 = vmul.f32 %v8106_v1, %v2139_v13  ;;  %v2149_v47 = vmul.f32 %v8106_v1, %v2140_v9  ;;  %v2155_v35 = vpop.permute.xlu1 %2154  ;;  %vm3095_vm4 = vcmp.ge.s32.totalorder %v6538_v16, 10  ;;  %v6697_v43 = vsel %vm3444_vm2, 1, %v7763_v18 }
 0x42c   : > { %v2153_v2 = vpop.permute.xlu0 %2152  ;;  %v2440_v5 = vsel %vm2439_vm0, 1, %v7763_v18  ;;  %vm3123_vm8 = vcmp.ge.s32.totalorder %v6538_v16, 9  ;;  %vm2583_vm3 = vcmp.lt.s32.totalorder %v6538_v16, 12  ;;  %v3096_v9 = vsel %vm3095_vm4, 1, %v7763_v18 }
 0x42d   : > { %v2150_v19 = vadd.f32 %v2148_v60, %v2131_v8  ;;  %v2151_v20 = vadd.f32 %v2149_v47, %v2132_v59  ;;  %v2157_v42 = vsel %vm7605_vm13, %v2153_v2, %v2155_v35  ;;  %v2158_v21 = vsel %vm7605_vm13, %v2155_v35, %v2153_v2 }
 0x42e   : > { %v2171_v62 = vsel %vm6642_vm9, %v2157_v42, 0.0  ;;  %v2172_v17 = vsel %vm6646_vm12, %v2158_v21, 0.0  ;;  %vm2410_vm13 = vcmp.ge.s32.totalorder %v6538_v16, 5  ;;  %v3153_v8 = vrot.slane %v3149_v10, %v4411_v36 }
 0x42f   : > { %v2180_v53 = vmul.f32 %v8113_v22, %v2171_v62  ;;  %v2181_v48 = vmul.f32 %v8113_v22, %v2172_v17  ;;  %v3157_v59 = vrot.slane %v3149_v10, %v4413_v37  ;;  %v2411_v13 = vsel %vm2410_vm13, 1, %v7763_v18 }
 0x430   : > { %v3449_v1 = vrot.slane %v6697_v43, %v4411_v36  ;;  %v2444_v47 = vrot.slane %v2440_v5, %v4411_v36  ;;  %v2448_v35 = vrot.slane %v2440_v5, %v4413_v37  ;;  %vm6717_vm0 = vcmp.eq.s32.totalorder %v3153_v8, 1 }
 0x431   : > { %v6660_v57 = vadd.f32 %v2180_v53, %v2150_v19  ;;  %v6662_v33 = vadd.f32 %v2181_v48, %v2151_v20  ;;  %v6664_v56 = vpop.permute.xlu0 %2404  ;;  %v6666_v44 = vpop.permute.xlu1 %2406  ;;  %v3124_v20 = vsel %vm3123_vm8, 1, %v7763_v18  ;;  %vm6721_vm4 = vcmp.eq.s32.totalorder %v3157_v59, 1  ;;  %v8123_v53 = vld [vmem:[#allocation82_spill] sm:$0xff] }
 0x432   : > { %v6726_v62 = vsel %vm2583_vm3, 1, %v7763_v18  ;;  %v2415_v17 = vrot.slane %v2411_v13, %v4411_v36  ;;  %v2419_v22 = vrot.slane %v2411_v13, %v4413_v37  ;;  %v6733_v48 = vmul.f32 %v8123_v53, %v6265_v41 }
 0x433   : > { %8114 = vst [vmem:[#allocation38_spill] sm:$0xff] %v6660_v57  ;;  %8115 = vst [vmem:[#allocation39_spill] sm:$0xff] %v6662_v33  ;;  %v3180_v10 = vsel %vm3179_vm10, 1, %v7763_v18  ;;  %v3100_v8 = vrot.slane %v3096_v9, %v4411_v36  ;;  %v3104_v59 = vrot.slane %v3096_v9, %v4413_v37  ;;  %v6743_v5 = vsel %vm2608_vm5, 1, %v7763_v18 }
 0x434   : > { %8124 = vst [vmem:[#allocation59_spill] sm:$0xff] %v6733_v48  ;;  %8125 = vst [vmem:[#allocation41_spill] sm:$0xff] %v6743_v5  ;;  %vm3394_vm3 = vcmp.lt.s32.totalorder %v6538_v16, 10  ;;  %v6748_v13 = vmul.f32 %v8123_v53, %v6268_v29  ;;  %v3128_v41 = vrot.slane %v3124_v20, %v4411_v36  ;;  %v3132_v60 = vrot.slane %v3124_v20, %v4413_v37  ;;  %v8154_v53 = vld [vmem:[#allocation30_spill] sm:$0xff]  ;;  %v8164_v5 = vld [vmem:[#allocation33_spill] sm:$0xff] }
 0x435   : > { %v6668_v61 = vpop.permute.xlu0 %2434  ;;  %v6670_v45 = vpop.permute.xlu1 %2432  ;;  %vm6754_vm10 = vcmp.eq.s32.totalorder %v2444_v47, 1  ;;  %vm6758_vm2 = vcmp.eq.s32.totalorder %v2448_v35, 1  ;;  %v3184_v29 = vrot.slane %v3180_v10, %v4411_v36  ;;  %vm6765_vm5 = vcmp.eq.s32.totalorder %v2415_v17, 1 }
 0x436   : > { %8126 = vst [vmem:[#allocation61_spill] sm:$0xff] %v6748_v13  ;;  %vm6769_vm8 = vcmp.eq.s32.totalorder %v2419_v22, 1  ;;  %v3188_v35 = vrot.slane %v3180_v10, %v4413_v37  ;;  %v6777_v13 = vsel %vm3394_vm3, 1, %v7763_v18  ;;  %vm3419_vm13 = vcmp.lt.s32.totalorder %v6538_v16, 9  ;;  %vm8141_vm3 = vmmov %vm8140_vm7 }
 0x437   : > { %8135 = vst [vmem:[#allocation46_spill] sm:$0xff] %v6777_v13  ;;  %vm6780_vm12 = vcmp.eq.s32.totalorder %v3100_v8, 1  ;;  %vm6784_vm9 = vcmp.eq.s32.totalorder %v3104_v59, 1  ;;  %vm6799_vm14 = vcmp.eq.s32.totalorder %v3128_v41, 1  ;;  %vm6803_vm11 = vcmp.eq.s32.totalorder %v3132_v60, 1 }
 0x438   : > { %vm6807_vm6 = vcmp.eq.s32.totalorder %v3184_v29, 1  ;;  %vm6826_vm15 = vcmp.eq.s32.totalorder %v3188_v35, 1  ;;  %v3160_v17 = vsel %vm6717_vm0, %v6485_v26, 0.0  ;;  %v3161_v8 = vsel %vm6721_vm4, %v6482_v50, 0.0  ;;  %v8178_v29 = vld [vmem:[#allocation52_spill] sm:$0xff] }
 0x439   : > { %v6672_v7 = vpop.permute.xlu0 %2464  ;;  %v6674_v34 = vpop.permute.xlu1 %2466  ;;  %v3215_v42 = vrot.slane %v3211_v4, %v4411_v36  ;;  %v3169_v0 = vmul.f32 %v8164_v5, %v3160_v17  ;;  %vm8165_vm0 = vcmp.lt.s32.totalorder %v5034_v58, 112 }
 0x43a   : > { %vm8167_vm4 = vmmov %vm8165_vm0 }
 0x43d   : > { %v6676_v31 = vpop.permute.xlu0 %2485  ;;  %v6678_v25 = vpop.permute.xlu1 %2483 }
 0x441   : > { %v6680_v30 = vpop.permute.xlu0 %2502  ;;  %v6682_v49 = vpop.permute.xlu1 %2504 }
 0x445   : > { %v6688_v12 = vpop.permute.xlu0 %2532  ;;  %v6690_v51 = vpop.permute.xlu1 %2534 }
 0x446   : > { %8116 = vst [vmem:[#allocation57_spill] sm:$0xff] %v6688_v12 }
 0x449   : > { %v6712_v2 = vpop.permute.xlu0 %2553  ;;  %v6714_v19 = vpop.permute.xlu1 %2551 }
 0x44a   : > { %8117 = vst [vmem:[#allocation76_spill] sm:$0xff] %v6712_v2  ;;  %8118 = vst [vmem:[#allocation40_spill] sm:$0xff] %v6714_v19 }
 0x464   : > { %v3090_v33 = vpop.permute.xlu0 %3089  ;;  %v3092_v57 = vpop.permute.xlu1 %3091 }
 0x465   : > { %v6793_v10 = vsel %vm8140_vm7, %v3090_v33, %v3092_v57  ;;  %v6797_v55 = vsel %vm8141_vm3, %v3092_v57, %v3090_v33  ;;  %v6816_v33 = vsel %vm3419_vm13, 1, %v7763_v18  ;;  %vm8148_vm7 = vcmp.lt.s32.totalorder %v5034_v58, 16 }
 0x466   : > { %vm8149_vm3 = vmmov %vm8148_vm7  ;;  %v3107_v57 = vsel %vm6780_vm12, %v6793_v10, 0.0  ;;  %v3108_v19 = vsel %vm6784_vm9, %v6797_v55, 0.0  ;;  %vm6843_vm13 = vcmp.eq.s32.totalorder %v3449_v1, 1  ;;  %vm8159_vm9 = vcmp.lt.s32.totalorder %v5034_v58, 80 }
 0x467   : > { %v6874_v21 = vsel %vm8159_vm9, %v6664_v56, %v6666_v44  ;;  %vm8161_vm12 = vmmov %vm8159_vm9  ;;  %v3424_v22 = vrot.slane %v6816_v33, %v4411_v36 }
 0x468   : > { %v3118_v48 = vpop.permute.xlu0 %3117  ;;  %v3120_v46 = vpop.permute.xlu1 %3119  ;;  %8160 = vst [vmem:[#allocation73_spill] sm:$0xff] %v6874_v21  ;;  %v6880_v11 = vsel %vm8161_vm12, %v6666_v44, %v6664_v56  ;;  %v2423_v17 = vsel %vm6769_vm8, %v6874_v21, 0.0  ;;  %vm8188_vm12 = vcmp.lt.s32.totalorder %v5034_v58, 64 }
 0x469   : > { %v6820_v60 = vsel %vm8148_vm7, %v3118_v48, %v3120_v46  ;;  %v6824_v41 = vsel %vm8149_vm3, %v3120_v46, %v3118_v48  ;;  %8162 = vst [vmem:[#allocation48_spill] sm:$0xff] %v6880_v11  ;;  %vm6906_vm7 = vcmp.eq.s32.totalorder %v3215_v42, 1 }
 0x46a   : > { %v3135_v2 = vsel %vm6799_vm14, %v6820_v60, 0.0  ;;  %v3136_v46 = vsel %vm6803_vm11, %v6824_v41, 0.0  ;;  %vm8155_vm11 = vcmp.lt.s32.totalorder %v5034_v58, 64 }
 0x46b   : > { %v3144_v35 = vmul.f32 %v8154_v53, %v3135_v2  ;;  %v3145_v39 = vmul.f32 %v8154_v53, %v3136_v46  ;;  %v6860_v1 = vsel %vm8155_vm11, %v6670_v45, %v6668_v61  ;;  %vm8157_vm14 = vmmov %vm8155_vm11  ;;  %v3219_v53 = vrot.slane %v3211_v4, %v4413_v37 }
 0x46c   : > { %8156 = vst [vmem:[#allocation71_spill] sm:$0xff] %v6860_v1  ;;  %v6866_v2 = vsel %vm8157_vm14, %v6668_v61, %v6670_v45  ;;  %v3174_v59 = vpop.permute.xlu0 %3173  ;;  %v3176_v46 = vpop.permute.xlu1 %3175  ;;  %v8163_v61 = vld [vmem:[#allocation31_spill] sm:$0xff]  ;;  %v3170_v4 = vmul.f32 %v8164_v5, %v3161_v8  ;;  %v2452_v44 = vsel %vm6758_vm2, %v6860_v1, 0.0  ;;  %v2422_v5 = vsel %vm6765_vm5, %v6880_v11, 0.0 }
 0x46d   : > { %8158 = vst [vmem:[#allocation47_spill] sm:$0xff] %v6866_v2  ;;  %v3115_v45 = vmul.f32 %v8163_v61, %v3107_v57  ;;  %v3116_v13 = vmul.f32 %v8163_v61, %v3108_v19  ;;  %v6888_v14 = vsel %vm8165_vm0, %v3174_v59, %v3176_v46  ;;  %v6892_v15 = vsel %vm8167_vm4, %v3176_v46, %v3174_v59  ;;  %vm8189_vm0 = vmmov %vm8188_vm12 }
 0x46e   : > { %8166 = vst [vmem:[#allocation49_spill] sm:$0xff] %v6888_v14  ;;  %8168 = vst [vmem:[#allocation77_spill] sm:$0xff] %v6892_v15  ;;  %v2451_v56 = vsel %vm6754_vm10, %v6866_v2, 0.0  ;;  %vm6910_vm3 = vcmp.eq.s32.totalorder %v3219_v53, 1  ;;  %vm8173_vm11 = vcmp.lt.s32.totalorder %v5034_v58, 96  ;;  %v8177_v53 = vld [vmem:[#allocation80_spill] sm:$0xff]  ;;  %v3428_v1 = vrot.slane %v6816_v33, %v4413_v37 }
 0x46f   : > { %v3146_v19 = vadd.f32 %v3144_v35, %v3115_v45  ;;  %v3147_v57 = vadd.f32 %v3145_v39, %v3116_v13  ;;  %v3191_v39 = vsel %vm6807_vm6, %v6892_v15, 0.0  ;;  %v3192_v13 = vsel %vm6826_vm15, %v6888_v14, 0.0  ;;  %vm8175_vm14 = vmmov %vm8173_vm11  ;;  %v8253_v33 = vld [vmem:[#allocation27_spill] sm:$0xff] }
 0x470   : > { %v3207_v8 = vpop.permute.xlu0 %3206  ;;  %v3205_v61 = vpop.permute.xlu1 %3204  ;;  %v2460_v45 = vmul.f32 %v8177_v53, %v2451_v56  ;;  %v2461_v2 = vmul.f32 %v8177_v53, %v2452_v44  ;;  %v2430_v15 = vmul.f32 %v8178_v29, %v2422_v5  ;;  %v2431_v14 = vmul.f32 %v8178_v29, %v2423_v17  ;;  %vm8180_vm15 = vmmov %vm8159_vm9 }
 0x471   : > { %v6922_v35 = vsel %vm8173_vm11, %v3205_v61, %v3207_v8  ;;  %v6926_v42 = vsel %vm8175_vm14, %v3207_v8, %v3205_v61  ;;  %v3171_v11 = vadd.f32 %v3169_v0, %v3146_v19  ;;  %v3172_v21 = vadd.f32 %v3170_v4, %v3147_v57  ;;  %vm8181_vm6 = vmmov %vm8159_vm9 }
 0x472   : > { %8174 = vst [vmem:[#allocation50_spill] sm:$0xff] %v6922_v35  ;;  %8176 = vst [vmem:[#allocation78_spill] sm:$0xff] %v6926_v42  ;;  %v3200_v12 = vmul.f32 %v8179_v23, %v3191_v39  ;;  %v3201_v8 = vmul.f32 %v8179_v23, %v3192_v13  ;;  %v3222_v56 = vsel %vm6906_vm7, %v6926_v42, 0.0  ;;  %v3223_v44 = vsel %vm6910_vm3, %v6922_v35, 0.0  ;;  %v8255_v23 = vld [vmem:[#allocation59_spill] sm:$0xff] }
 0x473   : > { %v6958_v4 = vsel %vm3469_vm1, 1, %v7763_v18  ;;  %v2462_v19 = vadd.f32 %v2460_v45, %v2430_v15  ;;  %v2463_v57 = vadd.f32 %v2461_v2, %v2431_v14  ;;  %vm8182_vm9 = vcmp.lt.s32.totalorder %v5034_v58, 48  ;;  %v8184_v14 = vld [vmem:[#allocation35_spill] sm:$0xff] }
 0x474   : > { %v3236_v61 = vpop.permute.xlu0 %3235  ;;  %v3238_v53 = vpop.permute.xlu1 %3237  ;;  %v6970_v46 = vsel %vm8182_vm9, %v6672_v7, %v6674_v34  ;;  %vm8183_vm1 = vmmov %vm8182_vm9  ;;  %v3231_v2 = vmul.f32 %v8184_v14, %v3222_v56  ;;  %v3232_v20 = vmul.f32 %v8184_v14, %v3223_v44  ;;  %v3202_v13 = vadd.f32 %v3200_v12, %v3171_v11 }
 0x475   : > { %v6946_v5 = vsel %vm8180_vm15, %v3236_v61, %v3238_v53  ;;  %v6950_v0 = vsel %vm8181_vm6, %v3238_v53, %v3236_v61  ;;  %v6976_v15 = vsel %vm8183_vm1, %v6674_v34, %v6672_v7  ;;  %v3203_v45 = vadd.f32 %v3201_v8, %v3172_v21  ;;  %v8187_v7 = vld [vmem:[#allocation34_spill] sm:$0xff]  ;;  %vm8199_vm6 = vmmov %vm8183_vm1 }
 0x476   : > { %v3241_v17 = vsel %vm6765_vm5, %v6950_v0, 0.0  ;;  %v3242_v59 = vsel %vm6769_vm8, %v6946_v5, 0.0  ;;  %vm8185_vm5 = vcmp.lt.s32.totalorder %v5034_v58, 32  ;;  %v8190_v14 = vrot.slane %v6697_v43, %v4413_v37  ;;  %vm8200_vm9 = vmmov %vm8183_vm1 }
 0x477   : > { %v2487_v47 = vsel %vm8185_vm5, %v6678_v25, %v6676_v31  ;;  %vm8186_vm8 = vmmov %vm8185_vm5  ;;  %v3250_v34 = vmul.f32 %v8187_v7, %v3241_v17  ;;  %v3251_v56 = vmul.f32 %v8187_v7, %v3242_v59  ;;  %vm3494_vm7 = vcmp.lt.s32.totalorder %v6538_v16, 6 }
 0x478   : > { %v2488_v39 = vsel %vm8186_vm8, %v6676_v31, %v6678_v25  ;;  %v3257_v29 = vpop.permute.xlu0 %3256  ;;  %v3255_v61 = vpop.permute.xlu1 %3254  ;;  %vm7001_vm4 = vcmp.eq.s32.totalorder %v8190_v14, 1  ;;  %vm8193_vm3 = vnez %v8081_v52  ;;  %vm8194_vm11 = vnez %v8083_v27 }
 0x479   : > { %v6992_v44 = vsel %vm8188_vm12, %v3255_v61, %v3257_v29  ;;  %v6996_v53 = vsel %vm8189_vm0, %v3257_v29, %v3255_v61  ;;  %v2470_v31 = vsel %vm8193_vm3, %v6976_v15, 0.0  ;;  %v2471_v25 = vsel %vm8194_vm11, %v6970_v46, 0.0 }
 0x47a   : > { %v3260_v12 = vsel %vm6754_vm10, %v6996_v53, 0.0  ;;  %v3261_v43 = vsel %vm6758_vm2, %v6992_v44, 0.0  ;;  %v3233_v21 = vadd.f32 %v3231_v2, %v3202_v13  ;;  %v3234_v8 = vadd.f32 %v3232_v20, %v3203_v45 }
 0x47b   : > { %v3269_v17 = vmul.f32 %v6331_v38, %v3260_v12  ;;  %v3270_v59 = vmul.f32 %v6331_v38, %v3261_v43  ;;  %vm8195_vm14 = vnez %v7774_v63  ;;  %vm8196_vm15 = vnez %v7776_v6  ;;  %v8201_v63 = vld [vmem:[#allocation54_spill] sm:$0xff] }
 0x47c   : > { %v2489_v29 = vsel %vm8195_vm14, %v2488_v39, 0.0  ;;  %v2490_v61 = vsel %vm8196_vm15, %v2487_v47, 0.0  ;;  %vm8197_vm10 = vcmp.lt.s32.totalorder %v5034_v58, 16  ;;  %v3274_v2 = vpop.permute.xlu0 %3273  ;;  %v3276_v20 = vpop.permute.xlu1 %3275  ;;  %v3252_v13 = vadd.f32 %v3250_v34, %v3233_v21 }
 0x47d   : > { %v2506_v9 = vsel %vm8197_vm10, %v6680_v30, %v6682_v49  ;;  %vm8198_vm2 = vmmov %vm8197_vm10  ;;  %v3253_v38 = vadd.f32 %v3251_v56, %v3234_v8  ;;  %v7034_v39 = vsel %vm8199_vm6, %v3274_v2, %v3276_v20  ;;  %v7038_v47 = vsel %vm8200_vm9, %v3276_v20, %v3274_v2  ;;  %v8204_v2 = vld [vmem:[#allocation81_spill] sm:$0xff] }
 0x47e   : > { %v2507_v32 = vsel %vm8198_vm2, %v6682_v49, %v6680_v30  ;;  %v3292_v45 = vsel %vm8195_vm14, %v6797_v55, 0.0  ;;  %v3293_v30 = vsel %vm8196_vm15, %v6793_v10, 0.0  ;;  %v3279_v49 = vsel %vm8193_vm3, %v7038_v47, 0.0 }
 0x47f   : > { %v3280_v7 = vsel %vm8194_vm11, %v7034_v39, 0.0  ;;  %v3271_v34 = vadd.f32 %v3269_v17, %v3252_v13  ;;  %v3272_v56 = vadd.f32 %v3270_v59, %v3253_v38  ;;  %v3288_v14 = vmul.f32 %v6329_v40, %v3279_v49 }
 0x480   : > { %v3289_v12 = vmul.f32 %v6329_v40, %v3280_v7  ;;  %v2479_v43 = vmul.f32 %v8201_v63, %v2470_v31  ;;  %v2480_v21 = vmul.f32 %v8201_v63, %v2471_v25  ;;  %vm8202_vm1 = vnez %v7801_v28 }
 0x481   : > { %v3305_v6 = vsel %vm8202_vm1, %v6824_v41, 0.0  ;;  %vm8203_vm5 = vnez %v7803_v54  ;;  %v3301_v27 = vmul.f32 %v6348_v24, %v3292_v45  ;;  %v3302_v8 = vmul.f32 %v6348_v24, %v3293_v30 }
 0x482   : > { %v3306_v52 = vsel %vm8203_vm5, %v6820_v60, 0.0  ;;  %v3290_v17 = vadd.f32 %v3288_v14, %v3271_v34  ;;  %v3291_v59 = vadd.f32 %v3289_v12, %v3272_v56  ;;  %v2498_v40 = vmul.f32 %v8204_v2, %v2489_v29  ;;  %v8212_v12 = vld [vmem:[#allocation57_spill] sm:$0xff] }
 0x483   : > { %v2499_v31 = vmul.f32 %v8204_v2, %v2490_v61  ;;  %v2508_v25 = vsel %vm8202_vm1, %v2507_v32, 0.0  ;;  %v2509_v20 = vsel %vm8203_vm5, %v2506_v9, 0.0  ;;  %v3314_v13 = vmul.f32 %v6346_v3, %v3305_v6  ;;  %v8205_v61 = vld [vmem:[#allocation56_spill] sm:$0xff] }
 0x484   : > { %v3315_v38 = vmul.f32 %v6346_v3, %v3306_v52  ;;  %v3303_v49 = vadd.f32 %v3301_v27, %v3290_v17  ;;  %v3304_v45 = vadd.f32 %v3302_v8, %v3291_v59  ;;  %v2481_v7 = vadd.f32 %v2479_v43, %v2462_v19  ;;  %v8215_v43 = vld [vmem:[#allocation37_spill] sm:$0xff]  ;;  %v8216_v6 = vld [vmem:[#allocation36_spill] sm:$0xff] }
 0x485   : > { %v2482_v24 = vadd.f32 %v2480_v21, %v2463_v57  ;;  %v7078_v28 = vsel %vm3494_vm7, 1, %v7763_v18  ;;  %v2517_v54 = vmul.f32 %v8205_v61, %v2508_v25  ;;  %v2518_v9 = vmul.f32 %v8205_v61, %v2509_v20  ;;  %v8217_v27 = vld [vmem:[#allocation73_spill] sm:$0xff]  ;;  %v8220_v59 = vld [vmem:[#allocation48_spill] sm:$0xff] }
 0x486   : > { %v3316_v32 = vadd.f32 %v3314_v13, %v3303_v49  ;;  %v3317_v30 = vadd.f32 %v3315_v38, %v3304_v45  ;;  %v2500_v3 = vadd.f32 %v2498_v40, %v2481_v7  ;;  %v8206_v19 = vrot.slane %v6726_v62, %v4411_v36  ;;  %v8218_v8 = vld [vmem:[#allocation53_spill] sm:$0xff]  ;;  %v8230_v13 = vld [vmem:[#allocation46_spill] sm:$0xff] }
 0x487   : > { %v2501_v34 = vadd.f32 %v2499_v31, %v2482_v24  ;;  %v8209_v16 = vrot.slane %v6726_v62, %v4413_v37  ;;  %v3474_v56 = vrot.slane %v6958_v4, %v4411_v36  ;;  %v3478_v14 = vrot.slane %v6958_v4, %v4413_v37  ;;  %v8221_v4 = vld [vmem:[#allocation55_spill] sm:$0xff]  ;;  %v8223_v40 = vld [vmem:[#allocation41_spill] sm:$0xff] }
 0x488   : > { %vm7085_vm8 = vcmp.eq.s32.totalorder %v8206_v19, 1  ;;  %vm8213_vm0 = vcmp.lt.s32.totalorder %v5034_v58, 112  ;;  %v3327_v21 = vadd.f32 %v8215_v43, %v3316_v32  ;;  %v3328_v52 = vadd.f32 %v8216_v6, %v3317_v30  ;;  %v8240_v6 = vld [vmem:[#allocation77_spill] sm:$0xff] }
 0x489   : > { %vm7092_vm12 = vcmp.eq.s32.totalorder %v8209_v16, 1  ;;  %v2536_v63 = vsel %vm8213_vm0, %v8212_v12, %v6690_v51  ;;  %vm8214_vm7 = vmmov %vm8213_vm0  ;;  %vm8219_vm3 = vnez %v8218_v8  ;;  %vm8222_vm11 = vnez %v8221_v4  ;;  %v3336_v19 = vpop.permute.xlu0 %3335  ;;  %v8237_v16 = vld [vmem:[#allocation49_spill] sm:$0xff] }
 0x48a   : > { %v2537_v62 = vsel %vm8214_vm7, %v6690_v51, %v8212_v12  ;;  %v8224_v31 = vrot.slane %v8223_v40, %v4411_v36  ;;  %v8227_v51 = vrot.slane %v8223_v40, %v4413_v37  ;;  %v8231_v38 = vrot.slane %v8230_v13, %v4411_v36  ;;  %v8238_v12 = vld [vmem:[#allocation100_spill] sm:$0xff]  ;;  %v8241_v40 = vld [vmem:[#allocation101_spill] sm:$0xff] }
 0x48b   : > { %v8234_v45 = vrot.slane %v8230_v13, %v4413_v37  ;;  %v2519_v32 = vadd.f32 %v2517_v54, %v2500_v3  ;;  %v2520_v30 = vadd.f32 %v2518_v9, %v2501_v34  ;;  %vm8239_vm6 = vnez %v8238_v12  ;;  %v8247_v3 = vld [vmem:[#allocation76_spill] sm:$0xff]  ;;  %v8256_v17 = vld [vmem:[#allocation61_spill] sm:$0xff] }
 0x48c   : > { %vm7119_vm14 = vcmp.eq.s32.totalorder %v8224_v31, 1  ;;  %vm7126_vm15 = vcmp.eq.s32.totalorder %v8227_v51, 1  ;;  %vm7133_vm10 = vcmp.eq.s32.totalorder %v8231_v38, 1  ;;  %v3329_v43 = vsel %vm8239_vm6, %v8237_v16, 0.0  ;;  %v3349_v51 = vpop.permute.xlu1 %3348  ;;  %v8248_v34 = vld [vmem:[#allocation40_spill] sm:$0xff] }
 0x48d   : > { %vm7140_vm2 = vcmp.eq.s32.totalorder %v8234_v45, 1  ;;  %vm8242_vm9 = vnez %v8241_v40  ;;  %v2538_v13 = vsel %vm8239_vm6, %v2536_v63, 0.0  ;;  %v3338_v45 = vmul.f32 %v3336_v19, %v3329_v43  ;;  %v3362_v24 = vpop.permute.xlu0 %3361  ;;  %v8270_v9 = vld [vmem:[#allocation60_spill] sm:$0xff] }
 0x48e   : > { %v3330_v31 = vsel %vm8242_vm9, %v8240_v6, 0.0  ;;  %v2539_v38 = vsel %vm8242_vm9, %v2537_v62, 0.0  ;;  %vm7161_vm1 = vcmp.eq.s32.totalorder %v3424_v22, 1  ;;  %vm7168_vm5 = vcmp.eq.s32.totalorder %v3428_v1, 1  ;;  %v8251_v62 = vld [vmem:[#allocation26_spill] sm:$0xff] }
 0x48f   : > { %v3339_v29 = vmul.f32 %v3336_v19, %v3330_v31  ;;  %vm8249_vm0 = vcmp.lt.s32.totalorder %v5034_v58, 96  ;;  %vm8252_vm6 = vnez %v8251_v62  ;;  %vm8254_vm9 = vnez %v8253_v33 }
 0x490   : > { %v2555_v63 = vsel %vm8249_vm0, %v8248_v34, %v8247_v3  ;;  %vm8250_vm7 = vmmov %vm8249_vm0  ;;  %v3342_v19 = vsel %vm8252_vm6, %v6922_v35, 0.0  ;;  %v3343_v1 = vsel %vm8254_vm9, %v6926_v42, 0.0  ;;  %v3340_v12 = vadd.f32 %v3338_v45, %v3327_v21  ;;  %v8257_v45 = vld [vmem:[#allocation58_spill] sm:$0xff] }
 0x491   : > { %v2556_v22 = vsel %vm8250_vm7, %v8247_v3, %v8248_v34  ;;  %v3341_v43 = vadd.f32 %v3339_v29, %v3328_v52  ;;  %v3351_v40 = vmul.f32 %v3349_v51, %v3342_v19  ;;  %v3352_v31 = vmul.f32 %v3349_v51, %v3343_v1  ;;  %v3375_v34 = vpop.permute.xlu1 %3374 }
 0x492   : > { %v2530_v2 = vadd.f32 %v8255_v23, %v2519_v32  ;;  %v2531_v61 = vadd.f32 %v8256_v17, %v2520_v30  ;;  %v3355_v58 = vsel %vm8219_vm3, %v6946_v5, 0.0  ;;  %v3356_v3 = vsel %vm8222_vm11, %v6950_v0, 0.0 }
 0x493   : > { %v3353_v35 = vadd.f32 %v3351_v40, %v3340_v12  ;;  %v3354_v42 = vadd.f32 %v3352_v31, %v3341_v43  ;;  %v3364_v21 = vmul.f32 %v3362_v24, %v3355_v58  ;;  %v3365_v29 = vmul.f32 %v3362_v24, %v3356_v3 }
 0x494   : > { %v2557_v52 = vsel %vm8252_vm6, %v2555_v63, 0.0  ;;  %v2558_v23 = vsel %vm8254_vm9, %v2556_v22, 0.0  ;;  %v3368_v17 = vsel %vm7085_vm8, %v6992_v44, 0.0  ;;  %v3369_v5 = vsel %vm7092_vm12, %v6996_v53, 0.0  ;;  %v3388_v63 = vpop.permute.xlu0 %3387 }
 0x495   : > { %v3366_v0 = vadd.f32 %v3364_v21, %v3353_v35  ;;  %v3367_v32 = vadd.f32 %v3365_v29, %v3354_v42  ;;  %v3377_v30 = vmul.f32 %v3375_v34, %v3368_v17  ;;  %v3378_v51 = vmul.f32 %v3375_v34, %v3369_v5  ;;  %v3413_v19 = vpop.permute.xlu1 %3412 }
 0x496   : > { %v2547_v24 = vmul.f32 %v8257_v45, %v2538_v13  ;;  %v2548_v62 = vmul.f32 %v8257_v45, %v2539_v38  ;;  %v3381_v22 = vsel %vm7119_vm14, %v7034_v39, 0.0  ;;  %v3382_v44 = vsel %vm7126_vm15, %v7038_v47, 0.0  ;;  %v8262_v38 = vld [vmem:[#allocation83_spill] sm:$0xff]  ;;  %v8281_v13 = vld [vmem:[#allocation28_spill] sm:$0xff] }
 0x497   : > { %v3379_v33 = vadd.f32 %v3377_v30, %v3366_v0  ;;  %v3380_v53 = vadd.f32 %v3378_v51, %v3367_v32  ;;  %v3390_v35 = vmul.f32 %v3388_v63, %v3381_v22  ;;  %v3391_v42 = vmul.f32 %v3388_v63, %v3382_v44  ;;  %v8272_v30 = vld [vmem:[#allocation71_spill] sm:$0xff] }
 0x498   : > { %vm7212_vm0 = vcmp.eq.s32.totalorder %v3474_v56, 1  ;;  %vm7216_vm7 = vcmp.eq.s32.totalorder %v3478_v14, 1  ;;  %v2566_v12 = vmul.f32 %v8262_v38, %v2557_v52  ;;  %v2567_v39 = vmul.f32 %v8262_v38, %v2558_v23  ;;  %v3438_v34 = vpop.permute.xlu0 %3437  ;;  %v8273_v51 = vld [vmem:[#allocation47_spill] sm:$0xff] }
 0x499   : > { %v3406_v47 = vsel %vm7133_vm10, %v6793_v10, 0.0  ;;  %v3407_v43 = vsel %vm7140_vm2, %v6797_v55, 0.0  ;;  %v3392_v56 = vadd.f32 %v3390_v35, %v3379_v33  ;;  %v3393_v40 = vadd.f32 %v3391_v42, %v3380_v53  ;;  %v2602_v10 = vpop.permute.xlu1 %2601  ;;  %v8277_v42 = vld [vmem:[#allocation69_spill] sm:$0xff] }
 0x49a   : > { %v3415_v31 = vmul.f32 %v3413_v19, %v3406_v47  ;;  %v3416_v58 = vmul.f32 %v3413_v19, %v3407_v43  ;;  %v2549_v14 = vadd.f32 %v2547_v24, %v2530_v2  ;;  %v2550_v3 = vadd.f32 %v2548_v62, %v2531_v61 }
 0x49b   : > { %v3431_v21 = vsel %vm7161_vm1, %v6820_v60, 0.0  ;;  %v3432_v49 = vsel %vm7168_vm5, %v6824_v41, 0.0  ;;  %v8263_v2 = vrot.slane %v7078_v28, %v4411_v36  ;;  %v8266_v60 = vrot.slane %v7078_v28, %v4413_v37 }
 0x49c   : > { %v3417_v29 = vadd.f32 %v3415_v31, %v3392_v56  ;;  %v3418_v52 = vadd.f32 %v3416_v58, %v3393_v40  ;;  %v3440_v7 = vmul.f32 %v3438_v34, %v3431_v21  ;;  %v3441_v55 = vmul.f32 %v3438_v34, %v3432_v49  ;;  %v3463_v62 = vpop.permute.xlu0 %3462  ;;  %v8279_v31 = vld [vmem:[#allocation78_spill] sm:$0xff] }
 0x49d   : > { %v2568_v23 = vadd.f32 %v2566_v12, %v2549_v14  ;;  %v2569_v17 = vadd.f32 %v2567_v39, %v2550_v3  ;;  %vm7237_vm10 = vcmp.eq.s32.totalorder %v8263_v2, 1  ;;  %vm7244_vm2 = vcmp.eq.s32.totalorder %v8266_v60, 1  ;;  %v2627_v4 = vpop.permute.xlu1 %2626  ;;  %v8278_v12 = vld [vmem:[#allocation39_spill] sm:$0xff]  ;;  %v8280_v14 = vld [vmem:[#allocation50_spill] sm:$0xff] }
 0x49e   : > { %v8269_v41 = vsel %vm8219_vm3, %v8217_v27, 0.0  ;;  %v8271_v0 = vsel %vm8222_vm11, %v8220_v59, 0.0  ;;  %v2595_v28 = vsel %vm7085_vm8, %v8272_v30, 0.0  ;;  %v2596_v45 = vsel %vm7092_vm12, %v8273_v51, 0.0 }
 0x49f   : > { %v2579_v5 = vmul.f32 %v8270_v9, %v8269_v41  ;;  %v2580_v32 = vmul.f32 %v8270_v9, %v8271_v0  ;;  %v2604_v24 = vmul.f32 %v2602_v10, %v2595_v28  ;;  %v2605_v8 = vmul.f32 %v2602_v10, %v2596_v45  ;;  %v8283_v45 = vld [vmem:[#allocation11_spill] sm:$0xff] }
 0x4a0   : > { %v2620_v27 = vsel %vm7119_vm14, %v6970_v46, 0.0  ;;  %v2621_v59 = vsel %vm7126_vm15, %v6976_v15, 0.0  ;;  %v3442_v63 = vadd.f32 %v3440_v7, %v3417_v29  ;;  %v3443_v22 = vadd.f32 %v3441_v55, %v3418_v52  ;;  %v8276_v15 = vld [vmem:[#allocation38_spill] sm:$0xff]  ;;  %v3488_v47 = vpop.permute.xlu0 %3487  ;;  %v8282_v52 = vld [vmem:[#allocation29_spill] sm:$0xff] }
 0x4a1   : > { %v8274_v57 = vsel %vm6843_vm13, %v6485_v26, 0.0  ;;  %v8275_v44 = vsel %vm7001_vm4, %v6482_v50, 0.0  ;;  %v2581_v33 = vadd.f32 %v2579_v5, %v2568_v23  ;;  %v2582_v25 = vadd.f32 %v2580_v32, %v2569_v17  ;;  %v3513_v43 = vpop.permute.xlu1 %3512 }
 0x4a2   : > { %v3465_v18 = vmul.f32 %v3463_v62, %v8274_v57  ;;  %v3466_v19 = vmul.f32 %v3463_v62, %v8275_v44  ;;  %v2629_v46 = vmul.f32 %v2627_v4, %v2620_v27  ;;  %v2630_v53 = vmul.f32 %v2627_v4, %v2621_v59  ;;  %v8284_v62 = vld [vmem:[#allocation14_spill] sm:$0xff]  ;;  %v8285_v4 = vld [vmem:[#allocation13_spill] sm:$0xff] }
 0x4a3   : > { %v2190_v38 = vadd.f32 %v8277_v42, %v8276_v15  ;;  %v2191_v48 = vadd.f32 %v8277_v42, %v8278_v12  ;;  %v2606_v39 = vadd.f32 %v2604_v24, %v2581_v33  ;;  %v2607_v26 = vadd.f32 %v2605_v8, %v2582_v25  ;;  %v8286_v57 = vld [vmem:[#allocation17_spill] sm:$0xff]  ;;  %v8289_v42 = vld [vmem:[#allocation18_spill] sm:$0xff] }
 0x4a4   : > { %v3467_v35 = vadd.f32 %v3465_v18, %v3442_v63  ;;  %v3468_v20 = vadd.f32 %v3466_v19, %v3443_v22  ;;  %v3481_v50 = vsel %vm7212_vm0, %v8240_v6, 0.0  ;;  %v3482_v11 = vsel %vm7216_vm7, %v8237_v16, 0.0  ;;  %v2637_v29 = vpop.permute.xlu0 %2636  ;;  %v8287_v19 = vld [vmem:[#allocation12_spill] sm:$0xff] }
 0x4a5   : > { %v3490_v56 = vmul.f32 %v3488_v47, %v3481_v50  ;;  %v3491_v40 = vmul.f32 %v3488_v47, %v3482_v11  ;;  %v3506_v58 = vsel %vm7237_vm10, %v8279_v31, 0.0  ;;  %v3507_v3 = vsel %vm7244_vm2, %v8280_v14, 0.0  ;;  %v3523_v61 = vpop.permute.xlu1 %3522  ;;  %v8291_v11 = vld [vmem:[#allocation19_spill] sm:$0xff] }
 0x4a6   : > { %v2631_v34 = vadd.f32 %v2629_v46, %v2606_v39  ;;  %v2632_v21 = vadd.f32 %v2630_v53, %v2607_v26  ;;  %v3515_v6 = vmul.f32 %v3513_v43, %v3506_v58  ;;  %v3516_v10 = vmul.f32 %v3513_v43, %v3507_v3  ;;  %v8290_v26 = vld [vmem:[#allocation16_spill] sm:$0xff]  ;;  %v8292_v58 = vld [vmem:[#allocation21_spill] sm:$0xff] }
 0x4a7   : > { %v3492_v49 = vadd.f32 %v3490_v56, %v3467_v35  ;;  %v3493_v1 = vadd.f32 %v3491_v40, %v3468_v20  ;;  %v2192_v16 = vadd.f32 %v2190_v38, %v8281_v13  ;;  %v2193_v7 = vadd.f32 %v2191_v48, %v8282_v52  ;;  %v8288_v35 = vld [vmem:[#allocation15_spill] sm:$0xff] }
 0x4a8   : > { %v2639_v55 = vadd.f32 %v2637_v29, %v2631_v34  ;;  %v2640_v23 = vadd.f32 %v2637_v29, %v2632_v21  ;;  %v8293_v34 = vld [vmem:[#allocation20_spill] sm:$0xff] }
 0x4a9   : > { %v3517_v17 = vadd.f32 %v3515_v6, %v3492_v49  ;;  %v3518_v2 = vadd.f32 %v3516_v10, %v3493_v1  ;;  %v8294_v10 = vld [vmem:[#allocation22_spill] sm:$0xff] }
 0x4aa   : > { %v2641_v60 = vadd.f32 %v2639_v55, %v2192_v16  ;;  %v2642_v41 = vadd.f32 %v2640_v23, %v2193_v7  ;;  %v8295_v7 = vld [vmem:[#allocation23_spill] sm:$0xff] }
 0x4ab   : > { %v3525_v54 = vadd.f32 %v3523_v61, %v3517_v17  ;;  %v3526_v9 = vadd.f32 %v3523_v61, %v3518_v2  ;;  %v8296_v61 = vld [vmem:[#allocation24_spill] sm:$0xff] }
 0x4ad   : > { %v3527_v5 = vadd.f32 %v3525_v54, %v2641_v60  ;;  %v3528_v0 = vadd.f32 %v3526_v9, %v2642_v41 }
 0x4af   : > { %v3532_v32 = vrot.slane %v3527_v5, %v4411_v36  ;;  %v3536_v30 = vrot.slane %v3528_v0, %v4411_v36  ;;  %v3542_v28 = vrot.slane %v3527_v5, %v4413_v37  ;;  %v3546_v51 = vrot.slane %v3528_v0, %v4413_v37 }
 0x4b0   : > { %v3554_v24 = vrot.slane %v3527_v5, %v8283_v45  ;;  %v3558_v8 = vrot.slane %v3528_v0, %v8283_v45  ;;  %v3566_v27 = vrot.slane %v3527_v5, %v8284_v62  ;;  %v3570_v59 = vrot.slane %v3528_v0, %v8284_v62 }
 0x4b1   : > { %v3537_v63 = vmul.f32 %v3532_v32, %v8285_v4  ;;  %v3538_v22 = vmul.f32 %v3536_v30, %v8285_v4  ;;  %v3547_v18 = vmul.f32 %v3542_v28, %v8286_v57  ;;  %v3548_v44 = vmul.f32 %v3546_v51, %v8286_v57  ;;  %v8297_v32 = vld [vmem:[#allocation25_spill] sm:$0xff]  ;;  %v8298_v28 = vld [vmem:[#allocation74_spill] sm:$0xff]  ;;  %v8299_v51 = vld [vmem:[#allocation75_spill] sm:$0xff] }
 0x4b2   : > { %v3559_v33 = vmul.f32 %v3554_v24, %v8287_v19  ;;  %v3560_v25 = vmul.f32 %v3558_v8, %v8287_v19  ;;  %v3578_v20 = vrot.slane %v3527_v5, %v8288_v35  ;;  %v3582_v15 = vrot.slane %v3528_v0, %v8288_v35 }
 0x4b3   : > { %v3549_v46 = vadd.f32 %v3547_v18, %v3537_v63  ;;  %v3550_v53 = vadd.f32 %v3548_v44, %v3538_v22  ;;  %v3590_v38 = vrot.slane %v3527_v5, %v8289_v42  ;;  %v3594_v12 = vrot.slane %v3528_v0, %v8289_v42 }
 0x4b4   : > { %v3571_v47 = vmul.f32 %v3566_v27, %v8290_v26  ;;  %v3572_v50 = vmul.f32 %v3570_v59, %v8290_v26  ;;  %v3602_v43 = vrot.slane %v3527_v5, %v8291_v11  ;;  %v3606_v56 = vrot.slane %v3528_v0, %v8291_v11 }
 0x4b5   : > { %v3561_v48 = vadd.f32 %v3559_v33, %v3549_v46  ;;  %v3562_v39 = vadd.f32 %v3560_v25, %v3550_v53  ;;  %v3583_v14 = vmul.f32 %v3578_v20, %v8292_v58  ;;  %v3584_v3 = vmul.f32 %v3582_v15, %v8292_v58 }
 0x4b6   : > { %v3595_v21 = vmul.f32 %v3590_v38, %v8293_v34  ;;  %v3596_v49 = vmul.f32 %v3594_v12, %v8293_v34  ;;  %v3614_v29 = vrot.slane %v3527_v5, %v8294_v10  ;;  %v3618_v13 = vrot.slane %v3528_v0, %v8294_v10 }
 0x4b7   : > { %v3573_v40 = vadd.f32 %v3571_v47, %v3561_v48  ;;  %v3574_v31 = vadd.f32 %v3572_v50, %v3562_v39  ;;  %v3607_v55 = vmul.f32 %v3602_v43, %v8295_v7  ;;  %v3608_v23 = vmul.f32 %v3606_v56, %v8295_v7 }
 0x4b8   : > { %v3619_v60 = vmul.f32 %v3614_v29, %v8296_v61  ;;  %v3620_v41 = vmul.f32 %v3618_v13, %v8296_v61 }
 0x4b9   : > { %v3585_v1 = vadd.f32 %v3583_v14, %v3573_v40  ;;  %v3586_v6 = vadd.f32 %v3584_v3, %v3574_v31 }
 0x4bb   : > { %v3597_v16 = vadd.f32 %v3595_v21, %v3585_v1  ;;  %v3598_v52 = vadd.f32 %v3596_v49, %v3586_v6 }
 0x4bd   : > { %v3609_v17 = vadd.f32 %v3607_v55, %v3597_v16  ;;  %v3610_v2 = vadd.f32 %v3608_v23, %v3598_v52 }
 0x4bf   : > { %v3621_v54 = vadd.f32 %v3619_v60, %v3609_v17  ;;  %v3622_v9 = vadd.f32 %v3620_v41, %v3610_v2 }
 0x4c1   : > { %v3623_v30 = vadd.f32 %v3621_v54, %v8297_v32  ;;  %v3624_v5 = vadd.f32 %v3622_v9, %v8297_v32 }
 0x4c3   : > { %v3625_v0 = vmul.f32 %v3623_v30, %v8298_v28  ;;  %v3626_v24 = vmul.f32 %v3624_v5, %v8299_v51 }
 0x4c5   : > { %v3630_v8 = vrot.slane %v3625_v0, %v4411_v36  ;;  %v3634_v27 = vrot.slane %v3626_v24, %v4411_v36  ;;  %v3640_v59 = vrot.slane %v3625_v0, %v4413_v37  ;;  %v3644_v63 = vrot.slane %v3626_v24, %v4413_v37 }
 0x4c6   : > { %v3652_v22 = vrot.slane %v3625_v0, %v8283_v45  ;;  %v3656_v18 = vrot.slane %v3626_v24, %v8283_v45  ;;  %v3664_v44 = vrot.slane %v3625_v0, %v8284_v62  ;;  %v3668_v33 = vrot.slane %v3626_v24, %v8284_v62 }
 0x4c7   : > { %v3635_v25 = vmul.f32 %v3630_v8, %v8285_v4  ;;  %v3636_v46 = vmul.f32 %v3634_v27, %v8285_v4  ;;  %v3645_v53 = vmul.f32 %v3640_v59, %v8286_v57  ;;  %v3646_v36 = vmul.f32 %v3644_v63, %v8286_v57 }
 0x4c8   : > { %v3657_v20 = vmul.f32 %v3652_v22, %v8287_v19  ;;  %v3658_v37 = vmul.f32 %v3656_v18, %v8287_v19  ;;  %v3676_v45 = vrot.slane %v3625_v0, %v8288_v35  ;;  %v3680_v12 = vrot.slane %v3626_v24, %v8288_v35 }
 0x4c9   : > { %v3647_v15 = vadd.f32 %v3645_v53, %v3635_v25  ;;  %v3648_v38 = vadd.f32 %v3646_v36, %v3636_v46  ;;  %v3688_v62 = vrot.slane %v3625_v0, %v8289_v42  ;;  %v3692_v48 = vrot.slane %v3626_v24, %v8289_v42 }
 0x4ca   : > { %v3669_v57 = vmul.f32 %v3664_v44, %v8290_v26  ;;  %v3670_v47 = vmul.f32 %v3668_v33, %v8290_v26  ;;  %v3700_v19 = vrot.slane %v3625_v0, %v8291_v11  ;;  %v3704_v50 = vrot.slane %v3626_v24, %v8291_v11 }
 0x4cb   : > { %v3659_v4 = vadd.f32 %v3657_v20, %v3647_v15  ;;  %v3660_v39 = vadd.f32 %v3658_v37, %v3648_v38  ;;  %v3681_v40 = vmul.f32 %v3676_v45, %v8292_v58  ;;  %v3682_v35 = vmul.f32 %v3680_v12, %v8292_v58 }
 0x4cc   : > { %v3693_v42 = vmul.f32 %v3688_v62, %v8293_v34  ;;  %v3694_v31 = vmul.f32 %v3692_v48, %v8293_v34  ;;  %v3712_v26 = vrot.slane %v3625_v0, %v8294_v10  ;;  %v3716_v21 = vrot.slane %v3626_v24, %v8294_v10 }
 0x4cd   : > { %v3671_v43 = vadd.f32 %v3669_v57, %v3659_v4  ;;  %v3672_v56 = vadd.f32 %v3670_v47, %v3660_v39  ;;  %v3705_v1 = vmul.f32 %v3700_v19, %v8295_v7  ;;  %v3706_v6 = vmul.f32 %v3704_v50, %v8295_v7 }
 0x4ce   : > { %v3717_v13 = vmul.f32 %v3712_v26, %v8296_v61  ;;  %v3718_v34 = vmul.f32 %v3716_v21, %v8296_v61 }
 0x4cf   : > { %v3683_v14 = vadd.f32 %v3681_v40, %v3671_v43  ;;  %v3684_v3 = vadd.f32 %v3682_v35, %v3672_v56 }
 0x4d1   : > { %v3695_v11 = vadd.f32 %v3693_v42, %v3683_v14  ;;  %v3696_v49 = vadd.f32 %v3694_v31, %v3684_v3 }
 0x4d3   : > { %v3707_v58 = vadd.f32 %v3705_v1, %v3695_v11  ;;  %v3708_v29 = vadd.f32 %v3706_v6, %v3696_v49 }
 0x4d5   : > { %v3719_v16 = vadd.f32 %v3717_v13, %v3707_v58  ;;  %v3720_v52 = vadd.f32 %v3718_v34, %v3708_v29 }
 0x4d7   : > { %v3721_v10 = vadd.f32 %v3719_v16, %v8297_v32  ;;  %v3722_v55 = vadd.f32 %v3720_v52, %v8297_v32 }
 0x4d9   : > { %3723 = vst [vmem:[%s703_s25] sm:$0xff] %v3721_v10  ;;  %3724 = vst [vmem:[%s703_s25 + $0x8] sm:$0xff] %v3722_v55 }
 0x4da   : > { %4042 = shalt.err (!%p4039_p3)
}
 0x4db   : > { %s4043_s26 = scalar_lea.hbm %s7373_s0, 256  ;;  %s4047_s2 = scalar_lea.hbm %s7433_s23, 512 }
 0x4dc   : > { %p4044_p4 = scmp.ne.s32.totalorder %s7373_s0, %s4043_s26  ;;  %p4048_p9 = scmp.lt.s32.totalorder %s7373_s0, %s7433_s23 }
 0x4dd   : > { %p4049_p10 = scmp.lt.s32.totalorder %s4047_s2, %s4043_s26 }
 0x4de   : > { %p4045_p7 = pnand %p4044_p4, %p4294_p5 }
 0x4df   : > { %p4050_p11 = por %p4049_p10, %p4048_p9 }
 0x4e0   : > { %p4046_p8 = pneg %p4045_p7 }
 0x4e2   : > { %p4051_p12 = pnand %p4050_p11, %p4046_p8 }
 0x4e4   : > { %4054 = shalt.err (!%p4051_p12)
}
 0x4e5   : > { %3926 = dma.vmem_to_hbm [thread:$0]  (%p4294_p5), %s3741_s24, 256, %s7373_s0, %s3726_s1  }
 0x4e6 PF: > { %s8300_s3 = sld [smem:[#allocation7_spill]] }
 0x4e7   : > { %s8301_s28 = sld [smem:[#allocation5_spill]] }
 0x4ec   : > { %p3932_p13 = scmp.ge.s32.totalorder %s8300_s3, 2 }
 0x4ed   : > { %s3752_s8 = sand.u32 1, %s8301_s28  }
 0x4ee   : > { %p3929_p0 = pnand %p3932_p13, %p4298_p6  ;;  %s3753_s6 = scalar_lea.sflag [#allocation3], %s3752_s8 }
 0x4f0   : > { %p3930_p1 = pneg %p3929_p0 }
 0x4f2   : > { %4072 = dma.done.wait (%p3930_p1), %s3753_s6, 256  }
 0x4f3   : > { %4074 = vsyncadd (%p3930_p1), %s3753_s6, 4294967040  ;;  %s8303_s25 = sld [smem:[#allocation8_spill]]  ;;  %s8306_s4 = smov %s4081_s30 }
 0x4f4   : > { %s8304_s26 = sld [smem:[#allocation6_spill]] }
 0x4f5   : > { %s8305_s24 = sld [smem:[#allocation9_spill]] }
 0x4f9   : > { %p33_p2 = scmp.ge.s32.totalorder %s8303_s25, 4  }
 0x4fa   : > { %s8307_s30 = smov %s8304_s26 }
 0x4fb   :  { %35 = sbr.rel (!%p33_p2) target bundleno = 13 (0xd), region = 258 }
 0x500   :  { %3758 = vsyncpa [#allocation3], 1 }
 0x501   :  { %3760 = vsyncpa [#allocation3 + $0x1], 1 }

</bundles_post_ra>
